<compile_context>
chip_gen: v5e
topology: v5e:2x2
jax: 0.10.0
libtpu: 0.0.40
codegen_flags: <defaults>
</compile_context>

<pallas_src>
import numpy as np

import jax
import jax.numpy as jnp
from jax.experimental import pallas as pl
from jax.experimental.pallas import tpu as pltpu


# =========================================================================
# Pallas kernels
# =========================================================================
def _conv_pool_relu_kernel(x_ref, w_ref, b_ref, es_ref, os_ref, o_ref):
    """Fused valid conv (stride 1) + bias + 2x2/2 max-pool + ReLU, one image/step.

    x_ref : (1, H, W*Cin)            f32   image, channels minor (NHWC-flat)
    w_ref : (kh, 2, W*Cin, Wq*Cout)  bf16  banded conv weights; half 0 produces
                                           even output columns, half 1 odd ones
    b_ref : (1, Wq*Cout)             f32   bias tiled over the pooled width
    es_ref: (Hq, Ho)                 f32   0/1 matrix selecting even conv rows
    os_ref: (Hq, Ho)                 f32   0/1 matrix selecting odd  conv rows
    o_ref : (1, Hq, Wq*Cout)         f32   pooled + ReLU output (NHWC-flat)
    """
    kh = w_ref.shape[0]
    H = x_ref.shape[1]
    Ho = H - kh + 1
    acc_e = None
    acc_o = None
    for di in range(kh):
        lhs = x_ref[0, di:di + Ho, :].astype(jnp.bfloat16)          # (Ho, W*Cin)
        de = jnp.dot(lhs, w_ref[di, 0], preferred_element_type=jnp.float32)
        do = jnp.dot(lhs, w_ref[di, 1], preferred_element_type=jnp.float32)
        acc_e = de if acc_e is None else acc_e + de
        acc_o = do if acc_o is None else acc_o + do
    # width pooling: max over even / odd output columns
    cp = jnp.maximum(acc_e, acc_o)                                  # (Ho, Wq*Cout)
    # height pooling: max over even / odd conv rows (0/1 selection matmuls)
    pe = jnp.dot(es_ref[...], cp, preferred_element_type=jnp.float32)
    po = jnp.dot(os_ref[...], cp, preferred_element_type=jnp.float32)
    out = jnp.maximum(jnp.maximum(pe, po) + b_ref[...], 0.0)        # bias + ReLU
    o_ref[0] = out.astype(o_ref.dtype)


def conv_pool_relu(x, cp):
    """x: (N, H, W*Cin) f32 -> (N, Hq, Wq*Cout) f32, one grid step per image."""
    wt, bias, esel, osel = cp['wt'], cp['b'], cp['esel'], cp['osel']
    N, H, WC = x.shape
    WqC = wt.shape[3]
    Hq = esel.shape[0]
    return pl.pallas_call(
        _conv_pool_relu_kernel,
        out_shape=jax.ShapeDtypeStruct((N, Hq, WqC), jnp.float32),
        grid=(N,),
        in_specs=[
            pl.BlockSpec((1, H, WC), lambda n: (n, 0, 0)),
            pl.BlockSpec(wt.shape, lambda n: (0, 0, 0, 0)),
            pl.BlockSpec(bias.shape, lambda n: (0, 0)),
            pl.BlockSpec(esel.shape, lambda n: (0, 0)),
            pl.BlockSpec(osel.shape, lambda n: (0, 0)),
        ],
        out_specs=pl.BlockSpec((1, Hq, WqC), lambda n: (n, 0, 0)),
        compiler_params=pltpu.CompilerParams(
            dimension_semantics=("parallel",)),
    )(x, wt, bias, esel, osel)


def _fc_loc_kernel(x_ref, w1_ref, b1_ref, w2_ref, b2_ref, o_ref):
    """theta = (relu(x @ w1 + b1)) @ w2 + b2 — both linears fused."""
    h = jnp.dot(x_ref[...].astype(jnp.bfloat16), w1_ref[...],
                preferred_element_type=jnp.float32)
    h = jnp.maximum(h + b1_ref[...], 0.0)
    t = jnp.dot(h.astype(jnp.bfloat16), w2_ref[...],
                preferred_element_type=jnp.float32)
    o_ref[...] = t + b2_ref[...]


def fc_loc_fused(x, w1, b1, w2, b2):
    N = x.shape[0]
    return pl.pallas_call(
        _fc_loc_kernel,
        out_shape=jax.ShapeDtypeStruct((N, w2.shape[1]), jnp.float32),
    )(x, w1, b1, w2, b2)


def _head_kernel(x_ref, w1_ref, b1_ref, w2_ref, b2_ref, o_ref):
    """log_softmax((relu(x @ w1 + b1)) @ w2 + b2) — fc1+fc2+log_softmax fused."""
    h = jnp.dot(x_ref[...].astype(jnp.bfloat16), w1_ref[...],
                preferred_element_type=jnp.float32)
    h = jnp.maximum(h + b1_ref[...], 0.0)
    logits = jnp.dot(h.astype(jnp.bfloat16), w2_ref[...],
                     preferred_element_type=jnp.float32) + b2_ref[...]
    m = jnp.max(logits, axis=-1, keepdims=True)
    e = jnp.exp(logits - m)
    s = jnp.sum(e, axis=-1, keepdims=True)
    o_ref[...] = logits - m - jnp.log(s)


def head_fused(x, w1, b1, w2, b2):
    N = x.shape[0]
    return pl.pallas_call(
        _head_kernel,
        out_shape=jax.ShapeDtypeStruct((N, w2.shape[1]), jnp.float32),
    )(x, w1, b1, w2, b2)


# =========================================================================
# JAX glue: STN affine grid + bilinear sampling (data-dependent gather)
# =========================================================================
def affine_grid(theta, H, W):
    """F.affine_grid, align_corners=False. theta:(N,2,3) -> (N,H,W,2)=(x,y)."""
    xs = (2.0 * jnp.arange(W, dtype=jnp.float32) + 1.0) / W - 1.0
    ys = (2.0 * jnp.arange(H, dtype=jnp.float32) + 1.0) / H - 1.0
    xg, yg = jnp.meshgrid(xs, ys)                                   # (H, W)
    base = jnp.stack([xg, yg, jnp.ones_like(xg)], axis=-1)          # (H, W, 3)
    return jnp.einsum('hwk,nik->nhwi', base, theta)


def grid_sample_nhwc(x, grid):
    """F.grid_sample, bilinear, padding_mode='zeros', align_corners=False."""
    # TODO(synk): data-dependent bilinear gather kept in JAX glue (no clean Pallas gather).
    N, H, W, C = x.shape
    gx, gy = grid[..., 0], grid[..., 1]
    ix = ((gx + 1.0) * W - 1.0) / 2.0
    iy = ((gy + 1.0) * H - 1.0) / 2.0
    ix0, iy0 = jnp.floor(ix), jnp.floor(iy)
    ix1, iy1 = ix0 + 1.0, iy0 + 1.0
    wx1, wy1 = ix - ix0, iy - iy0
    wx0, wy0 = 1.0 - wx1, 1.0 - wy1
    n_idx = jnp.arange(N)[:, None, None]

    def gather(ixf, iyf):
        valid = (ixf >= 0) & (ixf <= W - 1) & (iyf >= 0) & (iyf <= H - 1)
        ixc = jnp.clip(ixf, 0, W - 1).astype(jnp.int32)
        iyc = jnp.clip(iyf, 0, H - 1).astype(jnp.int32)
        vals = x[n_idx, iyc, ixc]                                   # (N,H,W,C)
        return vals * valid[..., None].astype(x.dtype)

    return (gather(ix0, iy0) * (wx0 * wy0)[..., None]
            + gather(ix1, iy0) * (wx1 * wy0)[..., None]
            + gather(ix0, iy1) * (wx0 * wy1)[..., None]
            + gather(ix1, iy1) * (wx1 * wy1)[..., None])


# =========================================================================
# Parameters: PyTorch-style init, then host-side lowering to kernel operands
# =========================================================================
def init_params(key, input_channels=1):
    def u(k, shape, fan_in):
        bound = 1.0 / float(fan_in) ** 0.5
        return jax.random.uniform(k, shape, jnp.float32, -bound, bound)

    ks = jax.random.split(key, 14)
    p = {}
    p['conv1_w'] = u(ks[0], (20, input_channels, 5, 5), input_channels * 25)
    p['conv1_b'] = u(ks[1], (20,), input_channels * 25)
    p['conv2_w'] = u(ks[2], (50, 20, 5, 5), 20 * 25)
    p['conv2_b'] = u(ks[3], (50,), 20 * 25)
    p['fc1_w'] = u(ks[4], (500, 800), 800)
    p['fc1_b'] = u(ks[5], (500,), 800)
    p['fc2_w'] = u(ks[6], (10, 500), 500)
    p['fc2_b'] = u(ks[7], (10,), 500)
    p['loc_conv1_w'] = u(ks[8], (8, input_channels, 7, 7), input_channels * 49)
    p['loc_conv1_b'] = u(ks[9], (8,), input_channels * 49)
    p['loc_conv2_w'] = u(ks[10], (10, 8, 5, 5), 8 * 25)
    p['loc_conv2_b'] = u(ks[11], (10,), 8 * 25)
    p['fc_loc1_w'] = u(ks[12], (32, 90), 90)
    p['fc_loc1_b'] = u(ks[13], (32,), 90)
    # exactly like the PyTorch module: identity affine transform at init
    p['fc_loc2_w'] = jnp.zeros((6, 32), jnp.float32)
    p['fc_loc2_b'] = jnp.array([1, 0, 0, 0, 1, 0], jnp.float32)
    return p


def _prep_conv(w, b, H, W):
    """Pre-lower one conv(+2x2 pool) to banded-matmul operands (host-side, once).

    Output columns of the banded weight are ordered (q, co) where wo = 2q + half,
    so width pooling is just max(acc_even_half, acc_odd_half) inside the kernel.
    """
    w = np.asarray(w, np.float32)                    # (Cout, Cin, kh, kw)
    b = np.asarray(b, np.float32)
    Cout, Cin, kh, kw = w.shape
    Ho, Wo = H - kh + 1, W - kw + 1
    Hq, Wq = Ho // 2, Wo // 2                        # floor-mode 2x2 pooling
    wt = np.zeros((kh, 2, W, Cin, Wq, Cout), np.float32)
    for di in range(kh):
        for dj in range(kw):
            wsl = w[:, :, di, dj].T                  # (Cin, Cout)
            for half in range(2):
                for q in range(Wq):
                    wt[di, half, 2 * q + half + dj, :, q, :] += wsl
    wt = wt.reshape(kh, 2, W * Cin, Wq * Cout)
    bias_t = np.tile(b, Wq).reshape(1, Wq * Cout)
    esel = np.zeros((Hq, Ho), np.float32)
    osel = np.zeros((Hq, Ho), np.float32)
    esel[np.arange(Hq), 2 * np.arange(Hq)] = 1.0
    osel[np.arange(Hq), 2 * np.arange(Hq) + 1] = 1.0
    return dict(wt=jnp.asarray(wt, jnp.bfloat16),
                b=jnp.asarray(bias_t, jnp.float32),
                esel=jnp.asarray(esel, jnp.float32),
                osel=jnp.asarray(osel, jnp.float32))


def prepare_params(raw):
    """Host-side weight preprocessing (runs once, outside the jitted forward)."""
    def lin(wname, bname):
        w = jnp.asarray(np.asarray(raw[wname]).T, jnp.bfloat16)      # (in, out)
        b = jnp.asarray(np.asarray(raw[bname]).reshape(1, -1), jnp.float32)
        return w, b

    p = {}
    p['loc1'] = _prep_conv(raw['loc_conv1_w'], raw['loc_conv1_b'], 28, 28)
    p['loc2'] = _prep_conv(raw['loc_conv2_w'], raw['loc_conv2_b'], 11, 11)
    p['conv1'] = _prep_conv(raw['conv1_w'], raw['conv1_b'], 28, 28)
    p['conv2'] = _prep_conv(raw['conv2_w'], raw['conv2_b'], 12, 12)
    # NOTE: features are flattened in (h, w, c) order instead of PyTorch's
    # (c, h, w); since fc1 / fc_loc1 weights are randomly initialized here this
    # is an equivalent reparameterization of the same architecture.
    p['fc_loc1_w'], p['fc_loc1_b'] = lin('fc_loc1_w', 'fc_loc1_b')
    p['fc_loc2_w'], p['fc_loc2_b'] = lin('fc_loc2_w', 'fc_loc2_b')
    p['fc1_w'], p['fc1_b'] = lin('fc1_w', 'fc1_b')
    p['fc2_w'], p['fc2_b'] = lin('fc2_w', 'fc2_b')
    return p


# =========================================================================
# Forward pass (matches Net.forward)
# =========================================================================
def net_forward(params, x):
    N, C, H, W = x.shape
    x_nhwc = jnp.transpose(x, (0, 2, 3, 1))                  # (N,H,W,C) f32
    xf = x_nhwc.reshape(N, H, W * C)

    # ---- STN localization -> theta ----
    xs = conv_pool_relu(xf, params['loc1'])                  # (N, 11, 11*8)
    xs = conv_pool_relu(xs, params['loc2'])                  # (N, 3, 3*10)
    xs = xs.reshape(N, 90)
    theta = fc_loc_fused(xs, params['fc_loc1_w'], params['fc_loc1_b'],
                         params['fc_loc2_w'], params['fc_loc2_b'])
    theta = theta.reshape(N, 2, 3)

    # ---- STN resample (JAX glue: affine_grid + bilinear grid_sample) ----
    grid = affine_grid(theta, H, W)
    xt = grid_sample_nhwc(x_nhwc, grid)                      # (N,H,W,C) f32
    xt = xt.reshape(N, H, W * C)

    # ---- main classifier ----
    h = conv_pool_relu(xt, params['conv1'])                  # (N, 12, 12*20)
    h = conv_pool_relu(h, params['conv2'])                   # (N, 4, 4*50)
    feat = h.reshape(N, 4 * 4 * 50)
    return head_fused(feat, params['fc1_w'], params['fc1_b'],
                      params['fc2_w'], params['fc2_b'])      # (N, 10) log-probs


if __name__ == "__main__":
    key = jax.random.PRNGKey(0)
    k_param, k_x = jax.random.split(key)
    input_channels = 1
    # 28x28 spatial size is required by the module's hard-coded fc shapes.
    x = jax.random.normal(k_x, (2, input_channels, 28, 28), jnp.float32)
    raw = init_params(k_param, input_channels)
    params = prepare_params(raw)

    out = jax.jit(net_forward)(params, x)
    out = jax.block_until_ready(out)

    assert out.shape == (2, 10), out.shape
    probs_sum = jnp.sum(jnp.exp(out), axis=1)
    assert bool(jnp.all(jnp.abs(probs_sum - 1.0) < 1e-4)), probs_sum
    print("KERNEL_OK")
</pallas_src>

<mosaic_0001>
module attributes {stable_mosaic.version = 11 : i64} {
  func.func @_conv_pool_relu_kernel(%arg0: i32, %arg1: memref<1x28x28xf32, #tpu.memory_space<vmem>>, %arg2: memref<7x2x28x88xbf16, #tpu.memory_space<vmem>>, %arg3: memref<1x88xf32, #tpu.memory_space<vmem>>, %arg4: memref<11x22xf32, #tpu.memory_space<vmem>>, %arg5: memref<11x22xf32, #tpu.memory_space<vmem>>, %arg6: memref<1x11x88xf32, #tpu.memory_space<vmem>>) attributes {dimension_semantics = [#tpu.dimension_semantics<parallel>], iteration_bounds = array<i64: 2>, scalar_prefetch = 0 : i64, scratch_operands = 0 : i64, tpu.core_type = #tpu.core_type<tc>, window_params = [{transform_indices = @transform_0, window_bounds = array<i64: 1, 28, 28>}, {pipeline_mode = #tpu.pipeline_mode<synchronous>, transform_indices = @transform_1, window_bounds = array<i64: 7, 2, 28, 88>}, {pipeline_mode = #tpu.pipeline_mode<synchronous>, transform_indices = @transform_2, window_bounds = array<i64: 1, 88>}, {pipeline_mode = #tpu.pipeline_mode<synchronous>, transform_indices = @transform_3, window_bounds = array<i64: 11, 22>}, {pipeline_mode = #tpu.pipeline_mode<synchronous>, transform_indices = @transform_4, window_bounds = array<i64: 11, 22>}, {transform_indices = @transform_5, window_bounds = array<i64: 1, 11, 88>}]} {
    %c0 = arith.constant 0 : index
    %c0_0 = arith.constant 0 : index
    %c0_1 = arith.constant 0 : index
    %0 = vector.load %arg1[%c0, %c0_0, %c0_1] : memref<1x28x28xf32, #tpu.memory_space<vmem>>, vector<1x22x28xf32>
    %1 = vector.shape_cast %0 : vector<1x22x28xf32> to vector<22x28xf32>
    %2 = arith.truncf %1 : vector<22x28xf32> to vector<22x28xbf16>
    %c0_2 = arith.constant 0 : index
    %c0_3 = arith.constant 0 : index
    %c0_4 = arith.constant 0 : index
    %c0_5 = arith.constant 0 : index
    %3 = vector.load %arg2[%c0_2, %c0_3, %c0_4, %c0_5] : memref<7x2x28x88xbf16, #tpu.memory_space<vmem>>, vector<1x1x28x88xbf16>
    %4 = vector.shape_cast %3 : vector<1x1x28x88xbf16> to vector<28x88xbf16>
    %cst = arith.constant dense<0.000000e+00> : vector<22x88xf32>
    %5 = tpu.matmul %2, %4, %cst {dimension_numbers = #tpu.dot_dimension_numbers<[1], [0], [0], [1], [0, 0, 1, 1], [], []>} : vector<22x28xbf16>, vector<28x88xbf16>, vector<22x88xf32> -> vector<22x88xf32>
    %c0_6 = arith.constant 0 : index
    %c1 = arith.constant 1 : index
    %c0_7 = arith.constant 0 : index
    %c0_8 = arith.constant 0 : index
    %6 = vector.load %arg2[%c0_6, %c1, %c0_7, %c0_8] : memref<7x2x28x88xbf16, #tpu.memory_space<vmem>>, vector<1x1x28x88xbf16>
    %7 = vector.shape_cast %6 : vector<1x1x28x88xbf16> to vector<28x88xbf16>
    %cst_9 = arith.constant dense<0.000000e+00> : vector<22x88xf32>
    %8 = tpu.matmul %2, %7, %cst_9 {dimension_numbers = #tpu.dot_dimension_numbers<[1], [0], [0], [1], [0, 0, 1, 1], [], []>} : vector<22x28xbf16>, vector<28x88xbf16>, vector<22x88xf32> -> vector<22x88xf32>
    %c0_10 = arith.constant 0 : index
    %c1_11 = arith.constant 1 : index
    %c0_12 = arith.constant 0 : index
    %9 = vector.load %arg1[%c0_10, %c1_11, %c0_12] : memref<1x28x28xf32, #tpu.memory_space<vmem>>, vector<1x22x28xf32>
    %10 = vector.shape_cast %9 : vector<1x22x28xf32> to vector<22x28xf32>
    %11 = arith.truncf %10 : vector<22x28xf32> to vector<22x28xbf16>
    %c1_13 = arith.constant 1 : index
    %c0_14 = arith.constant 0 : index
    %c0_15 = arith.constant 0 : index
    %c0_16 = arith.constant 0 : index
    %12 = vector.load %arg2[%c1_13, %c0_14, %c0_15, %c0_16] : memref<7x2x28x88xbf16, #tpu.memory_space<vmem>>, vector<1x1x28x88xbf16>
    %13 = vector.shape_cast %12 : vector<1x1x28x88xbf16> to vector<28x88xbf16>
    %cst_17 = arith.constant dense<0.000000e+00> : vector<22x88xf32>
    %14 = tpu.matmul %11, %13, %cst_17 {dimension_numbers = #tpu.dot_dimension_numbers<[1], [0], [0], [1], [0, 0, 1, 1], [], []>} : vector<22x28xbf16>, vector<28x88xbf16>, vector<22x88xf32> -> vector<22x88xf32>
    %c1_18 = arith.constant 1 : index
    %c1_19 = arith.constant 1 : index
    %c0_20 = arith.constant 0 : index
    %c0_21 = arith.constant 0 : index
    %15 = vector.load %arg2[%c1_18, %c1_19, %c0_20, %c0_21] : memref<7x2x28x88xbf16, #tpu.memory_space<vmem>>, vector<1x1x28x88xbf16>
    %16 = vector.shape_cast %15 : vector<1x1x28x88xbf16> to vector<28x88xbf16>
    %cst_22 = arith.constant dense<0.000000e+00> : vector<22x88xf32>
    %17 = tpu.matmul %11, %16, %cst_22 {dimension_numbers = #tpu.dot_dimension_numbers<[1], [0], [0], [1], [0, 0, 1, 1], [], []>} : vector<22x28xbf16>, vector<28x88xbf16>, vector<22x88xf32> -> vector<22x88xf32>
    %18 = arith.addf %5, %14 : vector<22x88xf32>
    %19 = arith.addf %8, %17 : vector<22x88xf32>
    %c0_23 = arith.constant 0 : index
    %c2 = arith.constant 2 : index
    %c0_24 = arith.constant 0 : index
    %20 = vector.load %arg1[%c0_23, %c2, %c0_24] : memref<1x28x28xf32, #tpu.memory_space<vmem>>, vector<1x22x28xf32>
    %21 = vector.shape_cast %20 : vector<1x22x28xf32> to vector<22x28xf32>
    %22 = arith.truncf %21 : vector<22x28xf32> to vector<22x28xbf16>
    %c2_25 = arith.constant 2 : index
    %c0_26 = arith.constant 0 : index
    %c0_27 = arith.constant 0 : index
    %c0_28 = arith.constant 0 : index
    %23 = vector.load %arg2[%c2_25, %c0_26, %c0_27, %c0_28] : memref<7x2x28x88xbf16, #tpu.memory_space<vmem>>, vector<1x1x28x88xbf16>
    %24 = vector.shape_cast %23 : vector<1x1x28x88xbf16> to vector<28x88xbf16>
    %cst_29 = arith.constant dense<0.000000e+00> : vector<22x88xf32>
    %25 = tpu.matmul %22, %24, %cst_29 {dimension_numbers = #tpu.dot_dimension_numbers<[1], [0], [0], [1], [0, 0, 1, 1], [], []>} : vector<22x28xbf16>, vector<28x88xbf16>, vector<22x88xf32> -> vector<22x88xf32>
    %c2_30 = arith.constant 2 : index
    %c1_31 = arith.constant 1 : index
    %c0_32 = arith.constant 0 : index
    %c0_33 = arith.constant 0 : index
    %26 = vector.load %arg2[%c2_30, %c1_31, %c0_32, %c0_33] : memref<7x2x28x88xbf16, #tpu.memory_space<vmem>>, vector<1x1x28x88xbf16>
    %27 = vector.shape_cast %26 : vector<1x1x28x88xbf16> to vector<28x88xbf16>
    %cst_34 = arith.constant dense<0.000000e+00> : vector<22x88xf32>
    %28 = tpu.matmul %22, %27, %cst_34 {dimension_numbers = #tpu.dot_dimension_numbers<[1], [0], [0], [1], [0, 0, 1, 1], [], []>} : vector<22x28xbf16>, vector<28x88xbf16>, vector<22x88xf32> -> vector<22x88xf32>
    %29 = arith.addf %18, %25 : vector<22x88xf32>
    %30 = arith.addf %19, %28 : vector<22x88xf32>
    %c0_35 = arith.constant 0 : index
    %c3 = arith.constant 3 : index
    %c0_36 = arith.constant 0 : index
    %31 = vector.load %arg1[%c0_35, %c3, %c0_36] : memref<1x28x28xf32, #tpu.memory_space<vmem>>, vector<1x22x28xf32>
    %32 = vector.shape_cast %31 : vector<1x22x28xf32> to vector<22x28xf32>
    %33 = arith.truncf %32 : vector<22x28xf32> to vector<22x28xbf16>
    %c3_37 = arith.constant 3 : index
    %c0_38 = arith.constant 0 : index
    %c0_39 = arith.constant 0 : index
    %c0_40 = arith.constant 0 : index
    %34 = vector.load %arg2[%c3_37, %c0_38, %c0_39, %c0_40] : memref<7x2x28x88xbf16, #tpu.memory_space<vmem>>, vector<1x1x28x88xbf16>
    %35 = vector.shape_cast %34 : vector<1x1x28x88xbf16> to vector<28x88xbf16>
    %cst_41 = arith.constant dense<0.000000e+00> : vector<22x88xf32>
    %36 = tpu.matmul %33, %35, %cst_41 {dimension_numbers = #tpu.dot_dimension_numbers<[1], [0], [0], [1], [0, 0, 1, 1], [], []>} : vector<22x28xbf16>, vector<28x88xbf16>, vector<22x88xf32> -> vector<22x88xf32>
    %c3_42 = arith.constant 3 : index
    %c1_43 = arith.constant 1 : index
    %c0_44 = arith.constant 0 : index
    %c0_45 = arith.constant 0 : index
    %37 = vector.load %arg2[%c3_42, %c1_43, %c0_44, %c0_45] : memref<7x2x28x88xbf16, #tpu.memory_space<vmem>>, vector<1x1x28x88xbf16>
    %38 = vector.shape_cast %37 : vector<1x1x28x88xbf16> to vector<28x88xbf16>
    %cst_46 = arith.constant dense<0.000000e+00> : vector<22x88xf32>
    %39 = tpu.matmul %33, %38, %cst_46 {dimension_numbers = #tpu.dot_dimension_numbers<[1], [0], [0], [1], [0, 0, 1, 1], [], []>} : vector<22x28xbf16>, vector<28x88xbf16>, vector<22x88xf32> -> vector<22x88xf32>
    %40 = arith.addf %29, %36 : vector<22x88xf32>
    %41 = arith.addf %30, %39 : vector<22x88xf32>
    %c0_47 = arith.constant 0 : index
    %c4 = arith.constant 4 : index
    %c0_48 = arith.constant 0 : index
    %42 = vector.load %arg1[%c0_47, %c4, %c0_48] : memref<1x28x28xf32, #tpu.memory_space<vmem>>, vector<1x22x28xf32>
    %43 = vector.shape_cast %42 : vector<1x22x28xf32> to vector<22x28xf32>
    %44 = arith.truncf %43 : vector<22x28xf32> to vector<22x28xbf16>
    %c4_49 = arith.constant 4 : index
    %c0_50 = arith.constant 0 : index
    %c0_51 = arith.constant 0 : index
    %c0_52 = arith.constant 0 : index
    %45 = vector.load %arg2[%c4_49, %c0_50, %c0_51, %c0_52] : memref<7x2x28x88xbf16, #tpu.memory_space<vmem>>, vector<1x1x28x88xbf16>
    %46 = vector.shape_cast %45 : vector<1x1x28x88xbf16> to vector<28x88xbf16>
    %cst_53 = arith.constant dense<0.000000e+00> : vector<22x88xf32>
    %47 = tpu.matmul %44, %46, %cst_53 {dimension_numbers = #tpu.dot_dimension_numbers<[1], [0], [0], [1], [0, 0, 1, 1], [], []>} : vector<22x28xbf16>, vector<28x88xbf16>, vector<22x88xf32> -> vector<22x88xf32>
    %c4_54 = arith.constant 4 : index
    %c1_55 = arith.constant 1 : index
    %c0_56 = arith.constant 0 : index
    %c0_57 = arith.constant 0 : index
    %48 = vector.load %arg2[%c4_54, %c1_55, %c0_56, %c0_57] : memref<7x2x28x88xbf16, #tpu.memory_space<vmem>>, vector<1x1x28x88xbf16>
    %49 = vector.shape_cast %48 : vector<1x1x28x88xbf16> to vector<28x88xbf16>
    %cst_58 = arith.constant dense<0.000000e+00> : vector<22x88xf32>
    %50 = tpu.matmul %44, %49, %cst_58 {dimension_numbers = #tpu.dot_dimension_numbers<[1], [0], [0], [1], [0, 0, 1, 1], [], []>} : vector<22x28xbf16>, vector<28x88xbf16>, vector<22x88xf32> -> vector<22x88xf32>
    %51 = arith.addf %40, %47 : vector<22x88xf32>
    %52 = arith.addf %41, %50 : vector<22x88xf32>
    %c0_59 = arith.constant 0 : index
    %c5 = arith.constant 5 : index
    %c0_60 = arith.constant 0 : index
    %53 = vector.load %arg1[%c0_59, %c5, %c0_60] : memref<1x28x28xf32, #tpu.memory_space<vmem>>, vector<1x22x28xf32>
    %54 = vector.shape_cast %53 : vector<1x22x28xf32> to vector<22x28xf32>
    %55 = arith.truncf %54 : vector<22x28xf32> to vector<22x28xbf16>
    %c5_61 = arith.constant 5 : index
    %c0_62 = arith.constant 0 : index
    %c0_63 = arith.constant 0 : index
    %c0_64 = arith.constant 0 : index
    %56 = vector.load %arg2[%c5_61, %c0_62, %c0_63, %c0_64] : memref<7x2x28x88xbf16, #tpu.memory_space<vmem>>, vector<1x1x28x88xbf16>
    %57 = vector.shape_cast %56 : vector<1x1x28x88xbf16> to vector<28x88xbf16>
    %cst_65 = arith.constant dense<0.000000e+00> : vector<22x88xf32>
    %58 = tpu.matmul %55, %57, %cst_65 {dimension_numbers = #tpu.dot_dimension_numbers<[1], [0], [0], [1], [0, 0, 1, 1], [], []>} : vector<22x28xbf16>, vector<28x88xbf16>, vector<22x88xf32> -> vector<22x88xf32>
    %c5_66 = arith.constant 5 : index
    %c1_67 = arith.constant 1 : index
    %c0_68 = arith.constant 0 : index
    %c0_69 = arith.constant 0 : index
    %59 = vector.load %arg2[%c5_66, %c1_67, %c0_68, %c0_69] : memref<7x2x28x88xbf16, #tpu.memory_space<vmem>>, vector<1x1x28x88xbf16>
    %60 = vector.shape_cast %59 : vector<1x1x28x88xbf16> to vector<28x88xbf16>
    %cst_70 = arith.constant dense<0.000000e+00> : vector<22x88xf32>
    %61 = tpu.matmul %55, %60, %cst_70 {dimension_numbers = #tpu.dot_dimension_numbers<[1], [0], [0], [1], [0, 0, 1, 1], [], []>} : vector<22x28xbf16>, vector<28x88xbf16>, vector<22x88xf32> -> vector<22x88xf32>
    %62 = arith.addf %51, %58 : vector<22x88xf32>
    %63 = arith.addf %52, %61 : vector<22x88xf32>
    %c0_71 = arith.constant 0 : index
    %c6 = arith.constant 6 : index
    %c0_72 = arith.constant 0 : index
    %64 = vector.load %arg1[%c0_71, %c6, %c0_72] : memref<1x28x28xf32, #tpu.memory_space<vmem>>, vector<1x22x28xf32>
    %65 = vector.shape_cast %64 : vector<1x22x28xf32> to vector<22x28xf32>
    %66 = arith.truncf %65 : vector<22x28xf32> to vector<22x28xbf16>
    %c6_73 = arith.constant 6 : index
    %c0_74 = arith.constant 0 : index
    %c0_75 = arith.constant 0 : index
    %c0_76 = arith.constant 0 : index
    %67 = vector.load %arg2[%c6_73, %c0_74, %c0_75, %c0_76] : memref<7x2x28x88xbf16, #tpu.memory_space<vmem>>, vector<1x1x28x88xbf16>
    %68 = vector.shape_cast %67 : vector<1x1x28x88xbf16> to vector<28x88xbf16>
    %cst_77 = arith.constant dense<0.000000e+00> : vector<22x88xf32>
    %69 = tpu.matmul %66, %68, %cst_77 {dimension_numbers = #tpu.dot_dimension_numbers<[1], [0], [0], [1], [0, 0, 1, 1], [], []>} : vector<22x28xbf16>, vector<28x88xbf16>, vector<22x88xf32> -> vector<22x88xf32>
    %c6_78 = arith.constant 6 : index
    %c1_79 = arith.constant 1 : index
    %c0_80 = arith.constant 0 : index
    %c0_81 = arith.constant 0 : index
    %70 = vector.load %arg2[%c6_78, %c1_79, %c0_80, %c0_81] : memref<7x2x28x88xbf16, #tpu.memory_space<vmem>>, vector<1x1x28x88xbf16>
    %71 = vector.shape_cast %70 : vector<1x1x28x88xbf16> to vector<28x88xbf16>
    %cst_82 = arith.constant dense<0.000000e+00> : vector<22x88xf32>
    %72 = tpu.matmul %66, %71, %cst_82 {dimension_numbers = #tpu.dot_dimension_numbers<[1], [0], [0], [1], [0, 0, 1, 1], [], []>} : vector<22x28xbf16>, vector<28x88xbf16>, vector<22x88xf32> -> vector<22x88xf32>
    %73 = arith.addf %62, %69 : vector<22x88xf32>
    %74 = arith.addf %63, %72 : vector<22x88xf32>
    %75 = arith.maximumf %73, %74 : vector<22x88xf32>
    %c0_83 = arith.constant 0 : index
    %c0_84 = arith.constant 0 : index
    %76 = vector.load %arg4[%c0_83, %c0_84] : memref<11x22xf32, #tpu.memory_space<vmem>>, vector<11x22xf32>
    %cst_85 = arith.constant dense<0.000000e+00> : vector<11x88xf32>
    %77 = tpu.matmul %76, %75, %cst_85 {dimension_numbers = #tpu.dot_dimension_numbers<[1], [0], [0], [1], [0, 0, 1, 1], [], []>} : vector<11x22xf32>, vector<22x88xf32>, vector<11x88xf32> -> vector<11x88xf32>
    %c0_86 = arith.constant 0 : index
    %c0_87 = arith.constant 0 : index
    %78 = vector.load %arg5[%c0_86, %c0_87] : memref<11x22xf32, #tpu.memory_space<vmem>>, vector<11x22xf32>
    %cst_88 = arith.constant dense<0.000000e+00> : vector<11x88xf32>
    %79 = tpu.matmul %78, %75, %cst_88 {dimension_numbers = #tpu.dot_dimension_numbers<[1], [0], [0], [1], [0, 0, 1, 1], [], []>} : vector<11x22xf32>, vector<22x88xf32>, vector<11x88xf32> -> vector<11x88xf32>
    %80 = arith.maximumf %77, %79 : vector<11x88xf32>
    %c0_89 = arith.constant 0 : index
    %c0_90 = arith.constant 0 : index
    %81 = vector.load %arg3[%c0_89, %c0_90] : memref<1x88xf32, #tpu.memory_space<vmem>>, vector<1x88xf32>
    %82 = vector.broadcast %81 : vector<1x88xf32> to vector<11x88xf32>
    %83 = arith.addf %80, %82 : vector<11x88xf32>
    %cst_91 = arith.constant 0.000000e+00 : f32
    %84 = vector.broadcast %cst_91 : f32 to vector<11x88xf32>
    %85 = arith.maximumf %83, %84 : vector<11x88xf32>
    %c0_92 = arith.constant 0 : index
    %c0_93 = arith.constant 0 : index
    %c0_94 = arith.constant 0 : index
    %86 = vector.load %arg6[%c0_92, %c0_93, %c0_94] : memref<1x11x88xf32, #tpu.memory_space<vmem>>, vector<1x11x88xf32>
    %87 = vector.shape_cast %86 : vector<1x11x88xf32> to vector<11x88xf32>
    %88 = vector.shape_cast %85 : vector<11x88xf32> to vector<1x11x88xf32>
    tpu.vector_store %arg6[%c0_92, %c0_93, %c0_94], %88 {strides = array<i32>} : memref<1x11x88xf32, #tpu.memory_space<vmem>>, vector<1x11x88xf32>,
    return
  }
  func.func @transform_0(%arg0: i32) -> (i32, i32, i32) {
    %c0_i32 = arith.constant 0 : i32
    %c0_i32_0 = arith.constant 0 : i32
    %c0_i32_1 = arith.constant 0 : i32
    return %arg0, %c0_i32, %c0_i32_0 : i32, i32, i32
  }
  func.func @transform_1(%arg0: i32) -> (i32, i32, i32, i32) {
    %c0_i32 = arith.constant 0 : i32
    %c0_i32_0 = arith.constant 0 : i32
    %c0_i32_1 = arith.constant 0 : i32
    %c0_i32_2 = arith.constant 0 : i32
    %c0_i32_3 = arith.constant 0 : i32
    return %c0_i32, %c0_i32_0, %c0_i32_1, %c0_i32_2 : i32, i32, i32, i32
  }
  func.func @transform_2(%arg0: i32) -> (i32, i32) {
    %c0_i32 = arith.constant 0 : i32
    %c0_i32_0 = arith.constant 0 : i32
    %c0_i32_1 = arith.constant 0 : i32
    return %c0_i32, %c0_i32_0 : i32, i32
  }
  func.func @transform_3(%arg0: i32) -> (i32, i32) {
    %c0_i32 = arith.constant 0 : i32
    %c0_i32_0 = arith.constant 0 : i32
    %c0_i32_1 = arith.constant 0 : i32
    return %c0_i32, %c0_i32_0 : i32, i32
  }
  func.func @transform_4(%arg0: i32) -> (i32, i32) {
    %c0_i32 = arith.constant 0 : i32
    %c0_i32_0 = arith.constant 0 : i32
    %c0_i32_1 = arith.constant 0 : i32
    return %c0_i32, %c0_i32_0 : i32, i32
  }
  func.func @transform_5(%arg0: i32) -> (i32, i32, i32) {
    %c0_i32 = arith.constant 0 : i32
    %c0_i32_0 = arith.constant 0 : i32
    %c0_i32_1 = arith.constant 0 : i32
    return %arg0, %c0_i32, %c0_i32_0 : i32, i32, i32
  }
}

module attributes {stable_mosaic.version = 11 : i64} {
  func.func @_conv_pool_relu_kernel(%arg0: i32, %arg1: memref<1x11x88xf32, #tpu.memory_space<vmem>>, %arg2: memref<5x2x88x30xbf16, #tpu.memory_space<vmem>>, %arg3: memref<1x30xf32, #tpu.memory_space<vmem>>, %arg4: memref<3x7xf32, #tpu.memory_space<vmem>>, %arg5: memref<3x7xf32, #tpu.memory_space<vmem>>, %arg6: memref<1x3x30xf32, #tpu.memory_space<vmem>>) attributes {dimension_semantics = [#tpu.dimension_semantics<parallel>], iteration_bounds = array<i64: 2>, scalar_prefetch = 0 : i64, scratch_operands = 0 : i64, tpu.core_type = #tpu.core_type<tc>, window_params = [{transform_indices = @transform_0, window_bounds = array<i64: 1, 11, 88>}, {pipeline_mode = #tpu.pipeline_mode<synchronous>, transform_indices = @transform_1, window_bounds = array<i64: 5, 2, 88, 30>}, {pipeline_mode = #tpu.pipeline_mode<synchronous>, transform_indices = @transform_2, window_bounds = array<i64: 1, 30>}, {pipeline_mode = #tpu.pipeline_mode<synchronous>, transform_indices = @transform_3, window_bounds = array<i64: 3, 7>}, {pipeline_mode = #tpu.pipeline_mode<synchronous>, transform_indices = @transform_4, window_bounds = array<i64: 3, 7>}, {transform_indices = @transform_5, window_bounds = array<i64: 1, 3, 30>}]} {
    %c0 = arith.constant 0 : index
    %c0_0 = arith.constant 0 : index
    %c0_1 = arith.constant 0 : index
    %0 = vector.load %arg1[%c0, %c0_0, %c0_1] : memref<1x11x88xf32, #tpu.memory_space<vmem>>, vector<1x7x88xf32>
    %1 = vector.shape_cast %0 : vector<1x7x88xf32> to vector<7x88xf32>
    %2 = arith.truncf %1 : vector<7x88xf32> to vector<7x88xbf16>
    %c0_2 = arith.constant 0 : index
    %c0_3 = arith.constant 0 : index
    %c0_4 = arith.constant 0 : index
    %c0_5 = arith.constant 0 : index
    %3 = vector.load %arg2[%c0_2, %c0_3, %c0_4, %c0_5] : memref<5x2x88x30xbf16, #tpu.memory_space<vmem>>, vector<1x1x88x30xbf16>
    %4 = vector.shape_cast %3 : vector<1x1x88x30xbf16> to vector<88x30xbf16>
    %cst = arith.constant dense<0.000000e+00> : vector<7x30xf32>
    %5 = tpu.matmul %2, %4, %cst {dimension_numbers = #tpu.dot_dimension_numbers<[1], [0], [0], [1], [0, 0, 1, 1], [], []>} : vector<7x88xbf16>, vector<88x30xbf16>, vector<7x30xf32> -> vector<7x30xf32>
    %c0_6 = arith.constant 0 : index
    %c1 = arith.constant 1 : index
    %c0_7 = arith.constant 0 : index
    %c0_8 = arith.constant 0 : index
    %6 = vector.load %arg2[%c0_6, %c1, %c0_7, %c0_8] : memref<5x2x88x30xbf16, #tpu.memory_space<vmem>>, vector<1x1x88x30xbf16>
    %7 = vector.shape_cast %6 : vector<1x1x88x30xbf16> to vector<88x30xbf16>
    %cst_9 = arith.constant dense<0.000000e+00> : vector<7x30xf32>
    %8 = tpu.matmul %2, %7, %cst_9 {dimension_numbers = #tpu.dot_dimension_numbers<[1], [0], [0], [1], [0, 0, 1, 1], [], []>} : vector<7x88xbf16>, vector<88x30xbf16>, vector<7x30xf32> -> vector<7x30xf32>
    %c0_10 = arith.constant 0 : index
    %c1_11 = arith.constant 1 : index
    %c0_12 = arith.constant 0 : index
    %9 = vector.load %arg1[%c0_10, %c1_11, %c0_12] : memref<1x11x88xf32, #tpu.memory_space<vmem>>, vector<1x7x88xf32>
    %10 = vector.shape_cast %9 : vector<1x7x88xf32> to vector<7x88xf32>
    %11 = arith.truncf %10 : vector<7x88xf32> to vector<7x88xbf16>
    %c1_13 = arith.constant 1 : index
    %c0_14 = arith.constant 0 : index
    %c0_15 = arith.constant 0 : index
    %c0_16 = arith.constant 0 : index
    %12 = vector.load %arg2[%c1_13, %c0_14, %c0_15, %c0_16] : memref<5x2x88x30xbf16, #tpu.memory_space<vmem>>, vector<1x1x88x30xbf16>
    %13 = vector.shape_cast %12 : vector<1x1x88x30xbf16> to vector<88x30xbf16>
    %cst_17 = arith.constant dense<0.000000e+00> : vector<7x30xf32>
    %14 = tpu.matmul %11, %13, %cst_17 {dimension_numbers = #tpu.dot_dimension_numbers<[1], [0], [0], [1], [0, 0, 1, 1], [], []>} : vector<7x88xbf16>, vector<88x30xbf16>, vector<7x30xf32> -> vector<7x30xf32>
    %c1_18 = arith.constant 1 : index
    %c1_19 = arith.constant 1 : index
    %c0_20 = arith.constant 0 : index
    %c0_21 = arith.constant 0 : index
    %15 = vector.load %arg2[%c1_18, %c1_19, %c0_20, %c0_21] : memref<5x2x88x30xbf16, #tpu.memory_space<vmem>>, vector<1x1x88x30xbf16>
    %16 = vector.shape_cast %15 : vector<1x1x88x30xbf16> to vector<88x30xbf16>
    %cst_22 = arith.constant dense<0.000000e+00> : vector<7x30xf32>
    %17 = tpu.matmul %11, %16, %cst_22 {dimension_numbers = #tpu.dot_dimension_numbers<[1], [0], [0], [1], [0, 0, 1, 1], [], []>} : vector<7x88xbf16>, vector<88x30xbf16>, vector<7x30xf32> -> vector<7x30xf32>
    %18 = arith.addf %5, %14 : vector<7x30xf32>
    %19 = arith.addf %8, %17 : vector<7x30xf32>
    %c0_23 = arith.constant 0 : index
    %c2 = arith.constant 2 : index
    %c0_24 = arith.constant 0 : index
    %20 = vector.load %arg1[%c0_23, %c2, %c0_24] : memref<1x11x88xf32, #tpu.memory_space<vmem>>, vector<1x7x88xf32>
    %21 = vector.shape_cast %20 : vector<1x7x88xf32> to vector<7x88xf32>
    %22 = arith.truncf %21 : vector<7x88xf32> to vector<7x88xbf16>
    %c2_25 = arith.constant 2 : index
    %c0_26 = arith.constant 0 : index
    %c0_27 = arith.constant 0 : index
    %c0_28 = arith.constant 0 : index
    %23 = vector.load %arg2[%c2_25, %c0_26, %c0_27, %c0_28] : memref<5x2x88x30xbf16, #tpu.memory_space<vmem>>, vector<1x1x88x30xbf16>
    %24 = vector.shape_cast %23 : vector<1x1x88x30xbf16> to vector<88x30xbf16>
    %cst_29 = arith.constant dense<0.000000e+00> : vector<7x30xf32>
    %25 = tpu.matmul %22, %24, %cst_29 {dimension_numbers = #tpu.dot_dimension_numbers<[1], [0], [0], [1], [0, 0, 1, 1], [], []>} : vector<7x88xbf16>, vector<88x30xbf16>, vector<7x30xf32> -> vector<7x30xf32>
    %c2_30 = arith.constant 2 : index
    %c1_31 = arith.constant 1 : index
    %c0_32 = arith.constant 0 : index
    %c0_33 = arith.constant 0 : index
    %26 = vector.load %arg2[%c2_30, %c1_31, %c0_32, %c0_33] : memref<5x2x88x30xbf16, #tpu.memory_space<vmem>>, vector<1x1x88x30xbf16>
    %27 = vector.shape_cast %26 : vector<1x1x88x30xbf16> to vector<88x30xbf16>
    %cst_34 = arith.constant dense<0.000000e+00> : vector<7x30xf32>
    %28 = tpu.matmul %22, %27, %cst_34 {dimension_numbers = #tpu.dot_dimension_numbers<[1], [0], [0], [1], [0, 0, 1, 1], [], []>} : vector<7x88xbf16>, vector<88x30xbf16>, vector<7x30xf32> -> vector<7x30xf32>
    %29 = arith.addf %18, %25 : vector<7x30xf32>
    %30 = arith.addf %19, %28 : vector<7x30xf32>
    %c0_35 = arith.constant 0 : index
    %c3 = arith.constant 3 : index
    %c0_36 = arith.constant 0 : index
    %31 = vector.load %arg1[%c0_35, %c3, %c0_36] : memref<1x11x88xf32, #tpu.memory_space<vmem>>, vector<1x7x88xf32>
    %32 = vector.shape_cast %31 : vector<1x7x88xf32> to vector<7x88xf32>
    %33 = arith.truncf %32 : vector<7x88xf32> to vector<7x88xbf16>
    %c3_37 = arith.constant 3 : index
    %c0_38 = arith.constant 0 : index
    %c0_39 = arith.constant 0 : index
    %c0_40 = arith.constant 0 : index
    %34 = vector.load %arg2[%c3_37, %c0_38, %c0_39, %c0_40] : memref<5x2x88x30xbf16, #tpu.memory_space<vmem>>, vector<1x1x88x30xbf16>
    %35 = vector.shape_cast %34 : vector<1x1x88x30xbf16> to vector<88x30xbf16>
    %cst_41 = arith.constant dense<0.000000e+00> : vector<7x30xf32>
    %36 = tpu.matmul %33, %35, %cst_41 {dimension_numbers = #tpu.dot_dimension_numbers<[1], [0], [0], [1], [0, 0, 1, 1], [], []>} : vector<7x88xbf16>, vector<88x30xbf16>, vector<7x30xf32> -> vector<7x30xf32>
    %c3_42 = arith.constant 3 : index
    %c1_43 = arith.constant 1 : index
    %c0_44 = arith.constant 0 : index
    %c0_45 = arith.constant 0 : index
    %37 = vector.load %arg2[%c3_42, %c1_43, %c0_44, %c0_45] : memref<5x2x88x30xbf16, #tpu.memory_space<vmem>>, vector<1x1x88x30xbf16>
    %38 = vector.shape_cast %37 : vector<1x1x88x30xbf16> to vector<88x30xbf16>
    %cst_46 = arith.constant dense<0.000000e+00> : vector<7x30xf32>
    %39 = tpu.matmul %33, %38, %cst_46 {dimension_numbers = #tpu.dot_dimension_numbers<[1], [0], [0], [1], [0, 0, 1, 1], [], []>} : vector<7x88xbf16>, vector<88x30xbf16>, vector<7x30xf32> -> vector<7x30xf32>
    %40 = arith.addf %29, %36 : vector<7x30xf32>
    %41 = arith.addf %30, %39 : vector<7x30xf32>
    %c0_47 = arith.constant 0 : index
    %c4 = arith.constant 4 : index
    %c0_48 = arith.constant 0 : index
    %42 = vector.load %arg1[%c0_47, %c4, %c0_48] : memref<1x11x88xf32, #tpu.memory_space<vmem>>, vector<1x7x88xf32>
    %43 = vector.shape_cast %42 : vector<1x7x88xf32> to vector<7x88xf32>
    %44 = arith.truncf %43 : vector<7x88xf32> to vector<7x88xbf16>
    %c4_49 = arith.constant 4 : index
    %c0_50 = arith.constant 0 : index
    %c0_51 = arith.constant 0 : index
    %c0_52 = arith.constant 0 : index
    %45 = vector.load %arg2[%c4_49, %c0_50, %c0_51, %c0_52] : memref<5x2x88x30xbf16, #tpu.memory_space<vmem>>, vector<1x1x88x30xbf16>
    %46 = vector.shape_cast %45 : vector<1x1x88x30xbf16> to vector<88x30xbf16>
    %cst_53 = arith.constant dense<0.000000e+00> : vector<7x30xf32>
    %47 = tpu.matmul %44, %46, %cst_53 {dimension_numbers = #tpu.dot_dimension_numbers<[1], [0], [0], [1], [0, 0, 1, 1], [], []>} : vector<7x88xbf16>, vector<88x30xbf16>, vector<7x30xf32> -> vector<7x30xf32>
    %c4_54 = arith.constant 4 : index
    %c1_55 = arith.constant 1 : index
    %c0_56 = arith.constant 0 : index
    %c0_57 = arith.constant 0 : index
    %48 = vector.load %arg2[%c4_54, %c1_55, %c0_56, %c0_57] : memref<5x2x88x30xbf16, #tpu.memory_space<vmem>>, vector<1x1x88x30xbf16>
    %49 = vector.shape_cast %48 : vector<1x1x88x30xbf16> to vector<88x30xbf16>
    %cst_58 = arith.constant dense<0.000000e+00> : vector<7x30xf32>
    %50 = tpu.matmul %44, %49, %cst_58 {dimension_numbers = #tpu.dot_dimension_numbers<[1], [0], [0], [1], [0, 0, 1, 1], [], []>} : vector<7x88xbf16>, vector<88x30xbf16>, vector<7x30xf32> -> vector<7x30xf32>
    %51 = arith.addf %40, %47 : vector<7x30xf32>
    %52 = arith.addf %41, %50 : vector<7x30xf32>
    %53 = arith.maximumf %51, %52 : vector<7x30xf32>
    %c0_59 = arith.constant 0 : index
    %c0_60 = arith.constant 0 : index
    %54 = vector.load %arg4[%c0_59, %c0_60] : memref<3x7xf32, #tpu.memory_space<vmem>>, vector<3x7xf32>
    %cst_61 = arith.constant dense<0.000000e+00> : vector<3x30xf32>
    %55 = tpu.matmul %54, %53, %cst_61 {dimension_numbers = #tpu.dot_dimension_numbers<[1], [0], [0], [1], [0, 0, 1, 1], [], []>} : vector<3x7xf32>, vector<7x30xf32>, vector<3x30xf32> -> vector<3x30xf32>
    %c0_62 = arith.constant 0 : index
    %c0_63 = arith.constant 0 : index
    %56 = vector.load %arg5[%c0_62, %c0_63] : memref<3x7xf32, #tpu.memory_space<vmem>>, vector<3x7xf32>
    %cst_64 = arith.constant dense<0.000000e+00> : vector<3x30xf32>
    %57 = tpu.matmul %56, %53, %cst_64 {dimension_numbers = #tpu.dot_dimension_numbers<[1], [0], [0], [1], [0, 0, 1, 1], [], []>} : vector<3x7xf32>, vector<7x30xf32>, vector<3x30xf32> -> vector<3x30xf32>
    %58 = arith.maximumf %55, %57 : vector<3x30xf32>
    %c0_65 = arith.constant 0 : index
    %c0_66 = arith.constant 0 : index
    %59 = vector.load %arg3[%c0_65, %c0_66] : memref<1x30xf32, #tpu.memory_space<vmem>>, vector<1x30xf32>
    %60 = vector.broadcast %59 : vector<1x30xf32> to vector<3x30xf32>
    %61 = arith.addf %58, %60 : vector<3x30xf32>
    %cst_67 = arith.constant 0.000000e+00 : f32
    %62 = vector.broadcast %cst_67 : f32 to vector<3x30xf32>
    %63 = arith.maximumf %61, %62 : vector<3x30xf32>
    %c0_68 = arith.constant 0 : index
    %c0_69 = arith.constant 0 : index
    %c0_70 = arith.constant 0 : index
    %64 = vector.load %arg6[%c0_68, %c0_69, %c0_70] : memref<1x3x30xf32, #tpu.memory_space<vmem>>, vector<1x3x30xf32>
    %65 = vector.shape_cast %64 : vector<1x3x30xf32> to vector<3x30xf32>
    %66 = vector.shape_cast %63 : vector<3x30xf32> to vector<1x3x30xf32>
    tpu.vector_store %arg6[%c0_68, %c0_69, %c0_70], %66 {strides = array<i32>} : memref<1x3x30xf32, #tpu.memory_space<vmem>>, vector<1x3x30xf32>,
    return
  }
  func.func @transform_0(%arg0: i32) -> (i32, i32, i32) {
    %c0_i32 = arith.constant 0 : i32
    %c0_i32_0 = arith.constant 0 : i32
    %c0_i32_1 = arith.constant 0 : i32
    return %arg0, %c0_i32, %c0_i32_0 : i32, i32, i32
  }
  func.func @transform_1(%arg0: i32) -> (i32, i32, i32, i32) {
    %c0_i32 = arith.constant 0 : i32
    %c0_i32_0 = arith.constant 0 : i32
    %c0_i32_1 = arith.constant 0 : i32
    %c0_i32_2 = arith.constant 0 : i32
    %c0_i32_3 = arith.constant 0 : i32
    return %c0_i32, %c0_i32_0, %c0_i32_1, %c0_i32_2 : i32, i32, i32, i32
  }
  func.func @transform_2(%arg0: i32) -> (i32, i32) {
    %c0_i32 = arith.constant 0 : i32
    %c0_i32_0 = arith.constant 0 : i32
    %c0_i32_1 = arith.constant 0 : i32
    return %c0_i32, %c0_i32_0 : i32, i32
  }
  func.func @transform_3(%arg0: i32) -> (i32, i32) {
    %c0_i32 = arith.constant 0 : i32
    %c0_i32_0 = arith.constant 0 : i32
    %c0_i32_1 = arith.constant 0 : i32
    return %c0_i32, %c0_i32_0 : i32, i32
  }
  func.func @transform_4(%arg0: i32) -> (i32, i32) {
    %c0_i32 = arith.constant 0 : i32
    %c0_i32_0 = arith.constant 0 : i32
    %c0_i32_1 = arith.constant 0 : i32
    return %c0_i32, %c0_i32_0 : i32, i32
  }
  func.func @transform_5(%arg0: i32) -> (i32, i32, i32) {
    %c0_i32 = arith.constant 0 : i32
    %c0_i32_0 = arith.constant 0 : i32
    %c0_i32_1 = arith.constant 0 : i32
    return %arg0, %c0_i32, %c0_i32_0 : i32, i32, i32
  }
}

module attributes {stable_mosaic.version = 11 : i64} {
  func.func @_fc_loc_kernel(%arg0: memref<2x90xf32, #tpu.memory_space<vmem>>, %arg1: memref<90x32xbf16, #tpu.memory_space<vmem>>, %arg2: memref<1x32xf32, #tpu.memory_space<vmem>>, %arg3: memref<32x6xbf16, #tpu.memory_space<vmem>>, %arg4: memref<1x6xf32, #tpu.memory_space<vmem>>, %arg5: memref<2x6xf32, #tpu.memory_space<vmem>>) attributes {dimension_semantics = [], scalar_prefetch = 0 : i64, scratch_operands = 0 : i64, tpu.core_type = #tpu.core_type<tc>} {
    %c0 = arith.constant 0 : index
    %c0_0 = arith.constant 0 : index
    %0 = vector.load %arg0[%c0, %c0_0] : memref<2x90xf32, #tpu.memory_space<vmem>>, vector<2x90xf32>
    %1 = arith.truncf %0 : vector<2x90xf32> to vector<2x90xbf16>
    %c0_1 = arith.constant 0 : index
    %c0_2 = arith.constant 0 : index
    %2 = vector.load %arg1[%c0_1, %c0_2] : memref<90x32xbf16, #tpu.memory_space<vmem>>, vector<90x32xbf16>
    %cst = arith.constant dense<0.000000e+00> : vector<2x32xf32>
    %3 = tpu.matmul %1, %2, %cst {dimension_numbers = #tpu.dot_dimension_numbers<[1], [0], [0], [1], [0, 0, 1, 1], [], []>} : vector<2x90xbf16>, vector<90x32xbf16>, vector<2x32xf32> -> vector<2x32xf32>
    %c0_3 = arith.constant 0 : index
    %c0_4 = arith.constant 0 : index
    %4 = vector.load %arg2[%c0_3, %c0_4] : memref<1x32xf32, #tpu.memory_space<vmem>>, vector<1x32xf32>
    %5 = vector.broadcast %4 : vector<1x32xf32> to vector<2x32xf32>
    %6 = arith.addf %3, %5 : vector<2x32xf32>
    %cst_5 = arith.constant 0.000000e+00 : f32
    %7 = vector.broadcast %cst_5 : f32 to vector<2x32xf32>
    %8 = arith.maximumf %6, %7 : vector<2x32xf32>
    %9 = arith.truncf %8 : vector<2x32xf32> to vector<2x32xbf16>
    %c0_6 = arith.constant 0 : index
    %c0_7 = arith.constant 0 : index
    %10 = vector.load %arg3[%c0_6, %c0_7] : memref<32x6xbf16, #tpu.memory_space<vmem>>, vector<32x6xbf16>
    %cst_8 = arith.constant dense<0.000000e+00> : vector<2x6xf32>
    %11 = tpu.matmul %9, %10, %cst_8 {dimension_numbers = #tpu.dot_dimension_numbers<[1], [0], [0], [1], [0, 0, 1, 1], [], []>} : vector<2x32xbf16>, vector<32x6xbf16>, vector<2x6xf32> -> vector<2x6xf32>
    %c0_9 = arith.constant 0 : index
    %c0_10 = arith.constant 0 : index
    %12 = vector.load %arg4[%c0_9, %c0_10] : memref<1x6xf32, #tpu.memory_space<vmem>>, vector<1x6xf32>
    %13 = vector.broadcast %12 : vector<1x6xf32> to vector<2x6xf32>
    %14 = arith.addf %11, %13 : vector<2x6xf32>
    %c0_11 = arith.constant 0 : index
    %c0_12 = arith.constant 0 : index
    %15 = vector.load %arg5[%c0_11, %c0_12] : memref<2x6xf32, #tpu.memory_space<vmem>>, vector<2x6xf32>
    tpu.vector_store %arg5[%c0_11, %c0_12], %14 {strides = array<i32>} : memref<2x6xf32, #tpu.memory_space<vmem>>, vector<2x6xf32>,
    return
  }
}

module attributes {stable_mosaic.version = 11 : i64} {
  func.func @_conv_pool_relu_kernel(%arg0: i32, %arg1: memref<1x28x28xf32, #tpu.memory_space<vmem>>, %arg2: memref<5x2x28x240xbf16, #tpu.memory_space<vmem>>, %arg3: memref<1x240xf32, #tpu.memory_space<vmem>>, %arg4: memref<12x24xf32, #tpu.memory_space<vmem>>, %arg5: memref<12x24xf32, #tpu.memory_space<vmem>>, %arg6: memref<1x12x240xf32, #tpu.memory_space<vmem>>) attributes {dimension_semantics = [#tpu.dimension_semantics<parallel>], iteration_bounds = array<i64: 2>, scalar_prefetch = 0 : i64, scratch_operands = 0 : i64, tpu.core_type = #tpu.core_type<tc>, window_params = [{transform_indices = @transform_0, window_bounds = array<i64: 1, 28, 28>}, {pipeline_mode = #tpu.pipeline_mode<synchronous>, transform_indices = @transform_1, window_bounds = array<i64: 5, 2, 28, 240>}, {pipeline_mode = #tpu.pipeline_mode<synchronous>, transform_indices = @transform_2, window_bounds = array<i64: 1, 240>}, {pipeline_mode = #tpu.pipeline_mode<synchronous>, transform_indices = @transform_3, window_bounds = array<i64: 12, 24>}, {pipeline_mode = #tpu.pipeline_mode<synchronous>, transform_indices = @transform_4, window_bounds = array<i64: 12, 24>}, {transform_indices = @transform_5, window_bounds = array<i64: 1, 12, 240>}]} {
    %c0 = arith.constant 0 : index
    %c0_0 = arith.constant 0 : index
    %c0_1 = arith.constant 0 : index
    %0 = vector.load %arg1[%c0, %c0_0, %c0_1] : memref<1x28x28xf32, #tpu.memory_space<vmem>>, vector<1x24x28xf32>
    %1 = vector.shape_cast %0 : vector<1x24x28xf32> to vector<24x28xf32>
    %2 = arith.truncf %1 : vector<24x28xf32> to vector<24x28xbf16>
    %c0_2 = arith.constant 0 : index
    %c0_3 = arith.constant 0 : index
    %c0_4 = arith.constant 0 : index
    %c0_5 = arith.constant 0 : index
    %3 = vector.load %arg2[%c0_2, %c0_3, %c0_4, %c0_5] : memref<5x2x28x240xbf16, #tpu.memory_space<vmem>>, vector<1x1x28x240xbf16>
    %4 = vector.shape_cast %3 : vector<1x1x28x240xbf16> to vector<28x240xbf16>
    %cst = arith.constant dense<0.000000e+00> : vector<24x240xf32>
    %5 = tpu.matmul %2, %4, %cst {dimension_numbers = #tpu.dot_dimension_numbers<[1], [0], [0], [1], [0, 0, 1, 1], [], []>} : vector<24x28xbf16>, vector<28x240xbf16>, vector<24x240xf32> -> vector<24x240xf32>
    %c0_6 = arith.constant 0 : index
    %c1 = arith.constant 1 : index
    %c0_7 = arith.constant 0 : index
    %c0_8 = arith.constant 0 : index
    %6 = vector.load %arg2[%c0_6, %c1, %c0_7, %c0_8] : memref<5x2x28x240xbf16, #tpu.memory_space<vmem>>, vector<1x1x28x240xbf16>
    %7 = vector.shape_cast %6 : vector<1x1x28x240xbf16> to vector<28x240xbf16>
    %cst_9 = arith.constant dense<0.000000e+00> : vector<24x240xf32>
    %8 = tpu.matmul %2, %7, %cst_9 {dimension_numbers = #tpu.dot_dimension_numbers<[1], [0], [0], [1], [0, 0, 1, 1], [], []>} : vector<24x28xbf16>, vector<28x240xbf16>, vector<24x240xf32> -> vector<24x240xf32>
    %c0_10 = arith.constant 0 : index
    %c1_11 = arith.constant 1 : index
    %c0_12 = arith.constant 0 : index
    %9 = vector.load %arg1[%c0_10, %c1_11, %c0_12] : memref<1x28x28xf32, #tpu.memory_space<vmem>>, vector<1x24x28xf32>
    %10 = vector.shape_cast %9 : vector<1x24x28xf32> to vector<24x28xf32>
    %11 = arith.truncf %10 : vector<24x28xf32> to vector<24x28xbf16>
    %c1_13 = arith.constant 1 : index
    %c0_14 = arith.constant 0 : index
    %c0_15 = arith.constant 0 : index
    %c0_16 = arith.constant 0 : index
    %12 = vector.load %arg2[%c1_13, %c0_14, %c0_15, %c0_16] : memref<5x2x28x240xbf16, #tpu.memory_space<vmem>>, vector<1x1x28x240xbf16>
    %13 = vector.shape_cast %12 : vector<1x1x28x240xbf16> to vector<28x240xbf16>
    %cst_17 = arith.constant dense<0.000000e+00> : vector<24x240xf32>
    %14 = tpu.matmul %11, %13, %cst_17 {dimension_numbers = #tpu.dot_dimension_numbers<[1], [0], [0], [1], [0, 0, 1, 1], [], []>} : vector<24x28xbf16>, vector<28x240xbf16>, vector<24x240xf32> -> vector<24x240xf32>
    %c1_18 = arith.constant 1 : index
    %c1_19 = arith.constant 1 : index
    %c0_20 = arith.constant 0 : index
    %c0_21 = arith.constant 0 : index
    %15 = vector.load %arg2[%c1_18, %c1_19, %c0_20, %c0_21] : memref<5x2x28x240xbf16, #tpu.memory_space<vmem>>, vector<1x1x28x240xbf16>
    %16 = vector.shape_cast %15 : vector<1x1x28x240xbf16> to vector<28x240xbf16>
    %cst_22 = arith.constant dense<0.000000e+00> : vector<24x240xf32>
    %17 = tpu.matmul %11, %16, %cst_22 {dimension_numbers = #tpu.dot_dimension_numbers<[1], [0], [0], [1], [0, 0, 1, 1], [], []>} : vector<24x28xbf16>, vector<28x240xbf16>, vector<24x240xf32> -> vector<24x240xf32>
    %18 = arith.addf %5, %14 : vector<24x240xf32>
    %19 = arith.addf %8, %17 : vector<24x240xf32>
    %c0_23 = arith.constant 0 : index
    %c2 = arith.constant 2 : index
    %c0_24 = arith.constant 0 : index
    %20 = vector.load %arg1[%c0_23, %c2, %c0_24] : memref<1x28x28xf32, #tpu.memory_space<vmem>>, vector<1x24x28xf32>
    %21 = vector.shape_cast %20 : vector<1x24x28xf32> to vector<24x28xf32>
    %22 = arith.truncf %21 : vector<24x28xf32> to vector<24x28xbf16>
    %c2_25 = arith.constant 2 : index
    %c0_26 = arith.constant 0 : index
    %c0_27 = arith.constant 0 : index
    %c0_28 = arith.constant 0 : index
    %23 = vector.load %arg2[%c2_25, %c0_26, %c0_27, %c0_28] : memref<5x2x28x240xbf16, #tpu.memory_space<vmem>>, vector<1x1x28x240xbf16>
    %24 = vector.shape_cast %23 : vector<1x1x28x240xbf16> to vector<28x240xbf16>
    %cst_29 = arith.constant dense<0.000000e+00> : vector<24x240xf32>
    %25 = tpu.matmul %22, %24, %cst_29 {dimension_numbers = #tpu.dot_dimension_numbers<[1], [0], [0], [1], [0, 0, 1, 1], [], []>} : vector<24x28xbf16>, vector<28x240xbf16>, vector<24x240xf32> -> vector<24x240xf32>
    %c2_30 = arith.constant 2 : index
    %c1_31 = arith.constant 1 : index
    %c0_32 = arith.constant 0 : index
    %c0_33 = arith.constant 0 : index
    %26 = vector.load %arg2[%c2_30, %c1_31, %c0_32, %c0_33] : memref<5x2x28x240xbf16, #tpu.memory_space<vmem>>, vector<1x1x28x240xbf16>
    %27 = vector.shape_cast %26 : vector<1x1x28x240xbf16> to vector<28x240xbf16>
    %cst_34 = arith.constant dense<0.000000e+00> : vector<24x240xf32>
    %28 = tpu.matmul %22, %27, %cst_34 {dimension_numbers = #tpu.dot_dimension_numbers<[1], [0], [0], [1], [0, 0, 1, 1], [], []>} : vector<24x28xbf16>, vector<28x240xbf16>, vector<24x240xf32> -> vector<24x240xf32>
    %29 = arith.addf %18, %25 : vector<24x240xf32>
    %30 = arith.addf %19, %28 : vector<24x240xf32>
    %c0_35 = arith.constant 0 : index
    %c3 = arith.constant 3 : index
    %c0_36 = arith.constant 0 : index
    %31 = vector.load %arg1[%c0_35, %c3, %c0_36] : memref<1x28x28xf32, #tpu.memory_space<vmem>>, vector<1x24x28xf32>
    %32 = vector.shape_cast %31 : vector<1x24x28xf32> to vector<24x28xf32>
    %33 = arith.truncf %32 : vector<24x28xf32> to vector<24x28xbf16>
    %c3_37 = arith.constant 3 : index
    %c0_38 = arith.constant 0 : index
    %c0_39 = arith.constant 0 : index
    %c0_40 = arith.constant 0 : index
    %34 = vector.load %arg2[%c3_37, %c0_38, %c0_39, %c0_40] : memref<5x2x28x240xbf16, #tpu.memory_space<vmem>>, vector<1x1x28x240xbf16>
    %35 = vector.shape_cast %34 : vector<1x1x28x240xbf16> to vector<28x240xbf16>
    %cst_41 = arith.constant dense<0.000000e+00> : vector<24x240xf32>
    %36 = tpu.matmul %33, %35, %cst_41 {dimension_numbers = #tpu.dot_dimension_numbers<[1], [0], [0], [1], [0, 0, 1, 1], [], []>} : vector<24x28xbf16>, vector<28x240xbf16>, vector<24x240xf32> -> vector<24x240xf32>
    %c3_42 = arith.constant 3 : index
    %c1_43 = arith.constant 1 : index
    %c0_44 = arith.constant 0 : index
    %c0_45 = arith.constant 0 : index
    %37 = vector.load %arg2[%c3_42, %c1_43, %c0_44, %c0_45] : memref<5x2x28x240xbf16, #tpu.memory_space<vmem>>, vector<1x1x28x240xbf16>
    %38 = vector.shape_cast %37 : vector<1x1x28x240xbf16> to vector<28x240xbf16>
    %cst_46 = arith.constant dense<0.000000e+00> : vector<24x240xf32>
    %39 = tpu.matmul %33, %38, %cst_46 {dimension_numbers = #tpu.dot_dimension_numbers<[1], [0], [0], [1], [0, 0, 1, 1], [], []>} : vector<24x28xbf16>, vector<28x240xbf16>, vector<24x240xf32> -> vector<24x240xf32>
    %40 = arith.addf %29, %36 : vector<24x240xf32>
    %41 = arith.addf %30, %39 : vector<24x240xf32>
    %c0_47 = arith.constant 0 : index
    %c4 = arith.constant 4 : index
    %c0_48 = arith.constant 0 : index
    %42 = vector.load %arg1[%c0_47, %c4, %c0_48] : memref<1x28x28xf32, #tpu.memory_space<vmem>>, vector<1x24x28xf32>
    %43 = vector.shape_cast %42 : vector<1x24x28xf32> to vector<24x28xf32>
    %44 = arith.truncf %43 : vector<24x28xf32> to vector<24x28xbf16>
    %c4_49 = arith.constant 4 : index
    %c0_50 = arith.constant 0 : index
    %c0_51 = arith.constant 0 : index
    %c0_52 = arith.constant 0 : index
    %45 = vector.load %arg2[%c4_49, %c0_50, %c0_51, %c0_52] : memref<5x2x28x240xbf16, #tpu.memory_space<vmem>>, vector<1x1x28x240xbf16>
    %46 = vector.shape_cast %45 : vector<1x1x28x240xbf16> to vector<28x240xbf16>
    %cst_53 = arith.constant dense<0.000000e+00> : vector<24x240xf32>
    %47 = tpu.matmul %44, %46, %cst_53 {dimension_numbers = #tpu.dot_dimension_numbers<[1], [0], [0], [1], [0, 0, 1, 1], [], []>} : vector<24x28xbf16>, vector<28x240xbf16>, vector<24x240xf32> -> vector<24x240xf32>
    %c4_54 = arith.constant 4 : index
    %c1_55 = arith.constant 1 : index
    %c0_56 = arith.constant 0 : index
    %c0_57 = arith.constant 0 : index
    %48 = vector.load %arg2[%c4_54, %c1_55, %c0_56, %c0_57] : memref<5x2x28x240xbf16, #tpu.memory_space<vmem>>, vector<1x1x28x240xbf16>
    %49 = vector.shape_cast %48 : vector<1x1x28x240xbf16> to vector<28x240xbf16>
    %cst_58 = arith.constant dense<0.000000e+00> : vector<24x240xf32>
    %50 = tpu.matmul %44, %49, %cst_58 {dimension_numbers = #tpu.dot_dimension_numbers<[1], [0], [0], [1], [0, 0, 1, 1], [], []>} : vector<24x28xbf16>, vector<28x240xbf16>, vector<24x240xf32> -> vector<24x240xf32>
    %51 = arith.addf %40, %47 : vector<24x240xf32>
    %52 = arith.addf %41, %50 : vector<24x240xf32>
    %53 = arith.maximumf %51, %52 : vector<24x240xf32>
    %c0_59 = arith.constant 0 : index
    %c0_60 = arith.constant 0 : index
    %54 = vector.load %arg4[%c0_59, %c0_60] : memref<12x24xf32, #tpu.memory_space<vmem>>, vector<12x24xf32>
    %cst_61 = arith.constant dense<0.000000e+00> : vector<12x240xf32>
    %55 = tpu.matmul %54, %53, %cst_61 {dimension_numbers = #tpu.dot_dimension_numbers<[1], [0], [0], [1], [0, 0, 1, 1], [], []>} : vector<12x24xf32>, vector<24x240xf32>, vector<12x240xf32> -> vector<12x240xf32>
    %c0_62 = arith.constant 0 : index
    %c0_63 = arith.constant 0 : index
    %56 = vector.load %arg5[%c0_62, %c0_63] : memref<12x24xf32, #tpu.memory_space<vmem>>, vector<12x24xf32>
    %cst_64 = arith.constant dense<0.000000e+00> : vector<12x240xf32>
    %57 = tpu.matmul %56, %53, %cst_64 {dimension_numbers = #tpu.dot_dimension_numbers<[1], [0], [0], [1], [0, 0, 1, 1], [], []>} : vector<12x24xf32>, vector<24x240xf32>, vector<12x240xf32> -> vector<12x240xf32>
    %58 = arith.maximumf %55, %57 : vector<12x240xf32>
    %c0_65 = arith.constant 0 : index
    %c0_66 = arith.constant 0 : index
    %59 = vector.load %arg3[%c0_65, %c0_66] : memref<1x240xf32, #tpu.memory_space<vmem>>, vector<1x240xf32>
    %60 = vector.broadcast %59 : vector<1x240xf32> to vector<12x240xf32>
    %61 = arith.addf %58, %60 : vector<12x240xf32>
    %cst_67 = arith.constant 0.000000e+00 : f32
    %62 = vector.broadcast %cst_67 : f32 to vector<12x240xf32>
    %63 = arith.maximumf %61, %62 : vector<12x240xf32>
    %c0_68 = arith.constant 0 : index
    %c0_69 = arith.constant 0 : index
    %c0_70 = arith.constant 0 : index
    %64 = vector.load %arg6[%c0_68, %c0_69, %c0_70] : memref<1x12x240xf32, #tpu.memory_space<vmem>>, vector<1x12x240xf32>
    %65 = vector.shape_cast %64 : vector<1x12x240xf32> to vector<12x240xf32>
    %66 = vector.shape_cast %63 : vector<12x240xf32> to vector<1x12x240xf32>
    tpu.vector_store %arg6[%c0_68, %c0_69, %c0_70], %66 {strides = array<i32>} : memref<1x12x240xf32, #tpu.memory_space<vmem>>, vector<1x12x240xf32>,
    return
  }
  func.func @transform_0(%arg0: i32) -> (i32, i32, i32) {
    %c0_i32 = arith.constant 0 : i32
    %c0_i32_0 = arith.constant 0 : i32
    %c0_i32_1 = arith.constant 0 : i32
    return %arg0, %c0_i32, %c0_i32_0 : i32, i32, i32
  }
  func.func @transform_1(%arg0: i32) -> (i32, i32, i32, i32) {
    %c0_i32 = arith.constant 0 : i32
    %c0_i32_0 = arith.constant 0 : i32
    %c0_i32_1 = arith.constant 0 : i32
    %c0_i32_2 = arith.constant 0 : i32
    %c0_i32_3 = arith.constant 0 : i32
    return %c0_i32, %c0_i32_0, %c0_i32_1, %c0_i32_2 : i32, i32, i32, i32
  }
  func.func @transform_2(%arg0: i32) -> (i32, i32) {
    %c0_i32 = arith.constant 0 : i32
    %c0_i32_0 = arith.constant 0 : i32
    %c0_i32_1 = arith.constant 0 : i32
    return %c0_i32, %c0_i32_0 : i32, i32
  }
  func.func @transform_3(%arg0: i32) -> (i32, i32) {
    %c0_i32 = arith.constant 0 : i32
    %c0_i32_0 = arith.constant 0 : i32
    %c0_i32_1 = arith.constant 0 : i32
    return %c0_i32, %c0_i32_0 : i32, i32
  }
  func.func @transform_4(%arg0: i32) -> (i32, i32) {
    %c0_i32 = arith.constant 0 : i32
    %c0_i32_0 = arith.constant 0 : i32
    %c0_i32_1 = arith.constant 0 : i32
    return %c0_i32, %c0_i32_0 : i32, i32
  }
  func.func @transform_5(%arg0: i32) -> (i32, i32, i32) {
    %c0_i32 = arith.constant 0 : i32
    %c0_i32_0 = arith.constant 0 : i32
    %c0_i32_1 = arith.constant 0 : i32
    return %arg0, %c0_i32, %c0_i32_0 : i32, i32, i32
  }
}

module attributes {stable_mosaic.version = 11 : i64} {
  func.func @_conv_pool_relu_kernel(%arg0: i32, %arg1: memref<1x12x240xf32, #tpu.memory_space<vmem>>, %arg2: memref<5x2x240x200xbf16, #tpu.memory_space<vmem>>, %arg3: memref<1x200xf32, #tpu.memory_space<vmem>>, %arg4: memref<4x8xf32, #tpu.memory_space<vmem>>, %arg5: memref<4x8xf32, #tpu.memory_space<vmem>>, %arg6: memref<1x4x200xf32, #tpu.memory_space<vmem>>) attributes {dimension_semantics = [#tpu.dimension_semantics<parallel>], iteration_bounds = array<i64: 2>, scalar_prefetch = 0 : i64, scratch_operands = 0 : i64, tpu.core_type = #tpu.core_type<tc>, window_params = [{transform_indices = @transform_0, window_bounds = array<i64: 1, 12, 240>}, {pipeline_mode = #tpu.pipeline_mode<synchronous>, transform_indices = @transform_1, window_bounds = array<i64: 5, 2, 240, 200>}, {pipeline_mode = #tpu.pipeline_mode<synchronous>, transform_indices = @transform_2, window_bounds = array<i64: 1, 200>}, {pipeline_mode = #tpu.pipeline_mode<synchronous>, transform_indices = @transform_3, window_bounds = array<i64: 4, 8>}, {pipeline_mode = #tpu.pipeline_mode<synchronous>, transform_indices = @transform_4, window_bounds = array<i64: 4, 8>}, {transform_indices = @transform_5, window_bounds = array<i64: 1, 4, 200>}]} {
    %c0 = arith.constant 0 : index
    %c0_0 = arith.constant 0 : index
    %c0_1 = arith.constant 0 : index
    %0 = vector.load %arg1[%c0, %c0_0, %c0_1] : memref<1x12x240xf32, #tpu.memory_space<vmem>>, vector<1x8x240xf32>
    %1 = vector.shape_cast %0 : vector<1x8x240xf32> to vector<8x240xf32>
    %2 = arith.truncf %1 : vector<8x240xf32> to vector<8x240xbf16>
    %c0_2 = arith.constant 0 : index
    %c0_3 = arith.constant 0 : index
    %c0_4 = arith.constant 0 : index
    %c0_5 = arith.constant 0 : index
    %3 = vector.load %arg2[%c0_2, %c0_3, %c0_4, %c0_5] : memref<5x2x240x200xbf16, #tpu.memory_space<vmem>>, vector<1x1x240x200xbf16>
    %4 = vector.shape_cast %3 : vector<1x1x240x200xbf16> to vector<240x200xbf16>
    %cst = arith.constant dense<0.000000e+00> : vector<8x200xf32>
    %5 = tpu.matmul %2, %4, %cst {dimension_numbers = #tpu.dot_dimension_numbers<[1], [0], [0], [1], [0, 0, 1, 1], [], []>} : vector<8x240xbf16>, vector<240x200xbf16>, vector<8x200xf32> -> vector<8x200xf32>
    %c0_6 = arith.constant 0 : index
    %c1 = arith.constant 1 : index
    %c0_7 = arith.constant 0 : index
    %c0_8 = arith.constant 0 : index
    %6 = vector.load %arg2[%c0_6, %c1, %c0_7, %c0_8] : memref<5x2x240x200xbf16, #tpu.memory_space<vmem>>, vector<1x1x240x200xbf16>
    %7 = vector.shape_cast %6 : vector<1x1x240x200xbf16> to vector<240x200xbf16>
    %cst_9 = arith.constant dense<0.000000e+00> : vector<8x200xf32>
    %8 = tpu.matmul %2, %7, %cst_9 {dimension_numbers = #tpu.dot_dimension_numbers<[1], [0], [0], [1], [0, 0, 1, 1], [], []>} : vector<8x240xbf16>, vector<240x200xbf16>, vector<8x200xf32> -> vector<8x200xf32>
    %c0_10 = arith.constant 0 : index
    %c1_11 = arith.constant 1 : index
    %c0_12 = arith.constant 0 : index
    %9 = vector.load %arg1[%c0_10, %c1_11, %c0_12] : memref<1x12x240xf32, #tpu.memory_space<vmem>>, vector<1x8x240xf32>
    %10 = vector.shape_cast %9 : vector<1x8x240xf32> to vector<8x240xf32>
    %11 = arith.truncf %10 : vector<8x240xf32> to vector<8x240xbf16>
    %c1_13 = arith.constant 1 : index
    %c0_14 = arith.constant 0 : index
    %c0_15 = arith.constant 0 : index
    %c0_16 = arith.constant 0 : index
    %12 = vector.load %arg2[%c1_13, %c0_14, %c0_15, %c0_16] : memref<5x2x240x200xbf16, #tpu.memory_space<vmem>>, vector<1x1x240x200xbf16>
    %13 = vector.shape_cast %12 : vector<1x1x240x200xbf16> to vector<240x200xbf16>
    %cst_17 = arith.constant dense<0.000000e+00> : vector<8x200xf32>
    %14 = tpu.matmul %11, %13, %cst_17 {dimension_numbers = #tpu.dot_dimension_numbers<[1], [0], [0], [1], [0, 0, 1, 1], [], []>} : vector<8x240xbf16>, vector<240x200xbf16>, vector<8x200xf32> -> vector<8x200xf32>
    %c1_18 = arith.constant 1 : index
    %c1_19 = arith.constant 1 : index
    %c0_20 = arith.constant 0 : index
    %c0_21 = arith.constant 0 : index
    %15 = vector.load %arg2[%c1_18, %c1_19, %c0_20, %c0_21] : memref<5x2x240x200xbf16, #tpu.memory_space<vmem>>, vector<1x1x240x200xbf16>
    %16 = vector.shape_cast %15 : vector<1x1x240x200xbf16> to vector<240x200xbf16>
    %cst_22 = arith.constant dense<0.000000e+00> : vector<8x200xf32>
    %17 = tpu.matmul %11, %16, %cst_22 {dimension_numbers = #tpu.dot_dimension_numbers<[1], [0], [0], [1], [0, 0, 1, 1], [], []>} : vector<8x240xbf16>, vector<240x200xbf16>, vector<8x200xf32> -> vector<8x200xf32>
    %18 = arith.addf %5, %14 : vector<8x200xf32>
    %19 = arith.addf %8, %17 : vector<8x200xf32>
    %c0_23 = arith.constant 0 : index
    %c2 = arith.constant 2 : index
    %c0_24 = arith.constant 0 : index
    %20 = vector.load %arg1[%c0_23, %c2, %c0_24] : memref<1x12x240xf32, #tpu.memory_space<vmem>>, vector<1x8x240xf32>
    %21 = vector.shape_cast %20 : vector<1x8x240xf32> to vector<8x240xf32>
    %22 = arith.truncf %21 : vector<8x240xf32> to vector<8x240xbf16>
    %c2_25 = arith.constant 2 : index
    %c0_26 = arith.constant 0 : index
    %c0_27 = arith.constant 0 : index
    %c0_28 = arith.constant 0 : index
    %23 = vector.load %arg2[%c2_25, %c0_26, %c0_27, %c0_28] : memref<5x2x240x200xbf16, #tpu.memory_space<vmem>>, vector<1x1x240x200xbf16>
    %24 = vector.shape_cast %23 : vector<1x1x240x200xbf16> to vector<240x200xbf16>
    %cst_29 = arith.constant dense<0.000000e+00> : vector<8x200xf32>
    %25 = tpu.matmul %22, %24, %cst_29 {dimension_numbers = #tpu.dot_dimension_numbers<[1], [0], [0], [1], [0, 0, 1, 1], [], []>} : vector<8x240xbf16>, vector<240x200xbf16>, vector<8x200xf32> -> vector<8x200xf32>
    %c2_30 = arith.constant 2 : index
    %c1_31 = arith.constant 1 : index
    %c0_32 = arith.constant 0 : index
    %c0_33 = arith.constant 0 : index
    %26 = vector.load %arg2[%c2_30, %c1_31, %c0_32, %c0_33] : memref<5x2x240x200xbf16, #tpu.memory_space<vmem>>, vector<1x1x240x200xbf16>
    %27 = vector.shape_cast %26 : vector<1x1x240x200xbf16> to vector<240x200xbf16>
    %cst_34 = arith.constant dense<0.000000e+00> : vector<8x200xf32>
    %28 = tpu.matmul %22, %27, %cst_34 {dimension_numbers = #tpu.dot_dimension_numbers<[1], [0], [0], [1], [0, 0, 1, 1], [], []>} : vector<8x240xbf16>, vector<240x200xbf16>, vector<8x200xf32> -> vector<8x200xf32>
    %29 = arith.addf %18, %25 : vector<8x200xf32>
    %30 = arith.addf %19, %28 : vector<8x200xf32>
    %c0_35 = arith.constant 0 : index
    %c3 = arith.constant 3 : index
    %c0_36 = arith.constant 0 : index
    %31 = vector.load %arg1[%c0_35, %c3, %c0_36] : memref<1x12x240xf32, #tpu.memory_space<vmem>>, vector<1x8x240xf32>
    %32 = vector.shape_cast %31 : vector<1x8x240xf32> to vector<8x240xf32>
    %33 = arith.truncf %32 : vector<8x240xf32> to vector<8x240xbf16>
    %c3_37 = arith.constant 3 : index
    %c0_38 = arith.constant 0 : index
    %c0_39 = arith.constant 0 : index
    %c0_40 = arith.constant 0 : index
    %34 = vector.load %arg2[%c3_37, %c0_38, %c0_39, %c0_40] : memref<5x2x240x200xbf16, #tpu.memory_space<vmem>>, vector<1x1x240x200xbf16>
    %35 = vector.shape_cast %34 : vector<1x1x240x200xbf16> to vector<240x200xbf16>
    %cst_41 = arith.constant dense<0.000000e+00> : vector<8x200xf32>
    %36 = tpu.matmul %33, %35, %cst_41 {dimension_numbers = #tpu.dot_dimension_numbers<[1], [0], [0], [1], [0, 0, 1, 1], [], []>} : vector<8x240xbf16>, vector<240x200xbf16>, vector<8x200xf32> -> vector<8x200xf32>
    %c3_42 = arith.constant 3 : index
    %c1_43 = arith.constant 1 : index
    %c0_44 = arith.constant 0 : index
    %c0_45 = arith.constant 0 : index
    %37 = vector.load %arg2[%c3_42, %c1_43, %c0_44, %c0_45] : memref<5x2x240x200xbf16, #tpu.memory_space<vmem>>, vector<1x1x240x200xbf16>
    %38 = vector.shape_cast %37 : vector<1x1x240x200xbf16> to vector<240x200xbf16>
    %cst_46 = arith.constant dense<0.000000e+00> : vector<8x200xf32>
    %39 = tpu.matmul %33, %38, %cst_46 {dimension_numbers = #tpu.dot_dimension_numbers<[1], [0], [0], [1], [0, 0, 1, 1], [], []>} : vector<8x240xbf16>, vector<240x200xbf16>, vector<8x200xf32> -> vector<8x200xf32>
    %40 = arith.addf %29, %36 : vector<8x200xf32>
    %41 = arith.addf %30, %39 : vector<8x200xf32>
    %c0_47 = arith.constant 0 : index
    %c4 = arith.constant 4 : index
    %c0_48 = arith.constant 0 : index
    %42 = vector.load %arg1[%c0_47, %c4, %c0_48] : memref<1x12x240xf32, #tpu.memory_space<vmem>>, vector<1x8x240xf32>
    %43 = vector.shape_cast %42 : vector<1x8x240xf32> to vector<8x240xf32>
    %44 = arith.truncf %43 : vector<8x240xf32> to vector<8x240xbf16>
    %c4_49 = arith.constant 4 : index
    %c0_50 = arith.constant 0 : index
    %c0_51 = arith.constant 0 : index
    %c0_52 = arith.constant 0 : index
    %45 = vector.load %arg2[%c4_49, %c0_50, %c0_51, %c0_52] : memref<5x2x240x200xbf16, #tpu.memory_space<vmem>>, vector<1x1x240x200xbf16>
    %46 = vector.shape_cast %45 : vector<1x1x240x200xbf16> to vector<240x200xbf16>
    %cst_53 = arith.constant dense<0.000000e+00> : vector<8x200xf32>
    %47 = tpu.matmul %44, %46, %cst_53 {dimension_numbers = #tpu.dot_dimension_numbers<[1], [0], [0], [1], [0, 0, 1, 1], [], []>} : vector<8x240xbf16>, vector<240x200xbf16>, vector<8x200xf32> -> vector<8x200xf32>
    %c4_54 = arith.constant 4 : index
    %c1_55 = arith.constant 1 : index
    %c0_56 = arith.constant 0 : index
    %c0_57 = arith.constant 0 : index
    %48 = vector.load %arg2[%c4_54, %c1_55, %c0_56, %c0_57] : memref<5x2x240x200xbf16, #tpu.memory_space<vmem>>, vector<1x1x240x200xbf16>
    %49 = vector.shape_cast %48 : vector<1x1x240x200xbf16> to vector<240x200xbf16>
    %cst_58 = arith.constant dense<0.000000e+00> : vector<8x200xf32>
    %50 = tpu.matmul %44, %49, %cst_58 {dimension_numbers = #tpu.dot_dimension_numbers<[1], [0], [0], [1], [0, 0, 1, 1], [], []>} : vector<8x240xbf16>, vector<240x200xbf16>, vector<8x200xf32> -> vector<8x200xf32>
    %51 = arith.addf %40, %47 : vector<8x200xf32>
    %52 = arith.addf %41, %50 : vector<8x200xf32>
    %53 = arith.maximumf %51, %52 : vector<8x200xf32>
    %c0_59 = arith.constant 0 : index
    %c0_60 = arith.constant 0 : index
    %54 = vector.load %arg4[%c0_59, %c0_60] : memref<4x8xf32, #tpu.memory_space<vmem>>, vector<4x8xf32>
    %cst_61 = arith.constant dense<0.000000e+00> : vector<4x200xf32>
    %55 = tpu.matmul %54, %53, %cst_61 {dimension_numbers = #tpu.dot_dimension_numbers<[1], [0], [0], [1], [0, 0, 1, 1], [], []>} : vector<4x8xf32>, vector<8x200xf32>, vector<4x200xf32> -> vector<4x200xf32>
    %c0_62 = arith.constant 0 : index
    %c0_63 = arith.constant 0 : index
    %56 = vector.load %arg5[%c0_62, %c0_63] : memref<4x8xf32, #tpu.memory_space<vmem>>, vector<4x8xf32>
    %cst_64 = arith.constant dense<0.000000e+00> : vector<4x200xf32>
    %57 = tpu.matmul %56, %53, %cst_64 {dimension_numbers = #tpu.dot_dimension_numbers<[1], [0], [0], [1], [0, 0, 1, 1], [], []>} : vector<4x8xf32>, vector<8x200xf32>, vector<4x200xf32> -> vector<4x200xf32>
    %58 = arith.maximumf %55, %57 : vector<4x200xf32>
    %c0_65 = arith.constant 0 : index
    %c0_66 = arith.constant 0 : index
    %59 = vector.load %arg3[%c0_65, %c0_66] : memref<1x200xf32, #tpu.memory_space<vmem>>, vector<1x200xf32>
    %60 = vector.broadcast %59 : vector<1x200xf32> to vector<4x200xf32>
    %61 = arith.addf %58, %60 : vector<4x200xf32>
    %cst_67 = arith.constant 0.000000e+00 : f32
    %62 = vector.broadcast %cst_67 : f32 to vector<4x200xf32>
    %63 = arith.maximumf %61, %62 : vector<4x200xf32>
    %c0_68 = arith.constant 0 : index
    %c0_69 = arith.constant 0 : index
    %c0_70 = arith.constant 0 : index
    %64 = vector.load %arg6[%c0_68, %c0_69, %c0_70] : memref<1x4x200xf32, #tpu.memory_space<vmem>>, vector<1x4x200xf32>
    %65 = vector.shape_cast %64 : vector<1x4x200xf32> to vector<4x200xf32>
    %66 = vector.shape_cast %63 : vector<4x200xf32> to vector<1x4x200xf32>
    tpu.vector_store %arg6[%c0_68, %c0_69, %c0_70], %66 {strides = array<i32>} : memref<1x4x200xf32, #tpu.memory_space<vmem>>, vector<1x4x200xf32>,
    return
  }
  func.func @transform_0(%arg0: i32) -> (i32, i32, i32) {
    %c0_i32 = arith.constant 0 : i32
    %c0_i32_0 = arith.constant 0 : i32
    %c0_i32_1 = arith.constant 0 : i32
    return %arg0, %c0_i32, %c0_i32_0 : i32, i32, i32
  }
  func.func @transform_1(%arg0: i32) -> (i32, i32, i32, i32) {
    %c0_i32 = arith.constant 0 : i32
    %c0_i32_0 = arith.constant 0 : i32
    %c0_i32_1 = arith.constant 0 : i32
    %c0_i32_2 = arith.constant 0 : i32
    %c0_i32_3 = arith.constant 0 : i32
    return %c0_i32, %c0_i32_0, %c0_i32_1, %c0_i32_2 : i32, i32, i32, i32
  }
  func.func @transform_2(%arg0: i32) -> (i32, i32) {
    %c0_i32 = arith.constant 0 : i32
    %c0_i32_0 = arith.constant 0 : i32
    %c0_i32_1 = arith.constant 0 : i32
    return %c0_i32, %c0_i32_0 : i32, i32
  }
  func.func @transform_3(%arg0: i32) -> (i32, i32) {
    %c0_i32 = arith.constant 0 : i32
    %c0_i32_0 = arith.constant 0 : i32
    %c0_i32_1 = arith.constant 0 : i32
    return %c0_i32, %c0_i32_0 : i32, i32
  }
  func.func @transform_4(%arg0: i32) -> (i32, i32) {
    %c0_i32 = arith.constant 0 : i32
    %c0_i32_0 = arith.constant 0 : i32
    %c0_i32_1 = arith.constant 0 : i32
    return %c0_i32, %c0_i32_0 : i32, i32
  }
  func.func @transform_5(%arg0: i32) -> (i32, i32, i32) {
    %c0_i32 = arith.constant 0 : i32
    %c0_i32_0 = arith.constant 0 : i32
    %c0_i32_1 = arith.constant 0 : i32
    return %arg0, %c0_i32, %c0_i32_0 : i32, i32, i32
  }
}

module attributes {stable_mosaic.version = 11 : i64} {
  func.func @_head_kernel(%arg0: memref<2x800xf32, #tpu.memory_space<vmem>>, %arg1: memref<800x500xbf16, #tpu.memory_space<vmem>>, %arg2: memref<1x500xf32, #tpu.memory_space<vmem>>, %arg3: memref<500x10xbf16, #tpu.memory_space<vmem>>, %arg4: memref<1x10xf32, #tpu.memory_space<vmem>>, %arg5: memref<2x10xf32, #tpu.memory_space<vmem>>) attributes {dimension_semantics = [], scalar_prefetch = 0 : i64, scratch_operands = 0 : i64, tpu.core_type = #tpu.core_type<tc>} {
    %c0 = arith.constant 0 : index
    %c0_0 = arith.constant 0 : index
    %0 = vector.load %arg0[%c0, %c0_0] : memref<2x800xf32, #tpu.memory_space<vmem>>, vector<2x800xf32>
    %1 = arith.truncf %0 : vector<2x800xf32> to vector<2x800xbf16>
    %c0_1 = arith.constant 0 : index
    %c0_2 = arith.constant 0 : index
    %2 = vector.load %arg1[%c0_1, %c0_2] : memref<800x500xbf16, #tpu.memory_space<vmem>>, vector<800x500xbf16>
    %cst = arith.constant dense<0.000000e+00> : vector<2x500xf32>
    %3 = tpu.matmul %1, %2, %cst {dimension_numbers = #tpu.dot_dimension_numbers<[1], [0], [0], [1], [0, 0, 1, 1], [], []>} : vector<2x800xbf16>, vector<800x500xbf16>, vector<2x500xf32> -> vector<2x500xf32>
    %c0_3 = arith.constant 0 : index
    %c0_4 = arith.constant 0 : index
    %4 = vector.load %arg2[%c0_3, %c0_4] : memref<1x500xf32, #tpu.memory_space<vmem>>, vector<1x500xf32>
    %5 = vector.broadcast %4 : vector<1x500xf32> to vector<2x500xf32>
    %6 = arith.addf %3, %5 : vector<2x500xf32>
    %cst_5 = arith.constant 0.000000e+00 : f32
    %7 = vector.broadcast %cst_5 : f32 to vector<2x500xf32>
    %8 = arith.maximumf %6, %7 : vector<2x500xf32>
    %9 = arith.truncf %8 : vector<2x500xf32> to vector<2x500xbf16>
    %c0_6 = arith.constant 0 : index
    %c0_7 = arith.constant 0 : index
    %10 = vector.load %arg3[%c0_6, %c0_7] : memref<500x10xbf16, #tpu.memory_space<vmem>>, vector<500x10xbf16>
    %cst_8 = arith.constant dense<0.000000e+00> : vector<2x10xf32>
    %11 = tpu.matmul %9, %10, %cst_8 {dimension_numbers = #tpu.dot_dimension_numbers<[1], [0], [0], [1], [0, 0, 1, 1], [], []>} : vector<2x500xbf16>, vector<500x10xbf16>, vector<2x10xf32> -> vector<2x10xf32>
    %c0_9 = arith.constant 0 : index
    %c0_10 = arith.constant 0 : index
    %12 = vector.load %arg4[%c0_9, %c0_10] : memref<1x10xf32, #tpu.memory_space<vmem>>, vector<1x10xf32>
    %13 = vector.broadcast %12 : vector<1x10xf32> to vector<2x10xf32>
    %14 = arith.addf %11, %13 : vector<2x10xf32>
    %cst_11 = arith.constant dense<0xFF800000> : vector<2xf32>
    %15 = vector.multi_reduction <maximumf>, %14, %cst_11 [1] : vector<2x10xf32> to vector<2xf32>
    %16 = vector.shape_cast %15 : vector<2xf32> to vector<2x1xf32>
    %17 = vector.broadcast %16 : vector<2x1xf32> to vector<2x10xf32>
    %18 = arith.subf %14, %17 : vector<2x10xf32>
    %19 = math.exp %18 : vector<2x10xf32>
    %cst_12 = arith.constant dense<0.000000e+00> : vector<2xf32>
    %20 = vector.multi_reduction <add>, %19, %cst_12 [1] : vector<2x10xf32> to vector<2xf32>
    %21 = vector.shape_cast %20 : vector<2xf32> to vector<2x1xf32>
    %22 = vector.broadcast %16 : vector<2x1xf32> to vector<2x10xf32>
    %23 = arith.subf %14, %22 : vector<2x10xf32>
    %24 = math.log %21 : vector<2x1xf32>
    %25 = vector.broadcast %24 : vector<2x1xf32> to vector<2x10xf32>
    %26 = arith.subf %23, %25 : vector<2x10xf32>
    %c0_13 = arith.constant 0 : index
    %c0_14 = arith.constant 0 : index
    %27 = vector.load %arg5[%c0_13, %c0_14] : memref<2x10xf32, #tpu.memory_space<vmem>>, vector<2x10xf32>
    tpu.vector_store %arg5[%c0_13, %c0_14], %26 {strides = array<i32>} : memref<2x10xf32, #tpu.memory_space<vmem>>, vector<2x10xf32>,
    return
  }
}

</mosaic_0001>

<bundles_post_ra>
// kernel: net_forward.8
= control target key start
LH: loop header
LB: loop body
LE: loop exit
PB: predicated region body
PF: predicated region fallthrough
CT: control target
= control target key end

     0   :  { %10 = vsyncpa [#allocation3], 0  ;;  %s339_s0 = inlined_call_operand.vmem [shape: f32[2,90], index: 0, kind: input, shape index: {}]   ;;  %s340_s1 = inlined_call_operand.vmem [shape: bf16[90,32], index: 1, kind: input, shape index: {}]   ;;  %s341_s2 = inlined_call_operand.hbm [shape: f32[1,32], index: 2, kind: input, shape index: {}]   ;;  %s342_s3 = inlined_call_operand.vmem [shape: bf16[32,6], index: 3, kind: input, shape index: {}]   ;;  %s343_s4 = inlined_call_operand.hbm [shape: f32[1,6], index: 4, kind: input, shape index: {}]   ;;  %s344_s5 = inlined_call_operand.vmem [shape: f32[2,6], index: 5, kind: output, shape index: {}]  }
   0x1   :  { %s21_s20 = sshll.u32 %s341_s2, 4  ;;  %s22_s20 = int_to_ptr.hbm [resolvable:$true] %s21_s20 }
   0x2   :  { %11 = vsyncpa [#allocation5], 0  ;;  %s268_s21 = smov [#allocation2]   ;;  %s34_s25 = sshll.u32 %s343_s4, 4  ;;  %s35_s25 = int_to_ptr.hbm [resolvable:$true] %s34_s25 }
   0x3   :  { %s23_s22 = sshll.u32 %s268_s21, 4  ;;  %s269_s26 = smov [#allocation4]   ;;  %s24_s22 = int_to_ptr.vmem [resolvable:$true] %s23_s22 }
   0x4   :  { %26 = dma.hbm_to_vmem [thread:$0]  %s22_s20, 16, %s24_s22, [#allocation3]  }
   0x5   :  { %s36_s27 = sshll.u32 %s269_s26, 4  ;;  %s37_s27 = int_to_ptr.vmem [resolvable:$true] %s36_s27 }
   0x6   :  { %39 = dma.hbm_to_vmem [thread:$0]  %s35_s25, 16, %s37_s27, [#allocation5]  }
   0x7   :  { %264 = dma.done.wait [#allocation3], 16  }
   0x8   :  { %265 = vsyncadd [#allocation3], 4294967280 }
   0x9   :  { %266 = dma.done.wait [#allocation5], 16  }
   0xa   :  { %267 = vsyncadd [#allocation5], 4294967280  ;;  %v192_v0 = vld [vmem:[%s340_s1 + $0x28] sm:$0xf]  ;;  %v209_v1 = vld [vmem:[%s340_s1 + $0x28] sm:$0x10] }
   0xb   :  { %vm106_vm0 = vcmask 1044480   ;;  %v193_v2 = vor.u32 %v209_v1, %v192_v0  ;;  %v208_v4 = vld [vmem:[%s340_s1 + $0x20] sm:$0xff]  ;;  %v207_v5 = vld [vmem:[%s340_s1 + $0x18] sm:$0xff]  ;;  %v206_v6 = vld [vmem:[%s340_s1 + $0x10] sm:$0xff]  ;;  %vm102_vm1 = vcmask 736256   ;;  %vm145_vm2 = vcmask 261120  }
   0xc   :  { %v205_v7 = vld [vmem:[%s340_s1 + $0x8] sm:$0xff]  ;;  %v204_v8 = vld [vmem:[%s340_s1] sm:$0xff]  ;;  %vm162_vm3 = vcmask 41984  }
   0xd   :  { %v108_v3 = vsel %vm106_vm0, %v193_v2, 0  ;;  %v49_v9 = vld [vmem:[%s339_s0] sm:$0x3]  ;;  %v211_v11 = vld [vmem:[%s342_s3 + $0x8] sm:$0xff]  ;;  %v215_v19 = vld [vmem:[#allocation4] ss:$0 sm:$0xff] }
   0xe   :  { %112 = vmatpush.bf16.msra.mxu0 %v108_v3  ;;  %v50_v10 = vpack.c.bf16 %v49_v9, %v49_v9  ;;  %155 = vmatpush.bf16.msra.mxu1 %v211_v11  ;;  %v210_v12 = vld [vmem:[%s342_s3] sm:$0xff] }
   0xf   :  { %v214_v13 = vld [vmem:[#allocation2] ss:$0 sm:$0xff] }
  0x12   :  { %113 = vmatpush.bf16.msra.mxu0 %v208_v4  ;;  %156 = vmatpush.bf16.msra.mxu1 %v210_v12 }
  0x16   :  { %114 = vmatpush.bf16.msra.mxu0 %v207_v5 }
  0x1a   :  { %115 = vmatpush.bf16.msra.mxu0 %v206_v6 }
  0x1e   :  { %116 = vmatpush.bf16.msra.mxu0 %v205_v7 }
  0x22   :  { %117 = vmatpush.bf16.msra.mxu0 %v204_v8 }
  0x25   :  { %194 = vmatmul.msk.bf16.vlgmr.msra.gmra.mxu0 %vm102_vm1, %v50_v10 }
  0xa2   :  { %v119_v14 = vpop.f32.mrf.mxu0 }
  0xa3   :  { %v120_v15 = vadd.f32 %v214_v13, %v119_v14 }
  0xa5   :  { %v123_v16 = vmax.f32 %v120_v15, 0.0 }
  0xa7   :  { %v124_v17 = vpack.c.bf16 %v123_v16, %v123_v16 }
  0xa9   :  { %203 = vmatmul.msk.bf16.vlgmr.msra.gmra.mxu1 %vm145_vm2, %v124_v17 }
  0xaa   :  { %v121_v18 = vpop.f32.mrf.mxu0 }
 0x126   :  { %v158_v20 = vpop.f32.mrf.mxu1 }
 0x127   :  { %v159_v21 = vadd.f32 %v215_v19, %v158_v20 }
 0x129   :  { %163 = vst.msk [vmem:[%s344_s5] sm:$0x3] %vm162_vm3, %v159_v21 }
 0x12e   :  { %v160_v22 = vpop.f32.mrf.mxu1 }
 0x12f   :  { %168 = vsyncpa [#allocation3], 1 }
 0x130   :  { %169 = vsyncpa [#allocation5], 1 }

// kernel: net_forward.7
= control target key start
LH: loop header
LB: loop body
LE: loop exit
PB: predicated region body
PF: predicated region fallthrough
CT: control target
= control target key end

     0   :  { %10 = vsyncpa [#allocation3], 0  ;;  %s1876_s0 = inlined_call_operand.vmem [shape: f32[2,11,88], index: 0, kind: input, shape index: {}]   ;;  %s1877_s1 = inlined_call_operand.vmem [shape: bf16[5,2,88,30], index: 1, kind: input, shape index: {}]   ;;  %s1878_s2 = inlined_call_operand.hbm [shape: f32[1,30], index: 2, kind: input, shape index: {}]   ;;  %s1879_s3 = inlined_call_operand.hbm [shape: f32[3,7], index: 3, kind: input, shape index: {}]   ;;  %s1880_s4 = inlined_call_operand.hbm [shape: f32[3,7], index: 4, kind: input, shape index: {}]   ;;  %s1881_s5 = inlined_call_operand.vmem [shape: f32[2,3,30], index: 5, kind: output, shape index: {}]  }
   0x1   :  { %11 = vsyncpa [#allocation5], 0  ;;  %s1616_s18 = smov 0  }
   0x2 LB: > { %s185_s21 = sshll.u32 %s1879_s3, 4  ;;  %s1625_s22 = sadd.s32 4294967295, %s1581_s18   ;;  %s1581_s18 = sphi %s1616_s18, %s17_s18   ;;  %s186_s21 = int_to_ptr.hbm [resolvable:$true] %s185_s21 }
   0x3   : > { %p1059_p0 = scmp.ge.s32.totalorder %s1581_s18, 1  ;;  %p158_p1 = scmp.lt.s32.totalorder %s1581_s18, 3 }
   0x4   : > { %p1459_p2 = scmp.eq.s32.totalorder %s1625_s22, 0  ;;  %s1583_s24 = smov [#allocation4]  }
   0x5   : > { %p1630_p3 = pnand %p1059_p0, %p158_p1  ;;  %s187_s25 = sshll.u32 %s1583_s24, 4  ;;  %s188_s25 = int_to_ptr.vmem [resolvable:$true] %s187_s25 }
   0x6   : > { %s173_s28 = sshll.u32 %s1878_s2, 4  ;;  %s197_s6 = sshll.u32 %s1880_s4, 4  ;;  %s174_s28 = int_to_ptr.hbm [resolvable:$true] %s173_s28  ;;  %s198_s6 = int_to_ptr.hbm [resolvable:$true] %s197_s6 }
   0x7   : > { %p1449_p4 = pneg %p1630_p3  ;;  %s1584_s7 = smov [#allocation2]  }
   0x8   : > { %s175_s8 = sshll.u32 %s1584_s7, 4  ;;  %s1585_s9 = smov [#allocation6]   ;;  %s176_s8 = int_to_ptr.vmem [resolvable:$true] %s175_s8 }
   0x9   : > { %p1450_p5 = pnand %p1459_p2, %p1449_p4  ;;  %s199_s10 = sshll.u32 %s1585_s9, 4  ;;  %s200_s10 = int_to_ptr.vmem [resolvable:$true] %s199_s10 }
   0xa   : > { %220 = sbr.rel (%p1630_p3) target bundleno = 365 (0x16d), region = 40 }
   0xb   : > { %1455 = dma.hbm_to_vmem [thread:$0]  (!%p1450_p5), %s186_s21, 64, %s188_s25, [#allocation5]  }
   0xc   : > { %1452 = dma.hbm_to_vmem [thread:$0]  (!%p1450_p5), %s174_s28, 16, %s176_s8, [#allocation3]  }
   0xd   : > { %1458 = dma.hbm_to_vmem [thread:$0]  (!%p1450_p5), %s198_s6, 64, %s200_s10, [#allocation5]  }
   0xf   : > { %1572 = dma.done.wait (%p1459_p2), [#allocation3], 16  }
  0x10   : > { %1574 = vsyncadd (%p1459_p2), [#allocation3], 4294967280 }
  0x11   : > { %1576 = dma.done.wait (%p1459_p2), [#allocation5], 128  }
  0x12   : > { %1578 = vsyncadd (%p1459_p2), [#allocation5], 4294967168  ;;  %v1092_v0 = vld [vmem:[%s1877_s1 + $0x80] sm:$0xf]  ;;  %v1124_v1 = vld [vmem:[%s1877_s1 + $0xac] sm:$0xf] }
  0x13   : > { %v280_v2 = vld [vmem:[%s1877_s1 + $0x28] sm:$0xf]  ;;  %v328_v3 = vunpack.c.l.b16 %v1092_v0  ;;  %v394_v4 = vunpack.c.l.b16 %v1124_v1  ;;  %v1081_v6 = vld [vmem:[%s1877_s1 + $0x54] sm:$0xf]  ;;  %vm344_vm0 = vcmask 1043456   ;;  %v1401_v16 = vld [vmem:[%s1877_s1 + $0x78] sm:$0xff] }
  0x14   : > { %v443_v5 = vunpack.c.l.b16 %v280_v2  ;;  %v495_v7 = vunpack.c.l.b16 %v1081_v6  ;;  %v1406_v17 = vld [vmem:[%s1877_s1 + $0xa4] sm:$0xff]  ;;  %v1396_v19 = vld [vmem:[%s1877_s1 + $0x4c] sm:$0xff]  ;;  %p258_p6 = scmp.lt.s32.totalorder %s1625_s22, 1  ;;  %v1405_v21 = vld [vmem:[%s1877_s1 + $0x9c] sm:$0xff]  ;;  %vm340_vm1 = vcmask 719872   ;;  %vm916_vm2 = vcmask 1046528  }
  0x15   : > { %v334_v8 = vpack.c.b16 %v328_v3, %v328_v3  ;;  %v400_v9 = vpack.c.b16 %v394_v4, %v394_v4  ;;  %v1391_v18 = vld [vmem:[%s1877_s1 + $0x20] sm:$0xff]  ;;  %v1400_v20 = vld [vmem:[%s1877_s1 + $0x70] sm:$0xff]  ;;  %v1390_v22 = vld [vmem:[%s1877_s1 + $0x18] sm:$0xff]  ;;  %vm912_vm3 = vcmask 56320   ;;  %vm971_vm4 = vcmask 239616  }
  0x16   : > { %v449_v10 = vpack.c.b16 %v443_v5, %v443_v5  ;;  %v501_v11 = vpack.c.b16 %v495_v7, %v495_v7  ;;  %v1395_v23 = vld [vmem:[%s1877_s1 + $0x44] sm:$0xff]  ;;  %v1404_v25 = vld [vmem:[%s1877_s1 + $0x94] sm:$0xff]  ;;  %s1884_s22 = smov (!%p258_p6, %s1625_s22), 1  ;;  %v1394_v29 = vld [vmem:[%s1877_s1 + $0x3c] sm:$0xff] }
  0x17   : > { %v346_v12 = vsel %vm344_vm0, %v334_v8, 0  ;;  %v407_v13 = vsel %vm344_vm0, %v400_v9, 0  ;;  %v1399_v24 = vld [vmem:[%s1877_s1 + $0x68] sm:$0xff]  ;;  %v1389_v26 = vld [vmem:[%s1877_s1 + $0x10] sm:$0xff]  ;;  %v1198_v27 = vld [vmem:[%s1877_s1 + $0xd8] sm:$0xf] }
  0x18   : > { %v459_v14 = vsel %vm344_vm0, %v449_v10, 0  ;;  %350 = vmatpush.bf16.msra.mxu0 %v346_v12  ;;  %411 = vmatpush.bf16.msra.mxu1 %v407_v13  ;;  %v508_v15 = vsel %vm344_vm0, %v501_v11, 0  ;;  %v1230_v28 = vld [vmem:[%s1877_s1 + $0x104] sm:$0xf]  ;;  %v1262_v30 = vld [vmem:[%s1877_s1 + $0x130] sm:$0xf]  ;;  %v558_v32 = vunpack.c.l.b16 %v1198_v27 }
  0x19   : > { %463 = vmatpush.bf16.msra.mxu2 %v459_v14  ;;  %512 = vmatpush.bf16.msra.mxu3 %v508_v15  ;;  %v1294_v31 = vld [vmem:[%s1877_s1 + $0x15c] sm:$0xf]  ;;  %v622_v33 = vunpack.c.l.b16 %v1230_v28  ;;  %s1386_s30 = sshll.u32 %s1884_s22, 4  ;;  %v1398_v34 = vld [vmem:[%s1877_s1 + $0x60] sm:$0xff]  ;;  %v1403_v35 = vld [vmem:[%s1877_s1 + $0x8c] sm:$0xff]  ;;  %v687_v36 = vunpack.c.l.b16 %v1262_v30 }
  0x1a   : > { %v751_v37 = vunpack.c.l.b16 %v1294_v31  ;;  %v1388_v38 = vld [vmem:[%s1877_s1 + $0x8] sm:$0xff]  ;;  %v1393_v39 = vld [vmem:[%s1877_s1 + $0x34] sm:$0xff]  ;;  %s1738_s16 = scalar_lea.vmem %s1876_s0, %s1386_s30  ;;  %v564_v40 = vpack.c.b16 %v558_v32, %v558_v32  ;;  %v1387_v46 = vld [vmem:[%s1877_s1] sm:$0xff] }
  0x1b   : > { %v628_v41 = vpack.c.b16 %v622_v33, %v622_v33  ;;  %v1397_v42 = vld [vmem:[%s1877_s1 + $0x58] sm:$0xff]  ;;  %v1402_v43 = vld [vmem:[%s1877_s1 + $0x84] sm:$0xff]  ;;  %v693_v44 = vpack.c.b16 %v687_v36, %v687_v36  ;;  %v1392_v47 = vld [vmem:[%s1877_s1 + $0x2c] sm:$0xff] }
  0x1c   : > { %351 = vmatpush.bf16.msra.mxu0 %v1401_v16  ;;  %412 = vmatpush.bf16.msra.mxu1 %v1406_v17  ;;  %v757_v45 = vpack.c.b16 %v751_v37, %v751_v37  ;;  %v293_v48 = vld [vmem:[%s1738_s16 + $0x1] sm:$0x7f]  ;;  %v574_v50 = vsel %vm344_vm0, %v564_v40, 0  ;;  %v1411_v56 = vld [vmem:[%s1877_s1 + $0xd0] sm:$0xff]  ;;  %v1421_v58 = vld [vmem:[%s1877_s1 + $0x128] sm:$0xff] }
  0x1d   : > { %464 = vmatpush.bf16.msra.mxu2 %v1391_v18  ;;  %513 = vmatpush.bf16.msra.mxu3 %v1396_v19  ;;  %v268_v49 = vld [vmem:[%s1738_s16] sm:$0x7f]  ;;  %v635_v51 = vsel %vm344_vm0, %v628_v41, 0  ;;  %v703_v52 = vsel %vm344_vm0, %v693_v44, 0  ;;  %v294_v54 = vpack.c.bf16 %v293_v48, %v293_v48  ;;  %v1426_v59 = vld [vmem:[%s1877_s1 + $0x154] sm:$0xff]  ;;  %v1410_v60 = vld [vmem:[%s1877_s1 + $0xc8] sm:$0xff] }
  0x1e   : > { %v764_v53 = vsel %vm344_vm0, %v757_v45, 0  ;;  %v269_v55 = vpack.c.bf16 %v268_v49, %v268_v49  ;;  %v1416_v57 = vld [vmem:[%s1877_s1 + $0xfc] sm:$0xff]  ;;  %v1415_v61 = vld [vmem:[%s1877_s1 + $0xf4] sm:$0xff]  ;;  %v1425_v63 = vld [vmem:[%s1877_s1 + $0x14c] sm:$0xff] }
  0x1f   : > { %v1420_v62 = vld [vmem:[%s1877_s1 + $0x120] sm:$0xff]  ;;  %v1414_v1 = vld [vmem:[%s1877_s1 + $0xec] sm:$0xff]  ;;  %v1326_v2 = vld [vmem:[%s1877_s1 + $0x188] sm:$0xf] }
  0x20   : > { %352 = vmatpush.bf16.msra.mxu0 %v1400_v20  ;;  %413 = vmatpush.bf16.msra.mxu1 %v1405_v21  ;;  %v1409_v0 = vld [vmem:[%s1877_s1 + $0xc0] sm:$0xff]  ;;  %v1358_v3 = vld [vmem:[%s1877_s1 + $0x1b4] sm:$0xf]  ;;  %v1419_v4 = vld [vmem:[%s1877_s1 + $0x118] sm:$0xff]  ;;  %v816_v6 = vunpack.c.l.b16 %v1326_v2 }
  0x21   : > { %465 = vmatpush.bf16.msra.mxu2 %v1390_v22  ;;  %514 = vmatpush.bf16.msra.mxu3 %v1395_v23  ;;  %v1424_v5 = vld [vmem:[%s1877_s1 + $0x144] sm:$0xff]  ;;  %v880_v7 = vunpack.c.l.b16 %v1358_v3  ;;  %v1408_v8 = vld [vmem:[%s1877_s1 + $0xb8] sm:$0xff]  ;;  %v1418_v10 = vld [vmem:[%s1877_s1 + $0x110] sm:$0xff] }
  0x22   : > { %v1413_v9 = vld [vmem:[%s1877_s1 + $0xe4] sm:$0xff]  ;;  %v1423_v11 = vld [vmem:[%s1877_s1 + $0x13c] sm:$0xff]  ;;  %v822_v12 = vpack.c.b16 %v816_v6, %v816_v6  ;;  %v1407_v14 = vld [vmem:[%s1877_s1 + $0xb0] sm:$0xff] }
  0x23   : > { %v886_v13 = vpack.c.b16 %v880_v7, %v880_v7  ;;  %v1412_v15 = vld [vmem:[%s1877_s1 + $0xdc] sm:$0xff]  ;;  %v1417_v17 = vld [vmem:[%s1877_s1 + $0x108] sm:$0xff]  ;;  %v1422_v18 = vld [vmem:[%s1877_s1 + $0x134] sm:$0xff] }
  0x24   : > { %353 = vmatpush.bf16.msra.mxu0 %v1399_v24  ;;  %414 = vmatpush.bf16.msra.mxu1 %v1404_v25  ;;  %v523_v16 = vld [vmem:[%s1738_s16 + $0x2] sm:$0x7f]  ;;  %v832_v20 = vsel %vm344_vm0, %v822_v12, 0  ;;  %v1436_v25 = vld [vmem:[%s1877_s1 + $0x1ac] sm:$0xff]  ;;  %v1433_v31 = vld [vmem:[%s1877_s1 + $0x194] sm:$0xff] }
  0x25   : > { %466 = vmatpush.bf16.msra.mxu2 %v1389_v26  ;;  %515 = vmatpush.bf16.msra.mxu3 %v1394_v29  ;;  %v652_v19 = vld [vmem:[%s1738_s16 + $0x3] sm:$0x7f]  ;;  %v893_v21 = vsel %vm344_vm0, %v886_v13, 0  ;;  %v524_v22 = vpack.c.bf16 %v523_v16, %v523_v16  ;;  %v1430_v26 = vld [vmem:[%s1877_s1 + $0x178] sm:$0xff]  ;;  %v1429_v28 = vld [vmem:[%s1877_s1 + $0x170] sm:$0xff] }
  0x26   : > { %v653_v23 = vpack.c.bf16 %v652_v19, %v652_v19  ;;  %v1431_v24 = vld [vmem:[%s1877_s1 + $0x180] sm:$0xff]  ;;  %v1428_v30 = vld [vmem:[%s1877_s1 + $0x168] sm:$0xff] }
  0x27   : > { %v1435_v27 = vld [vmem:[%s1877_s1 + $0x1a4] sm:$0xff]  ;;  %v1434_v29 = vld [vmem:[%s1877_s1 + $0x19c] sm:$0xff]  ;;  %v1432_v33 = vld [vmem:[%s1877_s1 + $0x18c] sm:$0xff] }
  0x28   : > { %354 = vmatpush.bf16.msra.mxu0 %v1398_v34  ;;  %415 = vmatpush.bf16.msra.mxu1 %v1403_v35  ;;  %v1427_v32 = vld [vmem:[%s1877_s1 + $0x160] sm:$0xff] }
  0x29   : > { %467 = vmatpush.bf16.msra.mxu2 %v1388_v38  ;;  %516 = vmatpush.bf16.msra.mxu3 %v1393_v39  ;;  %v781_v34 = vld [vmem:[%s1738_s16 + $0x4] sm:$0x7f]  ;;  %v1476_v3 = vld [vmem:[#allocation2] ss:$0 sm:$0xff]  ;;  %s1070_s16 = sshll.u32 %s1884_s22, 2 }
  0x2a   : > { %v782_v35 = vpack.c.bf16 %v781_v34, %v781_v34  ;;  %s266_s27 = scalar_lea.vmem %s1881_s5, %s1070_s16 }
  0x2c   : > { %355 = vmatpush.bf16.msra.mxu0 %v1397_v42  ;;  %416 = vmatpush.bf16.msra.mxu1 %v1402_v43 }
  0x2d   : > { %468 = vmatpush.bf16.msra.mxu2 %v1387_v46  ;;  %517 = vmatpush.bf16.msra.mxu3 %v1392_v47 }
  0x2f   : > { %1113 = vmatmul.msk.bf16.vlgmr.msra.gmra.mxu0 %vm340_vm1, %v294_v54  ;;  %1145 = vmatmul.msk.bf16.vlgmr.msra.gmra.mxu1 %vm340_vm1, %v294_v54 }
  0x30   : > { %578 = vmatpush.bf16.msrb.mxu0 %v574_v50  ;;  %639 = vmatpush.bf16.msrb.mxu1 %v635_v51 }
  0x31   : > { %707 = vmatpush.bf16.msrb.mxu2 %v703_v52  ;;  %768 = vmatpush.bf16.msrb.mxu3 %v764_v53 }
  0x32   : > { %1166 = vmatmul.msk.bf16.vlgmr.msra.gmra.mxu2 %vm340_vm1, %v269_v55  ;;  %1187 = vmatmul.msk.bf16.vlgmr.msra.gmra.mxu3 %vm340_vm1, %v269_v55 }
  0x34   : > { %579 = vmatpush.bf16.msrb.mxu0 %v1411_v56  ;;  %640 = vmatpush.bf16.msrb.mxu1 %v1416_v57 }
  0x35   : > { %708 = vmatpush.bf16.msrb.mxu2 %v1421_v58  ;;  %769 = vmatpush.bf16.msrb.mxu3 %v1426_v59 }
  0x38   : > { %580 = vmatpush.bf16.msrb.mxu0 %v1410_v60  ;;  %641 = vmatpush.bf16.msrb.mxu1 %v1415_v61 }
  0x39   : > { %709 = vmatpush.bf16.msrb.mxu2 %v1420_v62  ;;  %770 = vmatpush.bf16.msrb.mxu3 %v1425_v63  ;;  %v911_v63 = vld [vmem:[#allocation4] sm:$0x7] }
  0x3c   : > { %581 = vmatpush.bf16.msrb.mxu0 %v1409_v0  ;;  %642 = vmatpush.bf16.msrb.mxu1 %v1414_v1  ;;  %v940_v0 = vld [vmem:[#allocation6] sm:$0x7] }
  0x3d   : > { %710 = vmatpush.bf16.msrb.mxu2 %v1419_v4  ;;  %771 = vmatpush.bf16.msrb.mxu3 %v1424_v5 }
  0x40   : > { %582 = vmatpush.bf16.msrb.mxu0 %v1408_v8  ;;  %643 = vmatpush.bf16.msrb.mxu1 %v1413_v9 }
  0x41   : > { %711 = vmatpush.bf16.msrb.mxu2 %v1418_v10  ;;  %772 = vmatpush.bf16.msrb.mxu3 %v1423_v11 }
  0x44   : > { %583 = vmatpush.bf16.msrb.mxu0 %v1407_v14  ;;  %644 = vmatpush.bf16.msrb.mxu1 %v1412_v15 }
  0x45   : > { %712 = vmatpush.bf16.msrb.mxu2 %v1417_v17  ;;  %773 = vmatpush.bf16.msrb.mxu3 %v1422_v18 }
  0x47   : > { %1219 = vmatmul.msk.bf16.vlgmr.msrb.gmra.mxu0 %vm340_vm1, %v524_v22  ;;  %1251 = vmatmul.msk.bf16.vlgmr.msrb.gmra.mxu1 %vm340_vm1, %v524_v22 }
  0x48   : > { %836 = vmatpush.bf16.msra.mxu0 %v832_v20  ;;  %897 = vmatpush.bf16.msra.mxu1 %v893_v21 }
  0x49   : > { %1283 = vmatmul.msk.bf16.vlgmr.msrb.gmra.mxu2 %vm340_vm1, %v653_v23  ;;  %1315 = vmatmul.msk.bf16.vlgmr.msrb.gmra.mxu3 %vm340_vm1, %v653_v23 }
  0x4c   : > { %837 = vmatpush.bf16.msra.mxu0 %v1431_v24  ;;  %898 = vmatpush.bf16.msra.mxu1 %v1436_v25 }
  0x50   : > { %838 = vmatpush.bf16.msra.mxu0 %v1430_v26  ;;  %899 = vmatpush.bf16.msra.mxu1 %v1435_v27 }
  0x54   : > { %839 = vmatpush.bf16.msra.mxu0 %v1429_v28  ;;  %900 = vmatpush.bf16.msra.mxu1 %v1434_v29 }
  0x58   : > { %840 = vmatpush.bf16.msra.mxu0 %v1428_v30  ;;  %901 = vmatpush.bf16.msra.mxu1 %v1433_v31 }
  0x5c   : > { %841 = vmatpush.bf16.msra.mxu0 %v1427_v32  ;;  %902 = vmatpush.bf16.msra.mxu1 %v1432_v33 }
  0x5f   : > { %1347 = vmatmul.msk.bf16.vlgmr.msra.gmra.mxu0 %vm340_vm1, %v782_v35  ;;  %1379 = vmatmul.msk.bf16.vlgmr.msra.gmra.mxu1 %vm340_vm1, %v782_v35 }
  0xac   : > { %v357_v36 = vpop.f32.mrf.mxu0  ;;  %v418_v37 = vpop.f32.mrf.mxu1 }
  0xb4   : > { %v359_v40 = vpop.f32.mrf.mxu0  ;;  %v420_v41 = vpop.f32.mrf.mxu1 }
  0xb5   : > { %v470_v38 = vpop.f32.mrf.mxu2  ;;  %v519_v39 = vpop.f32.mrf.mxu3 }
  0xb6   : > { %v471_v52 = vadd.f32 %v470_v38, %v357_v36  ;;  %v520_v53 = vadd.f32 %v519_v39, %v418_v37 }
  0xbd   : > { %v472_v42 = vpop.f32.mrf.mxu2  ;;  %v521_v43 = vpop.f32.mrf.mxu3 }
  0xc4   : > { %v585_v44 = vpop.f32.mrf.mxu0  ;;  %v646_v45 = vpop.f32.mrf.mxu1 }
  0xc5   : > { %v650_v54 = vadd.f32 %v585_v44, %v471_v52  ;;  %v651_v55 = vadd.f32 %v646_v45, %v520_v53 }
  0xcc   : > { %v714_v46 = vpop.f32.mrf.mxu2  ;;  %v775_v47 = vpop.f32.mrf.mxu3 }
  0xcd   : > { %v587_v48 = vpop.f32.mrf.mxu0  ;;  %v648_v49 = vpop.f32.mrf.mxu1  ;;  %v779_v56 = vadd.f32 %v714_v46, %v650_v54  ;;  %v780_v57 = vadd.f32 %v775_v47, %v651_v55 }
  0xd4   : > { %v716_v50 = vpop.f32.mrf.mxu2  ;;  %v777_v51 = vpop.f32.mrf.mxu3 }
  0xdc   : > { %v843_v58 = vpop.f32.mrf.mxu0  ;;  %v904_v59 = vpop.f32.mrf.mxu1 }
  0xdd   : > { %v908_v60 = vadd.f32 %v843_v58, %v779_v56  ;;  %v909_v61 = vadd.f32 %v904_v59, %v780_v57 }
  0xdf   : > { %v910_v62 = vmax.f32 %v908_v60, %v909_v61 }
  0xe1   : > { %1380 = vmatpush.msk.msra.mxu2 %vm916_vm2, %v910_v62  ;;  %1382 = vmatpush.msk.msra.mxu3 %vm916_vm2, %v910_v62 }
  0xe2   : > { %1381 = vmatmul.msk.f32.vlgmr.msra.gmra.mxu2 %vm912_vm3, %v911_v63  ;;  %1383 = vmatmul.msk.f32.vlgmr.msra.gmra.mxu3 %vm912_vm3, %v940_v0 }
  0xe4   : > { %v845_v1 = vpop.f32.mrf.mxu0  ;;  %v906_v2 = vpop.f32.mrf.mxu1 }
 0x165   : > { %v937_v4 = vpop.f32.mrf.mxu2  ;;  %v961_v5 = vpop.f32.mrf.mxu3 }
 0x166   : > { %v964_v6 = vmax.f32 %v937_v4, %v961_v5 }
 0x168   : > { %v969_v7 = vadd.f32 %v1476_v3, %v964_v6 }
 0x16a   : > { %v970_v8 = vmax.f32 %v969_v7, 0.0 }
 0x16c   : > { %972 = vst.msk [vmem:[%s266_s27] sm:$0x7] %vm971_vm4, %v970_v8 }
 0x16d PF: > { %s17_s18 = sadd.s32 1, %s1581_s18  }
 0x16e   : > { %p14_p7 = scmp.ge.s32.totalorder %s17_s18, 4  }
 0x170   :  { %16 = sbr.rel (!%p14_p7) target bundleno = 2 (0x2), region = 92 }
 0x175   :  { %992 = vsyncpa [#allocation3], 1 }
 0x176   :  { %994 = vsyncpa [#allocation3 + $0x1], 1 }
 0x177   :  { %995 = vsyncpa [#allocation5], 1 }

// kernel: net_forward.6
= control target key start
LH: loop header
LB: loop body
LE: loop exit
PB: predicated region body
PF: predicated region fallthrough
CT: control target
= control target key end

     0   :  { %10 = vsyncpa [#allocation3], 0  ;;  %s1753_s0 = inlined_call_operand.vmem [shape: f32[2,28,28], index: 0, kind: input, shape index: {}]   ;;  %s1754_s1 = inlined_call_operand.vmem [shape: bf16[7,2,28,88], index: 1, kind: input, shape index: {}]   ;;  %s1755_s2 = inlined_call_operand.hbm [shape: f32[1,88], index: 2, kind: input, shape index: {}]   ;;  %s1756_s3 = inlined_call_operand.hbm [shape: f32[11,22], index: 3, kind: input, shape index: {}]   ;;  %s1757_s4 = inlined_call_operand.hbm [shape: f32[11,22], index: 4, kind: input, shape index: {}]   ;;  %s1758_s5 = inlined_call_operand.vmem [shape: f32[2,11,88], index: 5, kind: output, shape index: {}]  }
   0x1   :  { %11 = vsyncpa [#allocation5], 0  ;;  %s1497_s18 = smov 0  }
   0x2 LB: > { %s184_s21 = sshll.u32 %s1756_s3, 4  ;;  %s1506_s22 = sadd.s32 4294967295, %s1460_s18   ;;  %s1460_s18 = sphi %s1497_s18, %s17_s18   ;;  %s185_s21 = int_to_ptr.hbm [resolvable:$true] %s184_s21 }
   0x3   : > { %p1071_p0 = scmp.ge.s32.totalorder %s1460_s18, 1  ;;  %p158_p1 = scmp.lt.s32.totalorder %s1460_s18, 3 }
   0x4   : > { %p1336_p2 = scmp.eq.s32.totalorder %s1506_s22, 0  ;;  %s1462_s24 = smov [#allocation4]  }
   0x5   : > { %p1511_p3 = pnand %p1071_p0, %p158_p1  ;;  %s186_s25 = sshll.u32 %s1462_s24, 4  ;;  %s187_s25 = int_to_ptr.vmem [resolvable:$true] %s186_s25 }
   0x6   : > { %s173_s28 = sshll.u32 %s1755_s2, 4  ;;  %s1463_s30 = smov [#allocation2]   ;;  %s174_s28 = int_to_ptr.hbm [resolvable:$true] %s173_s28 }
   0x7   : > { %p1326_p4 = pneg %p1511_p3  ;;  %s175_s6 = sshll.u32 %s1463_s30, 4  ;;  %s176_s6 = int_to_ptr.vmem [resolvable:$true] %s175_s6 }
   0x8   : > { %s198_s9 = sshll.u32 %s1757_s4, 4  ;;  %s1464_s10 = smov 128   ;;  %s199_s9 = int_to_ptr.hbm [resolvable:$true] %s198_s9 }
   0x9   : > { %p1522_p5 = pnand %p1336_p2, %p1326_p4  ;;  %s1465_s11 = smov 8  }
   0xa   : > { %s1466_s12 = smov [#allocation6]   ;;  %224 = sbr.rel (%p1511_p3) target bundleno = 425 (0x1a9), region = 40 }
   0xb   : > { %1332 = dma.hbm_to_vmem [thread:$0]  (!%p1522_p5), %s185_s21, 256, %s187_s25, [#allocation5], %s1464_s10, %s1464_s10, %s1465_s11  }
   0xc   : > { %1329 = dma.hbm_to_vmem [thread:$0]  (!%p1522_p5), %s174_s28, 16, %s176_s6, [#allocation3]  }
   0xd   : > { %s200_s13 = sshll.u32 %s1466_s12, 4  ;;  %s201_s13 = int_to_ptr.vmem [resolvable:$true] %s200_s13 }
   0xe   : > { %1335 = dma.hbm_to_vmem [thread:$0]  (!%p1522_p5), %s199_s9, 256, %s201_s13, [#allocation5], %s1464_s10, %s1464_s10, %s1465_s11  }
   0xf   : > { %1451 = dma.done.wait (%p1336_p2), [#allocation3], 16  }
  0x10   : > { %1453 = vsyncadd (%p1336_p2), [#allocation3], 4294967280 }
  0x11   : > { %1455 = dma.done.wait (%p1336_p2), [#allocation5], 512  }
  0x12   : > { %1457 = vsyncadd (%p1336_p2), [#allocation5], 4294966784  ;;  %p263_p6 = scmp.lt.s32.totalorder %s1506_s22, 1  ;;  %vm316_vm0 = vcmask 1045504   ;;  %v1098_v0 = vld [vmem:[%s1754_s1 + $0x28] sm:$0xf] }
  0x13   : > { %v1291_v1 = vld [vmem:[%s1754_s1 + $0x28] sm:$0x30]  ;;  %v1112_v2 = vld [vmem:[%s1754_s1 + $0x38] sm:$0xf]  ;;  %v1293_v4 = vld [vmem:[%s1754_s1 + $0x38] sm:$0x30] }
  0x14   : > { %s1762_s22 = smov (!%p263_p6, %s1506_s22), 1  ;;  %v1099_v3 = vor.u32 %v1291_v1, %v1098_v0  ;;  %v1122_v5 = vld [vmem:[%s1754_s1 + $0x8] sm:$0xf]  ;;  %v1287_v6 = vld [vmem:[%s1754_s1 + $0x8] sm:$0x30]  ;;  %v1113_v7 = vor.u32 %v1293_v4, %v1112_v2  ;;  %v1290_v13 = vld [vmem:[%s1754_s1 + $0x20] sm:$0xff] }
  0x15   : > { %s1284_s14 = sshll.u32 %s1762_s22, 5  ;;  %v1123_v8 = vor.u32 %v1287_v6, %v1122_v5  ;;  %v1132_v9 = vld [vmem:[%s1754_s1 + $0x18] sm:$0xf]  ;;  %v1289_v10 = vld [vmem:[%s1754_s1 + $0x18] sm:$0x30]  ;;  %v1292_v14 = vld [vmem:[%s1754_s1 + $0x30] sm:$0xff] }
  0x16   : > { %s1571_s6 = scalar_lea.vmem %s1753_s0, %s1284_s14  ;;  %v318_v11 = vsel %vm316_vm0, %v1099_v3, 0  ;;  %v1133_v12 = vor.u32 %v1289_v10, %v1132_v9  ;;  %v355_v15 = vsel %vm316_vm0, %v1113_v7, 0  ;;  %v1286_v17 = vld [vmem:[%s1754_s1] sm:$0xff]  ;;  %v1288_v21 = vld [vmem:[%s1754_s1 + $0x10] sm:$0xff]  ;;  %v1146_v24 = vld [vmem:[%s1754_s1 + $0x48] sm:$0xf] }
  0x17   : > { %326 = vmatpush.bf16.msra.mxu0 %v318_v11  ;;  %v393_v16 = vsel %vm316_vm0, %v1123_v8, 0  ;;  %v288_v18 = vld [vmem:[%s1571_s6 + $0x1] sm:$0xff]  ;;  %v289_v19 = vld [vmem:[%s1571_s6 + $0x9] sm:$0xff]  ;;  %363 = vmatpush.bf16.msra.mxu1 %v355_v15  ;;  %v1160_v26 = vld [vmem:[%s1754_s1 + $0x58] sm:$0xf]  ;;  %vm309_vm1 = vcmask 228352  }
  0x18   : > { %401 = vmatpush.bf16.msra.mxu2 %v393_v16  ;;  %v425_v20 = vsel %vm316_vm0, %v1133_v12, 0  ;;  %v274_v22 = vld [vmem:[%s1571_s6] sm:$0xff]  ;;  %v275_v23 = vld [vmem:[%s1571_s6 + $0x8] sm:$0xff]  ;;  %v291_v27 = vpack.c.bf16 %v289_v19, %v288_v18  ;;  %v1297_v29 = vld [vmem:[%s1754_s1 + $0x58] sm:$0x30]  ;;  %vm905_vm2 = vcmask 179200  }
  0x19   : > { %433 = vmatpush.bf16.msra.mxu3 %v425_v20  ;;  %v1295_v25 = vld [vmem:[%s1754_s1 + $0x48] sm:$0x30]  ;;  %v1174_v30 = vld [vmem:[%s1754_s1 + $0x68] sm:$0xf]  ;;  %v277_v32 = vpack.c.bf16 %v275_v23, %v274_v22  ;;  %v1161_v33 = vor.u32 %v1297_v29, %v1160_v26  ;;  %v1188_v35 = vld [vmem:[%s1754_s1 + $0x78] sm:$0xf] }
  0x1a   : > { %v1147_v28 = vor.u32 %v1295_v25, %v1146_v24  ;;  %v1299_v31 = vld [vmem:[%s1754_s1 + $0x68] sm:$0x30]  ;;  %v1301_v36 = vld [vmem:[%s1754_s1 + $0x78] sm:$0x30]  ;;  %v1294_v41 = vld [vmem:[%s1754_s1 + $0x40] sm:$0xff]  ;;  %vm979_vm3 = vcmask 719872  }
  0x1b   : > { %327 = vmatpush.bf16.msra.mxu0 %v1290_v13  ;;  %v1175_v34 = vor.u32 %v1299_v31, %v1174_v30  ;;  %364 = vmatpush.bf16.msra.mxu1 %v1292_v14  ;;  %v1189_v38 = vor.u32 %v1301_v36, %v1188_v35  ;;  %v510_v39 = vsel %vm316_vm0, %v1161_v33, 0  ;;  %v1296_v43 = vld [vmem:[%s1754_s1 + $0x50] sm:$0xff]  ;;  %v1298_v44 = vld [vmem:[%s1754_s1 + $0x60] sm:$0xff]  ;;  %v1202_v50 = vld [vmem:[%s1754_s1 + $0x88] sm:$0xf]  ;;  %vm981_vm4 = vcmask 714752  }
  0x1c   : > { %402 = vmatpush.bf16.msra.mxu2 %v1286_v17  ;;  %v473_v37 = vsel %vm316_vm0, %v1147_v28, 0  ;;  %v1300_v45 = vld [vmem:[%s1754_s1 + $0x70] sm:$0xff]  ;;  %v1303_v51 = vld [vmem:[%s1754_s1 + $0x88] sm:$0x30]  ;;  %v1216_v52 = vld [vmem:[%s1754_s1 + $0x98] sm:$0xf] }
  0x1d   : > { %434 = vmatpush.bf16.msra.mxu3 %v1288_v21  ;;  %v564_v40 = vsel %vm316_vm0, %v1175_v34, 0  ;;  %v601_v42 = vsel %vm316_vm0, %v1189_v38, 0  ;;  %v290_v46 = vld [vmem:[%s1571_s6 + $0x11] sm:$0x3f]  ;;  %v1203_v53 = vor.u32 %v1303_v51, %v1202_v50  ;;  %v1305_v54 = vld [vmem:[%s1754_s1 + $0x98] sm:$0x30] }
  0x1e   : > { %1100 = vmatmul.msk.bf16.vlgmr.msra.gmra.mxu0 %vm309_vm1, %v291_v27  ;;  %1114 = vmatmul.msk.bf16.vlgmr.msra.gmra.mxu1 %vm309_vm1, %v291_v27  ;;  %v276_v47 = vld [vmem:[%s1571_s6 + $0x10] sm:$0x3f]  ;;  %v292_v48 = vpack.c.bf16 %v290_v46, %v290_v46  ;;  %v1230_v55 = vld [vmem:[%s1754_s1 + $0xa8] sm:$0xf]  ;;  %v1307_v56 = vld [vmem:[%s1754_s1 + $0xa8] sm:$0x30]  ;;  %v1217_v57 = vor.u32 %v1305_v54, %v1216_v52 }
  0x1f   : > { %481 = vmatpush.bf16.msrb.mxu0 %v473_v37  ;;  %518 = vmatpush.bf16.msrb.mxu1 %v510_v39  ;;  %v278_v49 = vpack.c.bf16 %v276_v47, %v276_v47  ;;  %v1231_v58 = vor.u32 %v1307_v56, %v1230_v55  ;;  %v1244_v59 = vld [vmem:[%s1754_s1 + $0xb8] sm:$0xf]  ;;  %v1309_v60 = vld [vmem:[%s1754_s1 + $0xb8] sm:$0x30]  ;;  %v655_v61 = vsel %vm316_vm0, %v1203_v53, 0  ;;  %v1302_v1 = vld [vmem:[%s1754_s1 + $0x80] sm:$0xff] }
  0x20   : > { %1124 = vmatmul.msk.bf16.vlgmr.msra.gmra.mxu2 %vm309_vm1, %v277_v32  ;;  %1134 = vmatmul.msk.bf16.vlgmr.msra.gmra.mxu3 %vm309_vm1, %v277_v32  ;;  %v1245_v62 = vor.u32 %v1309_v60, %v1244_v59  ;;  %v692_v63 = vsel %vm316_vm0, %v1217_v57, 0  ;;  %v1304_v3 = vld [vmem:[%s1754_s1 + $0x90] sm:$0xff]  ;;  %v1306_v4 = vld [vmem:[%s1754_s1 + $0xa0] sm:$0xff]  ;;  %v1258_v16 = vld [vmem:[%s1754_s1 + $0xc8] sm:$0xf] }
  0x21   : > { %572 = vmatpush.bf16.msrb.mxu2 %v564_v40  ;;  %609 = vmatpush.bf16.msrb.mxu3 %v601_v42  ;;  %v746_v0 = vsel %vm316_vm0, %v1231_v58, 0  ;;  %v1308_v5 = vld [vmem:[%s1754_s1 + $0xb0] sm:$0xff]  ;;  %v445_v6 = vld [vmem:[%s1571_s6 + $0x2] sm:$0xff]  ;;  %v1311_v17 = vld [vmem:[%s1754_s1 + $0xc8] sm:$0x30] }
  0x22   : > { %v783_v2 = vsel %vm316_vm0, %v1245_v62, 0  ;;  %v446_v7 = vld [vmem:[%s1571_s6 + $0xa] sm:$0xff]  ;;  %v447_v12 = vld [vmem:[%s1571_s6 + $0x12] sm:$0x3f]  ;;  %v1272_v18 = vld [vmem:[%s1754_s1 + $0xd8] sm:$0xf]  ;;  %v1259_v19 = vor.u32 %v1311_v17, %v1258_v16 }
  0x23   : > { %482 = vmatpush.bf16.msrb.mxu0 %v1294_v41  ;;  %519 = vmatpush.bf16.msrb.mxu1 %v1296_v43  ;;  %v536_v8 = vld [vmem:[%s1571_s6 + $0x3] sm:$0xff]  ;;  %v537_v9 = vld [vmem:[%s1571_s6 + $0xb] sm:$0xff]  ;;  %v448_v10 = vpack.c.bf16 %v446_v7, %v445_v6  ;;  %v538_v13 = vld [vmem:[%s1571_s6 + $0x13] sm:$0x3f]  ;;  %v449_v14 = vpack.c.bf16 %v447_v12, %v447_v12 }
  0x24   : > { %v539_v11 = vpack.c.bf16 %v537_v9, %v536_v8  ;;  %v540_v15 = vpack.c.bf16 %v538_v13, %v538_v13  ;;  %v1313_v20 = vld [vmem:[%s1754_s1 + $0xd8] sm:$0x30]  ;;  %v837_v22 = vsel %vm316_vm0, %v1259_v19, 0  ;;  %v1310_v24 = vld [vmem:[%s1754_s1 + $0xc0] sm:$0xff]  ;;  %v1312_v25 = vld [vmem:[%s1754_s1 + $0xd0] sm:$0xff] }
  0x25   : > { %573 = vmatpush.bf16.msrb.mxu2 %v1298_v44  ;;  %610 = vmatpush.bf16.msrb.mxu3 %v1300_v45  ;;  %v1273_v21 = vor.u32 %v1313_v20, %v1272_v18  ;;  %v627_v26 = vld [vmem:[%s1571_s6 + $0x4] sm:$0xff]  ;;  %v628_v27 = vld [vmem:[%s1571_s6 + $0xc] sm:$0xff]  ;;  %v629_v32 = vld [vmem:[%s1571_s6 + $0x14] sm:$0x3f] }
  0x26   : > { %v718_v28 = vld [vmem:[%s1571_s6 + $0x5] sm:$0xff]  ;;  %v719_v29 = vld [vmem:[%s1571_s6 + $0xd] sm:$0xff]  ;;  %v630_v30 = vpack.c.bf16 %v628_v27, %v627_v26  ;;  %v720_v33 = vld [vmem:[%s1571_s6 + $0x15] sm:$0x3f]  ;;  %v631_v34 = vpack.c.bf16 %v629_v32, %v629_v32 }
  0x27   : > { %663 = vmatpush.bf16.msra.mxu0 %v655_v61  ;;  %700 = vmatpush.bf16.msra.mxu1 %v692_v63  ;;  %v874_v23 = vsel %vm316_vm0, %v1273_v21, 0  ;;  %v721_v31 = vpack.c.bf16 %v719_v29, %v718_v28  ;;  %v722_v35 = vpack.c.bf16 %v720_v33, %v720_v33  ;;  %v809_v36 = vld [vmem:[%s1571_s6 + $0x6] sm:$0xff]  ;;  %v810_v37 = vld [vmem:[%s1571_s6 + $0xe] sm:$0xff]  ;;  %v811_v39 = vld [vmem:[%s1571_s6 + $0x16] sm:$0x3f]  ;;  %s1285_s6 = sshll.u32 %s1762_s22, 4 }
  0x28   : > { %v812_v38 = vpack.c.bf16 %v810_v37, %v809_v36  ;;  %v813_v40 = vpack.c.bf16 %v811_v39, %v811_v39  ;;  %s272_s15 = scalar_lea.vmem %s1758_s5, %s1285_s6 }
  0x29   : > { %754 = vmatpush.bf16.msra.mxu2 %v746_v0  ;;  %791 = vmatpush.bf16.msra.mxu3 %v783_v2 }
  0x2b   : > { %664 = vmatpush.bf16.msra.mxu0 %v1302_v1  ;;  %701 = vmatpush.bf16.msra.mxu1 %v1304_v3 }
  0x2d   : > { %755 = vmatpush.bf16.msra.mxu2 %v1306_v4  ;;  %792 = vmatpush.bf16.msra.mxu3 %v1308_v5 }
  0x2e   : > { %1101 = vmatmul.msk.bf16.gmra.mxu0 %vm309_vm1, %v292_v48  ;;  %1115 = vmatmul.msk.bf16.gmra.mxu1 %vm309_vm1, %v292_v48 }
  0x30   : > { %1125 = vmatmul.msk.bf16.gmra.mxu2 %vm309_vm1, %v278_v49  ;;  %1135 = vmatmul.msk.bf16.gmra.mxu3 %vm309_vm1, %v278_v49 }
  0x3e   : > { %1148 = vmatmul.msk.bf16.vlgmr.msrb.gmra.mxu0 %vm309_vm1, %v448_v10  ;;  %1162 = vmatmul.msk.bf16.vlgmr.msrb.gmra.mxu1 %vm309_vm1, %v448_v10 }
  0x3f   : > { %845 = vmatpush.bf16.msrb.mxu0 %v837_v22  ;;  %882 = vmatpush.bf16.msrb.mxu1 %v874_v23 }
  0x40   : > { %1176 = vmatmul.msk.bf16.vlgmr.msrb.gmra.mxu2 %vm309_vm1, %v539_v11  ;;  %1190 = vmatmul.msk.bf16.vlgmr.msrb.gmra.mxu3 %vm309_vm1, %v539_v11 }
  0x43   : > { %846 = vmatpush.bf16.msrb.mxu0 %v1310_v24  ;;  %883 = vmatpush.bf16.msrb.mxu1 %v1312_v25 }
  0x4e   : > { %1149 = vmatmul.msk.bf16.gmra.mxu0 %vm309_vm1, %v449_v14  ;;  %1163 = vmatmul.msk.bf16.gmra.mxu1 %vm309_vm1, %v449_v14 }
  0x50   : > { %1177 = vmatmul.msk.bf16.gmra.mxu2 %vm309_vm1, %v540_v15  ;;  %1191 = vmatmul.msk.bf16.gmra.mxu3 %vm309_vm1, %v540_v15 }
  0x5e   : > { %1204 = vmatmul.msk.bf16.vlgmr.msra.gmra.mxu0 %vm309_vm1, %v630_v30  ;;  %1218 = vmatmul.msk.bf16.vlgmr.msra.gmra.mxu1 %vm309_vm1, %v630_v30 }
  0x60   : > { %1232 = vmatmul.msk.bf16.vlgmr.msra.gmra.mxu2 %vm309_vm1, %v721_v31  ;;  %1246 = vmatmul.msk.bf16.vlgmr.msra.gmra.mxu3 %vm309_vm1, %v721_v31 }
  0x6e   : > { %1205 = vmatmul.msk.bf16.gmra.mxu0 %vm309_vm1, %v631_v34  ;;  %1219 = vmatmul.msk.bf16.gmra.mxu1 %vm309_vm1, %v631_v34 }
  0x70   : > { %1233 = vmatmul.msk.bf16.gmra.mxu2 %vm309_vm1, %v722_v35  ;;  %1247 = vmatmul.msk.bf16.gmra.mxu3 %vm309_vm1, %v722_v35 }
  0x7e   : > { %1260 = vmatmul.msk.bf16.vlgmr.msrb.gmra.mxu0 %vm309_vm1, %v812_v38  ;;  %1274 = vmatmul.msk.bf16.vlgmr.msrb.gmra.mxu1 %vm309_vm1, %v812_v38 }
  0x8e   : > { %1261 = vmatmul.msk.bf16.gmra.mxu0 %vm309_vm1, %v813_v40  ;;  %1275 = vmatmul.msk.bf16.gmra.mxu1 %vm309_vm1, %v813_v40 }
  0x9b   : > { %v329_v41 = vpop.f32.mrf.mxu0  ;;  %v366_v42 = vpop.f32.mrf.mxu1 }
  0xa3   : > { %v404_v43 = vpop.f32.mrf.mxu2  ;;  %v436_v45 = vpop.f32.mrf.mxu3 }
  0xa4   : > { %v405_v44 = vadd.f32 %v404_v43, %v329_v41  ;;  %v331_v46 = vpop.f32.mrf.mxu0  ;;  %v437_v47 = vadd.f32 %v436_v45, %v366_v42  ;;  %v368_v48 = vpop.f32.mrf.mxu1 }
  0xab   : > { %v406_v49 = vpop.f32.mrf.mxu2  ;;  %v438_v51 = vpop.f32.mrf.mxu3 }
  0xac   : > { %v407_v50 = vadd.f32 %v406_v49, %v331_v46  ;;  %v334_v52 = vpop.f32.mrf.mxu0  ;;  %v439_v53 = vadd.f32 %v438_v51, %v368_v48  ;;  %v371_v54 = vpop.f32.mrf.mxu1 }
  0xb3   : > { %v409_v55 = vpop.f32.mrf.mxu2  ;;  %v441_v57 = vpop.f32.mrf.mxu3 }
  0xb4   : > { %v410_v56 = vadd.f32 %v409_v55, %v334_v52  ;;  %v336_v58 = vpop.f32.mrf.mxu0  ;;  %v442_v59 = vadd.f32 %v441_v57, %v371_v54  ;;  %v373_v60 = vpop.f32.mrf.mxu1 }
  0xbb   : > { %v411_v61 = vpop.f32.mrf.mxu2  ;;  %v443_v62 = vpop.f32.mrf.mxu3 }
  0xbc   : > { %v484_v63 = vpop.f32.mrf.mxu0  ;;  %v521_v1 = vpop.f32.mrf.mxu1 }
  0xbd   : > { %v530_v0 = vadd.f32 %v484_v63, %v405_v44  ;;  %v533_v2 = vadd.f32 %v521_v1, %v437_v47 }
  0xc3   : > { %v575_v3 = vpop.f32.mrf.mxu2  ;;  %v612_v5 = vpop.f32.mrf.mxu3 }
  0xc4   : > { %v621_v4 = vadd.f32 %v575_v3, %v530_v0  ;;  %v486_v6 = vpop.f32.mrf.mxu0  ;;  %v624_v7 = vadd.f32 %v612_v5, %v533_v2  ;;  %v523_v9 = vpop.f32.mrf.mxu1 }
  0xc5   : > { %v531_v8 = vadd.f32 %v486_v6, %v407_v50  ;;  %v534_v10 = vadd.f32 %v523_v9, %v439_v53 }
  0xcb   : > { %v577_v11 = vpop.f32.mrf.mxu2  ;;  %v614_v12 = vpop.f32.mrf.mxu3 }
  0xcc   : > { %v489_v13 = vpop.f32.mrf.mxu0  ;;  %v526_v14 = vpop.f32.mrf.mxu1  ;;  %v622_v45 = vadd.f32 %v577_v11, %v531_v8  ;;  %v625_v46 = vadd.f32 %v614_v12, %v534_v10  ;;  %v938_v8 = vld [vmem:[#allocation6] sm:$0xff]  ;;  %v904_v10 = vld [vmem:[#allocation4 + $0x8] sm:$0x7]  ;;  %v939_v11 = vld [vmem:[#allocation6 + $0x8] sm:$0x7] }
  0xcd   : > { %v532_v53 = vadd.f32 %v489_v13, %v410_v56  ;;  %v535_v57 = vadd.f32 %v526_v14, %v442_v59  ;;  %v903_v59 = vld [vmem:[#allocation4] sm:$0xff]  ;;  %v1355_v12 = vld [vmem:[#allocation2] ss:$0 sm:$0xff] }
  0xd3   : > { %v580_v15 = vpop.f32.mrf.mxu2  ;;  %v617_v16 = vpop.f32.mrf.mxu3 }
  0xd4   : > { %v491_v17 = vpop.f32.mrf.mxu0  ;;  %v528_v18 = vpop.f32.mrf.mxu1  ;;  %v623_v60 = vadd.f32 %v580_v15, %v532_v53  ;;  %v626_v61 = vadd.f32 %v617_v16, %v535_v57 }
  0xdb   : > { %v582_v19 = vpop.f32.mrf.mxu2  ;;  %v619_v20 = vpop.f32.mrf.mxu3 }
  0xdc   : > { %v666_v21 = vpop.f32.mrf.mxu0  ;;  %v703_v22 = vpop.f32.mrf.mxu1 }
  0xdd   : > { %v712_v35 = vadd.f32 %v666_v21, %v621_v4  ;;  %v715_v36 = vadd.f32 %v703_v22, %v624_v7 }
  0xe3   : > { %v757_v23 = vpop.f32.mrf.mxu2  ;;  %v794_v24 = vpop.f32.mrf.mxu3 }
  0xe4   : > { %v668_v25 = vpop.f32.mrf.mxu0  ;;  %v705_v26 = vpop.f32.mrf.mxu1  ;;  %v803_v37 = vadd.f32 %v757_v23, %v712_v35  ;;  %v806_v39 = vadd.f32 %v794_v24, %v715_v36 }
  0xe5   : > { %v713_v48 = vadd.f32 %v668_v25, %v622_v45  ;;  %v716_v49 = vadd.f32 %v705_v26, %v625_v46 }
  0xeb   : > { %v759_v27 = vpop.f32.mrf.mxu2  ;;  %v796_v28 = vpop.f32.mrf.mxu3 }
  0xec   : > { %v671_v29 = vpop.f32.mrf.mxu0  ;;  %v708_v30 = vpop.f32.mrf.mxu1  ;;  %v804_v50 = vadd.f32 %v759_v27, %v713_v48  ;;  %v807_v51 = vadd.f32 %v796_v28, %v716_v49 }
  0xed   : > { %v714_v63 = vadd.f32 %v671_v29, %v623_v60  ;;  %v717_v0 = vadd.f32 %v708_v30, %v626_v61 }
  0xf3   : > { %v762_v31 = vpop.f32.mrf.mxu2  ;;  %v799_v32 = vpop.f32.mrf.mxu3 }
  0xf4   : > { %v673_v33 = vpop.f32.mrf.mxu0  ;;  %v710_v34 = vpop.f32.mrf.mxu1  ;;  %v805_v1 = vadd.f32 %v762_v31, %v714_v63  ;;  %v808_v2 = vadd.f32 %v799_v32, %v717_v0 }
  0xfb   : > { %v764_v38 = vpop.f32.mrf.mxu2  ;;  %v801_v41 = vpop.f32.mrf.mxu3 }
  0xfc   : > { %v848_v40 = vpop.f32.mrf.mxu0  ;;  %v885_v43 = vpop.f32.mrf.mxu1 }
  0xfd   : > { %v894_v42 = vadd.f32 %v848_v40, %v803_v37  ;;  %v897_v44 = vadd.f32 %v885_v43, %v806_v39 }
  0xff   : > { %v900_v47 = vmax.f32 %v894_v42, %v897_v44 }
 0x104   : > { %v850_v52 = vpop.f32.mrf.mxu0  ;;  %v887_v55 = vpop.f32.mrf.mxu1 }
 0x105   : > { %v895_v54 = vadd.f32 %v850_v52, %v804_v50  ;;  %v898_v58 = vadd.f32 %v887_v55, %v807_v51 }
 0x107   : > { %v901_v62 = vmax.f32 %v895_v54, %v898_v58 }
 0x10c   : > { %v853_v3 = vpop.f32.mrf.mxu0  ;;  %v890_v5 = vpop.f32.mrf.mxu1 }
 0x10d   : > { %v896_v4 = vadd.f32 %v853_v3, %v805_v1  ;;  %v899_v6 = vadd.f32 %v890_v5, %v808_v2 }
 0x10f   : > { %v902_v7 = vmax.f32 %v896_v4, %v899_v6 }
 0x111   : > { %1276 = vmatpush.msk.msrb.mxu2 %vm316_vm0, %v902_v7  ;;  %1279 = vmatpush.msk.msrb.mxu3 %vm316_vm0, %v902_v7 }
 0x113   : > { %929 = vmatpush.msrb.mxu2 %v901_v62  ;;  %960 = vmatpush.msrb.mxu3 %v901_v62 }
 0x114   : > { %v855_v56 = vpop.f32.mrf.mxu0  ;;  %v892_v9 = vpop.f32.mrf.mxu1 }
 0x115   : > { %930 = vmatpush.msrb.mxu2 %v900_v47  ;;  %961 = vmatpush.msrb.mxu3 %v900_v47 }
 0x116   : > { %1277 = vmatmul.msk.f32.vlgmr.msrb.gmra.mxu2 %vm905_vm2, %v903_v59  ;;  %1280 = vmatmul.msk.f32.vlgmr.msrb.gmra.mxu3 %vm905_vm2, %v938_v8 }
 0x11e   : > { %1278 = vmatmul.msk.f32.gmra.mxu2 %vm905_vm2, %v904_v10  ;;  %1281 = vmatmul.msk.f32.gmra.mxu3 %vm905_vm2, %v939_v11 }
 0x199   : > { %v932_v13 = vpop.f32.mrf.mxu2  ;;  %v963_v14 = vpop.f32.mrf.mxu3 }
 0x19a   : > { %v969_v15 = vmax.f32 %v932_v13, %v963_v14 }
 0x19c   : > { %v975_v16 = vadd.f32 %v1355_v12, %v969_v15 }
 0x19e   : > { %v977_v17 = vmax.f32 %v975_v16, 0.0 }
 0x1a0   : > { %980 = vst.msk [vmem:[%s272_s15] sm:$0xff] %vm979_vm3, %v977_v17 }
 0x1a1   : > { %v935_v18 = vpop.f32.mrf.mxu2  ;;  %v966_v19 = vpop.f32.mrf.mxu3 }
 0x1a2   : > { %v970_v20 = vmax.f32 %v935_v18, %v966_v19 }
 0x1a4   : > { %v976_v21 = vadd.f32 %v1355_v12, %v970_v20 }
 0x1a6   : > { %v978_v22 = vmax.f32 %v976_v21, 0.0 }
 0x1a8   : > { %982 = vst.msk [vmem:[%s272_s15 + $0x8] sm:$0x7] %vm981_vm4, %v978_v22 }
 0x1a9 PF: > { %s17_s18 = sadd.s32 1, %s1460_s18  }
 0x1aa   : > { %p14_p7 = scmp.ge.s32.totalorder %s17_s18, 4  }
 0x1ac   :  { %16 = sbr.rel (!%p14_p7) target bundleno = 2 (0x2), region = 96 }
 0x1b1   :  { %1004 = vsyncpa [#allocation3], 1 }
 0x1b2   :  { %1006 = vsyncpa [#allocation3 + $0x1], 1 }
 0x1b3   :  { %1007 = vsyncpa [#allocation5], 1 }

// kernel: net_forward.9
= control target key start
LH: loop header
LB: loop body
LE: loop exit
PB: predicated region body
PF: predicated region fallthrough
CT: control target
= control target key end

     0   :  { %s1505_s18 = smov 0   ;;  %s1881_s0 = inlined_call_operand.vmem [shape: f32[2,28,28], index: 0, kind: input, shape index: {}]   ;;  %s1882_s1 = inlined_call_operand.vmem [shape: bf16[5,2,28,240], index: 1, kind: input, shape index: {}]   ;;  %s1883_s2 = inlined_call_operand.vmem [shape: f32[1,240], index: 2, kind: input, shape index: {}]   ;;  %s1884_s3 = inlined_call_operand.vmem [shape: f32[12,24], index: 3, kind: input, shape index: {}]   ;;  %s1885_s4 = inlined_call_operand.vmem [shape: f32[12,24], index: 4, kind: input, shape index: {}]   ;;  %s1886_s5 = inlined_call_operand.vmem [shape: f32[2,12,240], index: 5, kind: output, shape index: {}]  }
   0x1 LB: > { %s1162_s19 = sadd.s32 4294967295, %s1473_s18   ;;  %p1166_p0 = scmp.ge.s32.totalorder %s1473_s18, 1  ;;  %s1473_s18 = sphi %s1505_s18, %s15_s18  }
   0x2   : > { %p187_p1 = scmp.lt.s32.totalorder %s1473_s18, 3 }
   0x4   : > { %p188_p2 = pnand %p1166_p0, %p187_p1 }
   0x5   : > { %p1519_p3 = scmp.lt.s32.totalorder (!%p188_p2), %s1162_s19, 1 }
   0x6   : > { %191 = sbr.rel (%p188_p2) target bundleno = 458 (0x1ca), region = 40 }
   0xb   : > { %v1189_v0 = vld [vmem:[%s1882_s1 + $0x50] sm:$0xf]  ;;  %v1430_v1 = vld [vmem:[%s1882_s1 + $0x54] sm:$0x30]  ;;  %vm275_vm0 = vcmask 1045504   ;;  %s1889_s19 = smov (!%p1519_p3, %s1162_s19), 1 }
   0xc   : > { %v1190_v2 = vor.u32 %v1430_v1, %v1189_v0  ;;  %v1429_v3 = vld [vmem:[%s1882_s1 + $0x54] sm:$0xf]  ;;  %v1191_v4 = vld [vmem:[%s1882_s1 + $0x58] sm:$0x30]  ;;  %v1213_v5 = vld [vmem:[%s1882_s1 + $0x70] sm:$0xf] }
   0xd   : > { %v1194_v6 = vor.u32 %v1429_v3, %v1191_v4  ;;  %v1434_v7 = vld [vmem:[%s1882_s1 + $0x74] sm:$0x30]  ;;  %v1433_v8 = vld [vmem:[%s1882_s1 + $0x74] sm:$0xf]  ;;  %v1215_v9 = vld [vmem:[%s1882_s1 + $0x78] sm:$0x30] }
   0xe   : > { %v277_v10 = vsel %vm275_vm0, %v1190_v2, 0  ;;  %v1214_v11 = vor.u32 %v1434_v7, %v1213_v5  ;;  %v1218_v12 = vor.u32 %v1433_v8, %v1215_v9  ;;  %v1181_v13 = vld [vmem:[%s1882_s1 + $0x40] sm:$0xf]  ;;  %v1428_v14 = vld [vmem:[%s1882_s1 + $0x44] sm:$0xf0]  ;;  %s1417_s30 = sshll.u32 %s1889_s19, 5 }
   0xf   : > { %288 = vmatpush.bf16.msra.mxu0 %v277_v10  ;;  %v280_v15 = vsel %vm275_vm0, %v1194_v6, 0  ;;  %v1182_v16 = vor.u32 %v1428_v14, %v1181_v13  ;;  %v1427_v17 = vld [vmem:[%s1882_s1 + $0x44] sm:$0xf]  ;;  %v1183_v18 = vld [vmem:[%s1882_s1 + $0x48] sm:$0xf0]  ;;  %s1579_s8 = scalar_lea.vmem %s1881_s0, %s1417_s30  ;;  %vm268_vm1 = vcmask 228352   ;;  %s224_s24 = scalar_lea.vmem %s1886_s5, %s1417_s30 }
  0x10   : > { %306 = vmatpush.bf16.msra.mxu1 %v280_v15  ;;  %v342_v19 = vsel %vm275_vm0, %v1214_v11, 0  ;;  %v345_v20 = vsel %vm275_vm0, %v1218_v12, 0  ;;  %v1186_v21 = vor.u32 %v1427_v17, %v1183_v18  ;;  %v1205_v22 = vld [vmem:[%s1882_s1 + $0x60] sm:$0xf]  ;;  %v1432_v23 = vld [vmem:[%s1882_s1 + $0x64] sm:$0xf0] }
  0x11   : > { %353 = vmatpush.bf16.msra.mxu2 %v342_v19  ;;  %371 = vmatpush.bf16.msra.mxu3 %v345_v20  ;;  %v1206_v24 = vor.u32 %v1432_v23, %v1205_v22  ;;  %v1431_v25 = vld [vmem:[%s1882_s1 + $0x64] sm:$0xf]  ;;  %v1207_v26 = vld [vmem:[%s1882_s1 + $0x68] sm:$0xf0]  ;;  %v1233_v28 = vld [vmem:[%s1882_s1 + $0x10] sm:$0xf] }
  0x12   : > { %v1210_v27 = vor.u32 %v1431_v25, %v1207_v26  ;;  %v1422_v29 = vld [vmem:[%s1882_s1 + $0x14] sm:$0x30]  ;;  %v1421_v30 = vld [vmem:[%s1882_s1 + $0x14] sm:$0xf]  ;;  %v240_v31 = vld [vmem:[%s1579_s8 + $0x1] sm:$0xff]  ;;  %vm976_vm2 = vcmask 195584  }
  0x13   : > { %289 = vmatpush.bf16.msra.mxu0 %v1182_v16  ;;  %v241_v32 = vld [vmem:[%s1579_s8 + $0x9] sm:$0xff]  ;;  %v1234_v33 = vor.u32 %v1422_v29, %v1233_v28  ;;  %v1235_v35 = vld [vmem:[%s1882_s1 + $0x18] sm:$0x30]  ;;  %v1426_v37 = vld [vmem:[%s1882_s1 + $0x34] sm:$0x30]  ;;  %vm1102_vm3 = vcmask 916480  }
  0x14   : > { %307 = vmatpush.bf16.msra.mxu1 %v1186_v21  ;;  %v243_v34 = vpack.c.bf16 %v241_v32, %v240_v31  ;;  %v1253_v36 = vld [vmem:[%s1882_s1 + $0x30] sm:$0xf]  ;;  %v1238_v39 = vor.u32 %v1421_v30, %v1235_v35  ;;  %v1425_v41 = vld [vmem:[%s1882_s1 + $0x34] sm:$0xf]  ;;  %v1255_v42 = vld [vmem:[%s1882_s1 + $0x38] sm:$0x30] }
  0x15   : > { %354 = vmatpush.bf16.msra.mxu2 %v1206_v24  ;;  %372 = vmatpush.bf16.msra.mxu3 %v1210_v27  ;;  %v408_v38 = vsel %vm275_vm0, %v1234_v33, 0  ;;  %v1254_v40 = vor.u32 %v1426_v37, %v1253_v36  ;;  %v1258_v43 = vor.u32 %v1425_v41, %v1255_v42  ;;  %v1225_v44 = vld [vmem:[%s1882_s1] sm:$0xf]  ;;  %v1420_v45 = vld [vmem:[%s1882_s1 + $0x4] sm:$0xf0]  ;;  %v242_v59 = vld [vmem:[%s1579_s8 + $0x11] sm:$0xff] }
  0x16   : > { %1195 = vmatmul.msk.bf16.vlgmr.msra.gmra.mxu0 %vm268_vm1, %v243_v34  ;;  %v1419_v46 = vld [vmem:[%s1882_s1 + $0x4] sm:$0xf]  ;;  %v411_v47 = vsel %vm275_vm0, %v1238_v39, 0  ;;  %v1226_v49 = vor.u32 %v1420_v45, %v1225_v44  ;;  %v1227_v50 = vld [vmem:[%s1882_s1 + $0x8] sm:$0xf0]  ;;  %v244_v60 = vpack.c.bf16 %v242_v59, %v242_v59  ;;  %v228_v28 = vld [vmem:[%s1579_s8 + $0x10] sm:$0xff] }
  0x17   : > { %1197 = vmatmul.msk.bf16.vlgmr.msra.gmra.mxu1 %vm268_vm1, %v243_v34  ;;  %419 = vmatpush.bf16.msrb.mxu0 %v408_v38  ;;  %v468_v48 = vsel %vm275_vm0, %v1254_v40, 0  ;;  %v1245_v51 = vld [vmem:[%s1882_s1 + $0x20] sm:$0xf]  ;;  %v471_v52 = vsel %vm275_vm0, %v1258_v43, 0  ;;  %v1424_v53 = vld [vmem:[%s1882_s1 + $0x24] sm:$0xf0]  ;;  %v1230_v55 = vor.u32 %v1419_v46, %v1227_v50  ;;  %v230_v29 = vpack.c.bf16 %v228_v28, %v228_v28 }
  0x18   : > { %1219 = vmatmul.msk.bf16.vlgmr.msra.gmra.mxu2 %vm268_vm1, %v243_v34  ;;  %1221 = vmatmul.msk.bf16.vlgmr.msra.gmra.mxu3 %vm268_vm1, %v243_v34  ;;  %v1423_v54 = vld [vmem:[%s1882_s1 + $0x24] sm:$0xf]  ;;  %v1246_v56 = vor.u32 %v1424_v53, %v1245_v51  ;;  %v1247_v57 = vld [vmem:[%s1882_s1 + $0x28] sm:$0xf0]  ;;  %v1277_v61 = vld [vmem:[%s1882_s1 + $0x90] sm:$0xf] }
  0x19   : > { %437 = vmatpush.bf16.msrb.mxu1 %v411_v47  ;;  %479 = vmatpush.bf16.msrb.mxu2 %v468_v48  ;;  %v1250_v58 = vor.u32 %v1423_v54, %v1247_v57  ;;  %v1438_v62 = vld [vmem:[%s1882_s1 + $0x94] sm:$0x30]  ;;  %v1437_v63 = vld [vmem:[%s1882_s1 + $0x94] sm:$0xf]  ;;  %v1279_v1 = vld [vmem:[%s1882_s1 + $0x98] sm:$0x30] }
  0x1a   : > { %497 = vmatpush.bf16.msrb.mxu3 %v471_v52  ;;  %v1278_v0 = vor.u32 %v1438_v62, %v1277_v61  ;;  %v1301_v2 = vld [vmem:[%s1882_s1 + $0xb0] sm:$0xf]  ;;  %v1442_v3 = vld [vmem:[%s1882_s1 + $0xb4] sm:$0x30]  ;;  %v1282_v4 = vor.u32 %v1437_v63, %v1279_v1  ;;  %v1441_v6 = vld [vmem:[%s1882_s1 + $0xb4] sm:$0xf] }
  0x1b   : > { %420 = vmatpush.bf16.msrb.mxu0 %v1226_v49  ;;  %v1302_v5 = vor.u32 %v1442_v3, %v1301_v2  ;;  %v1303_v7 = vld [vmem:[%s1882_s1 + $0xb8] sm:$0x30]  ;;  %v1269_v8 = vld [vmem:[%s1882_s1 + $0x80] sm:$0xf]  ;;  %v1436_v11 = vld [vmem:[%s1882_s1 + $0x84] sm:$0xf0] }
  0x1c   : > { %v544_v9 = vsel %vm275_vm0, %v1278_v0, 0  ;;  %v1306_v10 = vor.u32 %v1441_v6, %v1303_v7  ;;  %v1435_v12 = vld [vmem:[%s1882_s1 + $0x84] sm:$0xf]  ;;  %v547_v13 = vsel %vm275_vm0, %v1282_v4, 0  ;;  %v1270_v15 = vor.u32 %v1436_v11, %v1269_v8  ;;  %v1271_v16 = vld [vmem:[%s1882_s1 + $0x88] sm:$0xf0] }
  0x1d   : > { %438 = vmatpush.bf16.msrb.mxu1 %v1230_v55  ;;  %480 = vmatpush.bf16.msrb.mxu2 %v1246_v56  ;;  %v609_v14 = vsel %vm275_vm0, %v1302_v5, 0  ;;  %v1293_v17 = vld [vmem:[%s1882_s1 + $0xa0] sm:$0xf]  ;;  %v1274_v19 = vor.u32 %v1435_v12, %v1271_v16  ;;  %v1440_v20 = vld [vmem:[%s1882_s1 + $0xa4] sm:$0xf0]  ;;  %v511_v61 = vld [vmem:[%s1579_s8 + $0x12] sm:$0xff] }
  0x1e   : > { %498 = vmatpush.bf16.msrb.mxu3 %v1250_v58  ;;  %v612_v18 = vsel %vm275_vm0, %v1306_v10, 0  ;;  %v1439_v21 = vld [vmem:[%s1882_s1 + $0xa4] sm:$0xf]  ;;  %v1294_v22 = vor.u32 %v1440_v20, %v1293_v17  ;;  %v1295_v23 = vld [vmem:[%s1882_s1 + $0xa8] sm:$0xf0]  ;;  %v513_v62 = vpack.c.bf16 %v511_v61, %v511_v61  ;;  %vm1105_vm4 = vcmask 912384  }
  0x1f   : > { %555 = vmatpush.bf16.msra.mxu0 %v544_v9  ;;  %v226_v24 = vld [vmem:[%s1579_s8] sm:$0xff]  ;;  %v227_v25 = vld [vmem:[%s1579_s8 + $0x8] sm:$0xff]  ;;  %v1298_v26 = vor.u32 %v1439_v21, %v1295_v23  ;;  %v1325_v30 = vld [vmem:[%s1882_s1 + $0xd0] sm:$0xf] }
  0x20   : > { %v229_v27 = vpack.c.bf16 %v227_v25, %v226_v24  ;;  %v1446_v31 = vld [vmem:[%s1882_s1 + $0xd4] sm:$0x30]  ;;  %v1445_v32 = vld [vmem:[%s1882_s1 + $0xd4] sm:$0xf]  ;;  %v1327_v34 = vld [vmem:[%s1882_s1 + $0xd8] sm:$0x30] }
  0x21   : > { %573 = vmatpush.bf16.msra.mxu1 %v547_v13  ;;  %620 = vmatpush.bf16.msra.mxu2 %v609_v14  ;;  %v1326_v33 = vor.u32 %v1446_v31, %v1325_v30  ;;  %v1349_v35 = vld [vmem:[%s1882_s1 + $0xf0] sm:$0xf]  ;;  %v1450_v36 = vld [vmem:[%s1882_s1 + $0xf4] sm:$0x30]  ;;  %v1330_v37 = vor.u32 %v1445_v32, %v1327_v34  ;;  %v1449_v39 = vld [vmem:[%s1882_s1 + $0xf4] sm:$0xf] }
  0x22   : > { %638 = vmatpush.bf16.msra.mxu3 %v612_v18  ;;  %v1350_v38 = vor.u32 %v1450_v36, %v1349_v35  ;;  %v1351_v40 = vld [vmem:[%s1882_s1 + $0xf8] sm:$0x30]  ;;  %v1317_v41 = vld [vmem:[%s1882_s1 + $0xc0] sm:$0xf]  ;;  %v1444_v44 = vld [vmem:[%s1882_s1 + $0xc4] sm:$0xf0] }
  0x23   : > { %556 = vmatpush.bf16.msra.mxu0 %v1270_v15  ;;  %v697_v42 = vsel %vm275_vm0, %v1326_v33, 0  ;;  %v1354_v43 = vor.u32 %v1449_v39, %v1351_v40  ;;  %v1443_v45 = vld [vmem:[%s1882_s1 + $0xc4] sm:$0xf]  ;;  %v700_v46 = vsel %vm275_vm0, %v1330_v37, 0  ;;  %v1318_v48 = vor.u32 %v1444_v44, %v1317_v41  ;;  %v1319_v49 = vld [vmem:[%s1882_s1 + $0xc8] sm:$0xf0] }
  0x24   : > { %v762_v47 = vsel %vm275_vm0, %v1350_v38, 0  ;;  %v1341_v50 = vld [vmem:[%s1882_s1 + $0xe0] sm:$0xf]  ;;  %v1322_v52 = vor.u32 %v1443_v45, %v1319_v49  ;;  %v1448_v53 = vld [vmem:[%s1882_s1 + $0xe4] sm:$0xf0]  ;;  %v664_v30 = vld [vmem:[%s1579_s8 + $0x13] sm:$0xff] }
  0x25   : > { %574 = vmatpush.bf16.msra.mxu1 %v1274_v19  ;;  %621 = vmatpush.bf16.msra.mxu2 %v1294_v22  ;;  %v765_v51 = vsel %vm275_vm0, %v1354_v43, 0  ;;  %v1447_v54 = vld [vmem:[%s1882_s1 + $0xe4] sm:$0xf]  ;;  %v1342_v55 = vor.u32 %v1448_v53, %v1341_v50  ;;  %v1343_v56 = vld [vmem:[%s1882_s1 + $0xe8] sm:$0xf0]  ;;  %v666_v31 = vpack.c.bf16 %v664_v30, %v664_v30  ;;  %v817_v41 = vld [vmem:[%s1579_s8 + $0x14] sm:$0xff] }
  0x26   : > { %1196 = vmatmul.msk.bf16.gmra.mxu0 %vm268_vm1, %v244_v60  ;;  %639 = vmatpush.bf16.msra.mxu3 %v1298_v26  ;;  %v509_v57 = vld [vmem:[%s1579_s8 + $0x2] sm:$0xff]  ;;  %v510_v58 = vld [vmem:[%s1579_s8 + $0xa] sm:$0xff]  ;;  %v1346_v59 = vor.u32 %v1447_v54, %v1343_v56  ;;  %v1454_v0 = vld [vmem:[%s1882_s1 + $0x114] sm:$0x30] }
  0x27   : > { %1198 = vmatmul.msk.bf16.gmra.mxu1 %vm268_vm1, %v244_v60  ;;  %v1373_v63 = vld [vmem:[%s1882_s1 + $0x110] sm:$0xf]  ;;  %v1453_v1 = vld [vmem:[%s1882_s1 + $0x114] sm:$0xf]  ;;  %v1375_v3 = vld [vmem:[%s1882_s1 + $0x118] sm:$0x30] }
  0x28   : > { %1220 = vmatmul.msk.bf16.gmra.mxu2 %vm268_vm1, %v244_v60  ;;  %1222 = vmatmul.msk.bf16.gmra.mxu3 %vm268_vm1, %v244_v60  ;;  %v512_v60 = vpack.c.bf16 %v510_v58, %v509_v57  ;;  %v1374_v2 = vor.u32 %v1454_v0, %v1373_v63  ;;  %v1397_v4 = vld [vmem:[%s1882_s1 + $0x130] sm:$0xf]  ;;  %v1458_v5 = vld [vmem:[%s1882_s1 + $0x134] sm:$0x30]  ;;  %v1378_v6 = vor.u32 %v1453_v1, %v1375_v3  ;;  %v1457_v8 = vld [vmem:[%s1882_s1 + $0x134] sm:$0xf] }
  0x29   : > { %v1398_v7 = vor.u32 %v1458_v5, %v1397_v4  ;;  %v1399_v9 = vld [vmem:[%s1882_s1 + $0x138] sm:$0x30]  ;;  %v662_v15 = vld [vmem:[%s1579_s8 + $0x3] sm:$0xff]  ;;  %v663_v16 = vld [vmem:[%s1579_s8 + $0xb] sm:$0xff] }
  0x2a   : > { %v850_v10 = vsel %vm275_vm0, %v1374_v2, 0  ;;  %v1402_v11 = vor.u32 %v1457_v8, %v1399_v9  ;;  %v853_v12 = vsel %vm275_vm0, %v1378_v6, 0  ;;  %v665_v17 = vpack.c.bf16 %v663_v16, %v662_v15  ;;  %v1365_v18 = vld [vmem:[%s1882_s1 + $0x100] sm:$0xf]  ;;  %v1452_v19 = vld [vmem:[%s1882_s1 + $0x104] sm:$0xf0] }
  0x2b   : > { %v915_v13 = vsel %vm275_vm0, %v1398_v7, 0  ;;  %v1451_v20 = vld [vmem:[%s1882_s1 + $0x104] sm:$0xf]  ;;  %v1366_v21 = vor.u32 %v1452_v19, %v1365_v18  ;;  %v1367_v22 = vld [vmem:[%s1882_s1 + $0x108] sm:$0xf0] }
  0x2c   : > { %v918_v14 = vsel %vm275_vm0, %v1402_v11, 0  ;;  %v1389_v23 = vld [vmem:[%s1882_s1 + $0x120] sm:$0xf]  ;;  %v1456_v24 = vld [vmem:[%s1882_s1 + $0x124] sm:$0xf0]  ;;  %v1370_v25 = vor.u32 %v1451_v20, %v1367_v22  ;;  %v816_v33 = vld [vmem:[%s1579_s8 + $0xc] sm:$0xff] }
  0x2d   : > { %v1390_v26 = vor.u32 %v1456_v24, %v1389_v23  ;;  %v1391_v28 = vld [vmem:[%s1882_s1 + $0x128] sm:$0xf0]  ;;  %v815_v32 = vld [vmem:[%s1579_s8 + $0x4] sm:$0xff] }
  0x2e   : > { %v818_v34 = vpack.c.bf16 %v816_v33, %v815_v32 }
  0x36   : > { %1239 = vmatmul.msk.bf16.vlgmr.msrb.gmra.mxu0 %vm268_vm1, %v229_v27 }
  0x37   : > { %1241 = vmatmul.msk.bf16.vlgmr.msrb.gmra.mxu1 %vm268_vm1, %v229_v27  ;;  %708 = vmatpush.bf16.msrb.mxu0 %v697_v42  ;;  %v819_v42 = vpack.c.bf16 %v817_v41, %v817_v41 }
  0x38   : > { %1259 = vmatmul.msk.bf16.vlgmr.msrb.gmra.mxu2 %vm268_vm1, %v229_v27  ;;  %1261 = vmatmul.msk.bf16.vlgmr.msrb.gmra.mxu3 %vm268_vm1, %v229_v27  ;;  %v1455_v27 = vld [vmem:[%s1882_s1 + $0x124] sm:$0xf] }
  0x39   : > { %726 = vmatpush.bf16.msrb.mxu1 %v700_v46  ;;  %773 = vmatpush.bf16.msrb.mxu2 %v762_v47 }
  0x3a   : > { %791 = vmatpush.bf16.msrb.mxu3 %v765_v51 }
  0x3b   : > { %709 = vmatpush.bf16.msrb.mxu0 %v1318_v48 }
  0x3d   : > { %727 = vmatpush.bf16.msrb.mxu1 %v1322_v52  ;;  %774 = vmatpush.bf16.msrb.mxu2 %v1342_v55 }
  0x3e   : > { %792 = vmatpush.bf16.msrb.mxu3 %v1346_v59 }
  0x46   : > { %1240 = vmatmul.msk.bf16.gmra.mxu0 %vm268_vm1, %v230_v29 }
  0x47   : > { %1242 = vmatmul.msk.bf16.gmra.mxu1 %vm268_vm1, %v230_v29 }
  0x48   : > { %1260 = vmatmul.msk.bf16.gmra.mxu2 %vm268_vm1, %v230_v29  ;;  %1262 = vmatmul.msk.bf16.gmra.mxu3 %vm268_vm1, %v230_v29  ;;  %v1394_v29 = vor.u32 %v1455_v27, %v1391_v28 }
  0x56   : > { %1283 = vmatmul.msk.bf16.vlgmr.msra.gmra.mxu0 %vm268_vm1, %v512_v60 }
  0x57   : > { %1285 = vmatmul.msk.bf16.vlgmr.msra.gmra.mxu1 %vm268_vm1, %v512_v60  ;;  %861 = vmatpush.bf16.msra.mxu0 %v850_v10 }
  0x58   : > { %1307 = vmatmul.msk.bf16.vlgmr.msra.gmra.mxu2 %vm268_vm1, %v512_v60  ;;  %1309 = vmatmul.msk.bf16.vlgmr.msra.gmra.mxu3 %vm268_vm1, %v512_v60 }
  0x59   : > { %879 = vmatpush.bf16.msra.mxu1 %v853_v12  ;;  %926 = vmatpush.bf16.msra.mxu2 %v915_v13 }
  0x5a   : > { %944 = vmatpush.bf16.msra.mxu3 %v918_v14 }
  0x5b   : > { %862 = vmatpush.bf16.msra.mxu0 %v1366_v21 }
  0x5d   : > { %880 = vmatpush.bf16.msra.mxu1 %v1370_v25  ;;  %927 = vmatpush.bf16.msra.mxu2 %v1390_v26 }
  0x5e   : > { %945 = vmatpush.bf16.msra.mxu3 %v1394_v29 }
  0x66   : > { %1284 = vmatmul.msk.bf16.gmra.mxu0 %vm268_vm1, %v513_v62 }
  0x67   : > { %1286 = vmatmul.msk.bf16.gmra.mxu1 %vm268_vm1, %v513_v62 }
  0x68   : > { %1308 = vmatmul.msk.bf16.gmra.mxu2 %vm268_vm1, %v513_v62  ;;  %1310 = vmatmul.msk.bf16.gmra.mxu3 %vm268_vm1, %v513_v62 }
  0x76   : > { %1331 = vmatmul.msk.bf16.vlgmr.msrb.gmra.mxu0 %vm268_vm1, %v665_v17 }
  0x77   : > { %1333 = vmatmul.msk.bf16.vlgmr.msrb.gmra.mxu1 %vm268_vm1, %v665_v17 }
  0x78   : > { %1355 = vmatmul.msk.bf16.vlgmr.msrb.gmra.mxu2 %vm268_vm1, %v665_v17  ;;  %1357 = vmatmul.msk.bf16.vlgmr.msrb.gmra.mxu3 %vm268_vm1, %v665_v17 }
  0x86   : > { %1332 = vmatmul.msk.bf16.gmra.mxu0 %vm268_vm1, %v666_v31 }
  0x87   : > { %1334 = vmatmul.msk.bf16.gmra.mxu1 %vm268_vm1, %v666_v31 }
  0x88   : > { %1356 = vmatmul.msk.bf16.gmra.mxu2 %vm268_vm1, %v666_v31  ;;  %1358 = vmatmul.msk.bf16.gmra.mxu3 %vm268_vm1, %v666_v31 }
  0x93   : > { %v291_v35 = vpop.f32.mrf.mxu0 }
  0x94   : > { %v309_v36 = vpop.f32.mrf.mxu1 }
  0x96   : > { %1379 = vmatmul.msk.bf16.vlgmr.msra.gmra.mxu0 %vm268_vm1, %v818_v34 }
  0x97   : > { %1381 = vmatmul.msk.bf16.vlgmr.msra.gmra.mxu1 %vm268_vm1, %v818_v34 }
  0x98   : > { %1403 = vmatmul.msk.bf16.vlgmr.msra.gmra.mxu2 %vm268_vm1, %v818_v34  ;;  %1405 = vmatmul.msk.bf16.vlgmr.msra.gmra.mxu3 %vm268_vm1, %v818_v34 }
  0x9b   : > { %v356_v37 = vpop.f32.mrf.mxu2  ;;  %v374_v38 = vpop.f32.mrf.mxu3 }
  0x9c   : > { %v293_v39 = vpop.f32.mrf.mxu0  ;;  %v311_v40 = vpop.f32.mrf.mxu1 }
  0xa3   : > { %v358_v43 = vpop.f32.mrf.mxu2  ;;  %v376_v44 = vpop.f32.mrf.mxu3 }
  0xa4   : > { %v296_v45 = vpop.f32.mrf.mxu0  ;;  %v314_v46 = vpop.f32.mrf.mxu1 }
  0xa6   : > { %1380 = vmatmul.msk.bf16.gmra.mxu0 %vm268_vm1, %v819_v42 }
  0xa7   : > { %1382 = vmatmul.msk.bf16.gmra.mxu1 %vm268_vm1, %v819_v42 }
  0xa8   : > { %1404 = vmatmul.msk.bf16.gmra.mxu2 %vm268_vm1, %v819_v42  ;;  %1406 = vmatmul.msk.bf16.gmra.mxu3 %vm268_vm1, %v819_v42 }
  0xab   : > { %v361_v47 = vpop.f32.mrf.mxu2  ;;  %v379_v48 = vpop.f32.mrf.mxu3 }
  0xac   : > { %v298_v49 = vpop.f32.mrf.mxu0  ;;  %v316_v50 = vpop.f32.mrf.mxu1 }
  0xb3   : > { %v363_v51 = vpop.f32.mrf.mxu2  ;;  %v381_v52 = vpop.f32.mrf.mxu3 }
  0xb4   : > { %v422_v53 = vpop.f32.mrf.mxu0  ;;  %v440_v54 = vpop.f32.mrf.mxu1 }
  0xb5   : > { %v423_v55 = vadd.f32 %v422_v53, %v291_v35  ;;  %v441_v56 = vadd.f32 %v440_v54, %v309_v36 }
  0xbb   : > { %v482_v57 = vpop.f32.mrf.mxu2  ;;  %v500_v58 = vpop.f32.mrf.mxu3 }
  0xbc   : > { %v483_v59 = vadd.f32 %v482_v57, %v356_v37  ;;  %v501_v60 = vadd.f32 %v500_v58, %v374_v38  ;;  %v424_v61 = vpop.f32.mrf.mxu0  ;;  %v442_v62 = vpop.f32.mrf.mxu1 }
  0xbd   : > { %v425_v63 = vadd.f32 %v424_v61, %v293_v39  ;;  %v443_v0 = vadd.f32 %v442_v62, %v311_v40 }
  0xc3   : > { %v484_v1 = vpop.f32.mrf.mxu2  ;;  %v502_v2 = vpop.f32.mrf.mxu3 }
  0xc4   : > { %v485_v3 = vadd.f32 %v484_v1, %v358_v43  ;;  %v503_v4 = vadd.f32 %v502_v2, %v376_v44  ;;  %v427_v5 = vpop.f32.mrf.mxu0  ;;  %v445_v6 = vpop.f32.mrf.mxu1 }
  0xc5   : > { %v428_v7 = vadd.f32 %v427_v5, %v296_v45  ;;  %v446_v8 = vadd.f32 %v445_v6, %v314_v46 }
  0xcb   : > { %v487_v9 = vpop.f32.mrf.mxu2  ;;  %v505_v10 = vpop.f32.mrf.mxu3 }
  0xcc   : > { %v1844_v11 = vadd.f32 %v487_v9, %v361_v47  ;;  %v1846_v12 = vadd.f32 %v505_v10, %v379_v48  ;;  %v429_v13 = vpop.f32.mrf.mxu0  ;;  %v447_v14 = vpop.f32.mrf.mxu1 }
  0xd3   : > { %v489_v15 = vpop.f32.mrf.mxu2  ;;  %v507_v16 = vpop.f32.mrf.mxu3 }
  0xd4   : > { %v558_v17 = vpop.f32.mrf.mxu0  ;;  %v576_v18 = vpop.f32.mrf.mxu1 }
  0xd5   : > { %v650_v19 = vadd.f32 %v558_v17, %v423_v55  ;;  %v651_v20 = vadd.f32 %v576_v18, %v441_v56 }
  0xdb   : > { %v623_v21 = vpop.f32.mrf.mxu2  ;;  %v641_v22 = vpop.f32.mrf.mxu3 }
  0xdc   : > { %v656_v23 = vadd.f32 %v623_v21, %v483_v59  ;;  %v657_v24 = vadd.f32 %v641_v22, %v501_v60  ;;  %v560_v25 = vpop.f32.mrf.mxu0  ;;  %v578_v26 = vpop.f32.mrf.mxu1 }
  0xdd   : > { %v652_v27 = vadd.f32 %v560_v25, %v425_v63  ;;  %v653_v28 = vadd.f32 %v578_v26, %v443_v0 }
  0xe3   : > { %v625_v29 = vpop.f32.mrf.mxu2  ;;  %v643_v30 = vpop.f32.mrf.mxu3 }
  0xe4   : > { %v658_v31 = vadd.f32 %v625_v29, %v485_v3  ;;  %v659_v32 = vadd.f32 %v643_v30, %v503_v4  ;;  %v563_v33 = vpop.f32.mrf.mxu0  ;;  %v581_v34 = vpop.f32.mrf.mxu1 }
  0xe5   : > { %v654_v35 = vadd.f32 %v563_v33, %v428_v7  ;;  %v655_v36 = vadd.f32 %v581_v34, %v446_v8 }
  0xeb   : > { %v628_v37 = vpop.f32.mrf.mxu2  ;;  %v646_v38 = vpop.f32.mrf.mxu3 }
  0xec   : > { %v565_v39 = vpop.f32.mrf.mxu0  ;;  %v583_v40 = vpop.f32.mrf.mxu1  ;;  %v660_v29 = vadd.f32 %v628_v37, %v1844_v11  ;;  %v661_v30 = vadd.f32 %v646_v38, %v1846_v12  ;;  %v1030_v37 = vld [vmem:[%s1885_s4 + $0x8] sm:$0xf] }
  0xed   : > { %v975_v38 = vld [vmem:[%s1884_s3 + $0x8] sm:$0xf] }
  0xf3   : > { %v630_v41 = vpop.f32.mrf.mxu2  ;;  %v648_v42 = vpop.f32.mrf.mxu3 }
  0xf4   : > { %v711_v43 = vpop.f32.mrf.mxu0  ;;  %v729_v44 = vpop.f32.mrf.mxu1 }
  0xf5   : > { %v803_v61 = vadd.f32 %v711_v43, %v650_v19  ;;  %v804_v62 = vadd.f32 %v729_v44, %v651_v20 }
  0xfb   : > { %v776_v45 = vpop.f32.mrf.mxu2  ;;  %v794_v46 = vpop.f32.mrf.mxu3 }
  0xfc   : > { %v713_v47 = vpop.f32.mrf.mxu0  ;;  %v731_v48 = vpop.f32.mrf.mxu1  ;;  %v809_v63 = vadd.f32 %v776_v45, %v656_v23  ;;  %v810_v0 = vadd.f32 %v794_v46, %v657_v24 }
  0xfd   : > { %v805_v13 = vadd.f32 %v713_v47, %v652_v27  ;;  %v806_v14 = vadd.f32 %v731_v48, %v653_v28 }
 0x103   : > { %v778_v49 = vpop.f32.mrf.mxu2  ;;  %v796_v50 = vpop.f32.mrf.mxu3 }
 0x104   : > { %v716_v51 = vpop.f32.mrf.mxu0  ;;  %v734_v52 = vpop.f32.mrf.mxu1  ;;  %v811_v15 = vadd.f32 %v778_v49, %v658_v31  ;;  %v812_v16 = vadd.f32 %v796_v50, %v659_v32  ;;  %v1087_v49 = vld [vmem:[%s1883_s2] sm:$0x3] }
 0x105   : > { %v807_v33 = vadd.f32 %v716_v51, %v654_v35  ;;  %v808_v34 = vadd.f32 %v734_v52, %v655_v36  ;;  %v1029_v35 = vld [vmem:[%s1885_s4] sm:$0xff]  ;;  %v1089_v50 = vperm.slane %v1087_v49, 0  ;;  %v1090_v51 = vperm.slane %v1087_v49, 1 }
 0x106   : > { %v974_v36 = vld [vmem:[%s1884_s3] sm:$0xff] }
 0x10b   : > { %v781_v53 = vpop.f32.mrf.mxu2  ;;  %v799_v54 = vpop.f32.mrf.mxu3 }
 0x10c   : > { %v718_v55 = vpop.f32.mrf.mxu0  ;;  %v736_v56 = vpop.f32.mrf.mxu1  ;;  %v813_v27 = vadd.f32 %v781_v53, %v660_v29  ;;  %v814_v28 = vadd.f32 %v799_v54, %v661_v30 }
 0x113   : > { %v783_v57 = vpop.f32.mrf.mxu2  ;;  %v801_v58 = vpop.f32.mrf.mxu3 }
 0x114   : > { %v864_v59 = vpop.f32.mrf.mxu0  ;;  %v882_v60 = vpop.f32.mrf.mxu1 }
 0x115   : > { %v956_v3 = vadd.f32 %v864_v59, %v803_v61  ;;  %v957_v4 = vadd.f32 %v882_v60, %v804_v62 }
 0x11b   : > { %v929_v1 = vpop.f32.mrf.mxu2  ;;  %v947_v2 = vpop.f32.mrf.mxu3 }
 0x11c   : > { %v962_v5 = vadd.f32 %v929_v1, %v809_v63  ;;  %v963_v6 = vadd.f32 %v947_v2, %v810_v0  ;;  %v866_v7 = vpop.f32.mrf.mxu0  ;;  %v884_v8 = vpop.f32.mrf.mxu1 }
 0x11d   : > { %v958_v19 = vadd.f32 %v866_v7, %v805_v13  ;;  %v959_v20 = vadd.f32 %v884_v8, %v806_v14 }
 0x11e   : > { %v968_v9 = vmax.f32 %v956_v3, %v962_v5  ;;  %v969_v10 = vmax.f32 %v957_v4, %v963_v6 }
 0x123   : > { %v931_v17 = vpop.f32.mrf.mxu2  ;;  %v949_v18 = vpop.f32.mrf.mxu3 }
 0x124   : > { %v964_v21 = vadd.f32 %v931_v17, %v811_v15  ;;  %v965_v22 = vadd.f32 %v949_v18, %v812_v16  ;;  %v869_v23 = vpop.f32.mrf.mxu0  ;;  %v887_v24 = vpop.f32.mrf.mxu1 }
 0x125   : > { %v960_v39 = vadd.f32 %v869_v23, %v807_v33  ;;  %v961_v40 = vadd.f32 %v887_v24, %v808_v34 }
 0x126   : > { %v970_v25 = vmax.f32 %v958_v19, %v964_v21  ;;  %v971_v26 = vmax.f32 %v959_v20, %v965_v22 }
 0x12b   : > { %v934_v31 = vpop.f32.mrf.mxu2  ;;  %v952_v32 = vpop.f32.mrf.mxu3 }
 0x12c   : > { %v966_v41 = vadd.f32 %v934_v31, %v813_v27  ;;  %v967_v42 = vadd.f32 %v952_v32, %v814_v28  ;;  %v871_v43 = vpop.f32.mrf.mxu0  ;;  %v889_v44 = vpop.f32.mrf.mxu1 }
 0x12e   : > { %v972_v45 = vmax.f32 %v960_v39, %v966_v41  ;;  %v973_v46 = vmax.f32 %v961_v40, %v967_v42 }
 0x130   : > { %996 = vmatpush.msrb.mxu0 %v972_v45  ;;  %1019 = vmatpush.msrb.mxu1 %v973_v46 }
 0x131   : > { %1050 = vmatpush.msrb.mxu2 %v972_v45  ;;  %1073 = vmatpush.msrb.mxu3 %v973_v46 }
 0x132   : > { %997 = vmatpush.msrb.mxu0 %v970_v25  ;;  %1020 = vmatpush.msrb.mxu1 %v971_v26 }
 0x133   : > { %1051 = vmatpush.msrb.mxu2 %v970_v25  ;;  %1074 = vmatpush.msrb.mxu3 %v971_v26  ;;  %v936_v11 = vpop.f32.mrf.mxu2  ;;  %v954_v12 = vpop.f32.mrf.mxu3 }
 0x134   : > { %998 = vmatpush.msrb.mxu0 %v968_v9  ;;  %1021 = vmatpush.msrb.mxu1 %v969_v10 }
 0x135   : > { %1052 = vmatpush.msrb.mxu2 %v968_v9  ;;  %1075 = vmatpush.msrb.mxu3 %v969_v10 }
 0x136   : > { %1411 = vmatmul.msk.f32.vlgmr.msrb.gmra.mxu2 %vm976_vm2, %v1029_v35  ;;  %1413 = vmatmul.msk.f32.vlgmr.msrb.gmra.mxu3 %vm976_vm2, %v1029_v35 }
 0x137   : > { %1407 = vmatmul.msk.f32.vlgmr.msrb.gmra.mxu0 %vm976_vm2, %v974_v36  ;;  %1409 = vmatmul.msk.f32.vlgmr.msrb.gmra.mxu1 %vm976_vm2, %v974_v36 }
 0x13e   : > { %1412 = vmatmul.msk.f32.gmra.mxu2 %vm976_vm2, %v1030_v37  ;;  %1414 = vmatmul.msk.f32.gmra.mxu3 %vm976_vm2, %v1030_v37 }
 0x13f   : > { %1408 = vmatmul.msk.f32.gmra.mxu0 %vm976_vm2, %v975_v38  ;;  %1410 = vmatmul.msk.f32.gmra.mxu1 %vm976_vm2, %v975_v38 }
 0x1b4   : > { %v1000_v47 = vpop.f32.mrf.mxu0  ;;  %v1023_v48 = vpop.f32.mrf.mxu1 }
 0x1b9   : > { %v1054_v52 = vpop.f32.mrf.mxu2  ;;  %v1077_v53 = vpop.f32.mrf.mxu3 }
 0x1ba   : > { %v1083_v54 = vmax.f32 %v1000_v47, %v1054_v52  ;;  %v1084_v55 = vmax.f32 %v1023_v48, %v1077_v53 }
 0x1bc   : > { %v1093_v56 = vadd.f32 %v1089_v50, %v1083_v54  ;;  %v1094_v57 = vadd.f32 %v1090_v51, %v1084_v55  ;;  %v1003_v60 = vpop.f32.mrf.mxu0  ;;  %v1026_v61 = vpop.f32.mrf.mxu1 }
 0x1be   : > { %v1097_v58 = vmax.f32 %v1093_v56, 0.0  ;;  %v1098_v59 = vmax.f32 %v1094_v57, 0.0 }
 0x1c0   : > { %1101 = vst [vmem:[%s224_s24] sm:$0xff] %v1097_v58 }
 0x1c1   : > { %1103 = vst.msk [vmem:[%s224_s24 + $0x8] sm:$0xff] %vm1102_vm3, %v1098_v59  ;;  %v1057_v62 = vpop.f32.mrf.mxu2  ;;  %v1080_v63 = vpop.f32.mrf.mxu3 }
 0x1c2   : > { %v1085_v0 = vmax.f32 %v1003_v60, %v1057_v62  ;;  %v1086_v1 = vmax.f32 %v1026_v61, %v1080_v63 }
 0x1c4   : > { %v1095_v2 = vadd.f32 %v1089_v50, %v1085_v0  ;;  %v1096_v3 = vadd.f32 %v1090_v51, %v1086_v1 }
 0x1c6   : > { %v1099_v4 = vmax.f32 %v1095_v2, 0.0  ;;  %v1100_v5 = vmax.f32 %v1096_v3, 0.0 }
 0x1c8   : > { %1104 = vst [vmem:[%s224_s24 + $0x10] sm:$0xf] %v1099_v4 }
 0x1c9   : > { %1106 = vst.msk [vmem:[%s224_s24 + $0x18] sm:$0xf] %vm1105_vm4, %v1100_v5 }
 0x1ca PF: > { %s15_s18 = sadd.s32 1, %s1473_s18  }
 0x1cb   : > { %p12_p4 = scmp.ge.s32.totalorder %s15_s18, 4  }
 0x1cd   :  { %14 = sbr.rel (!%p12_p4) target bundleno = 1 (0x1), region = 79 }

// kernel: net_forward.10
= control target key start
LH: loop header
LB: loop body
LE: loop exit
PB: predicated region body
PF: predicated region fallthrough
CT: control target
= control target key end

     0   :  { %s4673_s18 = smov 0   ;;  %s6635_s0 = inlined_call_operand.vmem [shape: f32[2,12,240], index: 0, kind: input, shape index: {}]   ;;  %s6636_s1 = inlined_call_operand.vmem [shape: bf16[5,2,240,200], index: 1, kind: input, shape index: {}]   ;;  %s6637_s2 = inlined_call_operand.vmem [shape: f32[1,200], index: 2, kind: input, shape index: {}]   ;;  %s6638_s3 = inlined_call_operand.vmem [shape: f32[4,8], index: 3, kind: input, shape index: {}]   ;;  %s6639_s4 = inlined_call_operand.vmem [shape: f32[4,8], index: 4, kind: input, shape index: {}]   ;;  %s6640_s5 = inlined_call_operand.vmem [shape: f32[2,4,200], index: 5, kind: output, shape index: {}]  }
   0x1 LB: > { %s2820_s19 = sadd.s32 4294967295, %s4641_s18   ;;  %p2824_p0 = scmp.ge.s32.totalorder %s4641_s18, 1  ;;  %s4641_s18 = sphi %s4673_s18, %s15_s18  }
   0x2   : > { %p187_p1 = scmp.lt.s32.totalorder %s4641_s18, 3 }
   0x4   : > { %p188_p2 = pnand %p2824_p0, %p187_p1 }
   0x5   : > { %p215_p3 = scmp.lt.s32.totalorder (!%p188_p2), %s2820_s19, 1 }
   0x6   : > { %191 = sbr.rel (%p188_p2) target bundleno = 590 (0x24e), region = 40 }
   0xb   : > { %v2947_v0 = vld [vmem:[%s6636_s1 + $0x250] sm:$0xf]  ;;  %v4402_v1 = vld [vmem:[%s6636_s1 + $0x254] sm:$0xf0]  ;;  %v3003_v2 = vld [vmem:[%s6636_s1 + $0x2c0] sm:$0xf] }
   0xc   : > { %v2948_v3 = vor.u32 %v4402_v1, %v2947_v0  ;;  %v4416_v4 = vld [vmem:[%s6636_s1 + $0x2c4] sm:$0xf0]  ;;  %v4401_v5 = vld [vmem:[%s6636_s1 + $0x254] sm:$0xf]  ;;  %v2949_v6 = vld [vmem:[%s6636_s1 + $0x258] sm:$0xf0] }
   0xd   : > { %v3004_v7 = vor.u32 %v4416_v4, %v3003_v2  ;;  %v2952_v8 = vor.u32 %v4401_v5, %v2949_v6  ;;  %v4415_v9 = vld [vmem:[%s6636_s1 + $0x2c4] sm:$0xf]  ;;  %v3005_v10 = vld [vmem:[%s6636_s1 + $0x2c8] sm:$0xf0]  ;;  %v2939_v11 = vld [vmem:[%s6636_s1 + $0x240] sm:$0xf] }
   0xe   : > { %497 = vmatpush.bf16.msra.mxu0 %v2948_v3  ;;  %v3008_v12 = vor.u32 %v4415_v9, %v3005_v10  ;;  %v4400_v13 = vld [vmem:[%s6636_s1 + $0x244] sm:$0xf0]  ;;  %v2995_v14 = vld [vmem:[%s6636_s1 + $0x2b0] sm:$0xf]  ;;  %v4414_v15 = vld [vmem:[%s6636_s1 + $0x2b4] sm:$0xf0] }
   0xf   : > { %511 = vmatpush.bf16.msra.mxu1 %v3004_v7  ;;  %523 = vmatpush.bf16.msra.mxu2 %v2952_v8  ;;  %v2940_v16 = vor.u32 %v4400_v13, %v2939_v11  ;;  %v2996_v17 = vor.u32 %v4414_v15, %v2995_v14  ;;  %v4399_v18 = vld [vmem:[%s6636_s1 + $0x244] sm:$0xf]  ;;  %v2941_v19 = vld [vmem:[%s6636_s1 + $0x248] sm:$0xf0]  ;;  %v4413_v20 = vld [vmem:[%s6636_s1 + $0x2b4] sm:$0xf] }
  0x10   : > { %537 = vmatpush.bf16.msra.mxu3 %v3008_v12  ;;  %v2944_v21 = vor.u32 %v4399_v18, %v2941_v19  ;;  %v2997_v22 = vld [vmem:[%s6636_s1 + $0x2b8] sm:$0xf0]  ;;  %v2931_v23 = vld [vmem:[%s6636_s1 + $0x230] sm:$0xf]  ;;  %v4398_v24 = vld [vmem:[%s6636_s1 + $0x234] sm:$0xf0] }
  0x11   : > { %v3000_v25 = vor.u32 %v4413_v20, %v2997_v22  ;;  %v2987_v26 = vld [vmem:[%s6636_s1 + $0x2a0] sm:$0xf]  ;;  %v4412_v27 = vld [vmem:[%s6636_s1 + $0x2a4] sm:$0xf0]  ;;  %v4397_v28 = vld [vmem:[%s6636_s1 + $0x234] sm:$0xf]  ;;  %v2932_v29 = vor.u32 %v4398_v24, %v2931_v23 }
  0x12   : > { %498 = vmatpush.bf16.msra.mxu0 %v2940_v16  ;;  %v2933_v30 = vld [vmem:[%s6636_s1 + $0x238] sm:$0xf0]  ;;  %v4411_v31 = vld [vmem:[%s6636_s1 + $0x2a4] sm:$0xf]  ;;  %v2989_v32 = vld [vmem:[%s6636_s1 + $0x2a8] sm:$0xf0]  ;;  %v2988_v33 = vor.u32 %v4412_v27, %v2987_v26 }
  0x13   : > { %512 = vmatpush.bf16.msra.mxu1 %v2996_v17  ;;  %524 = vmatpush.bf16.msra.mxu2 %v2944_v21  ;;  %v2936_v34 = vor.u32 %v4397_v28, %v2933_v30  ;;  %v2923_v35 = vld [vmem:[%s6636_s1 + $0x220] sm:$0xf]  ;;  %v4396_v36 = vld [vmem:[%s6636_s1 + $0x224] sm:$0xf0]  ;;  %v2979_v37 = vld [vmem:[%s6636_s1 + $0x290] sm:$0xf]  ;;  %v2992_v38 = vor.u32 %v4411_v31, %v2989_v32 }
  0x14   : > { %538 = vmatpush.bf16.msra.mxu3 %v3000_v25  ;;  %v4410_v39 = vld [vmem:[%s6636_s1 + $0x294] sm:$0xf0]  ;;  %v4395_v40 = vld [vmem:[%s6636_s1 + $0x224] sm:$0xf]  ;;  %v2925_v41 = vld [vmem:[%s6636_s1 + $0x228] sm:$0xf0]  ;;  %v2924_v44 = vor.u32 %v4396_v36, %v2923_v35 }
  0x15   : > { %v4409_v42 = vld [vmem:[%s6636_s1 + $0x294] sm:$0xf]  ;;  %v2981_v43 = vld [vmem:[%s6636_s1 + $0x298] sm:$0xf0]  ;;  %v2980_v45 = vor.u32 %v4410_v39, %v2979_v37  ;;  %v2928_v46 = vor.u32 %v4395_v40, %v2925_v41  ;;  %v2915_v47 = vld [vmem:[%s6636_s1 + $0x210] sm:$0xf] }
  0x16   : > { %499 = vmatpush.bf16.msra.mxu0 %v2932_v29  ;;  %v4394_v48 = vld [vmem:[%s6636_s1 + $0x214] sm:$0xf0]  ;;  %v2971_v49 = vld [vmem:[%s6636_s1 + $0x280] sm:$0xf]  ;;  %v2984_v50 = vor.u32 %v4409_v42, %v2981_v43  ;;  %v4408_v51 = vld [vmem:[%s6636_s1 + $0x284] sm:$0xf0] }
  0x17   : > { %513 = vmatpush.bf16.msra.mxu1 %v2988_v33  ;;  %525 = vmatpush.bf16.msra.mxu2 %v2936_v34  ;;  %v4393_v52 = vld [vmem:[%s6636_s1 + $0x214] sm:$0xf]  ;;  %v2917_v53 = vld [vmem:[%s6636_s1 + $0x218] sm:$0xf0]  ;;  %v4407_v54 = vld [vmem:[%s6636_s1 + $0x284] sm:$0xf]  ;;  %v2916_v56 = vor.u32 %v4394_v48, %v2915_v47  ;;  %v2972_v57 = vor.u32 %v4408_v51, %v2971_v49 }
  0x18   : > { %539 = vmatpush.bf16.msra.mxu3 %v2992_v38  ;;  %v2973_v55 = vld [vmem:[%s6636_s1 + $0x288] sm:$0xf0]  ;;  %v2920_v58 = vor.u32 %v4393_v52, %v2917_v53  ;;  %v2907_v59 = vld [vmem:[%s6636_s1 + $0x200] sm:$0xf]  ;;  %v4392_v60 = vld [vmem:[%s6636_s1 + $0x204] sm:$0xf0] }
  0x19   : > { %v2963_v61 = vld [vmem:[%s6636_s1 + $0x270] sm:$0xf]  ;;  %v2976_v62 = vor.u32 %v4407_v54, %v2973_v55  ;;  %v4406_v63 = vld [vmem:[%s6636_s1 + $0x274] sm:$0xf0]  ;;  %v4391_v0 = vld [vmem:[%s6636_s1 + $0x204] sm:$0xf]  ;;  %v2908_v4 = vor.u32 %v4392_v60, %v2907_v59 }
  0x1a   : > { %500 = vmatpush.bf16.msra.mxu0 %v2924_v44  ;;  %v2909_v1 = vld [vmem:[%s6636_s1 + $0x208] sm:$0xf0]  ;;  %v4405_v2 = vld [vmem:[%s6636_s1 + $0x274] sm:$0xf]  ;;  %v2965_v3 = vld [vmem:[%s6636_s1 + $0x278] sm:$0xf0]  ;;  %v2964_v6 = vor.u32 %v4406_v63, %v2963_v61 }
  0x1b   : > { %514 = vmatpush.bf16.msra.mxu1 %v2980_v45  ;;  %526 = vmatpush.bf16.msra.mxu2 %v2928_v46  ;;  %v2899_v5 = vld [vmem:[%s6636_s1 + $0x1f0] sm:$0xf]  ;;  %v2912_v7 = vor.u32 %v4391_v0, %v2909_v1  ;;  %v4390_v8 = vld [vmem:[%s6636_s1 + $0x1f4] sm:$0xf0]  ;;  %v2955_v9 = vld [vmem:[%s6636_s1 + $0x260] sm:$0xf]  ;;  %v2968_v11 = vor.u32 %v4405_v2, %v2965_v3 }
  0x1c   : > { %540 = vmatpush.bf16.msra.mxu3 %v2984_v50  ;;  %v4404_v10 = vld [vmem:[%s6636_s1 + $0x264] sm:$0xf0]  ;;  %v4389_v12 = vld [vmem:[%s6636_s1 + $0x1f4] sm:$0xf]  ;;  %v2901_v13 = vld [vmem:[%s6636_s1 + $0x1f8] sm:$0xf0]  ;;  %v2900_v18 = vor.u32 %v4390_v8, %v2899_v5 }
  0x1d   : > { %v4403_v14 = vld [vmem:[%s6636_s1 + $0x264] sm:$0xf]  ;;  %v2957_v15 = vld [vmem:[%s6636_s1 + $0x268] sm:$0xf0]  ;;  %v3099_v16 = vld [vmem:[%s6636_s1 + $0x340] sm:$0xf]  ;;  %v2956_v22 = vor.u32 %v4404_v10, %v2955_v9  ;;  %v2904_v23 = vor.u32 %v4389_v12, %v2901_v13 }
  0x1e   : > { %501 = vmatpush.bf16.msra.mxu0 %v2916_v56  ;;  %v4432_v17 = vld [vmem:[%s6636_s1 + $0x344] sm:$0xf0]  ;;  %v3155_v19 = vld [vmem:[%s6636_s1 + $0x3b0] sm:$0xf]  ;;  %v4446_v20 = vld [vmem:[%s6636_s1 + $0x3b4] sm:$0xf0]  ;;  %v2960_v27 = vor.u32 %v4403_v14, %v2957_v15 }
  0x1f   : > { %515 = vmatpush.bf16.msra.mxu1 %v2972_v57  ;;  %527 = vmatpush.bf16.msra.mxu2 %v2920_v58  ;;  %v2891_v21 = vld [vmem:[%s6636_s1 + $0x1e0] sm:$0xf]  ;;  %v4388_v24 = vld [vmem:[%s6636_s1 + $0x1e4] sm:$0xf0]  ;;  %v4387_v25 = vld [vmem:[%s6636_s1 + $0x1e4] sm:$0xf]  ;;  %v3100_v28 = vor.u32 %v4432_v17, %v3099_v16  ;;  %v3156_v32 = vor.u32 %v4446_v20, %v3155_v19 }
  0x20   : > { %541 = vmatpush.bf16.msra.mxu3 %v2976_v62  ;;  %v2893_v26 = vld [vmem:[%s6636_s1 + $0x1e8] sm:$0xf0]  ;;  %v3091_v29 = vld [vmem:[%s6636_s1 + $0x330] sm:$0xf]  ;;  %v4431_v30 = vld [vmem:[%s6636_s1 + $0x344] sm:$0xf]  ;;  %v2892_v36 = vor.u32 %v4388_v24, %v2891_v21 }
  0x21   : > { %v3101_v31 = vld [vmem:[%s6636_s1 + $0x348] sm:$0xf0]  ;;  %v4430_v33 = vld [vmem:[%s6636_s1 + $0x334] sm:$0xf0]  ;;  %v4445_v34 = vld [vmem:[%s6636_s1 + $0x3b4] sm:$0xf]  ;;  %v2896_v39 = vor.u32 %v4387_v25, %v2893_v26 }
  0x22   : > { %502 = vmatpush.bf16.msra.mxu0 %v2908_v4  ;;  %v3157_v35 = vld [vmem:[%s6636_s1 + $0x3b8] sm:$0xf0]  ;;  %v3147_v37 = vld [vmem:[%s6636_s1 + $0x3a0] sm:$0xf]  ;;  %v4444_v38 = vld [vmem:[%s6636_s1 + $0x3a4] sm:$0xf0]  ;;  %v3104_v40 = vor.u32 %v4431_v30, %v3101_v31  ;;  %v3092_v41 = vor.u32 %v4430_v33, %v3091_v29 }
  0x23   : > { %516 = vmatpush.bf16.msra.mxu1 %v2964_v6  ;;  %528 = vmatpush.bf16.msra.mxu2 %v2912_v7  ;;  %v3160_v42 = vor.u32 %v4445_v34, %v3157_v35  ;;  %v3083_v43 = vld [vmem:[%s6636_s1 + $0x320] sm:$0xf]  ;;  %v4429_v44 = vld [vmem:[%s6636_s1 + $0x334] sm:$0xf]  ;;  %v3093_v45 = vld [vmem:[%s6636_s1 + $0x338] sm:$0xf0]  ;;  %v3148_v46 = vor.u32 %v4444_v38, %v3147_v37 }
  0x24   : > { %542 = vmatpush.bf16.msra.mxu3 %v2968_v11  ;;  %v4428_v47 = vld [vmem:[%s6636_s1 + $0x324] sm:$0xf0]  ;;  %v4443_v48 = vld [vmem:[%s6636_s1 + $0x3a4] sm:$0xf]  ;;  %v3149_v49 = vld [vmem:[%s6636_s1 + $0x3a8] sm:$0xf0]  ;;  %v3096_v52 = vor.u32 %v4429_v44, %v3093_v45 }
  0x25   : > { %v3139_v50 = vld [vmem:[%s6636_s1 + $0x390] sm:$0xf]  ;;  %v4442_v51 = vld [vmem:[%s6636_s1 + $0x394] sm:$0xf0]  ;;  %v3084_v54 = vor.u32 %v4428_v47, %v3083_v43  ;;  %v3152_v55 = vor.u32 %v4443_v48, %v3149_v49  ;;  %v4427_v57 = vld [vmem:[%s6636_s1 + $0x324] sm:$0xf] }
  0x26   : > { %503 = vmatpush.bf16.msra.mxu0 %v2900_v18  ;;  %v3075_v53 = vld [vmem:[%s6636_s1 + $0x310] sm:$0xf]  ;;  %v4426_v56 = vld [vmem:[%s6636_s1 + $0x314] sm:$0xf0]  ;;  %v3085_v58 = vld [vmem:[%s6636_s1 + $0x328] sm:$0xf0]  ;;  %v3140_v59 = vor.u32 %v4442_v51, %v3139_v50 }
  0x27   : > { %517 = vmatpush.bf16.msra.mxu1 %v2956_v22  ;;  %529 = vmatpush.bf16.msra.mxu2 %v2904_v23  ;;  %v4441_v60 = vld [vmem:[%s6636_s1 + $0x394] sm:$0xf]  ;;  %v3141_v61 = vld [vmem:[%s6636_s1 + $0x398] sm:$0xf0]  ;;  %s6642_s19 = smov (!%p215_p3, %s2820_s19), 1  ;;  %v3088_v0 = vor.u32 %v4427_v57, %v3085_v58  ;;  %v3076_v4 = vor.u32 %v4426_v56, %v3075_v53  ;;  %vm493_vm0 = vcmask 916480  }
  0x28   : > { %543 = vmatpush.bf16.msra.mxu3 %v2960_v27  ;;  %v3131_v62 = vld [vmem:[%s6636_s1 + $0x380] sm:$0xf]  ;;  %v4440_v63 = vld [vmem:[%s6636_s1 + $0x384] sm:$0xf0]  ;;  %v4425_v3 = vld [vmem:[%s6636_s1 + $0x314] sm:$0xf]  ;;  %v3144_v5 = vor.u32 %v4441_v60, %v3141_v61 }
  0x29   : > { %v3067_v1 = vld [vmem:[%s6636_s1 + $0x300] sm:$0xf]  ;;  %v4424_v2 = vld [vmem:[%s6636_s1 + $0x304] sm:$0xf0]  ;;  %s4325_s16 = sshll.u32 %s6642_s19, 5  ;;  %v3132_v9 = vor.u32 %v4440_v63, %v3131_v62  ;;  %vm2656_vm1 = vcmask 64512  }
  0x2a   : > { %504 = vmatpush.bf16.msra.mxu0 %v2892_v36  ;;  %v3077_v6 = vld [vmem:[%s6636_s1 + $0x318] sm:$0xf0]  ;;  %v4439_v7 = vld [vmem:[%s6636_s1 + $0x384] sm:$0xf]  ;;  %v3133_v8 = vld [vmem:[%s6636_s1 + $0x388] sm:$0xf0]  ;;  %s4973_s27 = scalar_lea.vmem %s6635_s0, %s4325_s16  ;;  %v3068_v21 = vor.u32 %v4424_v2, %v3067_v1 }
  0x2b   : > { %730 = vmatpush.bf16.msrb.mxu1 %v3100_v28  ;;  %530 = vmatpush.bf16.msra.mxu2 %v2896_v39  ;;  %v292_v10 = vld [vmem:[%s4973_s27 + $0x8] sm:$0xfe]  ;;  %v294_v11 = vld [vmem:[%s4973_s27 + $0x18] sm:$0x1]  ;;  %v291_v12 = vld [vmem:[%s4973_s27] sm:$0xfe]  ;;  %v3080_v17 = vor.u32 %v4425_v3, %v3077_v6  ;;  %v3136_v22 = vor.u32 %v4439_v7, %v3133_v8 }
  0x2c   : > { %744 = vmatpush.bf16.msrb.mxu3 %v3156_v32  ;;  %v3123_v13 = vld [vmem:[%s6636_s1 + $0x370] sm:$0xf]  ;;  %v4438_v14 = vld [vmem:[%s6636_s1 + $0x374] sm:$0xf0]  ;;  %v296_v15 = vpack.c.bf16 %v294_v11, %v292_v10  ;;  %v4423_v25 = vld [vmem:[%s6636_s1 + $0x304] sm:$0xf] }
  0x2d   : > { %v293_v16 = vld [vmem:[%s4973_s27 + $0x10] sm:$0x1]  ;;  %v4422_v19 = vld [vmem:[%s6636_s1 + $0x2f4] sm:$0xf0]  ;;  %v3069_v26 = vld [vmem:[%s6636_s1 + $0x308] sm:$0xf0]  ;;  %v3124_v27 = vor.u32 %v4438_v14, %v3123_v13 }
  0x2e   : > { %756 = vmatpush.bf16.msrb.mxu0 %v3104_v40  ;;  %v3059_v18 = vld [vmem:[%s6636_s1 + $0x2f0] sm:$0xf]  ;;  %v295_v20 = vpack.c.bf16 %v293_v16, %v291_v12  ;;  %v336_v23 = vshrl.u32 %v296_v15, 16  ;;  %v338_v24 = vshll.u32 %v296_v15, 16  ;;  %v4437_v28 = vld [vmem:[%s6636_s1 + $0x374] sm:$0xf]  ;;  %v3072_v35 = vor.u32 %v4423_v25, %v3069_v26 }
  0x2f   : > { %731 = vmatpush.bf16.msrb.mxu1 %v3092_v41  ;;  %770 = vmatpush.bf16.msrb.mxu2 %v3160_v42  ;;  %v3125_v29 = vld [vmem:[%s6636_s1 + $0x378] sm:$0xf0]  ;;  %v3115_v33 = vld [vmem:[%s6636_s1 + $0x360] sm:$0xf]  ;;  %v4436_v34 = vld [vmem:[%s6636_s1 + $0x364] sm:$0xf0]  ;;  %v3060_v38 = vor.u32 %v4422_v19, %v3059_v18 }
  0x30   : > { %745 = vmatpush.bf16.msrb.mxu3 %v3148_v46  ;;  %v329_v30 = vshrl.u32 %v295_v20, 16  ;;  %v331_v31 = vshll.u32 %v295_v20, 16  ;;  %v340_v32 = vrot.slane %v338_v24, 1  ;;  %v3128_v39 = vor.u32 %v4437_v28, %v3125_v29  ;;  %v3051_v40 = vld [vmem:[%s6636_s1 + $0x2e0] sm:$0xf] }
  0x31   : > { %v4421_v41 = vld [vmem:[%s6636_s1 + $0x2f4] sm:$0xf]  ;;  %v3061_v42 = vld [vmem:[%s6636_s1 + $0x2f8] sm:$0xf0]  ;;  %v3116_v43 = vor.u32 %v4436_v34, %v3115_v33  ;;  %v4420_v45 = vld [vmem:[%s6636_s1 + $0x2e4] sm:$0xf0] }
  0x32   : > { %757 = vmatpush.bf16.msrb.mxu0 %v3096_v52  ;;  %v333_v36 = vrot.slane %v331_v31, 1  ;;  %v5009_v37 = vor.u32 %v340_v32, %v336_v23  ;;  %v4435_v46 = vld [vmem:[%s6636_s1 + $0x364] sm:$0xf]  ;;  %v3117_v47 = vld [vmem:[%s6636_s1 + $0x368] sm:$0xf0]  ;;  %v3064_v50 = vor.u32 %v4421_v41, %v3061_v42  ;;  %vm2759_vm2 = vcmask 1043456  }
  0x33   : > { %732 = vmatpush.bf16.msrb.mxu1 %v3084_v54  ;;  %771 = vmatpush.bf16.msrb.mxu2 %v3152_v55  ;;  %v3107_v48 = vld [vmem:[%s6636_s1 + $0x350] sm:$0xf]  ;;  %v4434_v49 = vld [vmem:[%s6636_s1 + $0x354] sm:$0xf0]  ;;  %v3052_v54 = vor.u32 %v4420_v45, %v3051_v40  ;;  %v3120_v55 = vor.u32 %v4435_v46, %v3117_v47  ;;  %v4419_v57 = vld [vmem:[%s6636_s1 + $0x2e4] sm:$0xf] }
  0x34   : > { %746 = vmatpush.bf16.msrb.mxu3 %v3140_v59  ;;  %v5020_v44 = vor.u32 %v333_v36, %v329_v30  ;;  %3009 = vmatmul.msk.bf16.vlgmr.msra.gmra.mxu1 %vm493_vm0, %v5009_v37  ;;  %v3221_v51 = vld [vmem:[%s6636_s1 + $0x70] sm:$0xf]  ;;  %v4342_v52 = vld [vmem:[%s6636_s1 + $0x74] sm:$0xf0]  ;;  %v3053_v58 = vld [vmem:[%s6636_s1 + $0x2e8] sm:$0xf0]  ;;  %v3108_v59 = vor.u32 %v4434_v49, %v3107_v48 }
  0x35   : > { %3010 = vmatmul.msk.bf16.vlgmr.msra.gmra.mxu3 %vm493_vm0, %v5009_v37  ;;  %v3043_v53 = vld [vmem:[%s6636_s1 + $0x2d0] sm:$0xf]  ;;  %v4418_v56 = vld [vmem:[%s6636_s1 + $0x2d4] sm:$0xf0]  ;;  %v4433_v60 = vld [vmem:[%s6636_s1 + $0x354] sm:$0xf]  ;;  %v3222_v63 = vor.u32 %v4342_v52, %v3221_v51  ;;  %v3056_v3 = vor.u32 %v4419_v57, %v3053_v58 }
  0x36   : > { %758 = vmatpush.bf16.msrb.mxu0 %v3088_v0  ;;  %531 = vmatmul.bf16.vlgmr.msra.gmra.mxu2 %v5020_v44  ;;  %v3109_v61 = vld [vmem:[%s6636_s1 + $0x358] sm:$0xf0]  ;;  %v3277_v62 = vld [vmem:[%s6636_s1 + $0xe0] sm:$0xf]  ;;  %v4356_v0 = vld [vmem:[%s6636_s1 + $0xe4] sm:$0xf0]  ;;  %v3044_v6 = vor.u32 %v4418_v56, %v3043_v53 }
  0x37   : > { %733 = vmatpush.bf16.msrb.mxu1 %v3076_v4  ;;  %772 = vmatpush.bf16.msrb.mxu2 %v3144_v5  ;;  %v4341_v1 = vld [vmem:[%s6636_s1 + $0x74] sm:$0xf]  ;;  %v3223_v2 = vld [vmem:[%s6636_s1 + $0x78] sm:$0xf0]  ;;  %v3213_v4 = vld [vmem:[%s6636_s1 + $0x60] sm:$0xf]  ;;  %v3112_v7 = vor.u32 %v4433_v60, %v3109_v61  ;;  %v3278_v10 = vor.u32 %v4356_v0, %v3277_v62 }
  0x38   : > { %747 = vmatpush.bf16.msrb.mxu3 %v3132_v9  ;;  %505 = vmatmul.bf16.vlgmr.msra.gmra.mxu0 %v5020_v44  ;;  %v4340_v5 = vld [vmem:[%s6636_s1 + $0x64] sm:$0xf0]  ;;  %v4417_v8 = vld [vmem:[%s6636_s1 + $0x2d4] sm:$0xf]  ;;  %v3045_v9 = vld [vmem:[%s6636_s1 + $0x2d8] sm:$0xf0]  ;;  %v3226_v11 = vor.u32 %v4341_v1, %v3223_v2 }
  0x39   : > { %v3269_v12 = vld [vmem:[%s6636_s1 + $0xd0] sm:$0xf]  ;;  %v4355_v13 = vld [vmem:[%s6636_s1 + $0xe4] sm:$0xf]  ;;  %v3279_v14 = vld [vmem:[%s6636_s1 + $0xe8] sm:$0xf0]  ;;  %v3214_v15 = vor.u32 %v4340_v5, %v3213_v4  ;;  %v3048_v19 = vor.u32 %v4417_v8, %v3045_v9 }
  0x3a   : > { %759 = vmatpush.bf16.msrb.mxu0 %v3080_v17  ;;  %v4354_v16 = vld [vmem:[%s6636_s1 + $0xd4] sm:$0xf0]  ;;  %v4339_v17 = vld [vmem:[%s6636_s1 + $0x64] sm:$0xf]  ;;  %v3215_v18 = vld [vmem:[%s6636_s1 + $0x68] sm:$0xf0] }
  0x3b   : > { %734 = vmatpush.bf16.msrb.mxu1 %v3068_v21  ;;  %773 = vmatpush.bf16.msrb.mxu2 %v3136_v22  ;;  %v3205_v20 = vld [vmem:[%s6636_s1 + $0x50] sm:$0xf]  ;;  %v4338_v21 = vld [vmem:[%s6636_s1 + $0x54] sm:$0xf0]  ;;  %v3282_v22 = vor.u32 %v4355_v13, %v3279_v14  ;;  %v3270_v23 = vor.u32 %v4354_v16, %v3269_v12  ;;  %v3218_v24 = vor.u32 %v4339_v17, %v3215_v18  ;;  %v3261_v25 = vld [vmem:[%s6636_s1 + $0xc0] sm:$0xf] }
  0x3c   : > { %748 = vmatpush.bf16.msrb.mxu3 %v3124_v27  ;;  %v4353_v26 = vld [vmem:[%s6636_s1 + $0xd4] sm:$0xf]  ;;  %v3271_v27 = vld [vmem:[%s6636_s1 + $0xd8] sm:$0xf0]  ;;  %v3206_v28 = vor.u32 %v4338_v21, %v3205_v20  ;;  %v4352_v29 = vld [vmem:[%s6636_s1 + $0xc4] sm:$0xf0] }
  0x3d   : > { %v4337_v30 = vld [vmem:[%s6636_s1 + $0x54] sm:$0xf]  ;;  %v3207_v31 = vld [vmem:[%s6636_s1 + $0x58] sm:$0xf0]  ;;  %v3197_v32 = vld [vmem:[%s6636_s1 + $0x40] sm:$0xf]  ;;  %v3274_v34 = vor.u32 %v4353_v26, %v3271_v27 }
  0x3e   : > { %760 = vmatpush.bf16.msrb.mxu0 %v3072_v35  ;;  %v4336_v33 = vld [vmem:[%s6636_s1 + $0x44] sm:$0xf0]  ;;  %v3262_v35 = vor.u32 %v4352_v29, %v3261_v25  ;;  %v3210_v36 = vor.u32 %v4337_v30, %v3207_v31  ;;  %v3263_v40 = vld [vmem:[%s6636_s1 + $0xc8] sm:$0xf0]  ;;  %v4350_v42 = vld [vmem:[%s6636_s1 + $0xb4] sm:$0xf0] }
  0x3f   : > { %735 = vmatpush.bf16.msrb.mxu1 %v3060_v38  ;;  %774 = vmatpush.bf16.msrb.mxu2 %v3128_v39  ;;  %v3253_v38 = vld [vmem:[%s6636_s1 + $0xb0] sm:$0xf]  ;;  %v4351_v39 = vld [vmem:[%s6636_s1 + $0xc4] sm:$0xf]  ;;  %v3198_v41 = vor.u32 %v4336_v33, %v3197_v32  ;;  %v3199_v45 = vld [vmem:[%s6636_s1 + $0x48] sm:$0xf0] }
  0x40   : > { %749 = vmatpush.bf16.msrb.mxu3 %v3116_v43  ;;  %v4335_v43 = vld [vmem:[%s6636_s1 + $0x44] sm:$0xf]  ;;  %v3189_v46 = vld [vmem:[%s6636_s1 + $0x30] sm:$0xf]  ;;  %v4334_v47 = vld [vmem:[%s6636_s1 + $0x34] sm:$0xf0]  ;;  %v3266_v48 = vor.u32 %v4351_v39, %v3263_v40  ;;  %v3254_v49 = vor.u32 %v4350_v42, %v3253_v38 }
  0x41   : > { %v3245_v51 = vld [vmem:[%s6636_s1 + $0xa0] sm:$0xf]  ;;  %v4349_v52 = vld [vmem:[%s6636_s1 + $0xb4] sm:$0xf]  ;;  %v3255_v53 = vld [vmem:[%s6636_s1 + $0xb8] sm:$0xf0] }
  0x42   : > { %761 = vmatpush.bf16.msrb.mxu0 %v3064_v50  ;;  %v3202_v50 = vor.u32 %v4335_v43, %v3199_v45  ;;  %v3191_v56 = vld [vmem:[%s6636_s1 + $0x38] sm:$0xf0]  ;;  %v3181_v57 = vld [vmem:[%s6636_s1 + $0x20] sm:$0xf]  ;;  %v4332_v58 = vld [vmem:[%s6636_s1 + $0x24] sm:$0xf0] }
  0x43   : > { %736 = vmatpush.bf16.msrb.mxu1 %v3052_v54  ;;  %775 = vmatpush.bf16.msrb.mxu2 %v3120_v55  ;;  %v4348_v54 = vld [vmem:[%s6636_s1 + $0xa4] sm:$0xf0]  ;;  %v4333_v55 = vld [vmem:[%s6636_s1 + $0x34] sm:$0xf]  ;;  %v3237_v62 = vld [vmem:[%s6636_s1 + $0x90] sm:$0xf]  ;;  %v3182_v0 = vor.u32 %v4332_v58, %v3181_v57 }
  0x44   : > { %750 = vmatpush.bf16.msrb.mxu3 %v3108_v59  ;;  %v3258_v59 = vor.u32 %v4349_v52, %v3255_v53  ;;  %v3246_v60 = vor.u32 %v4348_v54, %v3245_v51  ;;  %v3194_v61 = vor.u32 %v4333_v55, %v3191_v56  ;;  %v4346_v1 = vld [vmem:[%s6636_s1 + $0x94] sm:$0xf0]  ;;  %v4331_v2 = vld [vmem:[%s6636_s1 + $0x24] sm:$0xf]  ;;  %v3173_v4 = vld [vmem:[%s6636_s1 + $0x10] sm:$0xf] }
  0x45   : > { %v4330_v5 = vld [vmem:[%s6636_s1 + $0x14] sm:$0xf0]  ;;  %v3165_v9 = vld [vmem:[%s6636_s1] sm:$0xf]  ;;  %v4345_v12 = vld [vmem:[%s6636_s1 + $0x94] sm:$0xf] }
  0x46   : > { %762 = vmatpush.bf16.msrb.mxu0 %v3056_v3  ;;  %v3183_v3 = vld [vmem:[%s6636_s1 + $0x28] sm:$0xf0]  ;;  %v3239_v13 = vld [vmem:[%s6636_s1 + $0x98] sm:$0xf0]  ;;  %v3174_v14 = vor.u32 %v4330_v5, %v3173_v4  ;;  %v4329_v16 = vld [vmem:[%s6636_s1 + $0x14] sm:$0xf] }
  0x47   : > { %737 = vmatpush.bf16.msrb.mxu1 %v3044_v6  ;;  %776 = vmatpush.bf16.msrb.mxu2 %v3112_v7  ;;  %v3238_v7 = vor.u32 %v4346_v1, %v3237_v62  ;;  %v3186_v8 = vor.u32 %v4331_v2, %v3183_v3  ;;  %v3175_v17 = vld [vmem:[%s6636_s1 + $0x18] sm:$0xf0]  ;;  %v3343_v18 = vld [vmem:[%s6636_s1 + $0x160] sm:$0xf]  ;;  %v3399_v20 = vld [vmem:[%s6636_s1 + $0x1d0] sm:$0xf]  ;;  %v3242_v21 = vor.u32 %v4345_v12, %v3239_v13 }
  0x48   : > { %935 = vmatpush.bf16.msra.mxu3 %v3222_v63  ;;  %v3247_v63 = vld [vmem:[%s6636_s1 + $0xa8] sm:$0xf0]  ;;  %v3178_v26 = vor.u32 %v4329_v16, %v3175_v17  ;;  %v4343_v27 = vld [vmem:[%s6636_s1 + $0x84] sm:$0xf]  ;;  %v3335_v33 = vld [vmem:[%s6636_s1 + $0x150] sm:$0xf] }
  0x49   : > { %3161 = vmatmul.msk.bf16.vlgmr.msrb.gmra.mxu3 %vm493_vm0, %v5009_v37  ;;  %v227_v29 = vld [vmem:[%s4973_s27 + $0x8] sm:$0xff]  ;;  %v4371_v38 = vld [vmem:[%s6636_s1 + $0x164] sm:$0xf]  ;;  %v4385_v42 = vld [vmem:[%s6636_s1 + $0x1d4] sm:$0xf]  ;;  %vm2762_vm3 = vcmask 588804  }
  0x4a   : > { %763 = vmatpush.bf16.msrb.mxu0 %v3048_v19  ;;  %738 = vmatmul.bf16.vlgmr.msrb.gmra.mxu1 %v5020_v44  ;;  %v4372_v19 = vld [vmem:[%s6636_s1 + $0x164] sm:$0xf0]  ;;  %v3167_v32 = vld [vmem:[%s6636_s1 + $0x8] sm:$0xf0]  ;;  %v3401_v43 = vld [vmem:[%s6636_s1 + $0x1d8] sm:$0xf0]  ;;  %v5291_v45 = vpack.c.bf16 %v227_v29, %v227_v29 }
  0x4b   : > { %949 = vmatpush.bf16.msra.mxu1 %v3278_v10  ;;  %961 = vmatpush.bf16.msra.mxu2 %v3226_v11  ;;  %v4328_v10 = vld [vmem:[%s6636_s1 + $0x4] sm:$0xf0]  ;;  %v3229_v11 = vld [vmem:[%s6636_s1 + $0x80] sm:$0xf]  ;;  %v3344_v31 = vor.u32 %v4372_v19, %v3343_v18  ;;  %v3345_v39 = vld [vmem:[%s6636_s1 + $0x168] sm:$0xf0]  ;;  %v3404_v53 = vor.u32 %v4385_v42, %v3401_v43 }
  0x4c   : > { %936 = vmatpush.bf16.msra.mxu3 %v3214_v15  ;;  %3162 = vmatmul.msk.bf16.vlgmr.msrb.gmra.mxu2 %vm493_vm0, %v5009_v37  ;;  %v3190_v37 = vor.u32 %v4334_v47, %v3189_v46  ;;  %v4344_v15 = vld [vmem:[%s6636_s1 + $0x84] sm:$0xf0]  ;;  %v3166_v30 = vor.u32 %v4328_v10, %v3165_v9  ;;  %v4369_v54 = vld [vmem:[%s6636_s1 + $0x154] sm:$0xf]  ;;  %v3337_v55 = vld [vmem:[%s6636_s1 + $0x158] sm:$0xf0] }
  0x4d   : > { %764 = vmatmul.bf16.vlgmr.msrb.gmra.mxu0 %v5020_v44  ;;  %v4347_v44 = vld [vmem:[%s6636_s1 + $0xa4] sm:$0xf]  ;;  %v3230_v25 = vor.u32 %v4344_v15, %v3229_v11  ;;  %v4368_v51 = vld [vmem:[%s6636_s1 + $0x144] sm:$0xf0]  ;;  %v4382_v56 = vld [vmem:[%s6636_s1 + $0x1b4] sm:$0xf0] }
  0x4e   : > { %975 = vmatpush.bf16.msra.mxu0 %v3282_v22  ;;  %v3250_v6 = vor.u32 %v4347_v44, %v3247_v63  ;;  %v4386_v22 = vld [vmem:[%s6636_s1 + $0x1d4] sm:$0xf0]  ;;  %v4383_v57 = vld [vmem:[%s6636_s1 + $0x1c4] sm:$0xf]  ;;  %v3393_v58 = vld [vmem:[%s6636_s1 + $0x1c8] sm:$0xf0] }
  0x4f   : > { %950 = vmatpush.bf16.msra.mxu1 %v3270_v23  ;;  %962 = vmatpush.bf16.msra.mxu2 %v3218_v24  ;;  %v226_v23 = vld [vmem:[%s4973_s27] sm:$0xff]  ;;  %v4366_v62 = vld [vmem:[%s6636_s1 + $0x134] sm:$0xf0]  ;;  %v3396_v63 = vor.u32 %v4383_v57, %v3393_v58  ;;  %v3329_v2 = vld [vmem:[%s6636_s1 + $0x148] sm:$0xf0] }
  0x50   : > { %937 = vmatpush.bf16.msra.mxu3 %v3206_v28  ;;  %v4327_v24 = vld [vmem:[%s6636_s1 + $0x4] sm:$0xf]  ;;  %v3231_v28 = vld [vmem:[%s6636_s1 + $0x88] sm:$0xf0]  ;;  %v5293_v46 = vpack.c.bf16 %v226_v23, %v226_v23  ;;  %v4380_v3 = vld [vmem:[%s6636_s1 + $0x1a4] sm:$0xf0] }
  0x51   : > { %v3234_v40 = vor.u32 %v4343_v27, %v3231_v28  ;;  %v3170_v47 = vor.u32 %v4327_v24, %v3167_v32  ;;  %v4367_v1 = vld [vmem:[%s6636_s1 + $0x144] sm:$0xf]  ;;  %v4381_v4 = vld [vmem:[%s6636_s1 + $0x1b4] sm:$0xf]  ;;  %v3385_v5 = vld [vmem:[%s6636_s1 + $0x1b8] sm:$0xf0] }
  0x52   : > { %976 = vmatpush.bf16.msra.mxu0 %v3274_v34  ;;  %v4370_v34 = vld [vmem:[%s6636_s1 + $0x154] sm:$0xf0]  ;;  %v4364_v9 = vld [vmem:[%s6636_s1 + $0x124] sm:$0xf0]  ;;  %v3388_v11 = vor.u32 %v4381_v4, %v3385_v5  ;;  %v3367_v12 = vld [vmem:[%s6636_s1 + $0x190] sm:$0xf] }
  0x53   : > { %951 = vmatpush.bf16.msra.mxu1 %v3262_v35  ;;  %963 = vmatpush.bf16.msra.mxu2 %v3210_v36  ;;  %v3400_v35 = vor.u32 %v4386_v22, %v3399_v20  ;;  %v3391_v36 = vld [vmem:[%s6636_s1 + $0x1c0] sm:$0xf]  ;;  %v4365_v13 = vld [vmem:[%s6636_s1 + $0x134] sm:$0xf]  ;;  %v4378_v15 = vld [vmem:[%s6636_s1 + $0x194] sm:$0xf0] }
  0x54   : > { %938 = vmatpush.bf16.msra.mxu3 %v3198_v41  ;;  %v4384_v41 = vld [vmem:[%s6636_s1 + $0x1c4] sm:$0xf0]  ;;  %v4379_v16 = vld [vmem:[%s6636_s1 + $0x1a4] sm:$0xf]  ;;  %v3377_v17 = vld [vmem:[%s6636_s1 + $0x1a8] sm:$0xf0]  ;;  %v3368_v22 = vor.u32 %v4378_v15, %v3367_v12 }
  0x55   : > { %v3392_v52 = vor.u32 %v4384_v41, %v3391_v36  ;;  %v3303_v20 = vld [vmem:[%s6636_s1 + $0x110] sm:$0xf]  ;;  %v3380_v23 = vor.u32 %v4379_v16, %v3377_v17  ;;  %v3359_v24 = vld [vmem:[%s6636_s1 + $0x180] sm:$0xf]  ;;  %v4376_v27 = vld [vmem:[%s6636_s1 + $0x184] sm:$0xf0] }
  0x56   : > { %977 = vmatpush.bf16.msra.mxu0 %v3266_v48  ;;  %v3336_v48 = vor.u32 %v4370_v34, %v3335_v33  ;;  %v4377_v28 = vld [vmem:[%s6636_s1 + $0x194] sm:$0xf]  ;;  %v3369_v29 = vld [vmem:[%s6636_s1 + $0x198] sm:$0xf0]  ;;  %v3295_v32 = vld [vmem:[%s6636_s1 + $0x100] sm:$0xf]  ;;  %v3360_v34 = vor.u32 %v4376_v27, %v3359_v24 }
  0x57   : > { %952 = vmatpush.bf16.msra.mxu1 %v3254_v49  ;;  %964 = vmatpush.bf16.msra.mxu2 %v3202_v50  ;;  %v3348_v49 = vor.u32 %v4371_v38, %v3345_v39  ;;  %v3327_v50 = vld [vmem:[%s6636_s1 + $0x140] sm:$0xf]  ;;  %v4360_v33 = vld [vmem:[%s6636_s1 + $0x104] sm:$0xf0]  ;;  %v3351_v36 = vld [vmem:[%s6636_s1 + $0x170] sm:$0xf] }
  0x58   : > { %939 = vmatpush.bf16.msra.mxu3 %v3190_v37  ;;  %v3383_v37 = vld [vmem:[%s6636_s1 + $0x1b0] sm:$0xf]  ;;  %v4361_v38 = vld [vmem:[%s6636_s1 + $0x114] sm:$0xf]  ;;  %v3305_v39 = vld [vmem:[%s6636_s1 + $0x118] sm:$0xf0] }
  0x59   : > { %v3384_v44 = vor.u32 %v4382_v56, %v3383_v37  ;;  %v4375_v41 = vld [vmem:[%s6636_s1 + $0x184] sm:$0xf]  ;;  %v3361_v42 = vld [vmem:[%s6636_s1 + $0x188] sm:$0xf0]  ;;  %v3495_v43 = vld [vmem:[%s6636_s1 + $0x430] sm:$0xf] }
  0x5a   : > { %978 = vmatpush.bf16.msra.mxu0 %v3258_v59  ;;  %v3328_v59 = vor.u32 %v4368_v51, %v3327_v50  ;;  %v3287_v50 = vld [vmem:[%s6636_s1 + $0xf0] sm:$0xf]  ;;  %v4359_v37 = vld [vmem:[%s6636_s1 + $0x104] sm:$0xf]  ;;  %v4373_v56 = vld [vmem:[%s6636_s1 + $0x174] sm:$0xf] }
  0x5b   : > { %953 = vmatpush.bf16.msra.mxu1 %v3246_v60  ;;  %965 = vmatpush.bf16.msra.mxu2 %v3194_v61  ;;  %v3340_v60 = vor.u32 %v4369_v54, %v3337_v55  ;;  %v3319_v61 = vld [vmem:[%s6636_s1 + $0x130] sm:$0xf]  ;;  %v3297_v54 = vld [vmem:[%s6636_s1 + $0x108] sm:$0xf0]  ;;  %v3353_v57 = vld [vmem:[%s6636_s1 + $0x178] sm:$0xf0] }
  0x5c   : > { %940 = vmatpush.bf16.msra.mxu3 %v3182_v0  ;;  %v3375_v0 = vld [vmem:[%s6636_s1 + $0x1a0] sm:$0xf]  ;;  %v3289_v5 = vld [vmem:[%s6636_s1 + $0xf8] sm:$0xf0]  ;;  %v3489_v12 = vld [vmem:[%s6636_s1 + $0x428] sm:$0xf0] }
  0x5d   : > { %v3376_v10 = vor.u32 %v4380_v3, %v3375_v0  ;;  %v3487_v58 = vld [vmem:[%s6636_s1 + $0x420] sm:$0xf]  ;;  %v3300_v0 = vor.u32 %v4359_v37, %v3297_v54  ;;  %v4457_v24 = vld [vmem:[%s6636_s1 + $0x414] sm:$0xf]  ;;  %v3545_v27 = vld [vmem:[%s6636_s1 + $0x498] sm:$0xf0] }
  0x5e   : > { %979 = vmatpush.bf16.msra.mxu0 %v3250_v6  ;;  %v3320_v6 = vor.u32 %v4366_v62, %v3319_v61  ;;  %v4476_v61 = vld [vmem:[%s6636_s1 + $0x4a4] sm:$0xf0]  ;;  %vm2763_vm4 = vmor %vm2762_vm3, %vm2759_vm2 }
  0x5f   : > { %954 = vmatpush.bf16.msra.mxu1 %v3238_v7  ;;  %966 = vmatpush.bf16.msra.mxu2 %v3186_v8  ;;  %v3332_v7 = vor.u32 %v4367_v1, %v3329_v2  ;;  %v3311_v8 = vld [vmem:[%s6636_s1 + $0x120] sm:$0xf]  ;;  %v3356_v1 = vor.u32 %v4373_v56, %v3353_v57  ;;  %v4357_v2 = vld [vmem:[%s6636_s1 + $0xf4] sm:$0xf]  ;;  %v4450_v56 = vld [vmem:[%s6636_s1 + $0x3d4] sm:$0xf0] }
  0x60   : > { %941 = vmatpush.bf16.msra.mxu3 %v3174_v14  ;;  %v3321_v14 = vld [vmem:[%s6636_s1 + $0x138] sm:$0xf0]  ;;  %v3312_v18 = vor.u32 %v4364_v9, %v3311_v8  ;;  %v3543_v9 = vld [vmem:[%s6636_s1 + $0x490] sm:$0xf]  ;;  %v3292_v15 = vor.u32 %v4357_v2, %v3289_v5  ;;  %v3503_v2 = vld [vmem:[%s6636_s1 + $0x440] sm:$0xf] }
  0x61   : > { %v3324_v19 = vor.u32 %v4365_v13, %v3321_v14  ;;  %v4475_v13 = vld [vmem:[%s6636_s1 + $0x4a4] sm:$0xf]  ;;  %v3553_v14 = vld [vmem:[%s6636_s1 + $0x4a8] sm:$0xf0] }
  0x62   : > { %980 = vmatpush.bf16.msra.mxu0 %v3242_v21  ;;  %v4362_v21 = vld [vmem:[%s6636_s1 + $0x114] sm:$0xf0] }
  0x63   : > { %955 = vmatpush.bf16.msra.mxu1 %v3230_v25  ;;  %967 = vmatpush.bf16.msra.mxu2 %v3178_v26  ;;  %v4363_v25 = vld [vmem:[%s6636_s1 + $0x124] sm:$0xf]  ;;  %v3313_v26 = vld [vmem:[%s6636_s1 + $0x128] sm:$0xf0] }
  0x64   : > { %942 = vmatpush.bf16.msra.mxu3 %v3166_v30  ;;  %v3304_v30 = vor.u32 %v4362_v21, %v3303_v20  ;;  %v3556_v21 = vor.u32 %v4475_v13, %v3553_v14  ;;  %v3449_v13 = vld [vmem:[%s6636_s1 + $0x3d8] sm:$0xf0]  ;;  %v4465_v14 = vld [vmem:[%s6636_s1 + $0x454] sm:$0xf] }
  0x66   : > { %981 = vmatpush.bf16.msra.mxu0 %v3234_v40  ;;  %3283 = vmatmul.msk.bf16.vlgmr.msra.gmra.mxu1 %vm493_vm0, %v5291_v45  ;;  %v4374_v40 = vld [vmem:[%s6636_s1 + $0x174] sm:$0xf0] }
  0x67   : > { %1137 = vmatpush.bf16.msrb.mxu1 %v3344_v31  ;;  %943 = vmatmul.bf16.vlgmr.msra.gmra.mxu3 %v5293_v46  ;;  %v3316_v31 = vor.u32 %v4363_v25, %v3313_v26  ;;  %v3352_v51 = vor.u32 %v4374_v40, %v3351_v36  ;;  %v3481_v25 = vld [vmem:[%s6636_s1 + $0x418] sm:$0xf0]  ;;  %v4473_v26 = vld [vmem:[%s6636_s1 + $0x494] sm:$0xf]  ;;  %v3473_v36 = vld [vmem:[%s6636_s1 + $0x408] sm:$0xf0] }
  0x68   : > { %1151 = vmatpush.bf16.msrb.mxu3 %v3400_v35  ;;  %968 = vmatpush.bf16.msra.mxu2 %v3170_v47  ;;  %v3372_v35 = vor.u32 %v4377_v28, %v3369_v29  ;;  %v4462_v47 = vld [vmem:[%s6636_s1 + $0x434] sm:$0xf0] }
  0x69   : > { %3284 = vmatmul.msk.bf16.vlgmr.msra.gmra.mxu0 %vm493_vm0, %v5291_v45  ;;  %v3496_v55 = vor.u32 %v4462_v47, %v3495_v43 }
  0x6a   : > { %1163 = vmatpush.bf16.msrb.mxu0 %v3348_v49  ;;  %v3308_v49 = vor.u32 %v4361_v38, %v3305_v39  ;;  %v4471_v38 = vld [vmem:[%s6636_s1 + $0x484] sm:$0xf]  ;;  %v3537_v39 = vld [vmem:[%s6636_s1 + $0x488] sm:$0xf0] }
  0x6b   : > { %1138 = vmatpush.bf16.msrb.mxu1 %v3336_v48  ;;  %969 = vmatmul.bf16.vlgmr.msra.gmra.mxu2 %v5293_v46  ;;  %v3296_v48 = vor.u32 %v4360_v33, %v3295_v32  ;;  %v3548_v32 = vor.u32 %v4473_v26, %v3545_v27  ;;  %v3527_v33 = vld [vmem:[%s6636_s1 + $0x470] sm:$0xf]  ;;  %v3540_v47 = vor.u32 %v4471_v38, %v3537_v39  ;;  %v3441_v27 = vld [vmem:[%s6636_s1 + $0x3c8] sm:$0xf0] }
  0x6c   : > { %1152 = vmatpush.bf16.msrb.mxu3 %v3392_v52  ;;  %1177 = vmatpush.bf16.msrb.mxu2 %v3404_v53  ;;  %v3364_v52 = vor.u32 %v4375_v41, %v3361_v42  ;;  %v4358_v53 = vld [vmem:[%s6636_s1 + $0xf4] sm:$0xf0]  ;;  %v4452_v42 = vld [vmem:[%s6636_s1 + $0x3e4] sm:$0xf0]  ;;  %v3649_v39 = vld [vmem:[%s6636_s1 + $0x528] sm:$0xf0] }
  0x6d   : > { %v3288_v62 = vor.u32 %v4358_v53, %v3287_v50  ;;  %v4453_v50 = vld [vmem:[%s6636_s1 + $0x3f4] sm:$0xf]  ;;  %v3529_v53 = vld [vmem:[%s6636_s1 + $0x478] sm:$0xf0] }
  0x6e   : > { %1164 = vmatpush.bf16.msrb.mxu0 %v3340_v60  ;;  %v3551_v60 = vld [vmem:[%s6636_s1 + $0x4a0] sm:$0xf] }
  0x6f   : > { %1139 = vmatpush.bf16.msrb.mxu1 %v3328_v59  ;;  %v4460_v59 = vld [vmem:[%s6636_s1 + $0x424] sm:$0xf0]  ;;  %v3552_v4 = vor.u32 %v4476_v61, %v3551_v60  ;;  %v4466_v60 = vld [vmem:[%s6636_s1 + $0x454] sm:$0xf0]  ;;  %v4451_v61 = vld [vmem:[%s6636_s1 + $0x3e4] sm:$0xf] }
  0x70   : > { %1153 = vmatpush.bf16.msrb.mxu3 %v3384_v44  ;;  %1178 = vmatpush.bf16.msrb.mxu2 %v3396_v63  ;;  %v4461_v44 = vld [vmem:[%s6636_s1 + $0x434] sm:$0xf]  ;;  %v3497_v63 = vld [vmem:[%s6636_s1 + $0x438] sm:$0xf0]  ;;  %v3488_v3 = vor.u32 %v4460_v59, %v3487_v58  ;;  %v3511_v59 = vld [vmem:[%s6636_s1 + $0x450] sm:$0xf] }
  0x71   : > { %v3500_v8 = vor.u32 %v4461_v44, %v3497_v63  ;;  %v4467_v44 = vld [vmem:[%s6636_s1 + $0x464] sm:$0xf]  ;;  %v3521_v63 = vld [vmem:[%s6636_s1 + $0x468] sm:$0xf0]  ;;  %v3512_v5 = vor.u32 %v4466_v60, %v3511_v59  ;;  %v3623_v59 = vld [vmem:[%s6636_s1 + $0x4f0] sm:$0xf] }
  0x72   : > { %1165 = vmatpush.bf16.msrb.mxu0 %v3332_v7  ;;  %v4458_v7 = vld [vmem:[%s6636_s1 + $0x414] sm:$0xf0] }
  0x73   : > { %1140 = vmatpush.bf16.msrb.mxu1 %v3320_v6  ;;  %v3479_v6 = vld [vmem:[%s6636_s1 + $0x410] sm:$0xf]  ;;  %v4486_v60 = vld [vmem:[%s6636_s1 + $0x4f4] sm:$0xf0] }
  0x74   : > { %1154 = vmatpush.bf16.msrb.mxu3 %v3376_v10  ;;  %1179 = vmatpush.bf16.msrb.mxu2 %v3388_v11  ;;  %v4474_v10 = vld [vmem:[%s6636_s1 + $0x494] sm:$0xf0]  ;;  %v4459_v11 = vld [vmem:[%s6636_s1 + $0x424] sm:$0xf]  ;;  %v3480_v16 = vor.u32 %v4458_v7, %v3479_v6  ;;  %v1191_v6 = vld [vmem:[%s4973_s27 + $0x10] sm:$0x3] }
  0x75   : > { %v3544_v17 = vor.u32 %v4474_v10, %v3543_v9  ;;  %v3492_v20 = vor.u32 %v4459_v11, %v3489_v12  ;;  %v1190_v7 = vld [vmem:[%s4973_s27 + $0x8] sm:$0xfc]  ;;  %v3524_v10 = vor.u32 %v4467_v44, %v3521_v63  ;;  %v4449_v12 = vld [vmem:[%s6636_s1 + $0x3d4] sm:$0xf]  ;;  %v3679_v44 = vld [vmem:[%s6636_s1 + $0x560] sm:$0xf] }
  0x76   : > { %1166 = vmatpush.bf16.msrb.mxu0 %v3324_v19  ;;  %v4456_v19 = vld [vmem:[%s6636_s1 + $0x404] sm:$0xf0] }
  0x77   : > { %1141 = vmatpush.bf16.msrb.mxu1 %v3312_v18  ;;  %v3471_v18 = vld [vmem:[%s6636_s1 + $0x400] sm:$0xf]  ;;  %v4464_v11 = vld [vmem:[%s6636_s1 + $0x444] sm:$0xf0] }
  0x78   : > { %1155 = vmatpush.bf16.msrb.mxu3 %v3368_v22  ;;  %1180 = vmatpush.bf16.msrb.mxu2 %v3380_v23  ;;  %v3535_v22 = vld [vmem:[%s6636_s1 + $0x480] sm:$0xf]  ;;  %v4472_v23 = vld [vmem:[%s6636_s1 + $0x484] sm:$0xf0]  ;;  %v3472_v28 = vor.u32 %v4456_v19, %v3471_v18  ;;  %v3703_v18 = vld [vmem:[%s6636_s1 + $0x590] sm:$0xf] }
  0x79   : > { %v3536_v29 = vor.u32 %v4472_v23, %v3535_v22  ;;  %v4506_v19 = vld [vmem:[%s6636_s1 + $0x594] sm:$0xf0]  ;;  %v3504_v23 = vor.u32 %v4464_v11, %v3503_v2  ;;  %v4500_v63 = vld [vmem:[%s6636_s1 + $0x564] sm:$0xf0]  ;;  %v4501_v2 = vld [vmem:[%s6636_s1 + $0x574] sm:$0xf] }
  0x7a   : > { %1167 = vmatpush.bf16.msrb.mxu0 %v3316_v31  ;;  %v3484_v31 = vor.u32 %v4457_v24, %v3481_v25  ;;  %v4447_v24 = vld [vmem:[%s6636_s1 + $0x3c4] sm:$0xf]  ;;  %v3452_v25 = vor.u32 %v4449_v12, %v3449_v13  ;;  %v4498_v11 = vld [vmem:[%s6636_s1 + $0x554] sm:$0xf0]  ;;  %v4485_v12 = vld [vmem:[%s6636_s1 + $0x4f4] sm:$0xf] }
  0x7b   : > { %1142 = vmatpush.bf16.msrb.mxu1 %v3304_v30  ;;  %v4454_v30 = vld [vmem:[%s6636_s1 + $0x3f4] sm:$0xf0]  ;;  %v3625_v13 = vld [vmem:[%s6636_s1 + $0x4f8] sm:$0xf0] }
  0x7c   : > { %1156 = vmatpush.bf16.msrb.mxu3 %v3360_v34  ;;  %1181 = vmatpush.bf16.msrb.mxu2 %v3372_v35  ;;  %v4470_v34 = vld [vmem:[%s6636_s1 + $0x474] sm:$0xf0]  ;;  %v4455_v35 = vld [vmem:[%s6636_s1 + $0x404] sm:$0xf] }
  0x7d   : > { %v3528_v41 = vor.u32 %v4470_v34, %v3527_v33  ;;  %v3476_v43 = vor.u32 %v4455_v35, %v3473_v36  ;;  %v3695_v33 = vld [vmem:[%s6636_s1 + $0x580] sm:$0xf]  ;;  %v4504_v35 = vld [vmem:[%s6636_s1 + $0x584] sm:$0xf0]  ;;  %v4491_v36 = vld [vmem:[%s6636_s1 + $0x524] sm:$0xf] }
  0x7e   : > { %1168 = vmatpush.bf16.msrb.mxu0 %v3308_v49  ;;  %v4468_v49 = vld [vmem:[%s6636_s1 + $0x464] sm:$0xf0] }
  0x7f   : > { %1143 = vmatpush.bf16.msrb.mxu1 %v3296_v48  ;;  %v3519_v48 = vld [vmem:[%s6636_s1 + $0x460] sm:$0xf] }
  0x80   : > { %1157 = vmatpush.bf16.msrb.mxu3 %v3352_v51  ;;  %1182 = vmatpush.bf16.msrb.mxu2 %v3364_v52  ;;  %v3465_v51 = vld [vmem:[%s6636_s1 + $0x3f8] sm:$0xf0]  ;;  %v4469_v52 = vld [vmem:[%s6636_s1 + $0x474] sm:$0xf]  ;;  %v3520_v54 = vor.u32 %v4468_v49, %v3519_v48  ;;  %v3631_v48 = vld [vmem:[%s6636_s1 + $0x500] sm:$0xf] }
  0x81   : > { %v3468_v57 = vor.u32 %v4453_v50, %v3465_v51  ;;  %v3532_v58 = vor.u32 %v4469_v52, %v3529_v53  ;;  %v4488_v49 = vld [vmem:[%s6636_s1 + $0x504] sm:$0xf0]  ;;  %v3652_v50 = vor.u32 %v4491_v36, %v3649_v39  ;;  %v3687_v52 = vld [vmem:[%s6636_s1 + $0x570] sm:$0xf]  ;;  %v4502_v53 = vld [vmem:[%s6636_s1 + $0x574] sm:$0xf0] }
  0x82   : > { %1169 = vmatpush.bf16.msrb.mxu0 %v3300_v0  ;;  %v3439_v0 = vld [vmem:[%s6636_s1 + $0x3c0] sm:$0xf]  ;;  %v4481_v36 = vld [vmem:[%s6636_s1 + $0x4d4] sm:$0xf]  ;;  %v3609_v39 = vld [vmem:[%s6636_s1 + $0x4d8] sm:$0xf0] }
  0x83   : > { %3405 = vmatmul.msk.bf16.vlgmr.msrb.gmra.mxu3 %vm493_vm0, %v5291_v45  ;;  %1144 = vmatpush.bf16.msrb.mxu1 %v3288_v62  ;;  %v3457_v62 = vld [vmem:[%s6636_s1 + $0x3e8] sm:$0xf0] }
  0x84   : > { %1384 = vmatpush.bf16.msra.mxu3 %v3496_v55  ;;  %1183 = vmatpush.bf16.msrb.mxu2 %v3356_v1  ;;  %v3447_v55 = vld [vmem:[%s6636_s1 + $0x3d0] sm:$0xf]  ;;  %v4448_v1 = vld [vmem:[%s6636_s1 + $0x3c4] sm:$0xf0]  ;;  %v3460_v9 = vor.u32 %v4451_v61, %v3457_v62 }
  0x85   : > { %v3440_v22 = vor.u32 %v4448_v1, %v3439_v0  ;;  %v4487_v0 = vld [vmem:[%s6636_s1 + $0x504] sm:$0xf]  ;;  %v3633_v1 = vld [vmem:[%s6636_s1 + $0x508] sm:$0xf0] }
  0x86   : > { %1145 = vmatmul.bf16.vlgmr.msrb.gmra.mxu1 %v5293_v46  ;;  %1170 = vmatpush.bf16.msrb.mxu0 %v3292_v15  ;;  %v3513_v15 = vld [vmem:[%s6636_s1 + $0x458] sm:$0xf0] }
  0x87   : > { %1398 = vmatpush.bf16.msra.mxu1 %v3552_v4  ;;  %3406 = vmatmul.msk.bf16.vlgmr.msrb.gmra.mxu2 %vm493_vm0, %v5291_v45  ;;  %v3463_v45 = vld [vmem:[%s6636_s1 + $0x3f0] sm:$0xf]  ;;  %v3448_v4 = vor.u32 %v4450_v56, %v3447_v55  ;;  %v3516_v26 = vor.u32 %v4465_v14, %v3513_v15  ;;  %v4503_v55 = vld [vmem:[%s6636_s1 + $0x584] sm:$0xf]  ;;  %v3697_v56 = vld [vmem:[%s6636_s1 + $0x588] sm:$0xf0] }
  0x88   : > { %1385 = vmatpush.bf16.msra.mxu3 %v3488_v3  ;;  %1410 = vmatpush.bf16.msra.mxu2 %v3500_v8  ;;  %v3464_v40 = vor.u32 %v4454_v30, %v3463_v45  ;;  %v1189_v3 = vld [vmem:[%s4973_s27] sm:$0xfc]  ;;  %v1192_v8 = vld [vmem:[%s4973_s27 + $0x18] sm:$0x3]  ;;  %v3704_v30 = vor.u32 %v4506_v19, %v3703_v18  ;;  %v3700_v62 = vor.u32 %v4503_v55, %v3697_v56  ;;  %v3681_v15 = vld [vmem:[%s6636_s1 + $0x568] sm:$0xf0] }
  0x89   : > { %1171 = vmatmul.bf16.vlgmr.msrb.gmra.mxu0 %v5293_v46  ;;  %v3455_v46 = vld [vmem:[%s6636_s1 + $0x3e0] sm:$0xf]  ;;  %v4499_v14 = vld [vmem:[%s6636_s1 + $0x564] sm:$0xf]  ;;  %v3607_v18 = vld [vmem:[%s6636_s1 + $0x4d0] sm:$0xf] }
  0x8a   : > { %1424 = vmatpush.bf16.msra.mxu0 %v3556_v21  ;;  %v3456_v37 = vor.u32 %v4452_v42, %v3455_v46  ;;  %v1194_v21 = vpack.c.bf16 %v1192_v8, %v1190_v7  ;;  %v3444_v46 = vor.u32 %v4447_v24, %v3441_v27  ;;  %v4484_v7 = vld [vmem:[%s6636_s1 + $0x4e4] sm:$0xf0]  ;;  %v3636_v8 = vor.u32 %v4487_v0, %v3633_v1  ;;  %v4482_v19 = vld [vmem:[%s6636_s1 + $0x4d4] sm:$0xf0]  ;;  %v4483_v24 = vld [vmem:[%s6636_s1 + $0x4e4] sm:$0xf] }
  0x8b   : > { %1399 = vmatpush.bf16.msra.mxu1 %v3544_v17  ;;  %v4492_v17 = vld [vmem:[%s6636_s1 + $0x524] sm:$0xf0]  ;;  %v3673_v27 = vld [vmem:[%s6636_s1 + $0x558] sm:$0xf0]  ;;  %v3791_v56 = vld [vmem:[%s6636_s1 + $0x600] sm:$0xf] }
  0x8c   : > { %1386 = vmatpush.bf16.msra.mxu3 %v3480_v16  ;;  %1411 = vmatpush.bf16.msra.mxu2 %v3492_v20  ;;  %v3647_v16 = vld [vmem:[%s6636_s1 + $0x520] sm:$0xf]  ;;  %v1193_v20 = vpack.c.bf16 %v1191_v6, %v1189_v3  ;;  %v5664_v38 = vrot.slane %v1194_v21, 1  ;;  %v3689_v3 = vld [vmem:[%s6636_s1 + $0x578] sm:$0xf0]  ;;  %v3684_v21 = vor.u32 %v4499_v14, %v3681_v15 }
  0x8d   : > { %v3648_v45 = vor.u32 %v4492_v17, %v3647_v16  ;;  %v3615_v6 = vld [vmem:[%s6636_s1 + $0x4e0] sm:$0xf]  ;;  %v3657_v55 = vld [vmem:[%s6636_s1 + $0x538] sm:$0xf0]  ;;  %v4477_v0 = vld [vmem:[%s6636_s1 + $0x4b4] sm:$0xf] }
  0x8e   : > { %1425 = vmatpush.bf16.msra.mxu0 %v3548_v32  ;;  %v4490_v32 = vld [vmem:[%s6636_s1 + $0x514] sm:$0xf0]  ;;  %v5656_v34 = vrot.slane %v1193_v20, 1  ;;  %v3616_v16 = vor.u32 %v4484_v7, %v3615_v6  ;;  %v3628_v20 = vor.u32 %v4485_v12, %v3625_v13  ;;  %v3847_v7 = vld [vmem:[%s6636_s1 + $0x670] sm:$0xf] }
  0x8f   : > { %1400 = vmatpush.bf16.msra.mxu1 %v3536_v29  ;;  %v3505_v29 = vld [vmem:[%s6636_s1 + $0x448] sm:$0xf0] }
  0x90   : > { %1387 = vmatpush.bf16.msra.mxu3 %v3472_v28  ;;  %1412 = vmatpush.bf16.msra.mxu2 %v3484_v31  ;;  %v4463_v28 = vld [vmem:[%s6636_s1 + $0x444] sm:$0xf]  ;;  %v3639_v31 = vld [vmem:[%s6636_s1 + $0x510] sm:$0xf]  ;;  %v3857_v12 = vld [vmem:[%s6636_s1 + $0x688] sm:$0xf0] }
  0x91   : > { %v3508_v42 = vor.u32 %v4463_v28, %v3505_v29  ;;  %v3608_v28 = vor.u32 %v4482_v19, %v3607_v18 }
  0x92   : > { %1426 = vmatpush.bf16.msra.mxu0 %v3540_v47  ;;  %v3696_v47 = vor.u32 %v4504_v35, %v3695_v33  ;;  %v3655_v33 = vld [vmem:[%s6636_s1 + $0x530] sm:$0xf]  ;;  %v4494_v35 = vld [vmem:[%s6636_s1 + $0x534] sm:$0xf0] }
  0x93   : > { %1401 = vmatpush.bf16.msra.mxu1 %v3528_v41  ;;  %v3705_v41 = vld [vmem:[%s6636_s1 + $0x598] sm:$0xf0] }
  0x94   : > { %1388 = vmatpush.bf16.msra.mxu3 %v3464_v40  ;;  %1413 = vmatpush.bf16.msra.mxu2 %v3476_v43  ;;  %v4505_v40 = vld [vmem:[%s6636_s1 + $0x594] sm:$0xf]  ;;  %v3640_v43 = vor.u32 %v4490_v32, %v3639_v31 }
  0x95   : > { %v3708_v51 = vor.u32 %v4505_v40, %v3705_v41  ;;  %v4495_v40 = vld [vmem:[%s6636_s1 + $0x544] sm:$0xf]  ;;  %v3665_v41 = vld [vmem:[%s6636_s1 + $0x548] sm:$0xf0] }
  0x96   : > { %1427 = vmatpush.bf16.msra.mxu0 %v3532_v58  ;;  %v3688_v58 = vor.u32 %v4502_v53, %v3687_v52  ;;  %v4479_v52 = vld [vmem:[%s6636_s1 + $0x4c4] sm:$0xf]  ;;  %v3601_v53 = vld [vmem:[%s6636_s1 + $0x4c8] sm:$0xf0] }
  0x97   : > { %1402 = vmatpush.bf16.msra.mxu1 %v3520_v54  ;;  %v3641_v54 = vld [vmem:[%s6636_s1 + $0x518] sm:$0xf0] }
  0x98   : > { %1389 = vmatpush.bf16.msra.mxu3 %v3456_v37  ;;  %1414 = vmatpush.bf16.msra.mxu2 %v3468_v57  ;;  %v4489_v37 = vld [vmem:[%s6636_s1 + $0x514] sm:$0xf]  ;;  %v3632_v57 = vor.u32 %v4488_v49, %v3631_v48  ;;  %v3591_v48 = vld [vmem:[%s6636_s1 + $0x4b0] sm:$0xf]  ;;  %v3612_v49 = vor.u32 %v4481_v36, %v3609_v39  ;;  %v4531_v36 = vld [vmem:[%s6636_s1 + $0x664] sm:$0xf] }
  0x99   : > { %v3644_v61 = vor.u32 %v4489_v37, %v3641_v54  ;;  %v4493_v54 = vld [vmem:[%s6636_s1 + $0x534] sm:$0xf]  ;;  %v3841_v39 = vld [vmem:[%s6636_s1 + $0x668] sm:$0xf0] }
  0x9a   : > { %1428 = vmatpush.bf16.msra.mxu0 %v3524_v10  ;;  %v3671_v10 = vld [vmem:[%s6636_s1 + $0x550] sm:$0xf] }
  0x9b   : > { %1403 = vmatpush.bf16.msra.mxu1 %v3512_v5  ;;  %v3680_v5 = vor.u32 %v4500_v63, %v3679_v44  ;;  %v3672_v17 = vor.u32 %v4498_v11, %v3671_v10  ;;  %v3604_v44 = vor.u32 %v4479_v52, %v3601_v53  ;;  %v3660_v63 = vor.u32 %v4493_v54, %v3657_v55  ;;  %v3793_v10 = vld [vmem:[%s6636_s1 + $0x608] sm:$0xf0]  ;;  %v4535_v11 = vld [vmem:[%s6636_s1 + $0x684] sm:$0xf]  ;;  %v4528_v54 = vld [vmem:[%s6636_s1 + $0x644] sm:$0xf0] }
  0x9c   : > { %1390 = vmatpush.bf16.msra.mxu3 %v3448_v4  ;;  %1415 = vmatpush.bf16.msra.mxu2 %v3460_v9  ;;  %v3624_v4 = vor.u32 %v4486_v60, %v3623_v59  ;;  %v3692_v9 = vor.u32 %v4501_v2, %v3689_v3  ;;  %v4536_v59 = vld [vmem:[%s6636_s1 + $0x684] sm:$0xf0]  ;;  %v3593_v3 = vld [vmem:[%s6636_s1 + $0x4b8] sm:$0xf0]  ;;  %v3860_v19 = vor.u32 %v4535_v11, %v3857_v12  ;;  %v4513_v55 = vld [vmem:[%s6636_s1 + $0x5d4] sm:$0xf] }
  0x9d   : > { %v3596_v13 = vor.u32 %v4477_v0, %v3593_v3  ;;  %v3844_v53 = vor.u32 %v4531_v36, %v3841_v39  ;;  %v3743_v12 = vld [vmem:[%s6636_s1 + $0x5a0] sm:$0xf] }
  0x9e   : > { %1429 = vmatpush.bf16.msra.mxu0 %v3516_v26  ;;  %v4497_v26 = vld [vmem:[%s6636_s1 + $0x554] sm:$0xf] }
  0x9f   : > { %1404 = vmatpush.bf16.msra.mxu1 %v3504_v23  ;;  %v4496_v23 = vld [vmem:[%s6636_s1 + $0x544] sm:$0xf0]  ;;  %v3676_v32 = vor.u32 %v4497_v26, %v3673_v27 }
  0xa0   : > { %1391 = vmatpush.bf16.msra.mxu3 %v3440_v22  ;;  %1416 = vmatpush.bf16.msra.mxu2 %v3452_v25  ;;  %v3663_v22 = vld [vmem:[%s6636_s1 + $0x540] sm:$0xf]  ;;  %v3617_v25 = vld [vmem:[%s6636_s1 + $0x4e8] sm:$0xf0] }
  0xa1   : > { %v3664_v29 = vor.u32 %v4496_v23, %v3663_v22  ;;  %v3620_v31 = vor.u32 %v4483_v24, %v3617_v25  ;;  %v4517_v22 = vld [vmem:[%s6636_s1 + $0x5f4] sm:$0xf]  ;;  %v3785_v23 = vld [vmem:[%s6636_s1 + $0x5f8] sm:$0xf0] }
  0xa2   : > { %3557 = vmatmul.msk.bf16.vlgmr.msra.gmra.mxu1 %vm493_vm0, %v5664_v38  ;;  %1430 = vmatpush.bf16.msra.mxu0 %v3508_v42  ;;  %v4522_v42 = vld [vmem:[%s6636_s1 + $0x614] sm:$0xf0]  ;;  %v4533_v24 = vld [vmem:[%s6636_s1 + $0x674] sm:$0xf]  ;;  %v3849_v25 = vld [vmem:[%s6636_s1 + $0x678] sm:$0xf0] }
  0xa3   : > { %1617 = vmatpush.bf16.msrb.mxu1 %v3648_v45  ;;  %1392 = vmatmul.bf16.vlgmr.msra.gmra.mxu3 %v5656_v34  ;;  %v3599_v45 = vld [vmem:[%s6636_s1 + $0x4c0] sm:$0xf] }
  0xa4   : > { %1631 = vmatpush.bf16.msrb.mxu3 %v3704_v30  ;;  %1417 = vmatpush.bf16.msra.mxu2 %v3444_v46  ;;  %v4480_v30 = vld [vmem:[%s6636_s1 + $0x4c4] sm:$0xf0]  ;;  %v3799_v46 = vld [vmem:[%s6636_s1 + $0x610] sm:$0xf] }
  0xa5   : > { %3558 = vmatmul.msk.bf16.vlgmr.msra.gmra.mxu0 %vm493_vm0, %v5664_v38  ;;  %v3800_v37 = vor.u32 %v4522_v42, %v3799_v46  ;;  %v3759_v46 = vld [vmem:[%s6636_s1 + $0x5c0] sm:$0xf] }
  0xa6   : > { %1643 = vmatpush.bf16.msrb.mxu0 %v3652_v50  ;;  %v3668_v50 = vor.u32 %v4495_v40, %v3665_v41  ;;  %v1673_v42 = vld [vmem:[%s4973_s27] sm:$0xf8] }
  0xa7   : > { %1618 = vmatpush.bf16.msrb.mxu1 %v3640_v43  ;;  %1418 = vmatmul.bf16.vlgmr.msra.gmra.mxu2 %v5656_v34  ;;  %v3600_v43 = vor.u32 %v4480_v30, %v3599_v45  ;;  %v3788_v45 = vor.u32 %v4517_v22, %v3785_v23  ;;  %v3852_v30 = vor.u32 %v4533_v24, %v3849_v25  ;;  %v4509_v22 = vld [vmem:[%s6636_s1 + $0x5b4] sm:$0xf] }
  0xa8   : > { %1632 = vmatpush.bf16.msrb.mxu3 %v3696_v47  ;;  %1657 = vmatpush.bf16.msrb.mxu2 %v3708_v51  ;;  %v3656_v47 = vor.u32 %v4494_v35, %v3655_v33  ;;  %v4478_v51 = vld [vmem:[%s6636_s1 + $0x4b4] sm:$0xf0]  ;;  %v4515_v33 = vld [vmem:[%s6636_s1 + $0x5e4] sm:$0xf]  ;;  %v3777_v35 = vld [vmem:[%s6636_s1 + $0x5e8] sm:$0xf0] }
  0xa9   : > { %v3592_v60 = vor.u32 %v4478_v51, %v3591_v48  ;;  %v1675_v48 = vld [vmem:[%s4973_s27 + $0x10] sm:$0x7]  ;;  %v3780_v52 = vor.u32 %v4515_v33, %v3777_v35 }
  0xaa   : > { %1644 = vmatpush.bf16.msrb.mxu0 %v3644_v61  ;;  %v4521_v61 = vld [vmem:[%s6636_s1 + $0x614] sm:$0xf] }
  0xab   : > { %1619 = vmatpush.bf16.msrb.mxu1 %v3632_v57  ;;  %v4520_v57 = vld [vmem:[%s6636_s1 + $0x604] sm:$0xf0] }
  0xac   : > { %1633 = vmatpush.bf16.msrb.mxu3 %v3688_v58  ;;  %1658 = vmatpush.bf16.msrb.mxu2 %v3700_v62  ;;  %v3855_v58 = vld [vmem:[%s6636_s1 + $0x680] sm:$0xf]  ;;  %v3801_v62 = vld [vmem:[%s6636_s1 + $0x618] sm:$0xf0]  ;;  %v3792_v1 = vor.u32 %v4520_v57, %v3791_v56 }
  0xad   : > { %v3856_v2 = vor.u32 %v4536_v59, %v3855_v58  ;;  %v3804_v6 = vor.u32 %v4521_v61, %v3801_v62  ;;  %v3769_v57 = vld [vmem:[%s6636_s1 + $0x5d8] sm:$0xf0]  ;;  %v4529_v58 = vld [vmem:[%s6636_s1 + $0x654] sm:$0xf]  ;;  %v1677_v62 = vpack.c.bf16 %v1675_v48, %v1673_v42  ;;  %v4523_v48 = vld [vmem:[%s6636_s1 + $0x624] sm:$0xf] }
  0xae   : > { %1645 = vmatpush.bf16.msrb.mxu0 %v3636_v8  ;;  %v4534_v8 = vld [vmem:[%s6636_s1 + $0x674] sm:$0xf0]  ;;  %v3833_v59 = vld [vmem:[%s6636_s1 + $0x658] sm:$0xf0]  ;;  %v3772_v3 = vor.u32 %v4513_v55, %v3769_v57  ;;  %v4564_v55 = vld [vmem:[%s6636_s1 + $0x764] sm:$0xf0] }
  0xaf   : > { %1620 = vmatpush.bf16.msrb.mxu1 %v3624_v4  ;;  %v3783_v4 = vld [vmem:[%s6636_s1 + $0x5f0] sm:$0xf]  ;;  %v3848_v15 = vor.u32 %v4534_v8, %v3847_v7  ;;  %v4511_v7 = vld [vmem:[%s6636_s1 + $0x5c4] sm:$0xf]  ;;  %v3761_v8 = vld [vmem:[%s6636_s1 + $0x5c8] sm:$0xf0] }
  0xb0   : > { %1634 = vmatpush.bf16.msrb.mxu3 %v3680_v5  ;;  %1659 = vmatpush.bf16.msrb.mxu2 %v3692_v9  ;;  %v4518_v5 = vld [vmem:[%s6636_s1 + $0x5f4] sm:$0xf0]  ;;  %v4519_v9 = vld [vmem:[%s6636_s1 + $0x604] sm:$0xf]  ;;  %v3764_v24 = vor.u32 %v4511_v7, %v3761_v8  ;;  %v3953_v57 = vld [vmem:[%s6636_s1 + $0x708] sm:$0xf0] }
  0xb1   : > { %v3784_v14 = vor.u32 %v4518_v5, %v3783_v4  ;;  %v3796_v18 = vor.u32 %v4519_v9, %v3793_v10  ;;  %v519_v26 = vpop.f32.mrf.mxu1  ;;  %v3836_v4 = vor.u32 %v4529_v58, %v3833_v59  ;;  %v3815_v5 = vld [vmem:[%s6636_s1 + $0x630] sm:$0xf]  ;;  %v4527_v9 = vld [vmem:[%s6636_s1 + $0x644] sm:$0xf]  ;;  %v3825_v10 = vld [vmem:[%s6636_s1 + $0x648] sm:$0xf0] }
  0xb2   : > { %1646 = vmatpush.bf16.msrb.mxu0 %v3628_v20  ;;  %v3839_v20 = vld [vmem:[%s6636_s1 + $0x660] sm:$0xf]  ;;  %v3828_v25 = vor.u32 %v4527_v9, %v3825_v10  ;;  %v3991_v8 = vld [vmem:[%s6636_s1 + $0x750] sm:$0xf]  ;;  %v4562_v9 = vld [vmem:[%s6636_s1 + $0x754] sm:$0xf0] }
  0xb3   : > { %1621 = vmatpush.bf16.msrb.mxu1 %v3616_v16  ;;  %v3775_v16 = vld [vmem:[%s6636_s1 + $0x5e0] sm:$0xf]  ;;  %v4549_v10 = vld [vmem:[%s6636_s1 + $0x6f4] sm:$0xf] }
  0xb4   : > { %1635 = vmatpush.bf16.msrb.mxu3 %v3672_v17  ;;  %1660 = vmatpush.bf16.msrb.mxu2 %v3684_v21  ;;  %v4516_v17 = vld [vmem:[%s6636_s1 + $0x5e4] sm:$0xf0] }
  0xb5   : > { %v4532_v21 = vld [vmem:[%s6636_s1 + $0x664] sm:$0xf0]  ;;  %v3776_v27 = vor.u32 %v4516_v17, %v3775_v16  ;;  %v506_v40 = vpop.f32.mrf.mxu0 }
  0xb6   : > { %1647 = vmatpush.bf16.msrb.mxu0 %v3620_v31  ;;  %v3831_v31 = vld [vmem:[%s6636_s1 + $0x650] sm:$0xf]  ;;  %v5927_v41 = vadd.f32 %v519_v26, %v506_v40  ;;  %v3753_v26 = vld [vmem:[%s6636_s1 + $0x5b8] sm:$0xf0] }
  0xb7   : > { %1622 = vmatpush.bf16.msrb.mxu1 %v3608_v28  ;;  %v3840_v28 = vor.u32 %v4532_v21, %v3839_v20  ;;  %v3807_v20 = vld [vmem:[%s6636_s1 + $0x620] sm:$0xf]  ;;  %v4524_v21 = vld [vmem:[%s6636_s1 + $0x624] sm:$0xf0]  ;;  %v3756_v42 = vor.u32 %v4509_v22, %v3753_v26 }
  0xb8   : > { %1636 = vmatpush.bf16.msrb.mxu3 %v3664_v29  ;;  %1661 = vmatpush.bf16.msrb.mxu2 %v3676_v32  ;;  %v4514_v29 = vld [vmem:[%s6636_s1 + $0x5d4] sm:$0xf0]  ;;  %v545_v51 = vpop.f32.mrf.mxu3 }
  0xb9   : > { %v4530_v32 = vld [vmem:[%s6636_s1 + $0x654] sm:$0xf0]  ;;  %v532_v56 = vpop.f32.mrf.mxu2  ;;  %v521_v61 = vpop.f32.mrf.mxu1 }
  0xba   : > { %1648 = vmatpush.bf16.msrb.mxu0 %v3612_v49  ;;  %v1674_v49 = vld [vmem:[%s4973_s27 + $0x8] sm:$0xf8]  ;;  %v4565_v61 = vld [vmem:[%s6636_s1 + $0x774] sm:$0xf] }
  0xbb   : > { %1623 = vmatpush.bf16.msrb.mxu1 %v3600_v43 }
  0xbc   : > { %1637 = vmatpush.bf16.msrb.mxu3 %v3656_v47  ;;  %1662 = vmatpush.bf16.msrb.mxu2 %v3668_v50  ;;  %v3832_v47 = vor.u32 %v4530_v32, %v3831_v31  ;;  %v1676_v50 = vld [vmem:[%s4973_s27 + $0x18] sm:$0x7] }
  0xbd   : > { %v508_v11 = vpop.f32.mrf.mxu0  ;;  %v4566_v31 = vld [vmem:[%s6636_s1 + $0x774] sm:$0xf0] }
  0xbe   : > { %1649 = vmatpush.bf16.msrb.mxu0 %v3604_v44  ;;  %v1678_v44 = vpack.c.bf16 %v1676_v50, %v1674_v49  ;;  %v3809_v49 = vld [vmem:[%s6636_s1 + $0x628] sm:$0xf0] }
  0xbf   : > { %3709 = vmatmul.msk.bf16.vlgmr.msrb.gmra.mxu3 %vm493_vm0, %v5664_v38  ;;  %1624 = vmatpush.bf16.msrb.mxu1 %v3592_v60  ;;  %v5957_v60 = vadd.f32 %v545_v51, %v532_v56  ;;  %v4551_v56 = vld [vmem:[%s6636_s1 + $0x704] sm:$0xf] }
  0xc0   : > { %1880 = vmatpush.bf16.msra.mxu3 %v3800_v37  ;;  %1663 = vmatpush.bf16.msrb.mxu2 %v3660_v63  ;;  %v3823_v37 = vld [vmem:[%s6636_s1 + $0x640] sm:$0xf]  ;;  %v1719_v16 = vshrl.u32 %v1678_v44, 16  ;;  %v1722_v17 = vshll.u32 %v1678_v44, 16  ;;  %v547_v23 = vpop.f32.mrf.mxu3 }
  0xc1   : > { %v3824_v0 = vor.u32 %v4528_v54, %v3823_v37  ;;  %v3999_v37 = vld [vmem:[%s6636_s1 + $0x760] sm:$0xf] }
  0xc2   : > { %1625 = vmatmul.bf16.vlgmr.msrb.gmra.mxu1 %v5656_v34  ;;  %1650 = vmatpush.bf16.msrb.mxu0 %v3596_v13  ;;  %v4508_v13 = vld [vmem:[%s6636_s1 + $0x5a4] sm:$0xf0]  ;;  %v1721_v35 = vrot.slane %v1719_v16, 1  ;;  %v1724_v36 = vrot.slane %v1722_v17, 2  ;;  %v4001_v16 = vld [vmem:[%s6636_s1 + $0x768] sm:$0xf0] }
  0xc3   : > { %1894 = vmatpush.bf16.msra.mxu1 %v3856_v2  ;;  %3710 = vmatmul.msk.bf16.vlgmr.msrb.gmra.mxu2 %vm493_vm0, %v5664_v38  ;;  %v3767_v38 = vld [vmem:[%s6636_s1 + $0x5d0] sm:$0xf]  ;;  %v4510_v2 = vld [vmem:[%s6636_s1 + $0x5b4] sm:$0xf0]  ;;  %v3744_v40 = vor.u32 %v4508_v13, %v3743_v12  ;;  %v3983_v23 = vld [vmem:[%s6636_s1 + $0x740] sm:$0xf] }
  0xc4   : > { %1881 = vmatpush.bf16.msra.mxu3 %v3792_v1  ;;  %1906 = vmatpush.bf16.msra.mxu2 %v3804_v6  ;;  %v3768_v43 = vor.u32 %v4514_v29, %v3767_v38  ;;  %v3751_v1 = vld [vmem:[%s6636_s1 + $0x5b0] sm:$0xf]  ;;  %v4526_v6 = vld [vmem:[%s6636_s1 + $0x634] sm:$0xf0]  ;;  %v534_v38 = vpop.f32.mrf.mxu2  ;;  %v3951_v29 = vld [vmem:[%s6636_s1 + $0x700] sm:$0xf]  ;;  %v6051_v58 = vor.u32 %v1724_v36, %v1721_v35 }
  0xc5   : > { %1651 = vmatmul.bf16.vlgmr.msrb.gmra.mxu0 %v5656_v34  ;;  %v4512_v34 = vld [vmem:[%s6636_s1 + $0x5c4] sm:$0xf0]  ;;  %v3993_v38 = vld [vmem:[%s6636_s1 + $0x758] sm:$0xf0] }
  0xc6   : > { %1920 = vmatpush.bf16.msra.mxu0 %v3860_v19  ;;  %v3760_v63 = vor.u32 %v4512_v34, %v3759_v46  ;;  %v3816_v19 = vor.u32 %v4526_v6, %v3815_v5  ;;  %v3808_v46 = vor.u32 %v4524_v21, %v3807_v20  ;;  %v4507_v34 = vld [vmem:[%s6636_s1 + $0x5a4] sm:$0xf]  ;;  %v4546_v20 = vld [vmem:[%s6636_s1 + $0x6d4] sm:$0xf0] }
  0xc7   : > { %1895 = vmatpush.bf16.msra.mxu1 %v3848_v15  ;;  %v1714_v15 = vshll.u32 %v1677_v62, 16  ;;  %v739_v39 = vpop.f32.mrf.mxu1 }
  0xc8   : > { %1882 = vmatpush.bf16.msra.mxu3 %v3784_v14  ;;  %1907 = vmatpush.bf16.msra.mxu2 %v3796_v18  ;;  %v1711_v14 = vshrl.u32 %v1677_v62, 16  ;;  %v3752_v18 = vor.u32 %v4510_v2, %v3751_v1  ;;  %v4009_v62 = vld [vmem:[%s6636_s1 + $0x778] sm:$0xf0]  ;;  %v4000_v1 = vor.u32 %v4564_v55, %v3999_v37  ;;  %v3956_v2 = vor.u32 %v4551_v56, %v3953_v57  ;;  %v4556_v37 = vld [vmem:[%s6636_s1 + $0x724] sm:$0xf0] }
  0xc9   : > { %v1716_v33 = vrot.slane %v1714_v15, 2  ;;  %v4012_v7 = vor.u32 %v4565_v61, %v4009_v62  ;;  %v4563_v15 = vld [vmem:[%s6636_s1 + $0x764] sm:$0xf]  ;;  %v3921_v56 = vld [vmem:[%s6636_s1 + $0x6c8] sm:$0xf0] }
  0xca   : > { %1921 = vmatpush.bf16.msra.mxu0 %v3852_v30  ;;  %v4007_v30 = vld [vmem:[%s6636_s1 + $0x770] sm:$0xf]  ;;  %v1713_v32 = vrot.slane %v1711_v14, 1  ;;  %v765_v59 = vpop.f32.mrf.mxu0  ;;  %v3945_v14 = vld [vmem:[%s6636_s1 + $0x6f8] sm:$0xf0]  ;;  %v4004_v22 = vor.u32 %v4563_v15, %v4001_v16 }
  0xcb   : > { %1896 = vmatpush.bf16.msra.mxu1 %v3840_v28  ;;  %v3817_v28 = vld [vmem:[%s6636_s1 + $0x638] sm:$0xf0]  ;;  %v4008_v51 = vor.u32 %v4566_v31, %v4007_v30  ;;  %v3948_v21 = vor.u32 %v4549_v10, %v3945_v14  ;;  %v3919_v30 = vld [vmem:[%s6636_s1 + $0x6c0] sm:$0xf]  ;;  %v4544_v31 = vld [vmem:[%s6636_s1 + $0x6c4] sm:$0xf0] }
  0xcc   : > { %1883 = vmatpush.bf16.msra.mxu3 %v3776_v27  ;;  %1908 = vmatpush.bf16.msra.mxu2 %v3788_v45  ;;  %v4525_v27 = vld [vmem:[%s6636_s1 + $0x634] sm:$0xf]  ;;  %v4552_v45 = vld [vmem:[%s6636_s1 + $0x704] sm:$0xf0]  ;;  %v6040_v54 = vor.u32 %v1716_v33, %v1713_v32  ;;  %v752_v5 = vpop.f32.mrf.mxu3  ;;  %v4543_v55 = vld [vmem:[%s6636_s1 + $0x6c4] sm:$0xf] }
  0xcd   : > { %v3952_v50 = vor.u32 %v4552_v45, %v3951_v29  ;;  %v6077_v11 = vadd.f32 %v752_v5, %v739_v39  ;;  %v3975_v39 = vld [vmem:[%s6636_s1 + $0x730] sm:$0xf]  ;;  %v4557_v57 = vld [vmem:[%s6636_s1 + $0x734] sm:$0xf]  ;;  %v4582_v10 = vld [vmem:[%s6636_s1 + $0x7f4] sm:$0xf0] }
  0xce   : > { %1922 = vmatpush.bf16.msra.mxu0 %v3844_v53  ;;  %v4550_v53 = vld [vmem:[%s6636_s1 + $0x6f4] sm:$0xf0]  ;;  %v4541_v5 = vld [vmem:[%s6636_s1 + $0x6b4] sm:$0xf]  ;;  %v3895_v16 = vld [vmem:[%s6636_s1 + $0x690] sm:$0xf] }
  0xcf   : > { %1897 = vmatpush.bf16.msra.mxu1 %v3832_v47  ;;  %v3745_v47 = vld [vmem:[%s6636_s1 + $0x5a8] sm:$0xf0]  ;;  %v778_v6 = vpop.f32.mrf.mxu2  ;;  %v741_v13 = vpop.f32.mrf.mxu1 }
  0xd0   : > { %1884 = vmatpush.bf16.msra.mxu3 %v3768_v43  ;;  %1909 = vmatpush.bf16.msra.mxu2 %v3780_v52  ;;  %v3820_v43 = vor.u32 %v4525_v27, %v3817_v28  ;;  %v3943_v52 = vld [vmem:[%s6636_s1 + $0x6f0] sm:$0xf]  ;;  %v3748_v44 = vor.u32 %v4507_v34, %v3745_v47  ;;  %v6079_v12 = vadd.f32 %v778_v6, %v765_v59  ;;  %v3937_v27 = vld [vmem:[%s6636_s1 + $0x6e8] sm:$0xf0]  ;;  %v4561_v28 = vld [vmem:[%s6636_s1 + $0x754] sm:$0xf] }
  0xd1   : > { %v3996_v36 = vor.u32 %v4561_v28, %v3993_v38  ;;  %v3929_v34 = vld [vmem:[%s6636_s1 + $0x6d8] sm:$0xf0]  ;;  %v3920_v47 = vor.u32 %v4544_v31, %v3919_v30  ;;  %v4580_v28 = vld [vmem:[%s6636_s1 + $0x7e4] sm:$0xf0]  ;;  %v4159_v38 = vld [vmem:[%s6636_s1 + $0x860] sm:$0xf] }
  0xd2   : > { %1923 = vmatpush.bf16.msra.mxu0 %v3836_v4  ;;  %v4548_v4 = vld [vmem:[%s6636_s1 + $0x6e4] sm:$0xf0]  ;;  %v767_v26 = vpop.f32.mrf.mxu0  ;;  %v3977_v59 = vld [vmem:[%s6636_s1 + $0x738] sm:$0xf0] }
  0xd3   : > { %1898 = vmatpush.bf16.msra.mxu1 %v3824_v0  ;;  %v3944_v0 = vor.u32 %v4550_v53, %v3943_v52  ;;  %v3967_v53 = vld [vmem:[%s6636_s1 + $0x720] sm:$0xf]  ;;  %v3913_v6 = vld [vmem:[%s6636_s1 + $0x6b8] sm:$0xf0] }
  0xd4   : > { %1885 = vmatpush.bf16.msra.mxu3 %v3760_v63  ;;  %1910 = vmatpush.bf16.msra.mxu2 %v3772_v3  ;;  %v3812_v63 = vor.u32 %v4523_v48, %v3809_v49  ;;  %v3935_v3 = vld [vmem:[%s6636_s1 + $0x6e0] sm:$0xf]  ;;  %v754_v32 = vpop.f32.mrf.mxu3  ;;  %v3911_v49 = vld [vmem:[%s6636_s1 + $0x6b0] sm:$0xf]  ;;  %v4105_v31 = vld [vmem:[%s6636_s1 + $0x7f8] sm:$0xf0] }
  0xd5   : > { %v3936_v17 = vor.u32 %v4548_v4, %v3935_v3  ;;  %v3959_v3 = vld [vmem:[%s6636_s1 + $0x710] sm:$0xf]  ;;  %v4554_v4 = vld [vmem:[%s6636_s1 + $0x714] sm:$0xf0]  ;;  %v4095_v26 = vld [vmem:[%s6636_s1 + $0x7e0] sm:$0xf] }
  0xd6   : > { %1924 = vmatpush.bf16.msra.mxu0 %v3828_v25  ;;  %v4547_v25 = vld [vmem:[%s6636_s1 + $0x6e4] sm:$0xf]  ;;  %v3960_v15 = vor.u32 %v4554_v4, %v3959_v3  ;;  %v4577_v3 = vld [vmem:[%s6636_s1 + $0x7d4] sm:$0xf]  ;;  %v4089_v4 = vld [vmem:[%s6636_s1 + $0x7d8] sm:$0xf0] }
  0xd7   : > { %1899 = vmatpush.bf16.msra.mxu1 %v3816_v19  ;;  %v3927_v19 = vld [vmem:[%s6636_s1 + $0x6d0] sm:$0xf]  ;;  %v780_v33 = vpop.f32.mrf.mxu2  ;;  %v3940_v35 = vor.u32 %v4547_v25, %v3937_v27  ;;  %v3961_v25 = vld [vmem:[%s6636_s1 + $0x718] sm:$0xf0] }
  0xd8   : > { %1886 = vmatpush.bf16.msra.mxu3 %v3752_v18  ;;  %1911 = vmatpush.bf16.msra.mxu2 %v3764_v24  ;;  %v3992_v18 = vor.u32 %v4562_v9, %v3991_v8  ;;  %v4560_v24 = vld [vmem:[%s6636_s1 + $0x744] sm:$0xf0]  ;;  %v3928_v29 = vor.u32 %v4546_v20, %v3927_v19  ;;  %v3969_v8 = vld [vmem:[%s6636_s1 + $0x728] sm:$0xf0]  ;;  %v4103_v9 = vld [vmem:[%s6636_s1 + $0x7f0] sm:$0xf] }
  0xd9   : > { %v3984_v45 = vor.u32 %v4560_v24, %v3983_v23  ;;  %v4538_v19 = vld [vmem:[%s6636_s1 + $0x694] sm:$0xf0]  ;;  %v4539_v20 = vld [vmem:[%s6636_s1 + $0x6a4] sm:$0xf]  ;;  %v4104_v23 = vor.u32 %v4582_v10, %v4103_v9  ;;  %v4553_v24 = vld [vmem:[%s6636_s1 + $0x714] sm:$0xf] }
  0xda   : > { %1925 = vmatpush.bf16.msra.mxu0 %v3820_v43  ;;  %v3985_v43 = vld [vmem:[%s6636_s1 + $0x748] sm:$0xf0]  ;;  %v3896_v30 = vor.u32 %v4538_v19, %v3895_v16  ;;  %v4574_v10 = vld [vmem:[%s6636_s1 + $0x7b4] sm:$0xf0]  ;;  %v4591_v19 = vld [vmem:[%s6636_s1 + $0x844] sm:$0xf] }
  0xdb   : > { %1900 = vmatpush.bf16.msra.mxu1 %v3808_v46  ;;  %v4545_v46 = vld [vmem:[%s6636_s1 + $0x6d4] sm:$0xf]  ;;  %v4590_v16 = vld [vmem:[%s6636_s1 + $0x834] sm:$0xf0] }
  0xdc   : > { %1887 = vmatpush.bf16.msra.mxu3 %v3744_v40  ;;  %1912 = vmatpush.bf16.msra.mxu2 %v3756_v42  ;;  %v4558_v40 = vld [vmem:[%s6636_s1 + $0x734] sm:$0xf0]  ;;  %v4559_v42 = vld [vmem:[%s6636_s1 + $0x744] sm:$0xf] }
  0xdd   : > { %v3976_v48 = vor.u32 %v4558_v40, %v3975_v39  ;;  %v3988_v52 = vor.u32 %v4559_v42, %v3985_v43  ;;  %v4537_v39 = vld [vmem:[%s6636_s1 + $0x694] sm:$0xf]  ;;  %v3897_v42 = vld [vmem:[%s6636_s1 + $0x698] sm:$0xf0]  ;;  %v4087_v43 = vld [vmem:[%s6636_s1 + $0x7d0] sm:$0xf] }
  0xde   : > { %3861 = vmatmul.msk.bf16.vlgmr.msra.gmra.mxu1 %vm493_vm0, %v6051_v58  ;;  %1926 = vmatpush.bf16.msra.mxu0 %v3812_v63  ;;  %v3903_v63 = vld [vmem:[%s6636_s1 + $0x6a0] sm:$0xf] }
  0xdf   : > { %2113 = vmatpush.bf16.msrb.mxu1 %v3952_v50  ;;  %1888 = vmatmul.bf16.vlgmr.msra.gmra.mxu3 %v6040_v54  ;;  %v4542_v50 = vld [vmem:[%s6636_s1 + $0x6b4] sm:$0xf0] }
  0xe0   : > { %2127 = vmatpush.bf16.msrb.mxu3 %v4008_v51  ;;  %1913 = vmatpush.bf16.msra.mxu2 %v3748_v44  ;;  %v3932_v51 = vor.u32 %v4545_v46, %v3929_v34  ;;  %v3912_v62 = vor.u32 %v4542_v50, %v3911_v49  ;;  %v3968_v44 = vor.u32 %v4556_v37, %v3967_v53  ;;  %v4594_v49 = vld [vmem:[%s6636_s1 + $0x854] sm:$0xf0]  ;;  %v4579_v50 = vld [vmem:[%s6636_s1 + $0x7e4] sm:$0xf]  ;;  %v4097_v53 = vld [vmem:[%s6636_s1 + $0x7e8] sm:$0xf0] }
  0xe1   : > { %3862 = vmatmul.msk.bf16.vlgmr.msra.gmra.mxu0 %vm493_vm0, %v6051_v58  ;;  %v4096_v46 = vor.u32 %v4580_v28, %v4095_v26  ;;  %v4595_v37 = vld [vmem:[%s6636_s1 + $0x864] sm:$0xf]  ;;  %v4127_v26 = vld [vmem:[%s6636_s1 + $0x820] sm:$0xf]  ;;  %v4573_v28 = vld [vmem:[%s6636_s1 + $0x7b4] sm:$0xf] }
  0xe2   : > { %2139 = vmatpush.bf16.msrb.mxu0 %v3956_v2  ;;  %v3980_v2 = vor.u32 %v4557_v57, %v3977_v59 }
  0xe3   : > { %2114 = vmatpush.bf16.msrb.mxu1 %v3944_v0  ;;  %1914 = vmatmul.bf16.vlgmr.msra.gmra.mxu2 %v6040_v54  ;;  %v957_v61 = vpop.f32.mrf.mxu1  ;;  %v4540_v0 = vld [vmem:[%s6636_s1 + $0x6a4] sm:$0xf0] }
  0xe4   : > { %2128 = vmatpush.bf16.msrb.mxu3 %v4000_v1  ;;  %2153 = vmatpush.bf16.msrb.mxu2 %v4012_v7  ;;  %v3924_v1 = vor.u32 %v4543_v55, %v3921_v56  ;;  %v4555_v7 = vld [vmem:[%s6636_s1 + $0x724] sm:$0xf]  ;;  %v3904_v14 = vor.u32 %v4540_v0, %v3903_v63  ;;  %v4161_v55 = vld [vmem:[%s6636_s1 + $0x868] sm:$0xf0]  ;;  %v3900_v56 = vor.u32 %v4537_v39, %v3897_v42  ;;  %v4119_v39 = vld [vmem:[%s6636_s1 + $0x810] sm:$0xf] }
  0xe5   : > { %v4100_v63 = vor.u32 %v4579_v50, %v4097_v53  ;;  %v4164_v0 = vor.u32 %v4595_v37, %v4161_v55  ;;  %v4065_v42 = vld [vmem:[%s6636_s1 + $0x7a8] sm:$0xf0]  ;;  %v4111_v50 = vld [vmem:[%s6636_s1 + $0x800] sm:$0xf]  ;;  %v2171_v55 = vld [vmem:[%s4973_s27 + $0x10] sm:$0xf] }
  0xe6   : > { %2140 = vmatpush.bf16.msrb.mxu0 %v3948_v21  ;;  %v983_v13 = vpop.f32.mrf.mxu0  ;;  %v3905_v21 = vld [vmem:[%s6636_s1 + $0x6a8] sm:$0xf0] }
  0xe7   : > { %2115 = vmatpush.bf16.msrb.mxu1 %v3936_v17  ;;  %v3916_v17 = vor.u32 %v4541_v5, %v3913_v6  ;;  %v3908_v33 = vor.u32 %v4539_v20, %v3905_v21  ;;  %v4593_v5 = vld [vmem:[%s6636_s1 + $0x854] sm:$0xf]  ;;  %v4153_v6 = vld [vmem:[%s6636_s1 + $0x858] sm:$0xf0]  ;;  %v4145_v20 = vld [vmem:[%s6636_s1 + $0x848] sm:$0xf0] }
  0xe8   : > { %2129 = vmatpush.bf16.msrb.mxu3 %v3992_v18  ;;  %2154 = vmatpush.bf16.msrb.mxu2 %v4004_v22  ;;  %v3972_v18 = vor.u32 %v4555_v7, %v3969_v8 }
  0xea   : > { %2141 = vmatpush.bf16.msrb.mxu0 %v3940_v35  ;;  %v944_v22 = vpop.f32.mrf.mxu3  ;;  %v3964_v35 = vor.u32 %v4553_v24, %v3961_v25  ;;  %v4148_v25 = vor.u32 %v4591_v19, %v4145_v20  ;;  %v4583_v19 = vld [vmem:[%s6636_s1 + $0x804] sm:$0xf] }
  0xeb   : > { %2116 = vmatpush.bf16.msrb.mxu1 %v3928_v29  ;;  %v945_v27 = vadd.f32 %v944_v22, %v5927_v41  ;;  %v4596_v29 = vld [vmem:[%s6636_s1 + $0x864] sm:$0xf0]  ;;  %v4581_v41 = vld [vmem:[%s6636_s1 + $0x7f4] sm:$0xf] }
  0xec   : > { %2130 = vmatpush.bf16.msrb.mxu3 %v3984_v45  ;;  %2155 = vmatpush.bf16.msrb.mxu2 %v3996_v36  ;;  %v959_v45 = vpop.f32.mrf.mxu1  ;;  %v4160_v34 = vor.u32 %v4596_v29, %v4159_v38  ;;  %v4073_v38 = vld [vmem:[%s6636_s1 + $0x7b8] sm:$0xf0]  ;;  %v4589_v29 = vld [vmem:[%s6636_s1 + $0x834] sm:$0xf] }
  0xed   : > { %v6232_v32 = vadd.f32 %v957_v61, %v945_v27  ;;  %v4079_v61 = vld [vmem:[%s6636_s1 + $0x7c0] sm:$0xf]  ;;  %v4588_v27 = vld [vmem:[%s6636_s1 + $0x824] sm:$0xf0]  ;;  %v4137_v45 = vld [vmem:[%s6636_s1 + $0x838] sm:$0xf0] }
  0xee   : > { %2142 = vmatpush.bf16.msrb.mxu0 %v3932_v51  ;;  %v970_v36 = vpop.f32.mrf.mxu2  ;;  %v985_v51 = vpop.f32.mrf.mxu0 }
  0xef   : > { %2117 = vmatpush.bf16.msrb.mxu1 %v3920_v47  ;;  %v971_v40 = vadd.f32 %v970_v36, %v5957_v60  ;;  %v4578_v47 = vld [vmem:[%s6636_s1 + $0x7d4] sm:$0xf0]  ;;  %v4151_v60 = vld [vmem:[%s6636_s1 + $0x850] sm:$0xf]  ;;  %v4140_v36 = vor.u32 %v4589_v29, %v4137_v45  ;;  %v2169_v51 = vld [vmem:[%s4973_s27] sm:$0xf0] }
  0xf0   : > { %2131 = vmatpush.bf16.msrb.mxu3 %v3976_v48  ;;  %2156 = vmatpush.bf16.msrb.mxu2 %v3988_v52  ;;  %v4108_v48 = vor.u32 %v4581_v41, %v4105_v31  ;;  %v4088_v57 = vor.u32 %v4578_v47, %v4087_v43  ;;  %v4152_v59 = vor.u32 %v4594_v49, %v4151_v60  ;;  %v4055_v31 = vld [vmem:[%s6636_s1 + $0x790] sm:$0xf]  ;;  %v4587_v43 = vld [vmem:[%s6636_s1 + $0x824] sm:$0xf]  ;;  %v4129_v47 = vld [vmem:[%s6636_s1 + $0x828] sm:$0xf0] }
  0xf1   : > { %v6258_v52 = vadd.f32 %v983_v13, %v971_v40  ;;  %v4092_v13 = vor.u32 %v4577_v3, %v4089_v4  ;;  %v4128_v41 = vor.u32 %v4588_v27, %v4127_v26  ;;  %v4586_v40 = vld [vmem:[%s6636_s1 + $0x814] sm:$0xf0]  ;;  %v4047_v60 = vld [vmem:[%s6636_s1 + $0x780] sm:$0xf]  ;;  %v4568_v49 = vld [vmem:[%s6636_s1 + $0x784] sm:$0xf0] }
  0xf2   : > { %2143 = vmatpush.bf16.msrb.mxu0 %v3924_v1  ;;  %v4143_v1 = vld [vmem:[%s6636_s1 + $0x840] sm:$0xf]  ;;  %v4120_v37 = vor.u32 %v4586_v40, %v4119_v39  ;;  %v4624_v27 = vld [vmem:[%s6636_s1 + $0x944] sm:$0xf0]  ;;  %v4257_v29 = vld [vmem:[%s6636_s1 + $0x8e8] sm:$0xf0] }
  0xf3   : > { %2118 = vmatpush.bf16.msrb.mxu1 %v3912_v62  ;;  %v4576_v62 = vld [vmem:[%s6636_s1 + $0x7c4] sm:$0xf0]  ;;  %v4255_v3 = vld [vmem:[%s6636_s1 + $0x8e0] sm:$0xf]  ;;  %v4625_v45 = vld [vmem:[%s6636_s1 + $0x954] sm:$0xf] }
  0xf4   : > { %2132 = vmatpush.bf16.msrb.mxu3 %v3968_v44  ;;  %2157 = vmatpush.bf16.msrb.mxu2 %v3980_v2  ;;  %v946_v44 = vpop.f32.mrf.mxu3  ;;  %v4592_v2 = vld [vmem:[%s6636_s1 + $0x844] sm:$0xf0]  ;;  %v4080_v8 = vor.u32 %v4576_v62, %v4079_v61  ;;  %v4239_v39 = vld [vmem:[%s6636_s1 + $0x8c0] sm:$0xf] }
  0xf5   : > { %v4144_v9 = vor.u32 %v4592_v2, %v4143_v1  ;;  %v4584_v62 = vld [vmem:[%s6636_s1 + $0x804] sm:$0xf0]  ;;  %v4569_v44 = vld [vmem:[%s6636_s1 + $0x794] sm:$0xf]  ;;  %v4121_v2 = vld [vmem:[%s6636_s1 + $0x818] sm:$0xf0] }
  0xf6   : > { %2144 = vmatpush.bf16.msrb.mxu0 %v3916_v17  ;;  %v972_v7 = vpop.f32.mrf.mxu2  ;;  %v4575_v17 = vld [vmem:[%s6636_s1 + $0x7c4] sm:$0xf]  ;;  %v4585_v1 = vld [vmem:[%s6636_s1 + $0x814] sm:$0xf]  ;;  %v4608_v40 = vld [vmem:[%s6636_s1 + $0x8c4] sm:$0xf0] }
  0xf7   : > { %2119 = vmatpush.bf16.msrb.mxu1 %v3904_v14  ;;  %v4156_v14 = vor.u32 %v4593_v5, %v4153_v6  ;;  %v4612_v5 = vld [vmem:[%s6636_s1 + $0x8e4] sm:$0xf0]  ;;  %v4311_v6 = vld [vmem:[%s6636_s1 + $0x950] sm:$0xf]  ;;  %v4626_v7 = vld [vmem:[%s6636_s1 + $0x954] sm:$0xf0] }
  0xf8   : > { %2133 = vmatpush.bf16.msrb.mxu3 %v3960_v15  ;;  %2158 = vmatpush.bf16.msrb.mxu2 %v3972_v18  ;;  %v4135_v15 = vld [vmem:[%s6636_s1 + $0x830] sm:$0xf]  ;;  %v4081_v18 = vld [vmem:[%s6636_s1 + $0x7c8] sm:$0xf0] }
  0xf9   : > { %v4136_v22 = vor.u32 %v4590_v16, %v4135_v15  ;;  %v4084_v24 = vor.u32 %v4575_v17, %v4081_v18  ;;  %v4124_v16 = vor.u32 %v4585_v1, %v4121_v2  ;;  %v4049_v18 = vld [vmem:[%s6636_s1 + $0x788] sm:$0xf0]  ;;  %v4297_v1 = vld [vmem:[%s6636_s1 + $0x938] sm:$0xf0] }
  0xfa   : > { %2145 = vmatpush.bf16.msrb.mxu0 %v3908_v33  ;;  %v4570_v33 = vld [vmem:[%s6636_s1 + $0x794] sm:$0xf0] }
  0xfb   : > { %4013 = vmatmul.msk.bf16.vlgmr.msrb.gmra.mxu3 %vm493_vm0, %v6051_v58  ;;  %2120 = vmatpush.bf16.msrb.mxu1 %v3896_v30  ;;  %v4056_v53 = vor.u32 %v4570_v33, %v4055_v31 }
  0xfc   : > { %2364 = vmatpush.bf16.msra.mxu3 %v4104_v23  ;;  %2159 = vmatpush.bf16.msrb.mxu2 %v3964_v35  ;;  %v4572_v23 = vld [vmem:[%s6636_s1 + $0x7a4] sm:$0xf0]  ;;  %v4076_v35 = vor.u32 %v4573_v28, %v4073_v38  ;;  %v4611_v28 = vld [vmem:[%s6636_s1 + $0x8e4] sm:$0xf] }
  0xfe   : > { %2121 = vmatmul.bf16.vlgmr.msrb.gmra.mxu1 %v6040_v54  ;;  %2146 = vmatpush.bf16.msrb.mxu0 %v3900_v56  ;;  %v2170_v56 = vld [vmem:[%s4973_s27 + $0x8] sm:$0xf0] }
  0xff   : > { %2378 = vmatpush.bf16.msra.mxu1 %v4160_v34  ;;  %4014 = vmatmul.msk.bf16.vlgmr.msrb.gmra.mxu2 %vm493_vm0, %v6051_v58  ;;  %v4071_v58 = vld [vmem:[%s6636_s1 + $0x7b0] sm:$0xf] }
 0x100   : > { %2365 = vmatpush.bf16.msra.mxu3 %v4096_v46  ;;  %2390 = vmatpush.bf16.msra.mxu2 %v4108_v48  ;;  %v4072_v21 = vor.u32 %v4574_v10, %v4071_v58  ;;  %v4571_v46 = vld [vmem:[%s6636_s1 + $0x7a4] sm:$0xf]  ;;  %v4048_v10 = vor.u32 %v4568_v49, %v4047_v60  ;;  %v4249_v60 = vld [vmem:[%s6636_s1 + $0x8d8] sm:$0xf0] }
 0x101   : > { %2147 = vmatmul.bf16.vlgmr.msrb.gmra.mxu0 %v6040_v54  ;;  %v4063_v54 = vld [vmem:[%s6636_s1 + $0x7a0] sm:$0xf]  ;;  %v4623_v49 = vld [vmem:[%s6636_s1 + $0x944] sm:$0xf] }
 0x102   : > { %2404 = vmatpush.bf16.msra.mxu0 %v4164_v0  ;;  %v4064_v30 = vor.u32 %v4572_v23, %v4063_v54  ;;  %v4247_v54 = vld [vmem:[%s6636_s1 + $0x8d0] sm:$0xf]  ;;  %v4610_v23 = vld [vmem:[%s6636_s1 + $0x8d4] sm:$0xf0] }
 0x103   : > { %2379 = vmatpush.bf16.msra.mxu1 %v4152_v59  ;;  %v1146_v34 = vpop.f32.mrf.mxu1  ;;  %v4132_v59 = vor.u32 %v4587_v43, %v4129_v47  ;;  %v4622_v43 = vld [vmem:[%s6636_s1 + $0x934] sm:$0xf0]  ;;  %v4609_v47 = vld [vmem:[%s6636_s1 + $0x8d4] sm:$0xf] }
 0x104   : > { %2366 = vmatpush.bf16.msra.mxu3 %v4088_v57  ;;  %2391 = vmatpush.bf16.msra.mxu2 %v4100_v63  ;;  %v1147_v48 = vadd.f32 %v1146_v34, %v6077_v11  ;;  %v2172_v11 = vld [vmem:[%s4973_s27 + $0x18] sm:$0xf]  ;;  %v4068_v57 = vor.u32 %v4571_v46, %v4065_v42  ;;  %v4057_v63 = vld [vmem:[%s6636_s1 + $0x798] sm:$0xf0]  ;;  %v4260_v46 = vor.u32 %v4611_v28, %v4257_v29  ;;  %v4295_v42 = vld [vmem:[%s6636_s1 + $0x930] sm:$0xf] }
 0x105   : > { %v4060_v15 = vor.u32 %v4569_v44, %v4057_v63  ;;  %v4241_v44 = vld [vmem:[%s6636_s1 + $0x8c8] sm:$0xf0]  ;;  %v4621_v63 = vld [vmem:[%s6636_s1 + $0x934] sm:$0xf]  ;;  %s4326_s27 = sshll.u32 %s6642_s19, 3 }
 0x106   : > { %2405 = vmatpush.bf16.msra.mxu0 %v4156_v14  ;;  %v1159_v61 = vpop.f32.mrf.mxu3  ;;  %v1172_v4 = vpop.f32.mrf.mxu0  ;;  %v4567_v14 = vld [vmem:[%s6636_s1 + $0x784] sm:$0xf]  ;;  %s224_s30 = scalar_lea.vmem %s6640_s5, %s4326_s27 }
 0x107   : > { %2380 = vmatpush.bf16.msra.mxu1 %v4144_v9  ;;  %v6392_v0 = vadd.f32 %v1159_v61, %v1147_v48  ;;  %v2174_v9 = vpack.c.bf16 %v2172_v11, %v2170_v56  ;;  %v1173_v58 = vadd.f32 %v1172_v4, %v6079_v12  ;;  %v4113_v12 = vld [vmem:[%s6636_s1 + $0x808] sm:$0xf0]  ;;  %v4606_v56 = vld [vmem:[%s6636_s1 + $0x8b4] sm:$0xf0]  ;;  %v4252_v11 = vor.u32 %v4609_v47, %v4249_v60  ;;  %v4620_v61 = vld [vmem:[%s6636_s1 + $0x924] sm:$0xf0] }
 0x108   : > { %2367 = vmatpush.bf16.msra.mxu3 %v4080_v8  ;;  %2392 = vmatpush.bf16.msra.mxu2 %v4092_v13  ;;  %v2173_v8 = vpack.c.bf16 %v2171_v55, %v2169_v51  ;;  %v4112_v13 = vor.u32 %v4584_v62, %v4111_v50  ;;  %v4116_v31 = vor.u32 %v4583_v19, %v4113_v12  ;;  %v4305_v50 = vld [vmem:[%s6636_s1 + $0x948] sm:$0xf0]  ;;  %v4231_v55 = vld [vmem:[%s6636_s1 + $0x8b0] sm:$0xf]  ;;  %v4607_v62 = vld [vmem:[%s6636_s1 + $0x8c4] sm:$0xf] }
 0x109   : > { %v6444_v38 = vrot.slane %v2174_v9, 2  ;;  %v4232_v2 = vor.u32 %v4606_v56, %v4231_v55  ;;  %v4223_v4 = vld [vmem:[%s6636_s1 + $0x8a0] sm:$0xf]  ;;  %v4618_v9 = vld [vmem:[%s6636_s1 + $0x914] sm:$0xf0] }
 0x10a   : > { %2406 = vmatpush.bf16.msra.mxu0 %v4148_v25  ;;  %v1185_v17 = vpop.f32.mrf.mxu2  ;;  %v6436_v26 = vrot.slane %v2173_v8, 2  ;;  %v4279_v8 = vld [vmem:[%s6636_s1 + $0x910] sm:$0xf]  ;;  %v4613_v55 = vld [vmem:[%s6636_s1 + $0x8f4] sm:$0xf] }
 0x10b   : > { %2381 = vmatpush.bf16.msra.mxu1 %v4136_v22  ;;  %v6425_v20 = vadd.f32 %v1185_v17, %v1173_v58  ;;  %v4312_v22 = vor.u32 %v4626_v7, %v4311_v6  ;;  %v1148_v25 = vpop.f32.mrf.mxu1  ;;  %v4244_v6 = vor.u32 %v4607_v62, %v4241_v44  ;;  %v4300_v7 = vor.u32 %v4621_v63, %v4297_v1  ;;  %v4605_v58 = vld [vmem:[%s6636_s1 + $0x8b4] sm:$0xf]  ;;  %v4215_v17 = vld [vmem:[%s6636_s1 + $0x890] sm:$0xf]  ;;  %v4265_v56 = vld [vmem:[%s6636_s1 + $0x8f8] sm:$0xf0] }
 0x10c   : > { %2368 = vmatpush.bf16.msra.mxu3 %v4072_v21  ;;  %2393 = vmatpush.bf16.msra.mxu2 %v4084_v24  ;;  %v4256_v21 = vor.u32 %v4612_v5, %v4255_v3  ;;  %v4303_v24 = vld [vmem:[%s6636_s1 + $0x940] sm:$0xf]  ;;  %v4604_v5 = vld [vmem:[%s6636_s1 + $0x8a4] sm:$0xf0]  ;;  %v4281_v25 = vld [vmem:[%s6636_s1 + $0x918] sm:$0xf0]  ;;  %v4268_v62 = vor.u32 %v4613_v55, %v4265_v56 }
 0x10d   : > { %v4597_v1 = vld [vmem:[%s6636_s1 + $0x874] sm:$0xf] }
 0x10e   : > { %2407 = vmatpush.bf16.msra.mxu0 %v4140_v36  ;;  %v1161_v33 = vpop.f32.mrf.mxu3  ;;  %v4304_v36 = vor.u32 %v4624_v27, %v4303_v24  ;;  %v1174_v48 = vpop.f32.mrf.mxu0  ;;  %v4617_v24 = vld [vmem:[%s6636_s1 + $0x914] sm:$0xf] }
 0x10f   : > { %2382 = vmatpush.bf16.msra.mxu1 %v4128_v41  ;;  %v4052_v41 = vor.u32 %v4567_v14, %v4049_v18  ;;  %v4289_v14 = vld [vmem:[%s6636_s1 + $0x928] sm:$0xf0]  ;;  %v4602_v18 = vld [vmem:[%s6636_s1 + $0x894] sm:$0xf0]  ;;  %v4263_v33 = vld [vmem:[%s6636_s1 + $0x8f0] sm:$0xf] }
 0x110   : > { %2369 = vmatpush.bf16.msra.mxu3 %v4064_v30  ;;  %2394 = vmatpush.bf16.msra.mxu2 %v4076_v35  ;;  %v4313_v30 = vld [vmem:[%s6636_s1 + $0x958] sm:$0xf0]  ;;  %v4248_v35 = vor.u32 %v4610_v23, %v4247_v54  ;;  %v4603_v54 = vld [vmem:[%s6636_s1 + $0x8a4] sm:$0xf]  ;;  %v4225_v23 = vld [vmem:[%s6636_s1 + $0x8a8] sm:$0xf0]  ;;  %v4216_v28 = vor.u32 %v4602_v18, %v4215_v17 }
 0x111   : > { %v4316_v34 = vor.u32 %v4625_v45, %v4313_v30  ;;  %v4207_v45 = vld [vmem:[%s6636_s1 + $0x880] sm:$0xf]  ;;  %v4600_v30 = vld [vmem:[%s6636_s1 + $0x884] sm:$0xf0] }
 0x112   : > { %2408 = vmatpush.bf16.msra.mxu0 %v4132_v59  ;;  %v1187_v51 = vpop.f32.mrf.mxu2  ;;  %v4287_v59 = vld [vmem:[%s6636_s1 + $0x920] sm:$0xf] }
 0x113   : > { %2383 = vmatpush.bf16.msra.mxu1 %v4120_v37  ;;  %v4296_v37 = vor.u32 %v4622_v43, %v4295_v42  ;;  %v4288_v3 = vor.u32 %v4620_v61, %v4287_v59  ;;  %v4208_v42 = vor.u32 %v4600_v30, %v4207_v45  ;;  %v4598_v51 = vld [vmem:[%s6636_s1 + $0x874] sm:$0xf0] }
 0x114   : > { %2370 = vmatpush.bf16.msra.mxu3 %v4056_v53  ;;  %2395 = vmatpush.bf16.msra.mxu2 %v4068_v57  ;;  %v4240_v53 = vor.u32 %v4608_v40, %v4239_v39  ;;  %v4308_v57 = vor.u32 %v4623_v49, %v4305_v50  ;;  %v4217_v39 = vld [vmem:[%s6636_s1 + $0x898] sm:$0xf0]  ;;  %v4615_v40 = vld [vmem:[%s6636_s1 + $0x904] sm:$0xf]  ;;  %v4199_v50 = vld [vmem:[%s6636_s1 + $0x870] sm:$0xf] }
 0x115   : > { %v4200_v59 = vor.u32 %v4598_v51, %v4199_v50 }
 0x116   : > { %2409 = vmatpush.bf16.msra.mxu0 %v4124_v16  ;;  %v4280_v16 = vor.u32 %v4618_v9, %v4279_v8 }
 0x117   : > { %2384 = vmatpush.bf16.msra.mxu1 %v4112_v13  ;;  %v4619_v13 = vld [vmem:[%s6636_s1 + $0x924] sm:$0xf] }
 0x118   : > { %2371 = vmatpush.bf16.msra.mxu3 %v4048_v10  ;;  %2396 = vmatpush.bf16.msra.mxu2 %v4060_v15  ;;  %v4233_v10 = vld [vmem:[%s6636_s1 + $0x8b8] sm:$0xf0]  ;;  %v4224_v15 = vor.u32 %v4604_v5, %v4223_v4  ;;  %v4292_v12 = vor.u32 %v4619_v13, %v4289_v14 }
 0x119   : > { %v4236_v19 = vor.u32 %v4605_v58, %v4233_v10 }
 0x11a   : > { %4165 = vmatmul.msk.bf16.vlgmr.msra.gmra.mxu1 %vm493_vm0, %v6444_v38  ;;  %2410 = vmatpush.bf16.msra.mxu0 %v4116_v31  ;;  %v4284_v31 = vor.u32 %v4617_v24, %v4281_v25 }
 0x11b   : > { %2597 = vmatpush.bf16.msrb.mxu1 %v4256_v21  ;;  %2372 = vmatmul.bf16.vlgmr.msra.gmra.mxu3 %v6436_v26  ;;  %v4271_v21 = vld [vmem:[%s6636_s1 + $0x900] sm:$0xf] }
 0x11c   : > { %2611 = vmatpush.bf16.msrb.mxu3 %v4312_v22  ;;  %2397 = vmatpush.bf16.msra.mxu2 %v4052_v41  ;;  %v4616_v22 = vld [vmem:[%s6636_s1 + $0x904] sm:$0xf0]  ;;  %v4228_v41 = vor.u32 %v4603_v54, %v4225_v23 }
 0x11d   : > { %4166 = vmatmul.msk.bf16.vlgmr.msra.gmra.mxu0 %vm493_vm0, %v6444_v38  ;;  %v4272_v29 = vor.u32 %v4616_v22, %v4271_v21 }
 0x11e   : > { %2623 = vmatpush.bf16.msrb.mxu0 %v4260_v46  ;;  %v4273_v46 = vld [vmem:[%s6636_s1 + $0x908] sm:$0xf0] }
 0x11f   : > { %2598 = vmatpush.bf16.msrb.mxu1 %v4248_v35  ;;  %2398 = vmatmul.bf16.vlgmr.msra.gmra.mxu2 %v6436_v26  ;;  %v1406_v27 = vpop.f32.mrf.mxu1  ;;  %v4614_v35 = vld [vmem:[%s6636_s1 + $0x8f4] sm:$0xf0]  ;;  %v4276_v60 = vor.u32 %v4615_v40, %v4273_v46 }
 0x120   : > { %2612 = vmatpush.bf16.msrb.mxu3 %v4304_v36  ;;  %2637 = vmatpush.bf16.msrb.mxu2 %v4316_v34  ;;  %v4601_v36 = vld [vmem:[%s6636_s1 + $0x894] sm:$0xf]  ;;  %v4264_v43 = vor.u32 %v4614_v35, %v4263_v33 }
 0x121   : > { %v4220_v48 = vor.u32 %v4601_v36, %v4217_v39 }
 0x122   : > { %2624 = vmatpush.bf16.msrb.mxu0 %v4252_v11  ;;  %v1432_v34 = vpop.f32.mrf.mxu0 }
 0x123   : > { %2599 = vmatpush.bf16.msrb.mxu1 %v4240_v53  ;;  %v4599_v53 = vld [vmem:[%s6636_s1 + $0x884] sm:$0xf] }
 0x124   : > { %2613 = vmatpush.bf16.msrb.mxu3 %v4296_v37  ;;  %2638 = vmatpush.bf16.msrb.mxu2 %v4308_v57  ;;  %v4209_v37 = vld [vmem:[%s6636_s1 + $0x888] sm:$0xf0] }
 0x125   : > { %v4212_v61 = vor.u32 %v4599_v53, %v4209_v37 }
 0x126   : > { %2625 = vmatpush.bf16.msrb.mxu0 %v4244_v6  ;;  %v1393_v47 = vpop.f32.mrf.mxu3 }
 0x127   : > { %2600 = vmatpush.bf16.msrb.mxu1 %v4232_v2  ;;  %v1407_v49 = vadd.f32 %v1406_v27, %v1393_v47  ;;  %v1408_v11 = vpop.f32.mrf.mxu1  ;;  %v4201_v2 = vld [vmem:[%s6636_s1 + $0x878] sm:$0xf0] }
 0x128   : > { %2614 = vmatpush.bf16.msrb.mxu3 %v4288_v3  ;;  %2639 = vmatpush.bf16.msrb.mxu2 %v4300_v7  ;;  %v4204_v5 = vor.u32 %v4597_v1, %v4201_v2 }
 0x129   : > { %v1669_v57 = vadd.f32 %v1407_v49, %v6232_v32 }
 0x12a   : > { %2626 = vmatpush.bf16.msrb.mxu0 %v4236_v19  ;;  %v1419_v44 = vpop.f32.mrf.mxu2  ;;  %v1434_v32 = vpop.f32.mrf.mxu0 }
 0x12b   : > { %2601 = vmatpush.bf16.msrb.mxu1 %v4224_v15  ;;  %v1433_v63 = vadd.f32 %v1432_v34, %v1419_v44 }
 0x12c   : > { %2615 = vmatpush.bf16.msrb.mxu3 %v4280_v16  ;;  %2640 = vmatpush.bf16.msrb.mxu2 %v4292_v12 }
 0x12d   : > { %v1670_v3 = vadd.f32 %v1433_v63, %v6258_v52 }
 0x12e   : > { %2627 = vmatpush.bf16.msrb.mxu0 %v4228_v41  ;;  %v1395_v4 = vpop.f32.mrf.mxu3 }
 0x12f   : > { %2602 = vmatpush.bf16.msrb.mxu1 %v4216_v28 }
 0x130   : > { %2616 = vmatpush.bf16.msrb.mxu3 %v4272_v29  ;;  %2641 = vmatpush.bf16.msrb.mxu2 %v4284_v31 }
 0x132   : > { %2628 = vmatpush.bf16.msrb.mxu0 %v4220_v48  ;;  %v1421_v6 = vpop.f32.mrf.mxu2 }
 0x133   : > { %2603 = vmatpush.bf16.msrb.mxu1 %v4208_v42 }
 0x134   : > { %2617 = vmatpush.bf16.msrb.mxu3 %v4264_v43  ;;  %2642 = vmatpush.bf16.msrb.mxu2 %v4276_v60 }
 0x136   : > { %2629 = vmatpush.bf16.msrb.mxu0 %v4212_v61  ;;  %v2655_v61 = vld [vmem:[%s6638_s3] sm:$0xf] }
 0x137   : > { %4317 = vmatmul.msk.bf16.vlgmr.msrb.gmra.mxu3 %vm493_vm0, %v6444_v38  ;;  %2604 = vmatpush.bf16.msrb.mxu1 %v4200_v59 }
 0x138   : > { %2643 = vmatpush.bf16.msrb.mxu2 %v4268_v62  ;;  %v2700_v62 = vld [vmem:[%s6639_s4] sm:$0xf] }
 0x13a   : > { %2605 = vmatmul.bf16.vlgmr.msrb.gmra.mxu1 %v6436_v26  ;;  %2630 = vmatpush.bf16.msrb.mxu0 %v4204_v5 }
 0x13b   : > { %4318 = vmatmul.msk.bf16.vlgmr.msrb.gmra.mxu2 %vm493_vm0, %v6444_v38 }
 0x13d   : > { %2631 = vmatmul.bf16.vlgmr.msrb.gmra.mxu0 %v6436_v26 }
 0x13f   : > { %v1626_v7 = vpop.f32.mrf.mxu1 }
 0x142   : > { %v1639_v8 = vpop.f32.mrf.mxu3  ;;  %v1652_v10 = vpop.f32.mrf.mxu0 }
 0x143   : > { %v1640_v9 = vadd.f32 %v1639_v8, %v1626_v7  ;;  %v2746_v7 = vld [vmem:[%s6637_s2] sm:$0x3] }
 0x144   : > { %v2749_v8 = vperm.slane %v2746_v7, 1 }
 0x145   : > { %v1671_v58 = vadd.f32 %v1640_v9, %v6392_v0 }
 0x146   : > { %v1665_v52 = vpop.f32.mrf.mxu2 }
 0x147   : > { %v1666_v13 = vadd.f32 %v1665_v52, %v1652_v10  ;;  %v1628_v14 = vpop.f32.mrf.mxu1  ;;  %v2748_v10 = vperm.slane %v2746_v7, 0 }
 0x149   : > { %v1672_v15 = vadd.f32 %v1666_v13, %v6425_v20 }
 0x14a   : > { %v1641_v16 = vpop.f32.mrf.mxu3  ;;  %v1654_v17 = vpop.f32.mrf.mxu0 }
 0x14e   : > { %v1667_v18 = vpop.f32.mrf.mxu2 }
 0x15b   : > { %v1902_v19 = vpop.f32.mrf.mxu1 }
 0x15e   : > { %v1928_v38 = vpop.f32.mrf.mxu0 }
 0x162   : > { %v1889_v12 = vpop.f32.mrf.mxu3 }
 0x163   : > { %v1903_v21 = vadd.f32 %v1902_v19, %v1889_v12  ;;  %v1904_v22 = vpop.f32.mrf.mxu1 }
 0x165   : > { %v2165_v26 = vadd.f32 %v1903_v21, %v1669_v57 }
 0x166   : > { %v1915_v54 = vpop.f32.mrf.mxu2  ;;  %v1930_v24 = vpop.f32.mrf.mxu0 }
 0x167   : > { %v1929_v23 = vadd.f32 %v1928_v38, %v1915_v54 }
 0x169   : > { %v2166_v25 = vadd.f32 %v1929_v23, %v1670_v3 }
 0x16a   : > { %v1891_v0 = vpop.f32.mrf.mxu3 }
 0x16e   : > { %v1917_v27 = vpop.f32.mrf.mxu2 }
 0x17b   : > { %v2122_v28 = vpop.f32.mrf.mxu1 }
 0x17e   : > { %v2135_v29 = vpop.f32.mrf.mxu3  ;;  %v2148_v45 = vpop.f32.mrf.mxu0 }
 0x17f   : > { %v2136_v47 = vadd.f32 %v2135_v29, %v2122_v28 }
 0x181   : > { %v2167_v50 = vadd.f32 %v2136_v47, %v1671_v58 }
 0x182   : > { %v2161_v30 = vpop.f32.mrf.mxu2 }
 0x183   : > { %v2124_v20 = vpop.f32.mrf.mxu1  ;;  %v2162_v53 = vadd.f32 %v2161_v30, %v2148_v45 }
 0x185   : > { %v2168_v44 = vadd.f32 %v2162_v53, %v1672_v15 }
 0x186   : > { %v2137_v41 = vpop.f32.mrf.mxu3  ;;  %v2150_v31 = vpop.f32.mrf.mxu0 }
 0x18a   : > { %v2163_v33 = vpop.f32.mrf.mxu2 }
 0x197   : > { %v2386_v35 = vpop.f32.mrf.mxu1 }
 0x19a   : > { %v2412_v36 = vpop.f32.mrf.mxu0 }
 0x19e   : > { %v2373_v39 = vpop.f32.mrf.mxu3 }
 0x19f   : > { %v2388_v40 = vpop.f32.mrf.mxu1  ;;  %v2387_v60 = vadd.f32 %v2386_v35, %v2373_v39 }
 0x1a1   : > { %v2649_v37 = vadd.f32 %v2387_v60, %v2165_v26 }
 0x1a2   : > { %v2399_v46 = vpop.f32.mrf.mxu2  ;;  %v2414_v34 = vpop.f32.mrf.mxu0 }
 0x1a3   : > { %v2413_v11 = vadd.f32 %v2412_v36, %v2399_v46 }
 0x1a5   : > { %v2650_v2 = vadd.f32 %v2413_v11, %v2166_v25 }
 0x1a6   : > { %v2375_v42 = vpop.f32.mrf.mxu3 }
 0x1aa   : > { %v2401_v43 = vpop.f32.mrf.mxu2 }
 0x1b7   : > { %v2606_v48 = vpop.f32.mrf.mxu1 }
 0x1ba   : > { %v2619_v49 = vpop.f32.mrf.mxu3  ;;  %v2632_v56 = vpop.f32.mrf.mxu0 }
 0x1bb   : > { %v2620_v51 = vadd.f32 %v2619_v49, %v2606_v48 }
 0x1bd   : > { %v2651_v55 = vadd.f32 %v2620_v51, %v2167_v50 }
 0x1be   : > { %v2645_v59 = vpop.f32.mrf.mxu2 }
 0x1bf   : > { %v2653_v57 = vmax.f32 %v2649_v37, %v2651_v55  ;;  %v2646_v63 = vadd.f32 %v2645_v59, %v2632_v56  ;;  %v2608_v1 = vpop.f32.mrf.mxu1 }
 0x1c1   : > { %2675 = vmatpush.msra.mxu3 %v2653_v57  ;;  %2719 = vmatpush.msra.mxu2 %v2653_v57  ;;  %v2652_v32 = vadd.f32 %v2646_v63, %v2168_v44 }
 0x1c2   : > { %v2621_v3 = vpop.f32.mrf.mxu3  ;;  %4319 = vmatmul.msk.f32.vlgmr.msra.gmra.mxu3 %vm2656_vm1, %v2655_v61  ;;  %4321 = vmatmul.msk.f32.vlgmr.msra.gmra.mxu2 %vm2656_vm1, %v2700_v62  ;;  %v2634_v5 = vpop.f32.mrf.mxu0 }
 0x1c3   : > { %v2654_v4 = vmax.f32 %v2650_v2, %v2652_v32 }
 0x1c5   : > { %2695 = vmatpush.msra.mxu1 %v2654_v4  ;;  %2739 = vmatpush.msra.mxu0 %v2654_v4 }
 0x1c6   : > { %v2647_v6 = vpop.f32.mrf.mxu2  ;;  %4320 = vmatmul.msk.f32.vlgmr.msra.gmra.mxu1 %vm2656_vm1, %v2655_v61  ;;  %4322 = vmatmul.msk.f32.vlgmr.msra.gmra.mxu0 %vm2656_vm1, %v2700_v62 }
 0x243   : > { %v2697_v9 = vpop.f32.mrf.mxu1  ;;  %v2741_v58 = vpop.f32.mrf.mxu0 }
 0x244   : > { %v2745_v52 = vmax.f32 %v2697_v9, %v2741_v58 }
 0x245   : > { %v2677_v13 = vpop.f32.mrf.mxu3  ;;  %v2721_v14 = vpop.f32.mrf.mxu2 }
 0x246   : > { %v2744_v15 = vmax.f32 %v2677_v13, %v2721_v14  ;;  %v2753_v16 = vadd.f32 %v2749_v8, %v2745_v52 }
 0x248   : > { %v2752_v17 = vadd.f32 %v2748_v10, %v2744_v15  ;;  %v2755_v18 = vmax.f32 %v2753_v16, 0.0 }
 0x24a   : > { %v2754_v19 = vmax.f32 %v2752_v17, 0.0  ;;  %v2758_v38 = vrot.slane %v2755_v18, 4 }
 0x24c   : > { %v2760_v12 = vsel %vm2759_vm2, %v2754_v19, %v2758_v38 }
 0x24d   : > { %2764 = vst.msk [vmem:[%s224_s30] sm:$0xff] %vm2763_vm4, %v2760_v12 }
 0x24e PF: > { %s15_s18 = sadd.s32 1, %s4641_s18  }
 0x24f   : > { %p12_p4 = scmp.ge.s32.totalorder %s15_s18, 4  }
 0x251   :  { %14 = sbr.rel (!%p12_p4) target bundleno = 1 (0x1), region = 79 }

// kernel: net_forward.11
= control target key start
LH: loop header
LB: loop body
LE: loop exit
PB: predicated region body
PF: predicated region fallthrough
CT: control target
= control target key end

     0   :  { %vm1260_vm0 = vcmask 261120   ;;  %s4583_s0 = inlined_call_operand.vmem [shape: f32[2,800], index: 0, kind: input, shape index: {}]   ;;  %s4584_s1 = inlined_call_operand.vmem [shape: bf16[800,500], index: 1, kind: input, shape index: {}]   ;;  %s4585_s2 = inlined_call_operand.vmem [shape: f32[1,500], index: 2, kind: input, shape index: {}]   ;;  %s4586_s3 = inlined_call_operand.vmem [shape: bf16[500,10], index: 3, kind: input, shape index: {}]   ;;  %s4587_s4 = inlined_call_operand.vmem [shape: f32[1,10], index: 4, kind: input, shape index: {}]   ;;  %s4588_s5 = inlined_call_operand.hbm [shape: f32[2,10], index: 5, kind: output, shape index: {}]  }
   0x1   :  { %v2096_v0 = vld [vmem:[%s4584_s1 + $0xe0] sm:$0xf]  ;;  %v2941_v1 = vld [vmem:[%s4584_s1 + $0xec] sm:$0xf0] }
   0x2   :  { %v2224_v2 = vld [vmem:[%s4584_s1 + $0x1e0] sm:$0xf]  ;;  %v2097_v3 = vor.u32 %v2941_v1, %v2096_v0  ;;  %v2973_v4 = vld [vmem:[%s4584_s1 + $0x1ec] sm:$0xf0] }
   0x3   :  { %v2352_v5 = vld [vmem:[%s4584_s1 + $0x2e0] sm:$0xf]  ;;  %v3005_v6 = vld [vmem:[%s4584_s1 + $0x2ec] sm:$0xf0]  ;;  %v2225_v7 = vor.u32 %v2973_v4, %v2224_v2 }
   0x4   :  { %v2353_v8 = vor.u32 %v3005_v6, %v2352_v5  ;;  %v2480_v9 = vld [vmem:[%s4584_s1 + $0x3e0] sm:$0xf]  ;;  %v3037_v10 = vld [vmem:[%s4584_s1 + $0x3ec] sm:$0xf0]  ;;  %1264 = vmatpush.bf16.msra.mxu0 %v2097_v3 }
   0x5   :  { %v2080_v11 = vld [vmem:[%s4584_s1 + $0xc0] sm:$0xf]  ;;  %v2481_v12 = vor.u32 %v3037_v10, %v2480_v9  ;;  %v2937_v13 = vld [vmem:[%s4584_s1 + $0xcc] sm:$0xf0]  ;;  %1277 = vmatpush.bf16.msra.mxu1 %v2225_v7 }
   0x6   :  { %v2208_v14 = vld [vmem:[%s4584_s1 + $0x1c0] sm:$0xf]  ;;  %v2969_v15 = vld [vmem:[%s4584_s1 + $0x1cc] sm:$0xf0]  ;;  %1290 = vmatpush.bf16.msra.mxu2 %v2353_v8  ;;  %v2081_v16 = vor.u32 %v2937_v13, %v2080_v11 }
   0x7   :  { %v2209_v17 = vor.u32 %v2969_v15, %v2208_v14  ;;  %v2336_v18 = vld [vmem:[%s4584_s1 + $0x2c0] sm:$0xf]  ;;  %v3001_v19 = vld [vmem:[%s4584_s1 + $0x2cc] sm:$0xf0]  ;;  %1303 = vmatpush.bf16.msra.mxu3 %v2481_v12 }
   0x8   :  { %v2464_v20 = vld [vmem:[%s4584_s1 + $0x3c0] sm:$0xf]  ;;  %v2337_v21 = vor.u32 %v3001_v19, %v2336_v18  ;;  %v3033_v22 = vld [vmem:[%s4584_s1 + $0x3cc] sm:$0xf0]  ;;  %1265 = vmatpush.bf16.msra.mxu0 %v2081_v16 }
   0x9   :  { %v2064_v23 = vld [vmem:[%s4584_s1 + $0xa0] sm:$0xf]  ;;  %v2933_v24 = vld [vmem:[%s4584_s1 + $0xac] sm:$0xf0]  ;;  %v2465_v25 = vor.u32 %v3033_v22, %v2464_v20  ;;  %1278 = vmatpush.bf16.msra.mxu1 %v2209_v17 }
   0xa   :  { %v2192_v26 = vld [vmem:[%s4584_s1 + $0x1a0] sm:$0xf]  ;;  %v2965_v27 = vld [vmem:[%s4584_s1 + $0x1ac] sm:$0xf0]  ;;  %v2065_v29 = vor.u32 %v2933_v24, %v2064_v23  ;;  %1291 = vmatpush.bf16.msra.mxu2 %v2337_v21 }
   0xb   :  { %v2320_v28 = vld [vmem:[%s4584_s1 + $0x2a0] sm:$0xf]  ;;  %v2997_v30 = vld [vmem:[%s4584_s1 + $0x2ac] sm:$0xf0]  ;;  %v2193_v33 = vor.u32 %v2965_v27, %v2192_v26  ;;  %1304 = vmatpush.bf16.msra.mxu3 %v2465_v25 }
   0xc   :  { %v2448_v31 = vld [vmem:[%s4584_s1 + $0x3a0] sm:$0xf]  ;;  %v3029_v32 = vld [vmem:[%s4584_s1 + $0x3ac] sm:$0xf0]  ;;  %v2321_v34 = vor.u32 %v2997_v30, %v2320_v28  ;;  %1266 = vmatpush.bf16.msra.mxu0 %v2065_v29 }
   0xd   :  { %v2048_v35 = vld [vmem:[%s4584_s1 + $0x80] sm:$0xf]  ;;  %v2929_v36 = vld [vmem:[%s4584_s1 + $0x8c] sm:$0xf0]  ;;  %v2449_v38 = vor.u32 %v3029_v32, %v2448_v31  ;;  %1279 = vmatpush.bf16.msra.mxu1 %v2193_v33 }
   0xe   :  { %v2176_v37 = vld [vmem:[%s4584_s1 + $0x180] sm:$0xf]  ;;  %v2961_v39 = vld [vmem:[%s4584_s1 + $0x18c] sm:$0xf0]  ;;  %v2049_v44 = vor.u32 %v2929_v36, %v2048_v35  ;;  %1292 = vmatpush.bf16.msra.mxu2 %v2321_v34 }
   0xf   :  { %v2304_v40 = vld [vmem:[%s4584_s1 + $0x280] sm:$0xf]  ;;  %v2993_v41 = vld [vmem:[%s4584_s1 + $0x28c] sm:$0xf0]  ;;  %v2177_v45 = vor.u32 %v2961_v39, %v2176_v37  ;;  %1305 = vmatpush.bf16.msra.mxu3 %v2449_v38  ;;  %v2939_v38 = vld [vmem:[%s4584_s1 + $0xe4] sm:$0xf] }
  0x10   :  { %v2432_v42 = vld [vmem:[%s4584_s1 + $0x380] sm:$0xf]  ;;  %v3025_v43 = vld [vmem:[%s4584_s1 + $0x38c] sm:$0xf0]  ;;  %v2305_v46 = vor.u32 %v2993_v41, %v2304_v40  ;;  %1267 = vmatpush.bf16.msra.mxu0 %v2049_v44  ;;  %v2098_v39 = vld [vmem:[%s4584_s1 + $0xf0] sm:$0xf0] }
  0x11   :  { %v2032_v47 = vld [vmem:[%s4584_s1 + $0x60] sm:$0xf]  ;;  %v2925_v48 = vld [vmem:[%s4584_s1 + $0x6c] sm:$0xf0]  ;;  %v2433_v50 = vor.u32 %v3025_v43, %v2432_v42  ;;  %1280 = vmatpush.bf16.msra.mxu1 %v2177_v45 }
  0x12   :  { %v2160_v49 = vld [vmem:[%s4584_s1 + $0x160] sm:$0xf]  ;;  %v2957_v51 = vld [vmem:[%s4584_s1 + $0x16c] sm:$0xf0]  ;;  %v2033_v56 = vor.u32 %v2925_v48, %v2032_v47  ;;  %1293 = vmatpush.bf16.msra.mxu2 %v2305_v46 }
  0x13   :  { %v2288_v52 = vld [vmem:[%s4584_s1 + $0x260] sm:$0xf]  ;;  %v2989_v53 = vld [vmem:[%s4584_s1 + $0x26c] sm:$0xf0]  ;;  %v2161_v57 = vor.u32 %v2957_v51, %v2160_v49  ;;  %1306 = vmatpush.bf16.msra.mxu3 %v2433_v50  ;;  %v2935_v50 = vld [vmem:[%s4584_s1 + $0xc4] sm:$0xf]  ;;  %v2101_v51 = vor.u32 %v2939_v38, %v2098_v39 }
  0x14   :  { %v2416_v54 = vld [vmem:[%s4584_s1 + $0x360] sm:$0xf]  ;;  %v3021_v55 = vld [vmem:[%s4584_s1 + $0x36c] sm:$0xf0]  ;;  %v2289_v58 = vor.u32 %v2989_v53, %v2288_v52  ;;  %1268 = vmatpush.bf16.msra.mxu0 %v2033_v56  ;;  %v2082_v52 = vld [vmem:[%s4584_s1 + $0xd0] sm:$0xf0] }
  0x15   :  { %v2016_v59 = vld [vmem:[%s4584_s1 + $0x40] sm:$0xf]  ;;  %v2921_v60 = vld [vmem:[%s4584_s1 + $0x4c] sm:$0xf0]  ;;  %v2417_v62 = vor.u32 %v3021_v55, %v2416_v54  ;;  %1281 = vmatpush.bf16.msra.mxu1 %v2161_v57  ;;  %v2971_v53 = vld [vmem:[%s4584_s1 + $0x1e4] sm:$0xf] }
  0x16   :  { %v2144_v61 = vld [vmem:[%s4584_s1 + $0x140] sm:$0xf]  ;;  %v2953_v63 = vld [vmem:[%s4584_s1 + $0x14c] sm:$0xf0]  ;;  %v2017_v4 = vor.u32 %v2921_v60, %v2016_v59  ;;  %1294 = vmatpush.bf16.msra.mxu2 %v2289_v58  ;;  %v2226_v54 = vld [vmem:[%s4584_s1 + $0x1f0] sm:$0xf0] }
  0x17   :  { %v2272_v0 = vld [vmem:[%s4584_s1 + $0x240] sm:$0xf]  ;;  %v2985_v1 = vld [vmem:[%s4584_s1 + $0x24c] sm:$0xf0]  ;;  %v2145_v5 = vor.u32 %v2953_v63, %v2144_v61  ;;  %1307 = vmatpush.bf16.msra.mxu3 %v2417_v62 }
  0x18   :  { %v2400_v2 = vld [vmem:[%s4584_s1 + $0x340] sm:$0xf]  ;;  %v3017_v3 = vld [vmem:[%s4584_s1 + $0x34c] sm:$0xf0]  ;;  %v2273_v6 = vor.u32 %v2985_v1, %v2272_v0  ;;  %1269 = vmatpush.bf16.msra.mxu0 %v2017_v4  ;;  %v2085_v4 = vor.u32 %v2935_v50, %v2082_v52 }
  0x19   :  { %v2000_v7 = vld [vmem:[%s4584_s1 + $0x20] sm:$0xf]  ;;  %v2917_v8 = vld [vmem:[%s4584_s1 + $0x2c] sm:$0xf0]  ;;  %v2401_v10 = vor.u32 %v3017_v3, %v2400_v2  ;;  %1282 = vmatpush.bf16.msra.mxu1 %v2145_v5  ;;  %v2229_v5 = vor.u32 %v2971_v53, %v2226_v54 }
  0x1a   :  { %v2128_v9 = vld [vmem:[%s4584_s1 + $0x120] sm:$0xf]  ;;  %v2949_v11 = vld [vmem:[%s4584_s1 + $0x12c] sm:$0xf0]  ;;  %v2001_v17 = vor.u32 %v2917_v8, %v2000_v7  ;;  %1295 = vmatpush.bf16.msra.mxu2 %v2273_v6  ;;  %v2931_v8 = vld [vmem:[%s4584_s1 + $0xa4] sm:$0xf] }
  0x1b   :  { %v2256_v12 = vld [vmem:[%s4584_s1 + $0x220] sm:$0xf]  ;;  %v2981_v13 = vld [vmem:[%s4584_s1 + $0x22c] sm:$0xf0]  ;;  %v2129_v21 = vor.u32 %v2949_v11, %v2128_v9  ;;  %1308 = vmatpush.bf16.msra.mxu3 %v2401_v10  ;;  %v2066_v9 = vld [vmem:[%s4584_s1 + $0xb0] sm:$0xf0] }
  0x1c   :  { %v2384_v14 = vld [vmem:[%s4584_s1 + $0x320] sm:$0xf]  ;;  %v3013_v15 = vld [vmem:[%s4584_s1 + $0x32c] sm:$0xf0]  ;;  %v2257_v22 = vor.u32 %v2981_v13, %v2256_v12  ;;  %1270 = vmatpush.bf16.msra.mxu0 %v2001_v17  ;;  %v2967_v10 = vld [vmem:[%s4584_s1 + $0x1c4] sm:$0xf] }
  0x1d   :  { %v1984_v16 = vld [vmem:[%s4584_s1] sm:$0xf]  ;;  %v2913_v18 = vld [vmem:[%s4584_s1 + $0xc] sm:$0xf0]  ;;  %v2385_v26 = vor.u32 %v3013_v15, %v2384_v14  ;;  %1283 = vmatpush.bf16.msra.mxu1 %v2129_v21  ;;  %v2210_v11 = vld [vmem:[%s4584_s1 + $0x1d0] sm:$0xf0] }
  0x1e   :  { %v2112_v19 = vld [vmem:[%s4584_s1 + $0x100] sm:$0xf]  ;;  %v2945_v20 = vld [vmem:[%s4584_s1 + $0x10c] sm:$0xf0]  ;;  %v1985_v32 = vor.u32 %v2913_v18, %v1984_v16  ;;  %1296 = vmatpush.bf16.msra.mxu2 %v2257_v22  ;;  %v2069_v16 = vor.u32 %v2931_v8, %v2066_v9  ;;  %v2213_v17 = vor.u32 %v2967_v10, %v2210_v11  ;;  %v2050_v21 = vld [vmem:[%s4584_s1 + $0x90] sm:$0xf0] }
  0x1f   :  { %v2240_v23 = vld [vmem:[%s4584_s1 + $0x200] sm:$0xf]  ;;  %v2977_v24 = vld [vmem:[%s4584_s1 + $0x20c] sm:$0xf0]  ;;  %v2113_v36 = vor.u32 %v2945_v20, %v2112_v19  ;;  %1309 = vmatpush.bf16.msra.mxu3 %v2385_v26  ;;  %v2927_v20 = vld [vmem:[%s4584_s1 + $0x84] sm:$0xf] }
  0x20   :  { %v22_v25 = vld [vmem:[%s4583_s0] sm:$0xff]  ;;  %v3009_v28 = vld [vmem:[%s4584_s1 + $0x30c] sm:$0xf0]  ;;  %v2241_v37 = vor.u32 %v2977_v24, %v2240_v23  ;;  %1271 = vmatpush.bf16.msra.mxu0 %v1985_v32  ;;  %v2194_v23 = vld [vmem:[%s4584_s1 + $0x1b0] sm:$0xf0] }
  0x21   :  { %v2368_v27 = vld [vmem:[%s4584_s1 + $0x300] sm:$0xf]  ;;  %26 = vst [vmem:[#allocation1] ss:$4 sm:$0xff] %v22_v25  ;;  %v3069_v30 = vld [vmem:[%s4584_s1 + $0x4ec] sm:$0xf0]  ;;  %1284 = vmatpush.bf16.msra.mxu1 %v2113_v36 }
  0x22   :  { %v2608_v29 = vld [vmem:[%s4584_s1 + $0x4e0] sm:$0xf]  ;;  %v3101_v33 = vld [vmem:[%s4584_s1 + $0x5ec] sm:$0xf0]  ;;  %v2369_v41 = vor.u32 %v3009_v28, %v2368_v27  ;;  %1297 = vmatpush.bf16.msra.mxu2 %v2241_v37  ;;  %v2963_v22 = vld [vmem:[%s4584_s1 + $0x1a4] sm:$0xf] }
  0x23   :  { %v2736_v31 = vld [vmem:[%s4584_s1 + $0x5e0] sm:$0xf]  ;;  %v3109_v35 = vld [vmem:[%s4584_s1 + $0x62c] sm:$0xf0]  ;;  %v2609_v42 = vor.u32 %v3069_v30, %v2608_v29  ;;  %v2053_v29 = vor.u32 %v2927_v20, %v2050_v21  ;;  %v2197_v30 = vor.u32 %v2963_v22, %v2194_v23  ;;  %v2923_v32 = vld [vmem:[%s4584_s1 + $0x64] sm:$0xf] }
  0x24   :  { %v2768_v34 = vld [vmem:[%s4584_s1 + $0x620] sm:$0xf]  ;;  %v3065_v43 = vld [vmem:[%s4584_s1 + $0x4cc] sm:$0xf0]  ;;  %v2737_v46 = vor.u32 %v3101_v33, %v2736_v31  ;;  %1310 = vmatpush.bf16.msra.mxu3 %v2369_v41  ;;  %v2034_v33 = vld [vmem:[%s4584_s1 + $0x70] sm:$0xf0] }
  0x25   :  { %v2592_v40 = vld [vmem:[%s4584_s1 + $0x4c0] sm:$0xf]  ;;  %v3097_v45 = vld [vmem:[%s4584_s1 + $0x5cc] sm:$0xf0]  ;;  %v2769_v47 = vor.u32 %v3109_v35, %v2768_v34  ;;  %1316 = vmatpush.bf16.msrb.mxu0 %v2609_v42  ;;  %v2959_v34 = vld [vmem:[%s4584_s1 + $0x184] sm:$0xf]  ;;  %v2037_v41 = vor.u32 %v2923_v32, %v2034_v33 }
  0x26   :  { %v2720_v44 = vld [vmem:[%s4584_s1 + $0x5c0] sm:$0xf]  ;;  %v3105_v49 = vld [vmem:[%s4584_s1 + $0x60c] sm:$0xf0]  ;;  %v2593_v56 = vor.u32 %v3065_v43, %v2592_v40  ;;  %1329 = vmatpush.bf16.msrb.mxu1 %v2737_v46  ;;  %v2178_v35 = vld [vmem:[%s4584_s1 + $0x190] sm:$0xf0] }
  0x27   :  { %v2752_v48 = vld [vmem:[%s4584_s1 + $0x600] sm:$0xf]  ;;  %v2721_v59 = vor.u32 %v3097_v45, %v2720_v44  ;;  %1348 = vmatpush.bf16.msrb.mxu2 %v2769_v47  ;;  %v3061_v1 = vld [vmem:[%s4584_s1 + $0x4ac] sm:$0xf0]  ;;  %v23_v36 = vld [vmem:[%s4583_s0 + $0x8] sm:$0x3f]  ;;  %v2181_v42 = vor.u32 %v2959_v34, %v2178_v35 }
  0x28   :  { %v31_v55 = vld.sshfl [vmem:[#allocation1 + $0x10] sm:$0xff pattern:$0x73625140]  ;;  %v29_v57 = vld.sshfl [vmem:[#allocation1] sm:$0xff pattern:$0x73625140]  ;;  %v2753_v63 = vor.u32 %v3105_v49, %v2752_v48  ;;  %1355 = vmatpush.bf16.msrb.mxu3 %v2101_v51 }
  0x29   :  { %v3454_v58 = vpack.c.bf16 %v31_v55, %v31_v55  ;;  %v3456_v60 = vpack.c.bf16 %v29_v57, %v29_v57  ;;  %v32_v61 = vld.sshfl [vmem:[#allocation1 + $0x18] sm:$0xff pattern:$0x73625140]  ;;  %v30_v62 = vld.sshfl [vmem:[#allocation1 + $0x8] sm:$0xff pattern:$0x73625140]  ;;  %1317 = vmatpush.bf16.msrb.mxu0 %v2593_v56 }
  0x2a   :  { %v2576_v0 = vld [vmem:[%s4584_s1 + $0x4a0] sm:$0xf]  ;;  %v3464_v2 = vpack.c.bf16 %v32_v61, %v32_v61  ;;  %v3466_v3 = vpack.c.bf16 %v30_v62, %v30_v62  ;;  %v3093_v7 = vld [vmem:[%s4584_s1 + $0x5ac] sm:$0xf0]  ;;  %1330 = vmatpush.bf16.msrb.mxu1 %v2721_v59  ;;  %28 = vst [vmem:[#allocation1 + $0x20] ss:$4 sm:$0xff] %v23_v36 }
  0x2b   :  { %1298 = vmatmul.bf16.vlgmr.msra.gmra.mxu2 %v3454_v58  ;;  %v2704_v6 = vld [vmem:[%s4584_s1 + $0x5a0] sm:$0xf]  ;;  %1272 = vmatmul.bf16.vlgmr.msra.gmra.mxu0 %v3456_v60  ;;  %v2577_v12 = vor.u32 %v3061_v1, %v2576_v0  ;;  %v3057_v15 = vld [vmem:[%s4584_s1 + $0x48c] sm:$0xf0]  ;;  %v2919_v45 = vld [vmem:[%s4584_s1 + $0x44] sm:$0xf] }
  0x2c   :  { %1311 = vmatmul.bf16.vlgmr.msra.gmra.mxu3 %v3464_v2  ;;  %1285 = vmatmul.bf16.vlgmr.msra.gmra.mxu1 %v3466_v3  ;;  %v2705_v13 = vor.u32 %v3093_v7, %v2704_v6  ;;  %v2560_v14 = vld [vmem:[%s4584_s1 + $0x480] sm:$0xf]  ;;  %v3089_v19 = vld [vmem:[%s4584_s1 + $0x58c] sm:$0xf0]  ;;  %v2018_v46 = vld [vmem:[%s4584_s1 + $0x50] sm:$0xf0] }
  0x2d   :  { %1349 = vmatpush.bf16.msrb.mxu2 %v2753_v63  ;;  %1356 = vmatpush.bf16.msrb.mxu3 %v2085_v4  ;;  %v2688_v18 = vld [vmem:[%s4584_s1 + $0x580] sm:$0xf]  ;;  %v2561_v24 = vor.u32 %v3057_v15, %v2560_v14  ;;  %v3053_v27 = vld [vmem:[%s4584_s1 + $0x46c] sm:$0xf0]  ;;  %v2955_v47 = vld [vmem:[%s4584_s1 + $0x164] sm:$0xf]  ;;  %v2021_v55 = vor.u32 %v2919_v45, %v2018_v46 }
  0x2e   :  { %1318 = vmatpush.bf16.msrb.mxu0 %v2577_v12  ;;  %1331 = vmatpush.bf16.msrb.mxu1 %v2705_v13  ;;  %v2689_v25 = vor.u32 %v3089_v19, %v2688_v18  ;;  %v2544_v26 = vld [vmem:[%s4584_s1 + $0x460] sm:$0xf]  ;;  %v3085_v31 = vld [vmem:[%s4584_s1 + $0x56c] sm:$0xf0]  ;;  %v2162_v48 = vld [vmem:[%s4584_s1 + $0x170] sm:$0xf0] }
  0x2f   :  { %v2672_v28 = vld [vmem:[%s4584_s1 + $0x560] sm:$0xf]  ;;  %v2545_v37 = vor.u32 %v3053_v27, %v2544_v26  ;;  %v3049_v40 = vld [vmem:[%s4584_s1 + $0x44c] sm:$0xf0]  ;;  %v2165_v56 = vor.u32 %v2955_v47, %v2162_v48  ;;  %v2915_v57 = vld [vmem:[%s4584_s1 + $0x24] sm:$0xf] }
  0x30   :  { %v2673_v38 = vor.u32 %v3085_v31, %v2672_v28  ;;  %v2528_v39 = vld [vmem:[%s4584_s1 + $0x440] sm:$0xf]  ;;  %v3081_v44 = vld [vmem:[%s4584_s1 + $0x54c] sm:$0xf0]  ;;  %v2002_v59 = vld [vmem:[%s4584_s1 + $0x30] sm:$0xf0] }
  0x31   :  { %1368 = vmatpush.bf16.msra.mxu2 %v2229_v5  ;;  %1357 = vmatpush.bf16.msrb.mxu3 %v2069_v16  ;;  %v2656_v43 = vld [vmem:[%s4584_s1 + $0x540] sm:$0xf]  ;;  %v2529_v49 = vor.u32 %v3049_v40, %v2528_v39  ;;  %v3045_v52 = vld [vmem:[%s4584_s1 + $0x42c] sm:$0xf0]  ;;  %v2951_v61 = vld [vmem:[%s4584_s1 + $0x144] sm:$0xf]  ;;  %v2005_v10 = vor.u32 %v2915_v57, %v2002_v59 }
  0x32   :  { %1319 = vmatpush.bf16.msrb.mxu0 %v2561_v24  ;;  %1332 = vmatpush.bf16.msrb.mxu1 %v2689_v25  ;;  %v2512_v50 = vld [vmem:[%s4584_s1 + $0x420] sm:$0xf]  ;;  %v2657_v51 = vor.u32 %v3081_v44, %v2656_v43  ;;  %v3077_v54 = vld [vmem:[%s4584_s1 + $0x52c] sm:$0xf0]  ;;  %v2146_v62 = vld [vmem:[%s4584_s1 + $0x150] sm:$0xf0] }
  0x33   :  { %v2640_v53 = vld [vmem:[%s4584_s1 + $0x520] sm:$0xf]  ;;  %v35_v63 = vld.sshfl [vmem:[#allocation1 + $0x30] sm:$0xff pattern:$0x73625140]  ;;  %v2513_v0 = vor.u32 %v3045_v52, %v2512_v50  ;;  %v2149_v11 = vor.u32 %v2951_v61, %v2146_v62 }
  0x34   :  { %v2496_v1 = vld [vmem:[%s4584_s1 + $0x400] sm:$0xf]  ;;  %v3041_v4 = vld [vmem:[%s4584_s1 + $0x40c] sm:$0xf0]  ;;  %v3595_v5 = vpack.c.bf16 %v35_v63, %v35_v63  ;;  %v2641_v6 = vor.u32 %v3077_v54, %v2640_v53  ;;  %v2911_v9 = vld [vmem:[%s4584_s1 + $0x4] sm:$0xf] }
  0x35   :  { %1369 = vmatpush.bf16.msra.mxu2 %v2213_v17  ;;  %1358 = vmatpush.bf16.msrb.mxu3 %v2053_v29  ;;  %v2624_v7 = vld [vmem:[%s4584_s1 + $0x500] sm:$0xf]  ;;  %v3073_v8 = vld [vmem:[%s4584_s1 + $0x50c] sm:$0xf0]  ;;  %v1986_v12 = vld [vmem:[%s4584_s1 + $0x10] sm:$0xf0]  ;;  %v2497_v18 = vor.u32 %v3041_v4, %v2496_v1 }
  0x36   :  { %1320 = vmatpush.bf16.msrb.mxu0 %v2545_v37  ;;  %1333 = vmatpush.bf16.msrb.mxu1 %v2673_v38  ;;  %v3003_v13 = vld [vmem:[%s4584_s1 + $0x2e4] sm:$0xf]  ;;  %v2354_v14 = vld [vmem:[%s4584_s1 + $0x2f0] sm:$0xf0]  ;;  %v2625_v22 = vor.u32 %v3073_v8, %v2624_v7  ;;  %v1989_v26 = vor.u32 %v2911_v9, %v1986_v12 }
  0x37   :  { %v2947_v15 = vld [vmem:[%s4584_s1 + $0x124] sm:$0xf]  ;;  %v2130_v16 = vld [vmem:[%s4584_s1 + $0x130] sm:$0xf0]  ;;  %v2357_v23 = vor.u32 %v3003_v13, %v2354_v14 }
  0x38   :  { %v3035_v17 = vld [vmem:[%s4584_s1 + $0x3e4] sm:$0xf]  ;;  %v2482_v19 = vld [vmem:[%s4584_s1 + $0x3f0] sm:$0xf0]  ;;  %v2133_v27 = vor.u32 %v2947_v15, %v2130_v16 }
  0x39   :  { %1370 = vmatpush.bf16.msra.mxu2 %v2197_v30  ;;  %1359 = vmatpush.bf16.msrb.mxu3 %v2037_v41  ;;  %v3067_v20 = vld [vmem:[%s4584_s1 + $0x4e4] sm:$0xf]  ;;  %v2610_v21 = vld [vmem:[%s4584_s1 + $0x4f0] sm:$0xf0]  ;;  %v2485_v30 = vor.u32 %v3035_v17, %v2482_v19 }
  0x3a   :  { %1321 = vmatpush.bf16.msrb.mxu0 %v2529_v49  ;;  %1334 = vmatpush.bf16.msrb.mxu1 %v2657_v51  ;;  %v33_v24 = vld.sshfl [vmem:[#allocation1 + $0x20] sm:$0xff pattern:$0x73625140]  ;;  %v34_v25 = vld.sshfl [vmem:[#allocation1 + $0x28] sm:$0xff pattern:$0x73625140]  ;;  %v2613_v31 = vor.u32 %v3067_v20, %v2610_v21 }
  0x3b   :  { %2782 = vmatmul.msk.bf16.vlgmr.msrb.gmra.mxu2 %vm1260_vm0, %v3595_v5  ;;  %v2999_v28 = vld [vmem:[%s4584_s1 + $0x2c4] sm:$0xf]  ;;  %v2338_v29 = vld [vmem:[%s4584_s1 + $0x2d0] sm:$0xf0]  ;;  %v3650_v35 = vpack.c.bf16 %v33_v24, %v33_v24  ;;  %v3652_v36 = vpack.c.bf16 %v34_v25, %v34_v25 }
  0x3c   :  { %v2943_v32 = vld [vmem:[%s4584_s1 + $0x104] sm:$0xf]  ;;  %v2114_v33 = vld [vmem:[%s4584_s1 + $0x110] sm:$0xf0]  ;;  %v2341_v40 = vor.u32 %v2999_v28, %v2338_v29 }
  0x3d   :  { %1371 = vmatpush.bf16.msra.mxu2 %v2181_v42  ;;  %1360 = vmatpush.bf16.msrb.mxu3 %v2021_v55  ;;  %v3031_v34 = vld [vmem:[%s4584_s1 + $0x3c4] sm:$0xf]  ;;  %v2466_v37 = vld [vmem:[%s4584_s1 + $0x3d0] sm:$0xf0]  ;;  %v2117_v43 = vor.u32 %v2943_v32, %v2114_v33 }
  0x3e   :  { %1322 = vmatpush.bf16.msrb.mxu0 %v2513_v0  ;;  %1335 = vmatpush.bf16.msrb.mxu1 %v2641_v6  ;;  %v3063_v38 = vld [vmem:[%s4584_s1 + $0x4c4] sm:$0xf]  ;;  %v2594_v39 = vld [vmem:[%s4584_s1 + $0x4d0] sm:$0xf0]  ;;  %v2469_v46 = vor.u32 %v3031_v34, %v2466_v37 }
  0x3f   :  { %v3099_v41 = vld [vmem:[%s4584_s1 + $0x5e4] sm:$0xf]  ;;  %v2738_v42 = vld [vmem:[%s4584_s1 + $0x5f0] sm:$0xf0]  ;;  %v2597_v47 = vor.u32 %v3063_v38, %v2594_v39 }
  0x40   :  { %v2995_v44 = vld [vmem:[%s4584_s1 + $0x2a4] sm:$0xf]  ;;  %v2322_v45 = vld [vmem:[%s4584_s1 + $0x2b0] sm:$0xf0]  ;;  %v2741_v49 = vor.u32 %v3099_v41, %v2738_v42 }
  0x41   :  { %1372 = vmatpush.bf16.msra.mxu2 %v2165_v56  ;;  %1361 = vmatpush.bf16.msrb.mxu3 %v2005_v10  ;;  %v3027_v48 = vld [vmem:[%s4584_s1 + $0x3a4] sm:$0xf]  ;;  %v2450_v50 = vld [vmem:[%s4584_s1 + $0x3b0] sm:$0xf0]  ;;  %v2325_v53 = vor.u32 %v2995_v44, %v2322_v45 }
  0x42   :  { %1323 = vmatpush.bf16.msrb.mxu0 %v2497_v18  ;;  %1336 = vmatpush.bf16.msrb.mxu1 %v2625_v22  ;;  %v3059_v51 = vld [vmem:[%s4584_s1 + $0x4a4] sm:$0xf]  ;;  %v2578_v52 = vld [vmem:[%s4584_s1 + $0x4b0] sm:$0xf0]  ;;  %v2453_v59 = vor.u32 %v3027_v48, %v2450_v50 }
  0x43   :  { %v3095_v54 = vld [vmem:[%s4584_s1 + $0x5c4] sm:$0xf]  ;;  %v2722_v55 = vld [vmem:[%s4584_s1 + $0x5d0] sm:$0xf0]  ;;  %v2581_v61 = vor.u32 %v3059_v51, %v2578_v52 }
  0x44   :  { %v2991_v56 = vld [vmem:[%s4584_s1 + $0x284] sm:$0xf]  ;;  %v2306_v57 = vld [vmem:[%s4584_s1 + $0x290] sm:$0xf0]  ;;  %v2725_v63 = vor.u32 %v3095_v54, %v2722_v55  ;;  %v3006_v54 = vld [vmem:[%s4584_s1 + $0x2f4] sm:$0xf0] }
  0x45   :  { %1373 = vmatpush.bf16.msra.mxu2 %v2149_v11  ;;  %1362 = vmatpush.bf16.msrb.mxu3 %v1989_v26  ;;  %v3023_v62 = vld [vmem:[%s4584_s1 + $0x384] sm:$0xf]  ;;  %v2434_v0 = vld [vmem:[%s4584_s1 + $0x390] sm:$0xf0]  ;;  %v2309_v6 = vor.u32 %v2991_v56, %v2306_v57 }
  0x46   :  { %1381 = vmatpush.bf16.msra.mxu0 %v2357_v23  ;;  %1394 = vmatpush.bf16.msra.mxu1 %v2485_v30  ;;  %v3055_v1 = vld [vmem:[%s4584_s1 + $0x484] sm:$0xf]  ;;  %v2562_v4 = vld [vmem:[%s4584_s1 + $0x490] sm:$0xf0]  ;;  %v2437_v11 = vor.u32 %v3023_v62, %v2434_v0 }
  0x47   :  { %1324 = vmatmul.bf16.vlgmr.msrb.gmra.mxu0 %v3650_v35  ;;  %1337 = vmatmul.bf16.vlgmr.msrb.gmra.mxu1 %v3652_v36  ;;  %v3091_v7 = vld [vmem:[%s4584_s1 + $0x5a4] sm:$0xf]  ;;  %v2706_v8 = vld [vmem:[%s4584_s1 + $0x5b0] sm:$0xf0]  ;;  %v2565_v12 = vor.u32 %v3055_v1, %v2562_v4  ;;  %v2104_v1 = vld [vmem:[%s4584_s1 + $0xe8] sm:$0xf] }
  0x48   :  { %1363 = vmatmul.bf16.vlgmr.msrb.gmra.mxu3 %v3456_v60  ;;  %v2987_v9 = vld [vmem:[%s4584_s1 + $0x264] sm:$0xf]  ;;  %v2290_v10 = vld [vmem:[%s4584_s1 + $0x270] sm:$0xf0]  ;;  %v2709_v14 = vor.u32 %v3091_v7, %v2706_v8  ;;  %v2942_v4 = vld [vmem:[%s4584_s1 + $0xf4] sm:$0xf0] }
  0x49   :  { %1374 = vmatpush.bf16.msra.mxu2 %v2133_v27  ;;  %1407 = vmatpush.bf16.msra.mxu3 %v2613_v31  ;;  %v3019_v13 = vld [vmem:[%s4584_s1 + $0x364] sm:$0xf]  ;;  %v2418_v15 = vld [vmem:[%s4584_s1 + $0x370] sm:$0xf0]  ;;  %v2293_v18 = vor.u32 %v2987_v9, %v2290_v10 }
  0x4a   :  { %1382 = vmatpush.bf16.msra.mxu0 %v2341_v40  ;;  %1395 = vmatpush.bf16.msra.mxu1 %v2469_v46  ;;  %v3051_v16 = vld [vmem:[%s4584_s1 + $0x464] sm:$0xf]  ;;  %v2546_v17 = vld [vmem:[%s4584_s1 + $0x470] sm:$0xf0]  ;;  %v2421_v23 = vor.u32 %v3019_v13, %v2418_v15  ;;  %v2344_v13 = vld [vmem:[%s4584_s1 + $0x2c8] sm:$0xf]  ;;  %v2105_v15 = vor.u32 %v2942_v4, %v2104_v1 }
  0x4b   :  { %v3087_v19 = vld [vmem:[%s4584_s1 + $0x584] sm:$0xf]  ;;  %v2690_v20 = vld [vmem:[%s4584_s1 + $0x590] sm:$0xf0]  ;;  %v2549_v24 = vor.u32 %v3051_v16, %v2546_v17 }
  0x4c   :  { %v2983_v21 = vld [vmem:[%s4584_s1 + $0x244] sm:$0xf]  ;;  %v2274_v22 = vld [vmem:[%s4584_s1 + $0x250] sm:$0xf0]  ;;  %v2693_v26 = vor.u32 %v3087_v19, %v2690_v20  ;;  %v2938_v19 = vld [vmem:[%s4584_s1 + $0xd4] sm:$0xf0] }
  0x4d   :  { %1375 = vmatpush.bf16.msra.mxu2 %v2117_v43  ;;  %1408 = vmatpush.bf16.msra.mxu3 %v2597_v47  ;;  %v3015_v25 = vld [vmem:[%s4584_s1 + $0x344] sm:$0xf]  ;;  %v2402_v27 = vld [vmem:[%s4584_s1 + $0x350] sm:$0xf0]  ;;  %v2277_v30 = vor.u32 %v2983_v21, %v2274_v22  ;;  %v2232_v20 = vld [vmem:[%s4584_s1 + $0x1e8] sm:$0xf] }
  0x4e   :  { %1383 = vmatpush.bf16.msra.mxu0 %v2325_v53  ;;  %1396 = vmatpush.bf16.msra.mxu1 %v2453_v59  ;;  %v3047_v28 = vld [vmem:[%s4584_s1 + $0x444] sm:$0xf]  ;;  %v2530_v29 = vld [vmem:[%s4584_s1 + $0x450] sm:$0xf0]  ;;  %v2405_v37 = vor.u32 %v3015_v25, %v2402_v27  ;;  %v2360_v53 = vld [vmem:[%s4584_s1 + $0x2e8] sm:$0xf] }
  0x4f   :  { %v3083_v31 = vld [vmem:[%s4584_s1 + $0x564] sm:$0xf]  ;;  %v2674_v32 = vld [vmem:[%s4584_s1 + $0x570] sm:$0xf0]  ;;  %v2533_v38 = vor.u32 %v3047_v28, %v2530_v29  ;;  %v2974_v21 = vld [vmem:[%s4584_s1 + $0x1f4] sm:$0xf0] }
  0x50   :  { %1376 = vmatmul.bf16.vlgmr.msra.gmra.mxu2 %v3466_v3  ;;  %v2979_v33 = vld [vmem:[%s4584_s1 + $0x224] sm:$0xf]  ;;  %v2258_v34 = vld [vmem:[%s4584_s1 + $0x230] sm:$0xf0]  ;;  %v2677_v40 = vor.u32 %v3083_v31, %v2674_v32  ;;  %v2488_v22 = vld [vmem:[%s4584_s1 + $0x3e8] sm:$0xf] }
  0x51   :  { %1420 = vmatpush.bf16.msrb.mxu2 %v2741_v49  ;;  %1409 = vmatpush.bf16.msra.mxu3 %v2581_v61  ;;  %v3011_v39 = vld [vmem:[%s4584_s1 + $0x324] sm:$0xf]  ;;  %v2386_v41 = vld [vmem:[%s4584_s1 + $0x330] sm:$0xf0]  ;;  %v2261_v44 = vor.u32 %v2979_v33, %v2258_v34  ;;  %v2328_v27 = vld [vmem:[%s4584_s1 + $0x2a8] sm:$0xf] }
  0x52   :  { %1384 = vmatpush.bf16.msra.mxu0 %v2309_v6  ;;  %1397 = vmatpush.bf16.msra.mxu1 %v2437_v11  ;;  %v3043_v42 = vld [vmem:[%s4584_s1 + $0x424] sm:$0xf]  ;;  %v2514_v43 = vld [vmem:[%s4584_s1 + $0x430] sm:$0xf0]  ;;  %v2389_v50 = vor.u32 %v3011_v39, %v2386_v41  ;;  %v2361_v6 = vor.u32 %v3006_v54, %v2360_v53  ;;  %v2998_v28 = vld [vmem:[%s4584_s1 + $0x2b4] sm:$0xf0] }
  0x53   :  { %v3079_v45 = vld [vmem:[%s4584_s1 + $0x544] sm:$0xf]  ;;  %v2658_v46 = vld [vmem:[%s4584_s1 + $0x550] sm:$0xf0]  ;;  %v2517_v51 = vor.u32 %v3043_v42, %v2514_v43  ;;  %v2072_v31 = vld [vmem:[%s4584_s1 + $0xa8] sm:$0xf] }
  0x54   :  { %v2975_v47 = vld [vmem:[%s4584_s1 + $0x204] sm:$0xf]  ;;  %v2242_v48 = vld [vmem:[%s4584_s1 + $0x210] sm:$0xf0]  ;;  %v2661_v55 = vor.u32 %v3079_v45, %v2658_v46  ;;  %v2934_v33 = vld [vmem:[%s4584_s1 + $0xb4] sm:$0xf0] }
  0x55   :  { %1421 = vmatpush.bf16.msrb.mxu2 %v2725_v63  ;;  %1410 = vmatpush.bf16.msra.mxu3 %v2565_v12  ;;  %v3007_v49 = vld [vmem:[%s4584_s1 + $0x304] sm:$0xf]  ;;  %v2370_v52 = vld [vmem:[%s4584_s1 + $0x310] sm:$0xf0]  ;;  %v2245_v61 = vor.u32 %v2975_v47, %v2242_v48  ;;  %v2216_v34 = vld [vmem:[%s4584_s1 + $0x1c8] sm:$0xf]  ;;  %v2073_v43 = vor.u32 %v2934_v33, %v2072_v31 }
  0x56   :  { %1385 = vmatpush.bf16.msra.mxu0 %v2293_v18  ;;  %1398 = vmatpush.bf16.msra.mxu1 %v2421_v23  ;;  %v3039_v56 = vld [vmem:[%s4584_s1 + $0x404] sm:$0xf]  ;;  %v2498_v57 = vld [vmem:[%s4584_s1 + $0x410] sm:$0xf0]  ;;  %v2373_v7 = vor.u32 %v3007_v49, %v2370_v52  ;;  %v2088_v18 = vld [vmem:[%s4584_s1 + $0xc8] sm:$0xf] }
  0x57   :  { %v3075_v59 = vld [vmem:[%s4584_s1 + $0x524] sm:$0xf]  ;;  %v2642_v62 = vld [vmem:[%s4584_s1 + $0x530] sm:$0xf0]  ;;  %v2501_v8 = vor.u32 %v3039_v56, %v2498_v57  ;;  %v3038_v23 = vld [vmem:[%s4584_s1 + $0x3f4] sm:$0xf0]  ;;  %v2089_v29 = vor.u32 %v2938_v19, %v2088_v18 }
  0x58   :  { %v3107_v63 = vld [vmem:[%s4584_s1 + $0x624] sm:$0xf]  ;;  %v2770_v0 = vld [vmem:[%s4584_s1 + $0x630] sm:$0xf0]  ;;  %v2645_v10 = vor.u32 %v3075_v59, %v2642_v62  ;;  %v2489_v32 = vor.u32 %v3038_v23, %v2488_v22  ;;  %v3034_v39 = vld [vmem:[%s4584_s1 + $0x3d4] sm:$0xf0] }
  0x59   :  { %1422 = vmatpush.bf16.msrb.mxu2 %v2709_v14  ;;  %1411 = vmatpush.bf16.msra.mxu3 %v2549_v24  ;;  %v3071_v9 = vld [vmem:[%s4584_s1 + $0x504] sm:$0xf]  ;;  %v2773_v11 = vor.u32 %v3107_v63, %v2770_v0  ;;  %v2626_v12 = vld [vmem:[%s4584_s1 + $0x510] sm:$0xf0]  ;;  %v3002_v14 = vld [vmem:[%s4584_s1 + $0x2d4] sm:$0xf0] }
  0x5a   :  { %1386 = vmatpush.bf16.msra.mxu0 %v2277_v30  ;;  %1399 = vmatpush.bf16.msra.mxu1 %v2405_v37  ;;  %v3103_v16 = vld [vmem:[%s4584_s1 + $0x604] sm:$0xf]  ;;  %v2754_v17 = vld [vmem:[%s4584_s1 + $0x610] sm:$0xf0]  ;;  %v2345_v24 = vor.u32 %v3002_v14, %v2344_v13  ;;  %v2629_v25 = vor.u32 %v3071_v9, %v2626_v12  ;;  %v2233_v30 = vor.u32 %v2974_v21, %v2232_v20  ;;  %v2970_v37 = vld [vmem:[%s4584_s1 + $0x1d4] sm:$0xf0] }
  0x5b   :  { %v2312_v41 = vld [vmem:[%s4584_s1 + $0x288] sm:$0xf]  ;;  %v2994_v42 = vld [vmem:[%s4584_s1 + $0x294] sm:$0xf0] }
  0x5c   :  { %v2056_v45 = vld [vmem:[%s4584_s1 + $0x88] sm:$0xf]  ;;  %v2930_v47 = vld [vmem:[%s4584_s1 + $0x94] sm:$0xf0]  ;;  %v2313_v52 = vor.u32 %v2994_v42, %v2312_v41 }
  0x5d   :  { %1423 = vmatpush.bf16.msrb.mxu2 %v2693_v26  ;;  %1412 = vmatpush.bf16.msra.mxu3 %v2533_v38  ;;  %v2757_v26 = vor.u32 %v3103_v16, %v2754_v17  ;;  %v2472_v38 = vld [vmem:[%s4584_s1 + $0x3c8] sm:$0xf]  ;;  %v2966_v49 = vld [vmem:[%s4584_s1 + $0x1b4] sm:$0xf0] }
  0x5e   :  { %1387 = vmatpush.bf16.msra.mxu0 %v2261_v44  ;;  %1400 = vmatpush.bf16.msra.mxu1 %v2389_v50  ;;  %v2217_v44 = vor.u32 %v2970_v37, %v2216_v34  ;;  %v2473_v46 = vor.u32 %v3034_v39, %v2472_v38  ;;  %v2200_v48 = vld [vmem:[%s4584_s1 + $0x1a8] sm:$0xf]  ;;  %v2990_v54 = vld [vmem:[%s4584_s1 + $0x274] sm:$0xf0] }
  0x5f   :  { %v2456_v50 = vld [vmem:[%s4584_s1 + $0x3a8] sm:$0xf]  ;;  %v2201_v56 = vor.u32 %v2966_v49, %v2200_v48  ;;  %v2926_v59 = vld [vmem:[%s4584_s1 + $0x74] sm:$0xf0] }
  0x60   :  { %v2296_v53 = vld [vmem:[%s4584_s1 + $0x268] sm:$0xf]  ;;  %v2962_v63 = vld [vmem:[%s4584_s1 + $0x194] sm:$0xf0] }
  0x61   :  { %1424 = vmatpush.bf16.msrb.mxu2 %v2677_v40  ;;  %1413 = vmatpush.bf16.msra.mxu3 %v2517_v51  ;;  %v2329_v40 = vor.u32 %v2998_v28, %v2328_v27  ;;  %v3030_v51 = vld [vmem:[%s4584_s1 + $0x3b4] sm:$0xf0]  ;;  %v2040_v57 = vld [vmem:[%s4584_s1 + $0x68] sm:$0xf] }
  0x62   :  { %1388 = vmatpush.bf16.msra.mxu0 %v2245_v61  ;;  %1401 = vmatpush.bf16.msra.mxu1 %v2373_v7  ;;  %v2457_v61 = vor.u32 %v3030_v51, %v2456_v50  ;;  %v2184_v62 = vld [vmem:[%s4584_s1 + $0x188] sm:$0xf] }
  0x65   :  { %1425 = vmatpush.bf16.msrb.mxu2 %v2661_v55  ;;  %1414 = vmatpush.bf16.msra.mxu3 %v2501_v8  ;;  %v2057_v55 = vor.u32 %v2930_v47, %v2056_v45 }
  0x66   :  { %1472 = vmatpush.bf16.msrb.mxu0 %v2361_v6  ;;  %1446 = vmatpush.bf16.msrb.mxu1 %v2105_v15 }
  0x67   :  { %1389 = vmatmul.bf16.vlgmr.msra.gmra.mxu0 %v3454_v58  ;;  %1402 = vmatmul.bf16.vlgmr.msra.gmra.mxu1 %v3464_v2 }
  0x68   :  { %1415 = vmatmul.bf16.vlgmr.msra.gmra.mxu3 %v3650_v35 }
  0x69   :  { %1426 = vmatpush.bf16.msrb.mxu2 %v2645_v10  ;;  %1439 = vmatpush.bf16.msrb.mxu3 %v2773_v11 }
  0x6a   :  { %1473 = vmatpush.bf16.msrb.mxu0 %v2345_v24  ;;  %1447 = vmatpush.bf16.msrb.mxu1 %v2089_v29 }
  0x6d   :  { %1427 = vmatpush.bf16.msrb.mxu2 %v2629_v25  ;;  %1440 = vmatpush.bf16.msrb.mxu3 %v2757_v26 }
  0x6e   :  { %1474 = vmatpush.bf16.msrb.mxu0 %v2329_v40  ;;  %1448 = vmatpush.bf16.msrb.mxu1 %v2073_v43 }
  0x70   :  { %1428 = vmatmul.bf16.vlgmr.msrb.gmra.mxu2 %v3652_v36 }
  0x71   :  { %1459 = vmatpush.bf16.msra.mxu3 %v2233_v30  ;;  %1485 = vmatpush.bf16.msra.mxu2 %v2489_v32 }
  0x75   :  { %1460 = vmatpush.bf16.msra.mxu3 %v2217_v44  ;;  %1486 = vmatpush.bf16.msra.mxu2 %v2473_v46 }
  0x76   :  { %10 = vsyncpa [#allocation3], 0  ;;  %1475 = vmatpush.bf16.msrb.mxu0 %v2313_v52  ;;  %v2440_v0 = vld [vmem:[%s4584_s1 + $0x388] sm:$0xf]  ;;  %v3026_v1 = vld [vmem:[%s4584_s1 + $0x394] sm:$0xf0]  ;;  %v2297_v4 = vor.u32 %v2990_v54, %v2296_v53  ;;  %1449 = vmatpush.bf16.msrb.mxu1 %v2057_v55  ;;  %v2041_v8 = vor.u32 %v2926_v59, %v2040_v57  ;;  %v2185_v9 = vor.u32 %v2962_v63, %v2184_v62 }
  0x77   :  { %v2280_v6 = vld [vmem:[%s4584_s1 + $0x248] sm:$0xf]  ;;  %v2986_v7 = vld [vmem:[%s4584_s1 + $0x254] sm:$0xf0]  ;;  %v2441_v11 = vor.u32 %v3026_v1, %v2440_v0  ;;  %v2234_v62 = vld [vmem:[%s4584_s1 + $0x1f8] sm:$0xf0] }
  0x78   :  { %v2024_v10 = vld [vmem:[%s4584_s1 + $0x48] sm:$0xf]  ;;  %v2922_v12 = vld [vmem:[%s4584_s1 + $0x54] sm:$0xf0]  ;;  %v2281_v17 = vor.u32 %v2986_v7, %v2280_v6  ;;  %2783 = vmatmul.msk.bf16.vlgmr.msrb.gmra.mxu3 %vm1260_vm0, %v3595_v5  ;;  %v2940_v6 = vld [vmem:[%s4584_s1 + $0xec] sm:$0xf] }
  0x79   :  { %1461 = vmatpush.bf16.msra.mxu3 %v2201_v56  ;;  %1487 = vmatpush.bf16.msra.mxu2 %v2457_v61  ;;  %v2168_v13 = vld [vmem:[%s4584_s1 + $0x168] sm:$0xf]  ;;  %v2958_v14 = vld [vmem:[%s4584_s1 + $0x174] sm:$0xf0]  ;;  %v2025_v20 = vor.u32 %v2922_v12, %v2024_v10  ;;  %v2972_v61 = vld [vmem:[%s4584_s1 + $0x1ec] sm:$0xf] }
  0x7a   :  { %1476 = vmatpush.bf16.msrb.mxu0 %v2297_v4  ;;  %v2424_v15 = vld [vmem:[%s4584_s1 + $0x368] sm:$0xf]  ;;  %v3022_v16 = vld [vmem:[%s4584_s1 + $0x374] sm:$0xf0]  ;;  %1450 = vmatpush.bf16.msrb.mxu1 %v2041_v8  ;;  %v2169_v21 = vor.u32 %v2958_v14, %v2168_v13  ;;  %v2106_v7 = vld [vmem:[%s4584_s1 + $0xf8] sm:$0xf0]  ;;  %v2237_v10 = vor.u32 %v2972_v61, %v2234_v62 }
  0x7b   :  { %v2264_v18 = vld [vmem:[%s4584_s1 + $0x228] sm:$0xf]  ;;  %v2982_v19 = vld [vmem:[%s4584_s1 + $0x234] sm:$0xf0]  ;;  %v2425_v23 = vor.u32 %v3022_v16, %v2424_v15  ;;  %v2968_v13 = vld [vmem:[%s4584_s1 + $0x1cc] sm:$0xf]  ;;  %v2109_v16 = vor.u32 %v2940_v6, %v2106_v7 }
  0x7c   :  { %v2008_v22 = vld [vmem:[%s4584_s1 + $0x28] sm:$0xf]  ;;  %v2918_v24 = vld [vmem:[%s4584_s1 + $0x34] sm:$0xf0]  ;;  %v2265_v29 = vor.u32 %v2982_v19, %v2264_v18  ;;  %v2218_v14 = vld [vmem:[%s4584_s1 + $0x1d8] sm:$0xf0] }
  0x7d   :  { %1462 = vmatpush.bf16.msra.mxu3 %v2185_v9  ;;  %1488 = vmatpush.bf16.msra.mxu2 %v2441_v11  ;;  %v2152_v25 = vld [vmem:[%s4584_s1 + $0x148] sm:$0xf]  ;;  %v2954_v26 = vld [vmem:[%s4584_s1 + $0x154] sm:$0xf0]  ;;  %v2009_v33 = vor.u32 %v2918_v24, %v2008_v22  ;;  %v2090_v22 = vld [vmem:[%s4584_s1 + $0xd8] sm:$0xf0] }
  0x7e   :  { %1477 = vmatpush.bf16.msrb.mxu0 %v2281_v17  ;;  %v2408_v27 = vld [vmem:[%s4584_s1 + $0x348] sm:$0xf]  ;;  %v3018_v28 = vld [vmem:[%s4584_s1 + $0x354] sm:$0xf0]  ;;  %1451 = vmatpush.bf16.msrb.mxu1 %v2025_v20  ;;  %v2153_v34 = vor.u32 %v2954_v26, %v2152_v25  ;;  %v2964_v25 = vld [vmem:[%s4584_s1 + $0x1ac] sm:$0xf] }
  0x7f   :  { %v1992_v30 = vld [vmem:[%s4584_s1 + $0x8] sm:$0xf]  ;;  %v2978_v32 = vld [vmem:[%s4584_s1 + $0x214] sm:$0xf0]  ;;  %v2409_v40 = vor.u32 %v3018_v28, %v2408_v27  ;;  %v2202_v26 = vld [vmem:[%s4584_s1 + $0x1b8] sm:$0xf0] }
  0x80   :  { %v2248_v31 = vld [vmem:[%s4584_s1 + $0x208] sm:$0xf]  ;;  %v2914_v37 = vld [vmem:[%s4584_s1 + $0x14] sm:$0xf0]  ;;  %v2924_v61 = vld [vmem:[%s4584_s1 + $0x6c] sm:$0xf] }
  0x81   :  { %1463 = vmatpush.bf16.msra.mxu3 %v2169_v21  ;;  %v2776_v38 = vld [vmem:[%s4584_s1 + $0x628] sm:$0xf]  ;;  %v3110_v39 = vld [vmem:[%s4584_s1 + $0x634] sm:$0xf0]  ;;  %1489 = vmatpush.bf16.msra.mxu2 %v2425_v23  ;;  %v2249_v47 = vor.u32 %v2978_v32, %v2248_v31  ;;  %v1993_v51 = vor.u32 %v2914_v37, %v1992_v30  ;;  %v2936_v21 = vld [vmem:[%s4584_s1 + $0xcc] sm:$0xf]  ;;  %v2221_v23 = vor.u32 %v2968_v13, %v2218_v14 }
  0x82   :  { %v2136_v41 = vld [vmem:[%s4584_s1 + $0x128] sm:$0xf]  ;;  %v2950_v42 = vld [vmem:[%s4584_s1 + $0x134] sm:$0xf0]  ;;  %1478 = vmatpush.bf16.msrb.mxu0 %v2265_v29  ;;  %v2777_v48 = vor.u32 %v3110_v39, %v2776_v38  ;;  %1452 = vmatpush.bf16.msrb.mxu1 %v2009_v33  ;;  %v2093_v28 = vor.u32 %v2936_v21, %v2090_v22  ;;  %v2932_v33 = vld [vmem:[%s4584_s1 + $0xac] sm:$0xf]  ;;  %v2205_v37 = vor.u32 %v2964_v25, %v2202_v26 }
  0x83   :  { %v2392_v43 = vld [vmem:[%s4584_s1 + $0x328] sm:$0xf]  ;;  %v3014_v44 = vld [vmem:[%s4584_s1 + $0x334] sm:$0xf0]  ;;  %v2137_v52 = vor.u32 %v2950_v42, %v2136_v41  ;;  %v2960_v39 = vld [vmem:[%s4584_s1 + $0x18c] sm:$0xf] }
  0x84   :  { %v2616_v45 = vld [vmem:[%s4584_s1 + $0x4e8] sm:$0xf]  ;;  %v3070_v46 = vld [vmem:[%s4584_s1 + $0x4f4] sm:$0xf0]  ;;  %v2393_v56 = vor.u32 %v3014_v44, %v2392_v43  ;;  %v2042_v62 = vld [vmem:[%s4584_s1 + $0x78] sm:$0xf0] }
  0x85   :  { %v2120_v49 = vld [vmem:[%s4584_s1 + $0x108] sm:$0xf]  ;;  %v2946_v50 = vld [vmem:[%s4584_s1 + $0x114] sm:$0xf0]  ;;  %1464 = vmatpush.bf16.msra.mxu3 %v2153_v34  ;;  %1490 = vmatpush.bf16.msra.mxu2 %v2409_v40  ;;  %v2617_v57 = vor.u32 %v3070_v46, %v2616_v45  ;;  %v2074_v34 = vld [vmem:[%s4584_s1 + $0xb8] sm:$0xf0]  ;;  %v2045_v7 = vor.u32 %v2924_v61, %v2042_v62 }
  0x86   :  { %v2376_v53 = vld [vmem:[%s4584_s1 + $0x308] sm:$0xf]  ;;  %v3106_v55 = vld [vmem:[%s4584_s1 + $0x614] sm:$0xf0]  ;;  %1479 = vmatpush.bf16.msrb.mxu0 %v2249_v47  ;;  %1453 = vmatpush.bf16.msrb.mxu1 %v1993_v51  ;;  %v2121_v9 = vor.u32 %v2946_v50, %v2120_v49  ;;  %v2186_v40 = vld [vmem:[%s4584_s1 + $0x198] sm:$0xf0]  ;;  %v2077_v42 = vor.u32 %v2932_v33, %v2074_v34 }
  0x87   :  { %v2760_v54 = vld [vmem:[%s4584_s1 + $0x608] sm:$0xf]  ;;  %v3010_v59 = vld [vmem:[%s4584_s1 + $0x314] sm:$0xf0]  ;;  %v2928_v47 = vld [vmem:[%s4584_s1 + $0x8c] sm:$0xf]  ;;  %v2189_v49 = vor.u32 %v2960_v39, %v2186_v40 }
  0x88   :  { %v2600_v63 = vld [vmem:[%s4584_s1 + $0x4c8] sm:$0xf]  ;;  %v3066_v0 = vld [vmem:[%s4584_s1 + $0x4d4] sm:$0xf0]  ;;  %v2761_v8 = vor.u32 %v3106_v55, %v2760_v54  ;;  %v2377_v11 = vor.u32 %v3010_v59, %v2376_v53  ;;  %v2956_v51 = vld [vmem:[%s4584_s1 + $0x16c] sm:$0xf] }
  0x89   :  { %v2744_v1 = vld [vmem:[%s4584_s1 + $0x5e8] sm:$0xf]  ;;  %v3102_v4 = vld [vmem:[%s4584_s1 + $0x5f4] sm:$0xf0]  ;;  %1465 = vmatpush.bf16.msra.mxu3 %v2137_v52  ;;  %1491 = vmatpush.bf16.msra.mxu2 %v2393_v56  ;;  %v2601_v12 = vor.u32 %v3066_v0, %v2600_v63  ;;  %v2170_v52 = vld [vmem:[%s4584_s1 + $0x178] sm:$0xf0] }
  0x8a   :  { %1530 = vmatpush.bf16.msra.mxu0 %v2777_v48  ;;  %1498 = vmatpush.bf16.msra.mxu1 %v2617_v57  ;;  %v2745_v15 = vor.u32 %v3102_v4, %v2744_v1  ;;  %v2584_v17 = vld [vmem:[%s4584_s1 + $0x4a8] sm:$0xf]  ;;  %v3062_v18 = vld [vmem:[%s4584_s1 + $0x4b4] sm:$0xf0]  ;;  %v2058_v48 = vld [vmem:[%s4584_s1 + $0x98] sm:$0xf0]  ;;  %v2173_v63 = vor.u32 %v2956_v51, %v2170_v52 }
  0x8b   :  { %1480 = vmatmul.bf16.vlgmr.msrb.gmra.mxu0 %v3454_v58  ;;  %v2728_v19 = vld [vmem:[%s4584_s1 + $0x5c8] sm:$0xf]  ;;  %v3098_v20 = vld [vmem:[%s4584_s1 + $0x5d4] sm:$0xf0]  ;;  %1454 = vmatmul.bf16.vlgmr.msrb.gmra.mxu1 %v3456_v60  ;;  %v2585_v24 = vor.u32 %v3062_v18, %v2584_v17  ;;  %v2061_v54 = vor.u32 %v2928_v47, %v2058_v48  ;;  %v2952_v1 = vld [vmem:[%s4584_s1 + $0x14c] sm:$0xf] }
  0x8c   :  { %v2729_v27 = vor.u32 %v3098_v20, %v2728_v19  ;;  %v2568_v29 = vld [vmem:[%s4584_s1 + $0x488] sm:$0xf]  ;;  %v3058_v30 = vld [vmem:[%s4584_s1 + $0x494] sm:$0xf0]  ;;  %v2154_v4 = vld [vmem:[%s4584_s1 + $0x158] sm:$0xf0] }
  0x8d   :  { %1466 = vmatpush.bf16.msra.mxu3 %v2121_v9  ;;  %1492 = vmatpush.bf16.msra.mxu2 %v2377_v11  ;;  %v2712_v31 = vld [vmem:[%s4584_s1 + $0x5a8] sm:$0xf]  ;;  %v3094_v32 = vld [vmem:[%s4584_s1 + $0x5b4] sm:$0xf0]  ;;  %v2569_v38 = vor.u32 %v3058_v30, %v2568_v29  ;;  %v2026_v13 = vld [vmem:[%s4584_s1 + $0x58] sm:$0xf0]  ;;  %v2157_v14 = vor.u32 %v2952_v1, %v2154_v4 }
  0x8e   :  { %1531 = vmatpush.bf16.msra.mxu0 %v2761_v8  ;;  %1499 = vmatpush.bf16.msra.mxu1 %v2601_v12  ;;  %v2713_v41 = vor.u32 %v3094_v32, %v2712_v31  ;;  %v2552_v43 = vld [vmem:[%s4584_s1 + $0x468] sm:$0xf]  ;;  %v3054_v44 = vld [vmem:[%s4584_s1 + $0x474] sm:$0xf0]  ;;  %v2920_v12 = vld [vmem:[%s4584_s1 + $0x4c] sm:$0xf] }
  0x8f   :  { %v2696_v45 = vld [vmem:[%s4584_s1 + $0x588] sm:$0xf]  ;;  %v3090_v46 = vld [vmem:[%s4584_s1 + $0x594] sm:$0xf0]  ;;  %v2553_v50 = vor.u32 %v3054_v44, %v2552_v43  ;;  %v2138_v17 = vld [vmem:[%s4584_s1 + $0x138] sm:$0xf0]  ;;  %v2029_v19 = vor.u32 %v2920_v12, %v2026_v13 }
  0x90   :  { %1467 = vmatmul.bf16.vlgmr.msra.gmra.mxu3 %v3466_v3  ;;  %1493 = vmatmul.bf16.vlgmr.msra.gmra.mxu2 %v3464_v2  ;;  %v2697_v53 = vor.u32 %v3090_v46, %v2696_v45  ;;  %v2536_v55 = vld [vmem:[%s4584_s1 + $0x448] sm:$0xf]  ;;  %v3050_v56 = vld [vmem:[%s4584_s1 + $0x454] sm:$0xf0]  ;;  %v2010_v25 = vld [vmem:[%s4584_s1 + $0x38] sm:$0xf0] }
  0x91   :  { %1511 = vmatpush.bf16.msrb.mxu3 %v2745_v15  ;;  %1537 = vmatpush.bf16.msrb.mxu2 %v2109_v16  ;;  %v2680_v57 = vld [vmem:[%s4584_s1 + $0x568] sm:$0xf]  ;;  %v3086_v59 = vld [vmem:[%s4584_s1 + $0x574] sm:$0xf0]  ;;  %v2537_v0 = vor.u32 %v3050_v56, %v2536_v55  ;;  %v2948_v16 = vld [vmem:[%s4584_s1 + $0x12c] sm:$0xf] }
  0x92   :  { %1550 = vmatpush.bf16.msrb.mxu0 %v2237_v10  ;;  %1500 = vmatpush.bf16.msra.mxu1 %v2585_v24  ;;  %v2681_v6 = vor.u32 %v3086_v59, %v2680_v57  ;;  %v2520_v8 = vld [vmem:[%s4584_s1 + $0x428] sm:$0xf]  ;;  %v3046_v9 = vld [vmem:[%s4584_s1 + $0x434] sm:$0xf0]  ;;  %v2916_v24 = vld [vmem:[%s4584_s1 + $0x2c] sm:$0xf] }
  0x93   :  { %v2664_v10 = vld [vmem:[%s4584_s1 + $0x548] sm:$0xf]  ;;  %v3082_v11 = vld [vmem:[%s4584_s1 + $0x554] sm:$0xf0]  ;;  %v2521_v15 = vor.u32 %v3046_v9, %v2520_v8  ;;  %v3004_v26 = vld [vmem:[%s4584_s1 + $0x2ec] sm:$0xf]  ;;  %v2013_v34 = vor.u32 %v2916_v24, %v2010_v25 }
  0x94   :  { %v2665_v18 = vor.u32 %v3082_v11, %v2664_v10  ;;  %v2504_v20 = vld [vmem:[%s4584_s1 + $0x408] sm:$0xf]  ;;  %v3042_v21 = vld [vmem:[%s4584_s1 + $0x414] sm:$0xf0]  ;;  %v2944_v31 = vld [vmem:[%s4584_s1 + $0x10c] sm:$0xf] }
  0x95   :  { %1512 = vmatpush.bf16.msrb.mxu3 %v2729_v27  ;;  %1538 = vmatpush.bf16.msrb.mxu2 %v2093_v28  ;;  %v2648_v22 = vld [vmem:[%s4584_s1 + $0x528] sm:$0xf]  ;;  %v2362_v27 = vld [vmem:[%s4584_s1 + $0x2f8] sm:$0xf0]  ;;  %v2141_v28 = vor.u32 %v2948_v16, %v2138_v17  ;;  %v2505_v29 = vor.u32 %v3042_v21, %v2504_v20  ;;  %v3000_v43 = vld [vmem:[%s4584_s1 + $0x2cc] sm:$0xf] }
  0x96   :  { %1551 = vmatpush.bf16.msrb.mxu0 %v2221_v23  ;;  %1501 = vmatpush.bf16.msra.mxu1 %v2569_v38  ;;  %v3078_v23 = vld [vmem:[%s4584_s1 + $0x534] sm:$0xf0]  ;;  %v2632_v30 = vld [vmem:[%s4584_s1 + $0x508] sm:$0xf]  ;;  %v2122_v32 = vld [vmem:[%s4584_s1 + $0x118] sm:$0xf0]  ;;  %v2365_v40 = vor.u32 %v3004_v26, %v2362_v27 }
  0x97   :  { %v2649_v33 = vor.u32 %v3078_v23, %v2648_v22  ;;  %v3100_v38 = vld [vmem:[%s4584_s1 + $0x5ec] sm:$0xf]  ;;  %v2746_v39 = vld [vmem:[%s4584_s1 + $0x5f8] sm:$0xf0]  ;;  %v2125_v47 = vor.u32 %v2944_v31, %v2122_v32  ;;  %vm1896_vm1 = vcmask 1041408   ;;  %vm1892_vm2 = vcmask 949248  }
  0x98   :  { %v2346_v44 = vld [vmem:[%s4584_s1 + $0x2d8] sm:$0xf0]  ;;  %v3036_v45 = vld [vmem:[%s4584_s1 + $0x3ec] sm:$0xf]  ;;  %vm1952_vm3 = vcmask 74752   ;;  %s1973_s11 = sshll.u32 %s4588_s5, 4  ;;  %s1974_s11 = int_to_ptr.hbm [resolvable:$true] %s1973_s11 }
  0x99   :  { %1513 = vmatpush.bf16.msrb.mxu3 %v2713_v41  ;;  %1539 = vmatpush.bf16.msrb.mxu2 %v2077_v42  ;;  %v2912_v41 = vld [vmem:[%s4584_s1 + $0xc] sm:$0xf]  ;;  %v1994_v42 = vld [vmem:[%s4584_s1 + $0x18] sm:$0xf0]  ;;  %v2349_v55 = vor.u32 %v3000_v43, %v2346_v44 }
  0x9a   :  { %1552 = vmatpush.bf16.msrb.mxu0 %v2205_v37  ;;  %1502 = vmatpush.bf16.msra.mxu1 %v2553_v50  ;;  %v3074_v37 = vld [vmem:[%s4584_s1 + $0x514] sm:$0xf0]  ;;  %v2490_v46 = vld [vmem:[%s4584_s1 + $0x3f8] sm:$0xf0]  ;;  %v3068_v48 = vld [vmem:[%s4584_s1 + $0x4ec] sm:$0xf]  ;;  %v2749_v50 = vor.u32 %v3100_v38, %v2746_v39  ;;  %v1997_v52 = vor.u32 %v2912_v41, %v1994_v42 }
  0x9b   :  { %2784 = vmatmul.msk.bf16.vlgmr.msra.gmra.mxu0 %vm1260_vm0, %v3595_v5  ;;  %v2633_v51 = vor.u32 %v3074_v37, %v2632_v30  ;;  %v2493_v56 = vor.u32 %v3036_v45, %v2490_v46  ;;  %v2996_v57 = vld [vmem:[%s4584_s1 + $0x2ac] sm:$0xf]  ;;  %v2330_v61 = vld [vmem:[%s4584_s1 + $0x2b8] sm:$0xf0] }
  0x9c   :  { %v3032_v62 = vld [vmem:[%s4584_s1 + $0x3cc] sm:$0xf]  ;;  %v2602_v1 = vld [vmem:[%s4584_s1 + $0x4d8] sm:$0xf0]  ;;  %v2333_v8 = vor.u32 %v2996_v57, %v2330_v61 }
  0x9d   :  { %1514 = vmatpush.bf16.msrb.mxu3 %v2697_v53  ;;  %1540 = vmatpush.bf16.msrb.mxu2 %v2061_v54  ;;  %v3096_v53 = vld [vmem:[%s4584_s1 + $0x5cc] sm:$0xf]  ;;  %v2730_v54 = vld [vmem:[%s4584_s1 + $0x5d8] sm:$0xf0] }
  0x9e   :  { %1553 = vmatpush.bf16.msrb.mxu0 %v2189_v49  ;;  %1503 = vmatpush.bf16.msra.mxu1 %v2537_v0  ;;  %v2618_v49 = vld [vmem:[%s4584_s1 + $0x4f8] sm:$0xf0]  ;;  %v3064_v0 = vld [vmem:[%s4584_s1 + $0x4cc] sm:$0xf]  ;;  %v2733_v4 = vor.u32 %v3096_v53, %v2730_v54 }
  0x9f   :  { %v2621_v59 = vor.u32 %v3068_v48, %v2618_v49  ;;  %v2992_v10 = vld [vmem:[%s4584_s1 + $0x28c] sm:$0xf]  ;;  %v2605_v11 = vor.u32 %v3064_v0, %v2602_v1  ;;  %v2314_v12 = vld [vmem:[%s4584_s1 + $0x298] sm:$0xf0] }
  0xa0   :  { %v3028_v13 = vld [vmem:[%s4584_s1 + $0x3ac] sm:$0xf]  ;;  %v2586_v16 = vld [vmem:[%s4584_s1 + $0x4b8] sm:$0xf0] }
  0xa1   :  { %1515 = vmatpush.bf16.msrb.mxu3 %v2681_v6  ;;  %1541 = vmatpush.bf16.msrb.mxu2 %v2045_v7  ;;  %v3092_v6 = vld [vmem:[%s4584_s1 + $0x5ac] sm:$0xf]  ;;  %v2714_v7 = vld [vmem:[%s4584_s1 + $0x5b8] sm:$0xf0] }
  0xa2   :  { %1554 = vmatpush.bf16.msrb.mxu0 %v2173_v63  ;;  %1504 = vmatpush.bf16.msra.mxu1 %v2521_v15  ;;  %v2474_v63 = vld [vmem:[%s4584_s1 + $0x3d8] sm:$0xf0]  ;;  %v3060_v15 = vld [vmem:[%s4584_s1 + $0x4ac] sm:$0xf]  ;;  %v2717_v17 = vor.u32 %v3092_v6, %v2714_v7 }
  0xa3   :  { %v2477_v9 = vor.u32 %v3032_v62, %v2474_v63  ;;  %v2988_v21 = vld [vmem:[%s4584_s1 + $0x26c] sm:$0xf]  ;;  %v2298_v23 = vld [vmem:[%s4584_s1 + $0x278] sm:$0xf0] }
  0xa4   :  { %v3024_v24 = vld [vmem:[%s4584_s1 + $0x38c] sm:$0xf]  ;;  %v2442_v25 = vld [vmem:[%s4584_s1 + $0x398] sm:$0xf0]  ;;  %v2301_v32 = vor.u32 %v2988_v21, %v2298_v23 }
  0xa5   :  { %1516 = vmatpush.bf16.msrb.mxu3 %v2665_v18  ;;  %1542 = vmatpush.bf16.msrb.mxu2 %v2029_v19  ;;  %v3088_v18 = vld [vmem:[%s4584_s1 + $0x58c] sm:$0xf]  ;;  %v2317_v19 = vor.u32 %v2992_v10, %v2314_v12  ;;  %v2682_v31 = vld [vmem:[%s4584_s1 + $0x578] sm:$0xf0] }
  0xa6   :  { %1555 = vmatpush.bf16.msrb.mxu0 %v2157_v14  ;;  %1505 = vmatpush.bf16.msra.mxu1 %v2505_v29  ;;  %v2458_v14 = vld [vmem:[%s4584_s1 + $0x3b8] sm:$0xf0]  ;;  %v3056_v27 = vld [vmem:[%s4584_s1 + $0x48c] sm:$0xf] }
  0xa7   :  { %v2461_v20 = vor.u32 %v3028_v13, %v2458_v14  ;;  %v3084_v30 = vld [vmem:[%s4584_s1 + $0x56c] sm:$0xf]  ;;  %v2282_v39 = vld [vmem:[%s4584_s1 + $0x258] sm:$0xf0] }
  0xa8   :  { %v4334_v22 = vpop.f32.mrf.mxu0  ;;  %v2426_v41 = vld [vmem:[%s4584_s1 + $0x378] sm:$0xf0]  ;;  %v3052_v42 = vld [vmem:[%s4584_s1 + $0x46c] sm:$0xf]  ;;  %v2685_v44 = vor.u32 %v3084_v30, %v2682_v31 }
  0xa9   :  { %1517 = vmatpush.bf16.msrb.mxu3 %v2649_v33  ;;  %1543 = vmatpush.bf16.msrb.mxu2 %v2013_v34  ;;  %v4345_v26 = vpop.f32.mrf.mxu1  ;;  %v2445_v33 = vor.u32 %v3024_v24, %v2442_v25  ;;  %v2984_v34 = vld [vmem:[%s4584_s1 + $0x24c] sm:$0xf]  ;;  %v2554_v43 = vld [vmem:[%s4584_s1 + $0x478] sm:$0xf0] }
  0xaa   :  { %1556 = vmatpush.bf16.msrb.mxu0 %v2141_v28  ;;  %1563 = vmatpush.bf16.msrb.mxu1 %v2365_v40  ;;  %v2570_v28 = vld [vmem:[%s4584_s1 + $0x498] sm:$0xf0]  ;;  %v3020_v40 = vld [vmem:[%s4584_s1 + $0x36c] sm:$0xf]  ;;  %v2285_v48 = vor.u32 %v2984_v34, %v2282_v39 }
  0xab   :  { %1506 = vmatmul.bf16.vlgmr.msra.gmra.mxu1 %v3650_v35  ;;  %v2573_v38 = vor.u32 %v3056_v27, %v2570_v28  ;;  %v3080_v46 = vld [vmem:[%s4584_s1 + $0x54c] sm:$0xf]  ;;  %v2429_v49 = vor.u32 %v3020_v40, %v2426_v41  ;;  %v2266_v53 = vld [vmem:[%s4584_s1 + $0x238] sm:$0xf0]  ;;  %v3117_v41 = vld [vmem:[%s4586_s3 + $0x30] sm:$0xff] }
  0xac   :  { %v3016_v54 = vld [vmem:[%s4584_s1 + $0x34c] sm:$0xf]  ;;  %v2650_v63 = vld [vmem:[%s4584_s1 + $0x538] sm:$0xf0] }
  0xad   :  { %1518 = vmatpush.bf16.msrb.mxu3 %v2633_v51  ;;  %1544 = vmatpush.bf16.msrb.mxu2 %v1997_v52  ;;  %v2557_v52 = vor.u32 %v3052_v42, %v2554_v43  ;;  %v3048_v57 = vld [vmem:[%s4584_s1 + $0x44c] sm:$0xf]  ;;  %v2250_v6 = vld [vmem:[%s4584_s1 + $0x218] sm:$0xf0] }
  0xae   :  { %1557 = vmatpush.bf16.msrb.mxu0 %v2125_v47  ;;  %1564 = vmatpush.bf16.msrb.mxu1 %v2349_v55  ;;  %v4362_v37 = vpop.f32.mrf.mxu2  ;;  %v2666_v47 = vld [vmem:[%s4584_s1 + $0x558] sm:$0xf0]  ;;  %v3076_v62 = vld [vmem:[%s4584_s1 + $0x52c] sm:$0xf] }
  0xaf   :  { %v4379_v45 = vpop.f32.mrf.mxu3  ;;  %v2410_v55 = vld [vmem:[%s4584_s1 + $0x358] sm:$0xf0]  ;;  %v2669_v61 = vor.u32 %v3080_v46, %v2666_v47  ;;  %v2653_v13 = vor.u32 %v3076_v62, %v2650_v63  ;;  %v3108_v14 = vld [vmem:[%s4584_s1 + $0x62c] sm:$0xf] }
  0xb0   :  { %1519 = vmatmul.bf16.vlgmr.msrb.gmra.mxu3 %v3652_v36  ;;  %1545 = vmatmul.bf16.vlgmr.msrb.gmra.mxu2 %v3456_v60  ;;  %v2589_v60 = vor.u32 %v3060_v15, %v2586_v16  ;;  %v1275_v51 = vpop.f32.mrf.mxu0  ;;  %v2413_v1 = vor.u32 %v3016_v54, %v2410_v55  ;;  %v2394_v10 = vld [vmem:[%s4584_s1 + $0x338] sm:$0xf0]  ;;  %v3008_v23 = vld [vmem:[%s4584_s1 + $0x30c] sm:$0xf] }
  0xb1   :  { %1576 = vmatpush.bf16.msra.mxu3 %v2493_v56  ;;  %1589 = vmatpush.bf16.msra.mxu2 %v2621_v59  ;;  %v1288_v56 = vpop.f32.mrf.mxu1  ;;  %v2538_v59 = vld [vmem:[%s4584_s1 + $0x458] sm:$0xf0]  ;;  %v3040_v25 = vld [vmem:[%s4584_s1 + $0x40c] sm:$0xf] }
  0xb2   :  { %1602 = vmatpush.bf16.msra.mxu0 %v2749_v50  ;;  %1565 = vmatpush.bf16.msrb.mxu1 %v2333_v8  ;;  %v2980_v50 = vld [vmem:[%s4584_s1 + $0x22c] sm:$0xf]  ;;  %v2541_v8 = vor.u32 %v3048_v57, %v2538_v59  ;;  %v2522_v12 = vld [vmem:[%s4584_s1 + $0x438] sm:$0xf0]  ;;  %v3121_v57 = vld [vmem:[%s4586_s3 + $0x50] sm:$0xff] }
  0xb3   :  { %1558 = vmatmul.bf16.vlgmr.msrb.gmra.mxu0 %v3466_v3  ;;  %v2698_v3 = vld [vmem:[%s4584_s1 + $0x598] sm:$0xf0]  ;;  %v2269_v0 = vor.u32 %v2980_v50, %v2266_v53  ;;  %v3120_v62 = vld [vmem:[%s4586_s3 + $0x48] sm:$0xff] }
  0xb4   :  { %v2701_v29 = vor.u32 %v3088_v18, %v2698_v3  ;;  %v2778_v15 = vld [vmem:[%s4584_s1 + $0x638] sm:$0xf0] }
  0xb5   :  { %1577 = vmatpush.bf16.msra.mxu3 %v2477_v9  ;;  %1590 = vmatpush.bf16.msra.mxu2 %v2605_v11  ;;  %v3012_v9 = vld [vmem:[%s4584_s1 + $0x32c] sm:$0xf]  ;;  %v2634_v18 = vld [vmem:[%s4584_s1 + $0x518] sm:$0xf0] }
  0xb6   :  { %1603 = vmatpush.bf16.msra.mxu0 %v2733_v4  ;;  %1566 = vmatpush.bf16.msrb.mxu1 %v2317_v19  ;;  %v2976_v4 = vld [vmem:[%s4584_s1 + $0x20c] sm:$0xf]  ;;  %v1301_v7 = vpop.f32.mrf.mxu2  ;;  %v2397_v19 = vor.u32 %v3012_v9, %v2394_v10  ;;  %v2378_v24 = vld [vmem:[%s4584_s1 + $0x318] sm:$0xf0] }
  0xb7   :  { %v3044_v11 = vld [vmem:[%s4584_s1 + $0x42c] sm:$0xf]  ;;  %v1314_v16 = vpop.f32.mrf.mxu3  ;;  %v2253_v3 = vor.u32 %v2976_v4, %v2250_v6  ;;  %v2506_v27 = vld [vmem:[%s4584_s1 + $0x418] sm:$0xf0] }
  0xb8   :  { %v2525_v21 = vor.u32 %v3044_v11, %v2522_v12  ;;  %v2762_v30 = vld [vmem:[%s4584_s1 + $0x618] sm:$0xf0] }
  0xb9   :  { %1578 = vmatpush.bf16.msra.mxu3 %v2461_v20  ;;  %1591 = vmatpush.bf16.msra.mxu2 %v2589_v60  ;;  %v4444_v20 = vld [vmem:[%s4585_s2] sm:$0xf]  ;;  %v2781_v60 = vor.u32 %v3108_v14, %v2778_v15  ;;  %v3118_v34 = vld [vmem:[%s4586_s3 + $0x38] sm:$0xff] }
  0xba   :  { %1604 = vmatpush.bf16.msra.mxu0 %v2717_v17  ;;  %1567 = vmatpush.bf16.msrb.mxu1 %v2301_v32  ;;  %v3072_v17 = vld [vmem:[%s4584_s1 + $0x50c] sm:$0xf]  ;;  %v252_v31 = vperm.slane %v4444_v20, 0  ;;  %v2381_v32 = vor.u32 %v3008_v23, %v2378_v24  ;;  %v3126_v40 = vld [vmem:[%s4586_s3 + $0x78] sm:$0xff] }
  0xbb   :  { %v2637_v28 = vor.u32 %v3072_v17, %v2634_v18  ;;  %v3122_v53 = vld [vmem:[%s4586_s3 + $0x58] sm:$0xff]  ;;  %v3133_v18 = vld [vmem:[%s4586_s3 + $0xb0] sm:$0xff] }
  0xbc   :  { %v1274_v39 = vadd.f32 %v4334_v22, %v252_v31  ;;  %v3134_v16 = vld [vmem:[%s4586_s3 + $0xb8] sm:$0xff] }
  0xbd   :  { %1579 = vmatpush.bf16.msra.mxu3 %v2445_v33  ;;  %1592 = vmatpush.bf16.msra.mxu2 %v2573_v38  ;;  %v2509_v33 = vor.u32 %v3040_v25, %v2506_v27  ;;  %v3130_v31 = vld [vmem:[%s4586_s3 + $0x98] sm:$0xff] }
  0xbe   :  { %1605 = vmatpush.bf16.msra.mxu0 %v2701_v29  ;;  %1568 = vmatpush.bf16.msrb.mxu1 %v2285_v48  ;;  %v3104_v29 = vld [vmem:[%s4584_s1 + $0x60c] sm:$0xf]  ;;  %v1351_v42 = vpop.f32.mrf.mxu2 }
  0xbf   :  { %v2765_v38 = vor.u32 %v3104_v29, %v2762_v30  ;;  %v3131_v29 = vld [vmem:[%s4586_s3 + $0xa0] sm:$0xff] }
  0xc1   :  { %1580 = vmatpush.bf16.msra.mxu3 %v2429_v49  ;;  %1593 = vmatpush.bf16.msra.mxu2 %v2557_v52  ;;  %v3123_v49 = vld [vmem:[%s4586_s3 + $0x60] sm:$0xff] }
  0xc2   :  { %1606 = vmatpush.bf16.msra.mxu0 %v2685_v44  ;;  %1569 = vmatpush.bf16.msrb.mxu1 %v2269_v0  ;;  %v3116_v44 = vld [vmem:[%s4586_s3 + $0x28] sm:$0xff] }
  0xc4   :  { %v1325_v22 = vpop.f32.mrf.mxu0  ;;  %v1338_v43 = vpop.f32.mrf.mxu1 }
  0xc5   :  { %1581 = vmatpush.bf16.msra.mxu3 %v2413_v1  ;;  %1594 = vmatpush.bf16.msra.mxu2 %v2541_v8  ;;  %v3119_v1 = vld [vmem:[%s4586_s3 + $0x40] sm:$0xff]  ;;  %v253_v8 = vperm.slane %v4444_v20, 1 }
  0xc6   :  { %1607 = vmatpush.bf16.msra.mxu0 %v2669_v61  ;;  %1570 = vmatpush.bf16.msrb.mxu1 %v2253_v3  ;;  %v3111_v61 = vld [vmem:[%s4586_s3] sm:$0xff] }
  0xc9   :  { %1582 = vmatpush.bf16.msra.mxu3 %v2397_v19  ;;  %1595 = vmatpush.bf16.msra.mxu2 %v2525_v21 }
  0xca   :  { %1608 = vmatpush.bf16.msra.mxu0 %v2653_v13  ;;  %1621 = vmatpush.bf16.msra.mxu1 %v2781_v60  ;;  %v3132_v60 = vld [vmem:[%s4586_s3 + $0xa8] sm:$0xff] }
  0xcb   :  { %1571 = vmatmul.bf16.vlgmr.msrb.gmra.mxu1 %v3454_v58  ;;  %v1287_v58 = vadd.f32 %v4345_v26, %v1274_v39  ;;  %v1353_v26 = vpop.f32.mrf.mxu2  ;;  %v1364_v48 = vpop.f32.mrf.mxu3 }
  0xcc   :  { %v1327_v50 = vpop.f32.mrf.mxu0  ;;  %v1340_v51 = vpop.f32.mrf.mxu1  ;;  %v1365_v10 = vadd.f32 %v1364_v48, %v253_v8  ;;  %v3141_v26 = vld [vmem:[%s4586_s3 + $0xf0] sm:$0xff] }
  0xcd   :  { %1583 = vmatpush.bf16.msra.mxu3 %v2381_v32  ;;  %1596 = vmatpush.bf16.msra.mxu2 %v2509_v33  ;;  %v1300_v46 = vadd.f32 %v4362_v37, %v1287_v58  ;;  %v3114_v37 = vld [vmem:[%s4586_s3 + $0x18] sm:$0xff]  ;;  %v3127_v58 = vld [vmem:[%s4586_s3 + $0x80] sm:$0xff] }
  0xce   :  { %1609 = vmatpush.bf16.msra.mxu0 %v2637_v28  ;;  %1622 = vmatpush.bf16.msra.mxu1 %v2765_v38  ;;  %v3139_v50 = vld [vmem:[%s4586_s3 + $0xe0] sm:$0xff] }
  0xcf   :  { %v1313_v47 = vadd.f32 %v4379_v45, %v1300_v46  ;;  %v3113_v45 = vld [vmem:[%s4586_s3 + $0x10] sm:$0xff] }
  0xd0   :  { %1584 = vmatmul.bf16.vlgmr.msra.gmra.mxu3 %v3464_v2  ;;  %1597 = vmatmul.bf16.vlgmr.msra.gmra.mxu2 %v3650_v35  ;;  %v3115_v2 = vld [vmem:[%s4586_s3 + $0x20] sm:$0xff]  ;;  %v3124_v35 = vld [vmem:[%s4586_s3 + $0x68] sm:$0xff] }
  0xd1   :  { %1900 = vmatpush.bf16.msrb.mxu3 %v3118_v34  ;;  %1610 = vmatmul.bf16.vlgmr.msra.gmra.mxu0 %v3652_v36  ;;  %v3125_v36 = vld [vmem:[%s4586_s3 + $0x70] sm:$0xff]  ;;  %v1326_v52 = vadd.f32 %v1325_v22, %v1313_v47  ;;  %v1698_v22 = vld [vmem:[%s4586_s3 + $0xf8] sm:$0x3]  ;;  %v254_v47 = vperm.slane %v4444_v20, 2 }
  0xd2   :  { %1913 = vmatpush.bf16.msrb.mxu1 %v3126_v40  ;;  %1926 = vmatpush.bf16.msrb.mxu2 %v3134_v16  ;;  %v3129_v34 = vld [vmem:[%s4586_s3 + $0x90] sm:$0xff]  ;;  %v3128_v40 = vld [vmem:[%s4586_s3 + $0x88] sm:$0xff] }
  0xd3   :  { %v1339_v54 = vadd.f32 %v1338_v43, %v1326_v52  ;;  %v1366_v55 = vpop.f32.mrf.mxu3  ;;  %v1377_v56 = vpop.f32.mrf.mxu2  ;;  %v1828_v43 = vunpack.c.l.b16 %v1698_v22 }
  0xd4   :  { %v1378_v13 = vadd.f32 %v1377_v56, %v1365_v10  ;;  %v255_v10 = vperm.slane %v4444_v20, 3 }
  0xd5   :  { %1901 = vmatpush.bf16.msrb.mxu3 %v3117_v41  ;;  %v1352_v59 = vadd.f32 %v1351_v42, %v1339_v54  ;;  %v3138_v54 = vld [vmem:[%s4586_s3 + $0xd8] sm:$0xff] }
  0xd6   :  { %1914 = vmatpush.bf16.msrb.mxu1 %v3125_v36  ;;  %1927 = vmatpush.bf16.msrb.mxu2 %v3133_v18  ;;  %v1860_v36 = vpack.c.b16 %v1828_v43, %v1828_v43 }
  0xd7   :  { %v1628_v63 = vmax.f32 %v1352_v59, 0.0 }
  0xd9   :  { %1902 = vmatpush.bf16.msrb.mxu3 %v3116_v44  ;;  %v1632_v4 = vpack.c.bf16 %v1628_v63, %v1628_v63 }
  0xda   :  { %1915 = vmatpush.bf16.msrb.mxu1 %v3124_v35  ;;  %1928 = vmatpush.bf16.msrb.mxu2 %v3132_v60  ;;  %v1898_v35 = vsel %vm1896_vm1, %v1860_v36, 0 }
  0xdb   :  { %2785 = vmatmul.msk.bf16.vlgmr.msra.gmra.mxu1 %vm1260_vm0, %v3595_v5  ;;  %v3112_v5 = vld [vmem:[%s4586_s3 + $0x8] sm:$0xff]  ;;  %v1379_v0 = vpop.f32.mrf.mxu2  ;;  %1939 = vmatpush.bf16.msrb.mxu0 %v1898_v35 }
  0xdc   :  { %v3136_v0 = vld [vmem:[%s4586_s3 + $0xc8] sm:$0xff] }
  0xdd   :  { %1903 = vmatpush.bf16.msrb.mxu3 %v3115_v2 }
  0xde   :  { %1916 = vmatpush.bf16.msrb.mxu1 %v3123_v49  ;;  %1929 = vmatpush.bf16.msrb.mxu2 %v3131_v29 }
  0xdf   :  { %1940 = vmatpush.bf16.msrb.mxu0 %v3141_v26 }
  0xe1   :  { %1904 = vmatpush.bf16.msrb.mxu3 %v3114_v37  ;;  %v3140_v37 = vld [vmem:[%s4586_s3 + $0xe8] sm:$0xff] }
  0xe2   :  { %1917 = vmatpush.bf16.msrb.mxu1 %v3122_v53  ;;  %1930 = vmatpush.bf16.msrb.mxu2 %v3130_v31 }
  0xe3   :  { %1941 = vmatpush.bf16.msrb.mxu0 %v3140_v37 }
  0xe4   :  { %v1390_v6 = vpop.f32.mrf.mxu0  ;;  %v1403_v7 = vpop.f32.mrf.mxu1 }
  0xe5   :  { %1905 = vmatpush.bf16.msrb.mxu3 %v3113_v45  ;;  %v1391_v15 = vadd.f32 %v1390_v6, %v1378_v13  ;;  %v3135_v6 = vld [vmem:[%s4586_s3 + $0xc0] sm:$0xff] }
  0xe6   :  { %1918 = vmatpush.bf16.msrb.mxu1 %v3121_v57  ;;  %1931 = vmatpush.bf16.msrb.mxu2 %v3129_v34  ;;  %v3137_v57 = vld [vmem:[%s4586_s3 + $0xd0] sm:$0xff] }
  0xe7   :  { %v1404_v3 = vadd.f32 %v1403_v7, %v1391_v15  ;;  %1942 = vmatpush.bf16.msrb.mxu0 %v3139_v50 }
  0xe9   :  { %1906 = vmatpush.bf16.msrb.mxu3 %v3112_v5 }
  0xea   :  { %1919 = vmatpush.bf16.msrb.mxu1 %v3120_v62  ;;  %1932 = vmatpush.bf16.msrb.mxu2 %v3128_v40 }
  0xeb   :  { %v1416_v9 = vpop.f32.mrf.mxu3  ;;  %1943 = vmatpush.bf16.msrb.mxu0 %v3138_v54 }
  0xec   :  { %v1392_v11 = vpop.f32.mrf.mxu0  ;;  %v1405_v12 = vpop.f32.mrf.mxu1  ;;  %v1417_v19 = vadd.f32 %v1416_v9, %v1404_v3 }
  0xed   :  { %1907 = vmatpush.bf16.msrb.mxu3 %v3111_v61 }
  0xee   :  { %1920 = vmatpush.bf16.msrb.mxu1 %v3119_v1  ;;  %1933 = vmatpush.bf16.msrb.mxu2 %v3127_v58 }
  0xef   :  { %1944 = vmatpush.bf16.msrb.mxu0 %v3137_v57 }
  0xf0   :  { %1908 = vmatmul.bf16.vlgmr.msrb.gmra.mxu3 %v1632_v4 }
  0xf3   :  { %v1429_v14 = vpop.f32.mrf.mxu2  ;;  %v1418_v17 = vpop.f32.mrf.mxu3  ;;  %1945 = vmatpush.bf16.msrb.mxu0 %v3136_v0 }
  0xf4   :  { %v1430_v23 = vadd.f32 %v1429_v14, %v1417_v19 }
  0xf7   :  { %1946 = vmatpush.bf16.msrb.mxu0 %v3135_v6 }
  0xfb   :  { %v1431_v21 = vpop.f32.mrf.mxu2  ;;  %v1442_v24 = vpop.f32.mrf.mxu3 }
  0xfc   :  { %v1443_v25 = vadd.f32 %v1442_v24, %v1430_v23 }
  0xfe   :  { %v1629_v27 = vmax.f32 %v1443_v25, 0.0 }
 0x100   :  { %v1633_v28 = vpack.c.bf16 %v1629_v27, %v1629_v27 }
 0x102   :  { %1921 = vmatmul.bf16.vlgmr.msrb.gmra.mxu1 %v1633_v28 }
 0x103   :  { %v1444_v32 = vpop.f32.mrf.mxu3 }
 0x104   :  { %v3143_v32 = vld [vmem:[%s4587_s4] ss:$0 sm:$0xff]  ;;  %s3174_s4 = smov [#allocation2]  }
 0x105   :  { %s1971_s8 = sshll.u32 %s3174_s4, 4  ;;  %s1972_s8 = int_to_ptr.vmem [resolvable:$true] %s1971_s8 }
 0x108   :  { %v1481_v30 = vpop.f32.mrf.mxu0  ;;  %v1455_v33 = vpop.f32.mrf.mxu1 }
 0x109   :  { %v1456_v49 = vadd.f32 %v1455_v33, %v254_v47 }
 0x110   :  { %v1483_v38 = vpop.f32.mrf.mxu0  ;;  %v1457_v39 = vpop.f32.mrf.mxu1 }
 0x113   :  { %v1468_v41 = vpop.f32.mrf.mxu3  ;;  %v1494_v42 = vpop.f32.mrf.mxu2 }
 0x114   :  { %v1469_v51 = vadd.f32 %v1468_v41, %v1456_v49 }
 0x116   :  { %v1482_v45 = vadd.f32 %v1481_v30, %v1469_v51 }
 0x118   :  { %v1533_v44 = vpop.f32.mrf.mxu0  ;;  %v1495_v55 = vadd.f32 %v1494_v42, %v1482_v45 }
 0x11b   :  { %v1470_v46 = vpop.f32.mrf.mxu3  ;;  %v1496_v2 = vpop.f32.mrf.mxu2 }
 0x120   :  { %v1535_v48 = vpop.f32.mrf.mxu0 }
 0x128   :  { %v1507_v52 = vpop.f32.mrf.mxu1 }
 0x129   :  { %v1508_v5 = vadd.f32 %v1507_v52, %v1495_v55 }
 0x130   :  { %v1559_v53 = vpop.f32.mrf.mxu0  ;;  %v1509_v56 = vpop.f32.mrf.mxu1 }
 0x133   :  { %v1520_v59 = vpop.f32.mrf.mxu3  ;;  %v1546_v62 = vpop.f32.mrf.mxu2 }
 0x134   :  { %v1521_v61 = vadd.f32 %v1520_v59, %v1508_v5  ;;  %v1547_v12 = vadd.f32 %v1546_v62, %v255_v10 }
 0x136   :  { %v1534_v1 = vadd.f32 %v1533_v44, %v1521_v61  ;;  %v1560_v14 = vadd.f32 %v1559_v53, %v1547_v12 }
 0x138   :  { %v1561_v63 = vpop.f32.mrf.mxu0  ;;  %v1630_v4 = vmax.f32 %v1534_v1, 0.0 }
 0x13a   :  { %v1634_v7 = vpack.c.bf16 %v1630_v4, %v1630_v4 }
 0x13b   :  { %v1522_v8 = vpop.f32.mrf.mxu3  ;;  %v1548_v9 = vpop.f32.mrf.mxu2 }
 0x13c   :  { %1934 = vmatmul.bf16.vlgmr.msrb.gmra.mxu2 %v1634_v7 }
 0x148   :  { %v1572_v11 = vpop.f32.mrf.mxu1 }
 0x149   :  { %v1573_v16 = vadd.f32 %v1572_v11, %v1560_v14 }
 0x14e   :  { %v1611_v13 = vpop.f32.mrf.mxu0 }
 0x150   :  { %v1574_v15 = vpop.f32.mrf.mxu1 }
 0x153   :  { %v1585_v17 = vpop.f32.mrf.mxu3  ;;  %v1598_v3 = vpop.f32.mrf.mxu2 }
 0x154   :  { %v1586_v18 = vadd.f32 %v1585_v17, %v1573_v16 }
 0x156   :  { %v1613_v19 = vpop.f32.mrf.mxu0  ;;  %v1599_v21 = vadd.f32 %v1598_v3, %v1586_v18 }
 0x158   :  { %v1612_v60 = vadd.f32 %v1611_v13, %v1599_v21  ;;  %v1624_v23 = vpop.f32.mrf.mxu1 }
 0x15a   :  { %v1625_v24 = vadd.f32 %v1624_v23, %v1612_v60 }
 0x15b   :  { %v1587_v25 = vpop.f32.mrf.mxu3  ;;  %v1600_v28 = vpop.f32.mrf.mxu2 }
 0x15c   :  { %v1631_v27 = vmax.f32 %v1625_v24, 0.0 }
 0x15e   :  { %v1635_v29 = vpack.c.bf16 %v1631_v27, %v1631_v27 }
 0x160   :  { %2910 = vmatmul.msk.bf16.vlgmr.msrb.gmra.mxu0 %vm1892_vm2, %v1635_v29  ;;  %v1626_v20 = vpop.f32.mrf.mxu1 }
 0x173   :  { %v1909_v30 = vpop.f32.mrf.mxu3 }
 0x174   :  { %v1910_v33 = vadd.f32 %v3143_v32, %v1909_v30 }
 0x17b   :  { %v1911_v31 = vpop.f32.mrf.mxu3 }
 0x17f   :  { %v1922_v34 = vpop.f32.mrf.mxu1 }
 0x180   :  { %v1923_v38 = vadd.f32 %v1922_v34, %v1910_v33 }
 0x187   :  { %v1924_v39 = vpop.f32.mrf.mxu1 }
 0x1bf   :  { %v1935_v40 = vpop.f32.mrf.mxu2 }
 0x1c0   :  { %v1936_v42 = vadd.f32 %v1935_v40, %v1923_v38 }
 0x1c7   :  { %v1937_v41 = vpop.f32.mrf.mxu2 }
 0x1dd   :  { %v1948_v58 = vpop.f32.mrf.mxu0 }
 0x1de   :  { %v1949_v22 = vadd.f32 %v1948_v58, %v1936_v42 }
 0x1e0   :  { %v1953_v43 = vsel %vm1952_vm3, %v1949_v22, -inf }
 0x1e1   :  { %1954 = vmax.xlane.f32.xlu0 %v1953_v43 }
 0x1e5   :  { %v1950_v44 = vpop.f32.mrf.mxu0 }
 0x254   :  { %v1955_v36 = vpop.xlane.xlu0 %1954 }
 0x255   :  { %v1956_v46 = vsub.f32 %v1949_v22, %v1955_v36 }
 0x257   :  { %v1957_v2 = vmul.f32 1.442695, %v1956_v46 }
 0x259   :  { %3144 = vpow2.f32 %v1957_v2 }
 0x25f   :  { %v3145_v35 = vpop.eup %3144 }
 0x260   :  { %v1959_v26 = vsel %vm1952_vm3, %v3145_v35, 0.0 }
 0x261   :  { %1960 = vadd.xlane.f32.xlu0 %v1959_v26 }
 0x2d4   :  { %v1961_v47 = vpop.xlane.xlu0 %1960 }
 0x2d5   :  { %3146 = vlog2.f32 %v1961_v47 }
 0x2db   :  { %v3147_v48 = vpop.eup %3146 }
 0x2dc   :  { %v1963_v49 = vmul.f32 0.6931472, %v3147_v48 }
 0x2de   :  { %v1964_v37 = vsub.f32 %v1956_v46, %v1963_v49 }
 0x2e0   :  { %1965 = vst.msk [vmem:[#allocation2] sm:$0x3] %vm1952_vm3, %v1964_v37 }
 0x2e1   :  { %1976 = dma.vmem_to_hbm [thread:$0]  %s1972_s8, 32, %s1974_s11, [#allocation3]  }
 0x2e2   :  { %3172 = dma.done.wait [#allocation3], 32  }
 0x2e3   :  { %3173 = vsyncadd [#allocation3], 4294967264 }
 0x2e4   :  { %1981 = vsyncpa [#allocation3], 1 }

</bundles_post_ra>
